<compile_context>
chip_gen: v7x
topology: tpu7x:2x2x1
jax: 0.10.0
libtpu: 0.0.40
codegen_flags: <defaults>
</compile_context>

<pallas_src>
import functools

import jax
import jax.numpy as jnp
from jax.experimental import pallas as pl
from jax.experimental.pallas import tpu as pltpu


def _round_up(x, m):
    return ((x + m - 1) // m) * m


# Per-generation tiling: 128x128 output tiles on v5e (4x128^2 MXU), 256 elsewhere.
try:
    _DEV_KIND = jax.devices()[0].device_kind.lower()
except Exception:  # pragma: no cover
    _DEV_KIND = ""
_TM = 128 if "v5" in _DEV_KIND else 256
_TN = _TM
_MULTI_TC = ("v7" in _DEV_KIND) or ("7x" in _DEV_KIND)   # 2 TensorCores per chip
_SMALL_VMEM_LIMIT = 32 * 1024 * 1024


def _pick_kp_tk(K):
    """Pad K and choose the K tile: single step when small, else prefer 512/256."""
    kp = _round_up(K, 128)
    if kp <= 512:
        return kp, kp                      # one K step
    kp512 = _round_up(K, 512)
    if kp512 - kp <= 256:                  # modest zero-padding for fewer steps
        return kp512, 512
    return _round_up(K, 256), 256


def _pick_tiles(M, N):
    tm = min(_TM, _round_up(M, 8))
    tn = min(_TN, _round_up(N, 128))
    if _MULTI_TC and _round_up(M, tm) == tm and _round_up(N, tn) == tn:
        # 1x1 parallel grid would leave one TensorCore idle on v7x: split an axis.
        if _round_up(N, 128) >= 256:
            tn = 128
        elif _round_up(M, 8) >= 16:
            tm = _round_up((M + 1) // 2, 8)
    return tm, tn


def _matmul_vmem_limit(tm, tn, tk, out_bytes, has_res):
    need = (2 * tm * tk * 2          # double-buffered bf16 A tiles
            + 2 * tk * tn * 2        # double-buffered bf16 B tiles
            + 2 * tm * tn * out_bytes
            + tm * tn * 4            # f32 accumulator scratch
            + 4 * tn * 4)            # scale/shift tiles
    if has_res:
        need += 2 * tm * tn * 2
    return int(min(_SMALL_VMEM_LIMIT, max(4 * need, 16 * 1024 * 1024)))


# ----------------------------- Pallas kernels -----------------------------

def _mm_bn_kernel(a_ref, b_ref, s_ref, t_ref, o_ref, acc_ref, *, relu):
    """C tile = A @ B (bf16 -> f32 acc); epilogue: *scale + shift (+ReLU), cast out."""
    @pl.when(pl.program_id(2) == 0)
    def _():
        acc_ref[...] = jnp.zeros_like(acc_ref)

    acc_ref[...] += jnp.dot(a_ref[...], b_ref[...],
                            preferred_element_type=jnp.float32)

    @pl.when(pl.program_id(2) == pl.num_programs(2) - 1)
    def _():
        y = acc_ref[...] * s_ref[...] + t_ref[...]
        if relu:
            y = jnp.maximum(y, 0.0)
        o_ref[...] = y.astype(o_ref.dtype)


def _mm_bn_res_kernel(a_ref, b_ref, s_ref, t_ref, r_ref, o_ref, acc_ref, *, relu):
    """Same as above plus a (bf16) residual add in the epilogue."""
    @pl.when(pl.program_id(2) == 0)
    def _():
        acc_ref[...] = jnp.zeros_like(acc_ref)

    acc_ref[...] += jnp.dot(a_ref[...], b_ref[...],
                            preferred_element_type=jnp.float32)

    @pl.when(pl.program_id(2) == pl.num_programs(2) - 1)
    def _():
        y = acc_ref[...] * s_ref[...] + t_ref[...] + r_ref[...].astype(jnp.float32)
        if relu:
            y = jnp.maximum(y, 0.0)
        o_ref[...] = y.astype(o_ref.dtype)


def _max9_kernel(x_ref, o_ref):
    o_ref[...] = jnp.max(x_ref[...], axis=0)


def _head_kernel(x_ref, w_ref, b_ref, o_ref, *, hw):
    """Fused global-average-pool + fc + bias: x (hw, Np, C) -> logits (Np, NCp)."""
    pooled = jnp.sum(x_ref[...].astype(jnp.float32), axis=0) * (1.0 / hw)
    o_ref[...] = jnp.dot(pooled.astype(jnp.bfloat16), w_ref[...],
                         preferred_element_type=jnp.float32) + b_ref[...]


# ----------------------------- Fused matmul wrapper -----------------------------

def fused_matmul(a, b, scale, shift, residual=None, relu=False,
                 out_dtype=jnp.bfloat16):
    """y = (a @ b) * scale + shift [+ residual] [relu]; a:(M,K) b:(K,N) -> (M,N)."""
    M, K = a.shape
    K2, N = b.shape
    assert K == K2
    tm, tn = _pick_tiles(M, N)
    mp = _round_up(M, tm)
    np_ = _round_up(N, tn)
    kp, tk = _pick_kp_tk(K)

    a_p = a if a.dtype == jnp.bfloat16 else a.astype(jnp.bfloat16)
    if (mp, kp) != (M, K):
        a_p = jnp.pad(a_p, ((0, mp - M), (0, kp - K)))
    b_p = b if b.dtype == jnp.bfloat16 else b.astype(jnp.bfloat16)
    if (kp, np_) != (K, N):
        b_p = jnp.pad(b_p, ((0, kp - K), (0, np_ - N)))
    s_p = jnp.pad(scale.reshape(1, N).astype(jnp.float32), ((0, 0), (0, np_ - N)))
    t_p = jnp.pad(shift.reshape(1, N).astype(jnp.float32), ((0, 0), (0, np_ - N)))

    in_specs = [
        pl.BlockSpec((tm, tk), lambda i, j, k: (i, k)),
        pl.BlockSpec((tk, tn), lambda i, j, k: (k, j)),
        pl.BlockSpec((1, tn), lambda i, j, k: (0, j)),
        pl.BlockSpec((1, tn), lambda i, j, k: (0, j)),
    ]
    args = [a_p, b_p, s_p, t_p]
    if residual is not None:
        r_p = residual if residual.dtype == jnp.bfloat16 else residual.astype(jnp.bfloat16)
        if (mp, np_) != (M, N):
            r_p = jnp.pad(r_p, ((0, mp - M), (0, np_ - N)))
        in_specs.append(pl.BlockSpec((tm, tn), lambda i, j, k: (i, j)))
        args.append(r_p)
        kernel = functools.partial(_mm_bn_res_kernel, relu=relu)
    else:
        kernel = functools.partial(_mm_bn_kernel, relu=relu)

    out_bytes = jnp.dtype(out_dtype).itemsize
    out = pl.pallas_call(
        kernel,
        out_shape=jax.ShapeDtypeStruct((mp, np_), out_dtype),
        grid=(mp // tm, np_ // tn, kp // tk),
        in_specs=in_specs,
        out_specs=pl.BlockSpec((tm, tn), lambda i, j, k: (i, j)),
        scratch_shapes=[pltpu.VMEM((tm, tn), jnp.float32)],
        compiler_params=pltpu.CompilerParams(
            dimension_semantics=("parallel", "parallel", "arbitrary"),
            vmem_limit_bytes=_matmul_vmem_limit(tm, tn, tk, out_bytes,
                                                residual is not None),
        ),
    )(*args)
    if (mp, np_) != (M, N):
        out = out[:M, :N]
    return out


# ----------------------------- Conv / pool / head wrappers -----------------------------

def _bn_scale_shift(bn):
    gamma, beta, mean, var = bn
    scale = gamma * jax.lax.rsqrt(var + 1e-5)
    shift = beta - mean * scale
    return scale, shift


def conv2d_bn(x, w, bn, stride, padding, relu, residual=None):
    """x: (N,H,W,C) bf16, w: (kh,kw,C,O).  bf16 im2col + fused matmul(BN/ReLU/res)."""
    n, h, wdt, c = x.shape
    kh, kw, _, o = w.shape
    ho = (h + 2 * padding - kh) // stride + 1
    wo = (wdt + 2 * padding - kw) // stride + 1
    if kh == 1 and kw == 1 and padding == 0:
        patches = x[:, ::stride, ::stride, :].reshape(n * ho * wo, c)
    else:
        xp = jnp.pad(x, ((0, 0), (padding, padding), (padding, padding), (0, 0)))
        cols = [xp[:, i:i + stride * ho:stride, j:j + stride * wo:stride, :]
                for i in range(kh) for j in range(kw)]
        patches = jnp.stack(cols, axis=3).reshape(n * ho * wo, kh * kw * c)
    scale, shift = _bn_scale_shift(bn)
    res2d = None if residual is None else residual.reshape(n * ho * wo, o)
    y = fused_matmul(patches, w.reshape(kh * kw * c, o), scale, shift,
                     residual=res2d, relu=relu, out_dtype=jnp.bfloat16)
    return y.reshape(n, ho, wo, o)


def maxpool_3x3_s2(x):
    """3x3 stride-2 max pool (pad 1) on bf16 NHWC; Pallas reduce over the 9 taps."""
    n, h, wdt, c = x.shape
    xp = jnp.pad(x, ((0, 0), (1, 1), (1, 1), (0, 0)), constant_values=-jnp.inf)
    ho = (h + 2 - 3) // 2 + 1
    wo = (wdt + 2 - 3) // 2 + 1
    shifts = [xp[:, i:i + 2 * ho:2, j:j + 2 * wo:2, :]
              for i in range(3) for j in range(3)]
    m = n * ho * wo
    stk = jnp.stack(shifts, axis=0).reshape(9, m * c)
    # lane-dense layout: fold channels into a 128-wide last dim when possible
    lane = 128 if (m * c) % 128 == 0 else c
    rows = (m * c) // lane
    stk = stk.reshape(9, rows, lane)
    tr = min(1024, _round_up(rows, 8))
    rows_p = _round_up(rows, tr)
    if rows_p != rows:
        stk = jnp.pad(stk, ((0, 0), (0, rows_p - rows), (0, 0)),
                      constant_values=-jnp.inf)
    out = pl.pallas_call(
        _max9_kernel,
        out_shape=jax.ShapeDtypeStruct((rows_p, lane), x.dtype),
        grid=(rows_p // tr,),
        in_specs=[pl.BlockSpec((9, tr, lane), lambda i: (0, i, 0))],
        out_specs=pl.BlockSpec((tr, lane), lambda i: (i, 0)),
        compiler_params=pltpu.CompilerParams(
            dimension_semantics=("parallel",),
            vmem_limit_bytes=_SMALL_VMEM_LIMIT,
        ),
    )(stk)
    return out[:rows].reshape(n, ho, wo, c)


def head_gap_fc(x, fc_w, fc_b, num_classes):
    """Fused global-average-pool + fc + bias in one Pallas kernel -> f32 logits."""
    n, h, w, c = x.shape
    hw = h * w
    n_pad = _round_up(n, 8)
    ncp = _round_up(num_classes, 128)
    xr = jnp.transpose(x.reshape(n, hw, c), (1, 0, 2))            # (hw, n, c)
    if n_pad != n:
        xr = jnp.pad(xr, ((0, 0), (0, n_pad - n), (0, 0)))
    w_p = jnp.pad(fc_w.astype(jnp.bfloat16), ((0, 0), (0, ncp - num_classes)))
    b_p = jnp.pad(fc_b.reshape(1, num_classes).astype(jnp.float32),
                  ((0, 0), (0, ncp - num_classes)))
    out = pl.pallas_call(
        functools.partial(_head_kernel, hw=hw),
        out_shape=jax.ShapeDtypeStruct((n_pad, ncp), jnp.float32),
        grid=(1,),
        in_specs=[pl.BlockSpec((hw, n_pad, c), lambda i: (0, 0, 0)),
                  pl.BlockSpec((c, ncp), lambda i: (0, 0)),
                  pl.BlockSpec((1, ncp), lambda i: (0, 0))],
        out_specs=pl.BlockSpec((n_pad, ncp), lambda i: (0, 0)),
        compiler_params=pltpu.CompilerParams(
            dimension_semantics=("arbitrary",),
            vmem_limit_bytes=_SMALL_VMEM_LIMIT,
        ),
    )(xr, w_p, b_p)
    return out[:n, :num_classes]


# ----------------------------- ResNet-18 forward -----------------------------

def basic_block(x, p, stride):
    out = conv2d_bn(x, p["conv1_w"], p["bn1"], stride, 1, relu=True)
    if "down_w" in p:
        ident = conv2d_bn(x, p["down_w"], p["down_bn"], stride, 0, relu=False)
    else:
        ident = x
    # conv2 + BN + residual add + ReLU fused into one matmul epilogue
    out = conv2d_bn(out, p["conv2_w"], p["bn2"], 1, 1, relu=True, residual=ident)
    return out


def resnet18_forward(x_nchw, params):
    # NCHW -> NHWC; cast to bf16 ONCE so patches / outputs stay bf16 throughout.
    x = jnp.transpose(x_nchw, (0, 2, 3, 1)).astype(jnp.bfloat16)
    x = conv2d_bn(x, params["conv1_w"], params["bn1"], 2, 3, relu=True)  # 7x7/2 + BN + ReLU
    x = maxpool_3x3_s2(x)                                                # 3x3/2
    for lname, stride in (("layer1", 1), ("layer2", 2), ("layer3", 2), ("layer4", 2)):
        blocks = params[lname]
        x = basic_block(x, blocks[0], stride)
        x = basic_block(x, blocks[1], 1)
    # Fused global-avgpool + fc + bias (single kernel; 1/hw folded in-kernel).
    return head_gap_fc(x, params["fc_w"], params["fc_b"], params["fc_w"].shape[1])


# ----------------------------- Deterministic parameter init -----------------------------

def init_params(key, num_classes=2):
    keys = iter(jax.random.split(key, 64))

    def conv_init(k, kh, kw, cin, cout):
        fan_in = kh * kw * cin
        return jax.random.normal(k, (kh, kw, cin, cout), jnp.float32) * (2.0 / fan_in) ** 0.5

    def bn_init(c):
        # (gamma, beta, running_mean, running_var) -- eval-mode BN
        return (jnp.ones((c,), jnp.float32), jnp.zeros((c,), jnp.float32),
                jnp.zeros((c,), jnp.float32), jnp.ones((c,), jnp.float32))

    params = {
        "conv1_w": conv_init(next(keys), 7, 7, 3, 64),
        "bn1": bn_init(64),
    }
    in_c = 64
    for li, (c, stride) in enumerate([(64, 1), (128, 2), (256, 2), (512, 2)], start=1):
        blocks = []
        for b in range(2):
            s = stride if b == 0 else 1
            cin = in_c if b == 0 else c
            bp = {
                "conv1_w": conv_init(next(keys), 3, 3, cin, c),
                "bn1": bn_init(c),
                "conv2_w": conv_init(next(keys), 3, 3, c, c),
                "bn2": bn_init(c),
            }
            if b == 0 and (s != 1 or cin != c):
                bp["down_w"] = conv_init(next(keys), 1, 1, cin, c)
                bp["down_bn"] = bn_init(c)
            blocks.append(bp)
        params[f"layer{li}"] = blocks
        in_c = c
    params["fc_w"] = jax.random.normal(next(keys), (512, num_classes), jnp.float32) * (1.0 / 512.0) ** 0.5
    params["fc_b"] = jnp.zeros((num_classes,), jnp.float32)
    return params


if __name__ == "__main__":
    key = jax.random.PRNGKey(0)
    pkey, xkey = jax.random.split(key)
    params = init_params(pkey, num_classes=2)
    x = jax.random.normal(xkey, (2, 3, 32, 32), jnp.float32)  # NCHW, like PyTorch
    fwd = jax.jit(resnet18_forward)
    logits = fwd(x, params)
    jax.block_until_ready(logits)
    assert logits.shape == (2, 2) and logits.dtype == jnp.float32
    print("KERNEL_OK")
</pallas_src>

<mosaic_0001>
module attributes {stable_mosaic.version = 11 : i64} {
  func.func @_mm_bn_kernel(%arg0: i32, %arg1: i32, %arg2: i32, %arg3: memref<256x256xbf16, #tpu.memory_space<vmem>>, %arg4: memref<256x128xbf16, #tpu.memory_space<vmem>>, %arg5: memref<1x128xf32, #tpu.memory_space<vmem>>, %arg6: memref<1x128xf32, #tpu.memory_space<vmem>>, %arg7: memref<256x128xbf16, #tpu.memory_space<vmem>>, %arg8: memref<256x128xf32, #tpu.memory_space<vmem>>) attributes {dimension_semantics = [#tpu.dimension_semantics<parallel>, #tpu.dimension_semantics<parallel>, #tpu.dimension_semantics<arbitrary>], iteration_bounds = array<i64: 2, 1, 1>, scalar_prefetch = 0 : i64, scratch_operands = 1 : i64, tpu.core_type = #tpu.core_type<tc>, window_params = [{transform_indices = @transform_0, window_bounds = array<i64: 256, 256>}, {transform_indices = @transform_1, window_bounds = array<i64: 256, 128>}, {transform_indices = @transform_2, window_bounds = array<i64: 1, 128>}, {transform_indices = @transform_3, window_bounds = array<i64: 1, 128>}, {transform_indices = @transform_4, window_bounds = array<i64: 256, 128>}]} {
    %c0_i32 = arith.constant 0 : i32
    %0 = arith.cmpi eq, %arg2, %c0_i32 : i32
    %1 = arith.extui %0 : i1 to i32
    %c0_i32_0 = arith.constant 0 : i32
    %2 = arith.cmpi ne, %1, %c0_i32_0 : i32
    scf.if %2 {
      %cst_10 = arith.constant 0.000000e+00 : f32
      %12 = vector.broadcast %cst_10 : f32 to vector<256x128xf32>
      %c0_11 = arith.constant 0 : index
      %c0_12 = arith.constant 0 : index
      %13 = vector.load %arg8[%c0_11, %c0_12] : memref<256x128xf32, #tpu.memory_space<vmem>>, vector<256x128xf32>
      tpu.vector_store %arg8[%c0_11, %c0_12], %12 {strides = array<i32>} : memref<256x128xf32, #tpu.memory_space<vmem>>, vector<256x128xf32>,
    } else {
    }
    %c0 = arith.constant 0 : index
    %c0_1 = arith.constant 0 : index
    %3 = vector.load %arg8[%c0, %c0_1] : memref<256x128xf32, #tpu.memory_space<vmem>>, vector<256x128xf32>
    %c0_2 = arith.constant 0 : index
    %c0_3 = arith.constant 0 : index
    %4 = vector.load %arg3[%c0_2, %c0_3] : memref<256x256xbf16, #tpu.memory_space<vmem>>, vector<256x256xbf16>
    %c0_4 = arith.constant 0 : index
    %c0_5 = arith.constant 0 : index
    %5 = vector.load %arg4[%c0_4, %c0_5] : memref<256x128xbf16, #tpu.memory_space<vmem>>, vector<256x128xbf16>
    %cst = arith.constant dense<0.000000e+00> : vector<256x128xf32>
    %6 = tpu.matmul %4, %5, %cst {dimension_numbers = #tpu.dot_dimension_numbers<[1], [0], [0], [1], [0, 0, 1, 1], [], []>} : vector<256x256xbf16>, vector<256x128xbf16>, vector<256x128xf32> -> vector<256x128xf32>
    %7 = arith.addf %3, %6 : vector<256x128xf32>
    %c0_6 = arith.constant 0 : index
    %c0_7 = arith.constant 0 : index
    %8 = vector.load %arg8[%c0_6, %c0_7] : memref<256x128xf32, #tpu.memory_space<vmem>>, vector<256x128xf32>
    tpu.vector_store %arg8[%c0_6, %c0_7], %7 {strides = array<i32>} : memref<256x128xf32, #tpu.memory_space<vmem>>, vector<256x128xf32>,
    %c0_i32_8 = arith.constant 0 : i32
    %9 = arith.cmpi eq, %arg2, %c0_i32_8 : i32
    %10 = arith.extui %9 : i1 to i32
    %c0_i32_9 = arith.constant 0 : i32
    %11 = arith.cmpi ne, %10, %c0_i32_9 : i32
    scf.if %11 {
      %c0_10 = arith.constant 0 : index
      %c0_11 = arith.constant 0 : index
      %12 = vector.load %arg8[%c0_10, %c0_11] : memref<256x128xf32, #tpu.memory_space<vmem>>, vector<256x128xf32>
      %c0_12 = arith.constant 0 : index
      %c0_13 = arith.constant 0 : index
      %13 = vector.load %arg5[%c0_12, %c0_13] : memref<1x128xf32, #tpu.memory_space<vmem>>, vector<1x128xf32>
      %14 = vector.broadcast %13 : vector<1x128xf32> to vector<256x128xf32>
      %15 = arith.mulf %12, %14 : vector<256x128xf32>
      %c0_14 = arith.constant 0 : index
      %c0_15 = arith.constant 0 : index
      %16 = vector.load %arg6[%c0_14, %c0_15] : memref<1x128xf32, #tpu.memory_space<vmem>>, vector<1x128xf32>
      %17 = vector.broadcast %16 : vector<1x128xf32> to vector<256x128xf32>
      %18 = arith.addf %15, %17 : vector<256x128xf32>
      %cst_16 = arith.constant 0.000000e+00 : f32
      %19 = vector.broadcast %cst_16 : f32 to vector<256x128xf32>
      %20 = arith.maximumf %18, %19 : vector<256x128xf32>
      %21 = arith.truncf %20 : vector<256x128xf32> to vector<256x128xbf16>
      %c0_17 = arith.constant 0 : index
      %c0_18 = arith.constant 0 : index
      %22 = vector.load %arg7[%c0_17, %c0_18] : memref<256x128xbf16, #tpu.memory_space<vmem>>, vector<256x128xbf16>
      tpu.vector_store %arg7[%c0_17, %c0_18], %21 {strides = array<i32>} : memref<256x128xbf16, #tpu.memory_space<vmem>>, vector<256x128xbf16>,
    } else {
    }
    return
  }
  func.func @transform_0(%arg0: i32, %arg1: i32, %arg2: i32) -> (i32, i32) {
    %c0_i32 = arith.constant 0 : i32
    return %arg0, %arg2 : i32, i32
  }
  func.func @transform_1(%arg0: i32, %arg1: i32, %arg2: i32) -> (i32, i32) {
    %c0_i32 = arith.constant 0 : i32
    return %arg2, %arg1 : i32, i32
  }
  func.func @transform_2(%arg0: i32, %arg1: i32, %arg2: i32) -> (i32, i32) {
    %c0_i32 = arith.constant 0 : i32
    %c0_i32_0 = arith.constant 0 : i32
    return %c0_i32, %arg1 : i32, i32
  }
  func.func @transform_3(%arg0: i32, %arg1: i32, %arg2: i32) -> (i32, i32) {
    %c0_i32 = arith.constant 0 : i32
    %c0_i32_0 = arith.constant 0 : i32
    return %c0_i32, %arg1 : i32, i32
  }
  func.func @transform_4(%arg0: i32, %arg1: i32, %arg2: i32) -> (i32, i32) {
    %c0_i32 = arith.constant 0 : i32
    return %arg0, %arg1 : i32, i32
  }
}

module attributes {stable_mosaic.version = 11 : i64} {
  func.func @_max9_kernel(%arg0: i32, %arg1: memref<9x64x128xbf16, #tpu.memory_space<vmem>>, %arg2: memref<64x128xbf16, #tpu.memory_space<vmem>>) attributes {dimension_semantics = [#tpu.dimension_semantics<parallel>], iteration_bounds = array<i64: 1>, scalar_prefetch = 0 : i64, scratch_operands = 0 : i64, tpu.core_type = #tpu.core_type<tc>, window_params = [{transform_indices = @transform_0, window_bounds = array<i64: 9, 64, 128>}, {transform_indices = @transform_1, window_bounds = array<i64: 64, 128>}]} {
    %c0 = arith.constant 0 : index
    %c0_0 = arith.constant 0 : index
    %c0_1 = arith.constant 0 : index
    %0 = vector.load %arg1[%c0, %c0_0, %c0_1] : memref<9x64x128xbf16, #tpu.memory_space<vmem>>, vector<9x64x128xbf16>
    %cst = arith.constant dense<0xFF80> : vector<64x128xbf16>
    %1 = vector.multi_reduction <maximumf>, %0, %cst [0] : vector<9x64x128xbf16> to vector<64x128xbf16>
    %c0_2 = arith.constant 0 : index
    %c0_3 = arith.constant 0 : index
    %2 = vector.load %arg2[%c0_2, %c0_3] : memref<64x128xbf16, #tpu.memory_space<vmem>>, vector<64x128xbf16>
    tpu.vector_store %arg2[%c0_2, %c0_3], %1 {strides = array<i32>} : memref<64x128xbf16, #tpu.memory_space<vmem>>, vector<64x128xbf16>,
    return
  }
  func.func @transform_0(%arg0: i32) -> (i32, i32, i32) {
    %c0_i32 = arith.constant 0 : i32
    %c0_i32_0 = arith.constant 0 : i32
    %c0_i32_1 = arith.constant 0 : i32
    return %c0_i32, %arg0, %c0_i32_0 : i32, i32, i32
  }
  func.func @transform_1(%arg0: i32) -> (i32, i32) {
    %c0_i32 = arith.constant 0 : i32
    %c0_i32_0 = arith.constant 0 : i32
    return %arg0, %c0_i32 : i32, i32
  }
}

module attributes {stable_mosaic.version = 11 : i64} {
  func.func @_mm_bn_kernel(%arg0: i32, %arg1: i32, %arg2: i32, %arg3: memref<128x256xbf16, #tpu.memory_space<vmem>>, %arg4: memref<256x128xbf16, #tpu.memory_space<vmem>>, %arg5: memref<1x128xf32, #tpu.memory_space<vmem>>, %arg6: memref<1x128xf32, #tpu.memory_space<vmem>>, %arg7: memref<128x128xbf16, #tpu.memory_space<vmem>>, %arg8: memref<128x128xf32, #tpu.memory_space<vmem>>) attributes {dimension_semantics = [#tpu.dimension_semantics<parallel>, #tpu.dimension_semantics<parallel>, #tpu.dimension_semantics<arbitrary>], iteration_bounds = array<i64: 1, 1, 3>, scalar_prefetch = 0 : i64, scratch_operands = 1 : i64, tpu.core_type = #tpu.core_type<tc>, window_params = [{transform_indices = @transform_0, window_bounds = array<i64: 128, 256>}, {transform_indices = @transform_1, window_bounds = array<i64: 256, 128>}, {transform_indices = @transform_2, window_bounds = array<i64: 1, 128>}, {transform_indices = @transform_3, window_bounds = array<i64: 1, 128>}, {transform_indices = @transform_4, window_bounds = array<i64: 128, 128>}]} {
    %c0_i32 = arith.constant 0 : i32
    %0 = arith.cmpi eq, %arg2, %c0_i32 : i32
    %1 = arith.extui %0 : i1 to i32
    %c0_i32_0 = arith.constant 0 : i32
    %2 = arith.cmpi ne, %1, %c0_i32_0 : i32
    scf.if %2 {
      %cst_9 = arith.constant 0.000000e+00 : f32
      %12 = vector.broadcast %cst_9 : f32 to vector<128x128xf32>
      %c0_10 = arith.constant 0 : index
      %c0_11 = arith.constant 0 : index
      %13 = vector.load %arg8[%c0_10, %c0_11] : memref<128x128xf32, #tpu.memory_space<vmem>>, vector<128x128xf32>
      tpu.vector_store %arg8[%c0_10, %c0_11], %12 {strides = array<i32>} : memref<128x128xf32, #tpu.memory_space<vmem>>, vector<128x128xf32>,
    } else {
    }
    %c0 = arith.constant 0 : index
    %c0_1 = arith.constant 0 : index
    %3 = vector.load %arg8[%c0, %c0_1] : memref<128x128xf32, #tpu.memory_space<vmem>>, vector<128x128xf32>
    %c0_2 = arith.constant 0 : index
    %c0_3 = arith.constant 0 : index
    %4 = vector.load %arg3[%c0_2, %c0_3] : memref<128x256xbf16, #tpu.memory_space<vmem>>, vector<128x256xbf16>
    %c0_4 = arith.constant 0 : index
    %c0_5 = arith.constant 0 : index
    %5 = vector.load %arg4[%c0_4, %c0_5] : memref<256x128xbf16, #tpu.memory_space<vmem>>, vector<256x128xbf16>
    %cst = arith.constant dense<0.000000e+00> : vector<128x128xf32>
    %6 = tpu.matmul %4, %5, %cst {dimension_numbers = #tpu.dot_dimension_numbers<[1], [0], [0], [1], [0, 0, 1, 1], [], []>} : vector<128x256xbf16>, vector<256x128xbf16>, vector<128x128xf32> -> vector<128x128xf32>
    %7 = arith.addf %3, %6 : vector<128x128xf32>
    %c0_6 = arith.constant 0 : index
    %c0_7 = arith.constant 0 : index
    %8 = vector.load %arg8[%c0_6, %c0_7] : memref<128x128xf32, #tpu.memory_space<vmem>>, vector<128x128xf32>
    tpu.vector_store %arg8[%c0_6, %c0_7], %7 {strides = array<i32>} : memref<128x128xf32, #tpu.memory_space<vmem>>, vector<128x128xf32>,
    %c2_i32 = arith.constant 2 : i32
    %9 = arith.cmpi eq, %arg2, %c2_i32 : i32
    %10 = arith.extui %9 : i1 to i32
    %c0_i32_8 = arith.constant 0 : i32
    %11 = arith.cmpi ne, %10, %c0_i32_8 : i32
    scf.if %11 {
      %c0_9 = arith.constant 0 : index
      %c0_10 = arith.constant 0 : index
      %12 = vector.load %arg8[%c0_9, %c0_10] : memref<128x128xf32, #tpu.memory_space<vmem>>, vector<128x128xf32>
      %c0_11 = arith.constant 0 : index
      %c0_12 = arith.constant 0 : index
      %13 = vector.load %arg5[%c0_11, %c0_12] : memref<1x128xf32, #tpu.memory_space<vmem>>, vector<1x128xf32>
      %14 = vector.broadcast %13 : vector<1x128xf32> to vector<128x128xf32>
      %15 = arith.mulf %12, %14 : vector<128x128xf32>
      %c0_13 = arith.constant 0 : index
      %c0_14 = arith.constant 0 : index
      %16 = vector.load %arg6[%c0_13, %c0_14] : memref<1x128xf32, #tpu.memory_space<vmem>>, vector<1x128xf32>
      %17 = vector.broadcast %16 : vector<1x128xf32> to vector<128x128xf32>
      %18 = arith.addf %15, %17 : vector<128x128xf32>
      %cst_15 = arith.constant 0.000000e+00 : f32
      %19 = vector.broadcast %cst_15 : f32 to vector<128x128xf32>
      %20 = arith.maximumf %18, %19 : vector<128x128xf32>
      %21 = arith.truncf %20 : vector<128x128xf32> to vector<128x128xbf16>
      %c0_16 = arith.constant 0 : index
      %c0_17 = arith.constant 0 : index
      %22 = vector.load %arg7[%c0_16, %c0_17] : memref<128x128xbf16, #tpu.memory_space<vmem>>, vector<128x128xbf16>
      tpu.vector_store %arg7[%c0_16, %c0_17], %21 {strides = array<i32>} : memref<128x128xbf16, #tpu.memory_space<vmem>>, vector<128x128xbf16>,
    } else {
    }
    return
  }
  func.func @transform_0(%arg0: i32, %arg1: i32, %arg2: i32) -> (i32, i32) {
    %c0_i32 = arith.constant 0 : i32
    return %arg0, %arg2 : i32, i32
  }
  func.func @transform_1(%arg0: i32, %arg1: i32, %arg2: i32) -> (i32, i32) {
    %c0_i32 = arith.constant 0 : i32
    return %arg2, %arg1 : i32, i32
  }
  func.func @transform_2(%arg0: i32, %arg1: i32, %arg2: i32) -> (i32, i32) {
    %c0_i32 = arith.constant 0 : i32
    %c0_i32_0 = arith.constant 0 : i32
    return %c0_i32, %arg1 : i32, i32
  }
  func.func @transform_3(%arg0: i32, %arg1: i32, %arg2: i32) -> (i32, i32) {
    %c0_i32 = arith.constant 0 : i32
    %c0_i32_0 = arith.constant 0 : i32
    return %c0_i32, %arg1 : i32, i32
  }
  func.func @transform_4(%arg0: i32, %arg1: i32, %arg2: i32) -> (i32, i32) {
    %c0_i32 = arith.constant 0 : i32
    return %arg0, %arg1 : i32, i32
  }
}

module attributes {stable_mosaic.version = 11 : i64} {
  func.func @_mm_bn_res_kernel(%arg0: i32, %arg1: i32, %arg2: i32, %arg3: memref<128x256xbf16, #tpu.memory_space<vmem>>, %arg4: memref<256x128xbf16, #tpu.memory_space<vmem>>, %arg5: memref<1x128xf32, #tpu.memory_space<vmem>>, %arg6: memref<1x128xf32, #tpu.memory_space<vmem>>, %arg7: memref<128x128xbf16, #tpu.memory_space<vmem>>, %arg8: memref<128x128xbf16, #tpu.memory_space<vmem>>, %arg9: memref<128x128xf32, #tpu.memory_space<vmem>>) attributes {dimension_semantics = [#tpu.dimension_semantics<parallel>, #tpu.dimension_semantics<parallel>, #tpu.dimension_semantics<arbitrary>], iteration_bounds = array<i64: 1, 1, 3>, scalar_prefetch = 0 : i64, scratch_operands = 1 : i64, tpu.core_type = #tpu.core_type<tc>, window_params = [{transform_indices = @transform_0, window_bounds = array<i64: 128, 256>}, {transform_indices = @transform_1, window_bounds = array<i64: 256, 128>}, {transform_indices = @transform_2, window_bounds = array<i64: 1, 128>}, {transform_indices = @transform_3, window_bounds = array<i64: 1, 128>}, {transform_indices = @transform_4, window_bounds = array<i64: 128, 128>}, {transform_indices = @transform_5, window_bounds = array<i64: 128, 128>}]} {
    %c0_i32 = arith.constant 0 : i32
    %0 = arith.cmpi eq, %arg2, %c0_i32 : i32
    %1 = arith.extui %0 : i1 to i32
    %c0_i32_0 = arith.constant 0 : i32
    %2 = arith.cmpi ne, %1, %c0_i32_0 : i32
    scf.if %2 {
      %cst_9 = arith.constant 0.000000e+00 : f32
      %12 = vector.broadcast %cst_9 : f32 to vector<128x128xf32>
      %c0_10 = arith.constant 0 : index
      %c0_11 = arith.constant 0 : index
      %13 = vector.load %arg9[%c0_10, %c0_11] : memref<128x128xf32, #tpu.memory_space<vmem>>, vector<128x128xf32>
      tpu.vector_store %arg9[%c0_10, %c0_11], %12 {strides = array<i32>} : memref<128x128xf32, #tpu.memory_space<vmem>>, vector<128x128xf32>,
    } else {
    }
    %c0 = arith.constant 0 : index
    %c0_1 = arith.constant 0 : index
    %3 = vector.load %arg9[%c0, %c0_1] : memref<128x128xf32, #tpu.memory_space<vmem>>, vector<128x128xf32>
    %c0_2 = arith.constant 0 : index
    %c0_3 = arith.constant 0 : index
    %4 = vector.load %arg3[%c0_2, %c0_3] : memref<128x256xbf16, #tpu.memory_space<vmem>>, vector<128x256xbf16>
    %c0_4 = arith.constant 0 : index
    %c0_5 = arith.constant 0 : index
    %5 = vector.load %arg4[%c0_4, %c0_5] : memref<256x128xbf16, #tpu.memory_space<vmem>>, vector<256x128xbf16>
    %cst = arith.constant dense<0.000000e+00> : vector<128x128xf32>
    %6 = tpu.matmul %4, %5, %cst {dimension_numbers = #tpu.dot_dimension_numbers<[1], [0], [0], [1], [0, 0, 1, 1], [], []>} : vector<128x256xbf16>, vector<256x128xbf16>, vector<128x128xf32> -> vector<128x128xf32>
    %7 = arith.addf %3, %6 : vector<128x128xf32>
    %c0_6 = arith.constant 0 : index
    %c0_7 = arith.constant 0 : index
    %8 = vector.load %arg9[%c0_6, %c0_7] : memref<128x128xf32, #tpu.memory_space<vmem>>, vector<128x128xf32>
    tpu.vector_store %arg9[%c0_6, %c0_7], %7 {strides = array<i32>} : memref<128x128xf32, #tpu.memory_space<vmem>>, vector<128x128xf32>,
    %c2_i32 = arith.constant 2 : i32
    %9 = arith.cmpi eq, %arg2, %c2_i32 : i32
    %10 = arith.extui %9 : i1 to i32
    %c0_i32_8 = arith.constant 0 : i32
    %11 = arith.cmpi ne, %10, %c0_i32_8 : i32
    scf.if %11 {
      %c0_9 = arith.constant 0 : index
      %c0_10 = arith.constant 0 : index
      %12 = vector.load %arg9[%c0_9, %c0_10] : memref<128x128xf32, #tpu.memory_space<vmem>>, vector<128x128xf32>
      %c0_11 = arith.constant 0 : index
      %c0_12 = arith.constant 0 : index
      %13 = vector.load %arg5[%c0_11, %c0_12] : memref<1x128xf32, #tpu.memory_space<vmem>>, vector<1x128xf32>
      %14 = vector.broadcast %13 : vector<1x128xf32> to vector<128x128xf32>
      %15 = arith.mulf %12, %14 : vector<128x128xf32>
      %c0_13 = arith.constant 0 : index
      %c0_14 = arith.constant 0 : index
      %16 = vector.load %arg6[%c0_13, %c0_14] : memref<1x128xf32, #tpu.memory_space<vmem>>, vector<1x128xf32>
      %17 = vector.broadcast %16 : vector<1x128xf32> to vector<128x128xf32>
      %18 = arith.addf %15, %17 : vector<128x128xf32>
      %c0_15 = arith.constant 0 : index
      %c0_16 = arith.constant 0 : index
      %19 = vector.load %arg7[%c0_15, %c0_16] : memref<128x128xbf16, #tpu.memory_space<vmem>>, vector<128x128xbf16>
      %20 = arith.extf %19 : vector<128x128xbf16> to vector<128x128xf32>
      %21 = arith.addf %18, %20 : vector<128x128xf32>
      %cst_17 = arith.constant 0.000000e+00 : f32
      %22 = vector.broadcast %cst_17 : f32 to vector<128x128xf32>
      %23 = arith.maximumf %21, %22 : vector<128x128xf32>
      %24 = arith.truncf %23 : vector<128x128xf32> to vector<128x128xbf16>
      %c0_18 = arith.constant 0 : index
      %c0_19 = arith.constant 0 : index
      %25 = vector.load %arg8[%c0_18, %c0_19] : memref<128x128xbf16, #tpu.memory_space<vmem>>, vector<128x128xbf16>
      tpu.vector_store %arg8[%c0_18, %c0_19], %24 {strides = array<i32>} : memref<128x128xbf16, #tpu.memory_space<vmem>>, vector<128x128xbf16>,
    } else {
    }
    return
  }
  func.func @transform_0(%arg0: i32, %arg1: i32, %arg2: i32) -> (i32, i32) {
    %c0_i32 = arith.constant 0 : i32
    return %arg0, %arg2 : i32, i32
  }
  func.func @transform_1(%arg0: i32, %arg1: i32, %arg2: i32) -> (i32, i32) {
    %c0_i32 = arith.constant 0 : i32
    return %arg2, %arg1 : i32, i32
  }
  func.func @transform_2(%arg0: i32, %arg1: i32, %arg2: i32) -> (i32, i32) {
    %c0_i32 = arith.constant 0 : i32
    %c0_i32_0 = arith.constant 0 : i32
    return %c0_i32, %arg1 : i32, i32
  }
  func.func @transform_3(%arg0: i32, %arg1: i32, %arg2: i32) -> (i32, i32) {
    %c0_i32 = arith.constant 0 : i32
    %c0_i32_0 = arith.constant 0 : i32
    return %c0_i32, %arg1 : i32, i32
  }
  func.func @transform_4(%arg0: i32, %arg1: i32, %arg2: i32) -> (i32, i32) {
    %c0_i32 = arith.constant 0 : i32
    return %arg0, %arg1 : i32, i32
  }
  func.func @transform_5(%arg0: i32, %arg1: i32, %arg2: i32) -> (i32, i32) {
    %c0_i32 = arith.constant 0 : i32
    return %arg0, %arg1 : i32, i32
  }
}

module attributes {stable_mosaic.version = 11 : i64} {
  func.func @_mm_bn_kernel(%arg0: i32, %arg1: i32, %arg2: i32, %arg3: memref<32x256xbf16, #tpu.memory_space<vmem>>, %arg4: memref<256x128xbf16, #tpu.memory_space<vmem>>, %arg5: memref<1x128xf32, #tpu.memory_space<vmem>>, %arg6: memref<1x128xf32, #tpu.memory_space<vmem>>, %arg7: memref<32x128xbf16, #tpu.memory_space<vmem>>, %arg8: memref<32x128xf32, #tpu.memory_space<vmem>>) attributes {dimension_semantics = [#tpu.dimension_semantics<parallel>, #tpu.dimension_semantics<parallel>, #tpu.dimension_semantics<arbitrary>], iteration_bounds = array<i64: 1, 1, 3>, scalar_prefetch = 0 : i64, scratch_operands = 1 : i64, tpu.core_type = #tpu.core_type<tc>, window_params = [{transform_indices = @transform_0, window_bounds = array<i64: 32, 256>}, {transform_indices = @transform_1, window_bounds = array<i64: 256, 128>}, {transform_indices = @transform_2, window_bounds = array<i64: 1, 128>}, {transform_indices = @transform_3, window_bounds = array<i64: 1, 128>}, {transform_indices = @transform_4, window_bounds = array<i64: 32, 128>}]} {
    %c0_i32 = arith.constant 0 : i32
    %0 = arith.cmpi eq, %arg2, %c0_i32 : i32
    %1 = arith.extui %0 : i1 to i32
    %c0_i32_0 = arith.constant 0 : i32
    %2 = arith.cmpi ne, %1, %c0_i32_0 : i32
    scf.if %2 {
      %cst_9 = arith.constant 0.000000e+00 : f32
      %12 = vector.broadcast %cst_9 : f32 to vector<32x128xf32>
      %c0_10 = arith.constant 0 : index
      %c0_11 = arith.constant 0 : index
      %13 = vector.load %arg8[%c0_10, %c0_11] : memref<32x128xf32, #tpu.memory_space<vmem>>, vector<32x128xf32>
      tpu.vector_store %arg8[%c0_10, %c0_11], %12 {strides = array<i32>} : memref<32x128xf32, #tpu.memory_space<vmem>>, vector<32x128xf32>,
    } else {
    }
    %c0 = arith.constant 0 : index
    %c0_1 = arith.constant 0 : index
    %3 = vector.load %arg8[%c0, %c0_1] : memref<32x128xf32, #tpu.memory_space<vmem>>, vector<32x128xf32>
    %c0_2 = arith.constant 0 : index
    %c0_3 = arith.constant 0 : index
    %4 = vector.load %arg3[%c0_2, %c0_3] : memref<32x256xbf16, #tpu.memory_space<vmem>>, vector<32x256xbf16>
    %c0_4 = arith.constant 0 : index
    %c0_5 = arith.constant 0 : index
    %5 = vector.load %arg4[%c0_4, %c0_5] : memref<256x128xbf16, #tpu.memory_space<vmem>>, vector<256x128xbf16>
    %cst = arith.constant dense<0.000000e+00> : vector<32x128xf32>
    %6 = tpu.matmul %4, %5, %cst {dimension_numbers = #tpu.dot_dimension_numbers<[1], [0], [0], [1], [0, 0, 1, 1], [], []>} : vector<32x256xbf16>, vector<256x128xbf16>, vector<32x128xf32> -> vector<32x128xf32>
    %7 = arith.addf %3, %6 : vector<32x128xf32>
    %c0_6 = arith.constant 0 : index
    %c0_7 = arith.constant 0 : index
    %8 = vector.load %arg8[%c0_6, %c0_7] : memref<32x128xf32, #tpu.memory_space<vmem>>, vector<32x128xf32>
    tpu.vector_store %arg8[%c0_6, %c0_7], %7 {strides = array<i32>} : memref<32x128xf32, #tpu.memory_space<vmem>>, vector<32x128xf32>,
    %c2_i32 = arith.constant 2 : i32
    %9 = arith.cmpi eq, %arg2, %c2_i32 : i32
    %10 = arith.extui %9 : i1 to i32
    %c0_i32_8 = arith.constant 0 : i32
    %11 = arith.cmpi ne, %10, %c0_i32_8 : i32
    scf.if %11 {
      %c0_9 = arith.constant 0 : index
      %c0_10 = arith.constant 0 : index
      %12 = vector.load %arg8[%c0_9, %c0_10] : memref<32x128xf32, #tpu.memory_space<vmem>>, vector<32x128xf32>
      %c0_11 = arith.constant 0 : index
      %c0_12 = arith.constant 0 : index
      %13 = vector.load %arg5[%c0_11, %c0_12] : memref<1x128xf32, #tpu.memory_space<vmem>>, vector<1x128xf32>
      %14 = vector.broadcast %13 : vector<1x128xf32> to vector<32x128xf32>
      %15 = arith.mulf %12, %14 : vector<32x128xf32>
      %c0_13 = arith.constant 0 : index
      %c0_14 = arith.constant 0 : index
      %16 = vector.load %arg6[%c0_13, %c0_14] : memref<1x128xf32, #tpu.memory_space<vmem>>, vector<1x128xf32>
      %17 = vector.broadcast %16 : vector<1x128xf32> to vector<32x128xf32>
      %18 = arith.addf %15, %17 : vector<32x128xf32>
      %cst_15 = arith.constant 0.000000e+00 : f32
      %19 = vector.broadcast %cst_15 : f32 to vector<32x128xf32>
      %20 = arith.maximumf %18, %19 : vector<32x128xf32>
      %21 = arith.truncf %20 : vector<32x128xf32> to vector<32x128xbf16>
      %c0_16 = arith.constant 0 : index
      %c0_17 = arith.constant 0 : index
      %22 = vector.load %arg7[%c0_16, %c0_17] : memref<32x128xbf16, #tpu.memory_space<vmem>>, vector<32x128xbf16>
      tpu.vector_store %arg7[%c0_16, %c0_17], %21 {strides = array<i32>} : memref<32x128xbf16, #tpu.memory_space<vmem>>, vector<32x128xbf16>,
    } else {
    }
    return
  }
  func.func @transform_0(%arg0: i32, %arg1: i32, %arg2: i32) -> (i32, i32) {
    %c0_i32 = arith.constant 0 : i32
    return %arg0, %arg2 : i32, i32
  }
  func.func @transform_1(%arg0: i32, %arg1: i32, %arg2: i32) -> (i32, i32) {
    %c0_i32 = arith.constant 0 : i32
    return %arg2, %arg1 : i32, i32
  }
  func.func @transform_2(%arg0: i32, %arg1: i32, %arg2: i32) -> (i32, i32) {
    %c0_i32 = arith.constant 0 : i32
    %c0_i32_0 = arith.constant 0 : i32
    return %c0_i32, %arg1 : i32, i32
  }
  func.func @transform_3(%arg0: i32, %arg1: i32, %arg2: i32) -> (i32, i32) {
    %c0_i32 = arith.constant 0 : i32
    %c0_i32_0 = arith.constant 0 : i32
    return %c0_i32, %arg1 : i32, i32
  }
  func.func @transform_4(%arg0: i32, %arg1: i32, %arg2: i32) -> (i32, i32) {
    %c0_i32 = arith.constant 0 : i32
    return %arg0, %arg1 : i32, i32
  }
}

module attributes {stable_mosaic.version = 11 : i64} {
  func.func @_mm_bn_kernel(%arg0: i32, %arg1: i32, %arg2: i32, %arg3: memref<32x128xbf16, #tpu.memory_space<vmem>>, %arg4: memref<128x128xbf16, #tpu.memory_space<vmem>>, %arg5: memref<1x128xf32, #tpu.memory_space<vmem>>, %arg6: memref<1x128xf32, #tpu.memory_space<vmem>>, %arg7: memref<32x128xbf16, #tpu.memory_space<vmem>>, %arg8: memref<32x128xf32, #tpu.memory_space<vmem>>) attributes {dimension_semantics = [#tpu.dimension_semantics<parallel>, #tpu.dimension_semantics<parallel>, #tpu.dimension_semantics<arbitrary>], iteration_bounds = array<i64: 1, 1, 1>, scalar_prefetch = 0 : i64, scratch_operands = 1 : i64, tpu.core_type = #tpu.core_type<tc>, window_params = [{transform_indices = @transform_0, window_bounds = array<i64: 32, 128>}, {transform_indices = @transform_1, window_bounds = array<i64: 128, 128>}, {transform_indices = @transform_2, window_bounds = array<i64: 1, 128>}, {transform_indices = @transform_3, window_bounds = array<i64: 1, 128>}, {transform_indices = @transform_4, window_bounds = array<i64: 32, 128>}]} {
    %c0_i32 = arith.constant 0 : i32
    %0 = arith.cmpi eq, %arg2, %c0_i32 : i32
    %1 = arith.extui %0 : i1 to i32
    %c0_i32_0 = arith.constant 0 : i32
    %2 = arith.cmpi ne, %1, %c0_i32_0 : i32
    scf.if %2 {
      %cst_10 = arith.constant 0.000000e+00 : f32
      %12 = vector.broadcast %cst_10 : f32 to vector<32x128xf32>
      %c0_11 = arith.constant 0 : index
      %c0_12 = arith.constant 0 : index
      %13 = vector.load %arg8[%c0_11, %c0_12] : memref<32x128xf32, #tpu.memory_space<vmem>>, vector<32x128xf32>
      tpu.vector_store %arg8[%c0_11, %c0_12], %12 {strides = array<i32>} : memref<32x128xf32, #tpu.memory_space<vmem>>, vector<32x128xf32>,
    } else {
    }
    %c0 = arith.constant 0 : index
    %c0_1 = arith.constant 0 : index
    %3 = vector.load %arg8[%c0, %c0_1] : memref<32x128xf32, #tpu.memory_space<vmem>>, vector<32x128xf32>
    %c0_2 = arith.constant 0 : index
    %c0_3 = arith.constant 0 : index
    %4 = vector.load %arg3[%c0_2, %c0_3] : memref<32x128xbf16, #tpu.memory_space<vmem>>, vector<32x128xbf16>
    %c0_4 = arith.constant 0 : index
    %c0_5 = arith.constant 0 : index
    %5 = vector.load %arg4[%c0_4, %c0_5] : memref<128x128xbf16, #tpu.memory_space<vmem>>, vector<128x128xbf16>
    %cst = arith.constant dense<0.000000e+00> : vector<32x128xf32>
    %6 = tpu.matmul %4, %5, %cst {dimension_numbers = #tpu.dot_dimension_numbers<[1], [0], [0], [1], [0, 0, 1, 1], [], []>} : vector<32x128xbf16>, vector<128x128xbf16>, vector<32x128xf32> -> vector<32x128xf32>
    %7 = arith.addf %3, %6 : vector<32x128xf32>
    %c0_6 = arith.constant 0 : index
    %c0_7 = arith.constant 0 : index
    %8 = vector.load %arg8[%c0_6, %c0_7] : memref<32x128xf32, #tpu.memory_space<vmem>>, vector<32x128xf32>
    tpu.vector_store %arg8[%c0_6, %c0_7], %7 {strides = array<i32>} : memref<32x128xf32, #tpu.memory_space<vmem>>, vector<32x128xf32>,
    %c0_i32_8 = arith.constant 0 : i32
    %9 = arith.cmpi eq, %arg2, %c0_i32_8 : i32
    %10 = arith.extui %9 : i1 to i32
    %c0_i32_9 = arith.constant 0 : i32
    %11 = arith.cmpi ne, %10, %c0_i32_9 : i32
    scf.if %11 {
      %c0_10 = arith.constant 0 : index
      %c0_11 = arith.constant 0 : index
      %12 = vector.load %arg8[%c0_10, %c0_11] : memref<32x128xf32, #tpu.memory_space<vmem>>, vector<32x128xf32>
      %c0_12 = arith.constant 0 : index
      %c0_13 = arith.constant 0 : index
      %13 = vector.load %arg5[%c0_12, %c0_13] : memref<1x128xf32, #tpu.memory_space<vmem>>, vector<1x128xf32>
      %14 = vector.broadcast %13 : vector<1x128xf32> to vector<32x128xf32>
      %15 = arith.mulf %12, %14 : vector<32x128xf32>
      %c0_14 = arith.constant 0 : index
      %c0_15 = arith.constant 0 : index
      %16 = vector.load %arg6[%c0_14, %c0_15] : memref<1x128xf32, #tpu.memory_space<vmem>>, vector<1x128xf32>
      %17 = vector.broadcast %16 : vector<1x128xf32> to vector<32x128xf32>
      %18 = arith.addf %15, %17 : vector<32x128xf32>
      %19 = arith.truncf %18 : vector<32x128xf32> to vector<32x128xbf16>
      %c0_16 = arith.constant 0 : index
      %c0_17 = arith.constant 0 : index
      %20 = vector.load %arg7[%c0_16, %c0_17] : memref<32x128xbf16, #tpu.memory_space<vmem>>, vector<32x128xbf16>
      tpu.vector_store %arg7[%c0_16, %c0_17], %19 {strides = array<i32>} : memref<32x128xbf16, #tpu.memory_space<vmem>>, vector<32x128xbf16>,
    } else {
    }
    return
  }
  func.func @transform_0(%arg0: i32, %arg1: i32, %arg2: i32) -> (i32, i32) {
    %c0_i32 = arith.constant 0 : i32
    return %arg0, %arg2 : i32, i32
  }
  func.func @transform_1(%arg0: i32, %arg1: i32, %arg2: i32) -> (i32, i32) {
    %c0_i32 = arith.constant 0 : i32
    return %arg2, %arg1 : i32, i32
  }
  func.func @transform_2(%arg0: i32, %arg1: i32, %arg2: i32) -> (i32, i32) {
    %c0_i32 = arith.constant 0 : i32
    %c0_i32_0 = arith.constant 0 : i32
    return %c0_i32, %arg1 : i32, i32
  }
  func.func @transform_3(%arg0: i32, %arg1: i32, %arg2: i32) -> (i32, i32) {
    %c0_i32 = arith.constant 0 : i32
    %c0_i32_0 = arith.constant 0 : i32
    return %c0_i32, %arg1 : i32, i32
  }
  func.func @transform_4(%arg0: i32, %arg1: i32, %arg2: i32) -> (i32, i32) {
    %c0_i32 = arith.constant 0 : i32
    return %arg0, %arg1 : i32, i32
  }
}

module attributes {stable_mosaic.version = 11 : i64} {
  func.func @_mm_bn_kernel(%arg0: i32, %arg1: i32, %arg2: i32, %arg3: memref<32x256xbf16, #tpu.memory_space<vmem>>, %arg4: memref<256x128xbf16, #tpu.memory_space<vmem>>, %arg5: memref<1x128xf32, #tpu.memory_space<vmem>>, %arg6: memref<1x128xf32, #tpu.memory_space<vmem>>, %arg7: memref<32x128xbf16, #tpu.memory_space<vmem>>, %arg8: memref<32x128xf32, #tpu.memory_space<vmem>>) attributes {dimension_semantics = [#tpu.dimension_semantics<parallel>, #tpu.dimension_semantics<parallel>, #tpu.dimension_semantics<arbitrary>], iteration_bounds = array<i64: 1, 1, 5>, scalar_prefetch = 0 : i64, scratch_operands = 1 : i64, tpu.core_type = #tpu.core_type<tc>, window_params = [{transform_indices = @transform_0, window_bounds = array<i64: 32, 256>}, {transform_indices = @transform_1, window_bounds = array<i64: 256, 128>}, {transform_indices = @transform_2, window_bounds = array<i64: 1, 128>}, {transform_indices = @transform_3, window_bounds = array<i64: 1, 128>}, {transform_indices = @transform_4, window_bounds = array<i64: 32, 128>}]} {
    %c0_i32 = arith.constant 0 : i32
    %0 = arith.cmpi eq, %arg2, %c0_i32 : i32
    %1 = arith.extui %0 : i1 to i32
    %c0_i32_0 = arith.constant 0 : i32
    %2 = arith.cmpi ne, %1, %c0_i32_0 : i32
    scf.if %2 {
      %cst_9 = arith.constant 0.000000e+00 : f32
      %12 = vector.broadcast %cst_9 : f32 to vector<32x128xf32>
      %c0_10 = arith.constant 0 : index
      %c0_11 = arith.constant 0 : index
      %13 = vector.load %arg8[%c0_10, %c0_11] : memref<32x128xf32, #tpu.memory_space<vmem>>, vector<32x128xf32>
      tpu.vector_store %arg8[%c0_10, %c0_11], %12 {strides = array<i32>} : memref<32x128xf32, #tpu.memory_space<vmem>>, vector<32x128xf32>,
    } else {
    }
    %c0 = arith.constant 0 : index
    %c0_1 = arith.constant 0 : index
    %3 = vector.load %arg8[%c0, %c0_1] : memref<32x128xf32, #tpu.memory_space<vmem>>, vector<32x128xf32>
    %c0_2 = arith.constant 0 : index
    %c0_3 = arith.constant 0 : index
    %4 = vector.load %arg3[%c0_2, %c0_3] : memref<32x256xbf16, #tpu.memory_space<vmem>>, vector<32x256xbf16>
    %c0_4 = arith.constant 0 : index
    %c0_5 = arith.constant 0 : index
    %5 = vector.load %arg4[%c0_4, %c0_5] : memref<256x128xbf16, #tpu.memory_space<vmem>>, vector<256x128xbf16>
    %cst = arith.constant dense<0.000000e+00> : vector<32x128xf32>
    %6 = tpu.matmul %4, %5, %cst {dimension_numbers = #tpu.dot_dimension_numbers<[1], [0], [0], [1], [0, 0, 1, 1], [], []>} : vector<32x256xbf16>, vector<256x128xbf16>, vector<32x128xf32> -> vector<32x128xf32>
    %7 = arith.addf %3, %6 : vector<32x128xf32>
    %c0_6 = arith.constant 0 : index
    %c0_7 = arith.constant 0 : index
    %8 = vector.load %arg8[%c0_6, %c0_7] : memref<32x128xf32, #tpu.memory_space<vmem>>, vector<32x128xf32>
    tpu.vector_store %arg8[%c0_6, %c0_7], %7 {strides = array<i32>} : memref<32x128xf32, #tpu.memory_space<vmem>>, vector<32x128xf32>,
    %c4_i32 = arith.constant 4 : i32
    %9 = arith.cmpi eq, %arg2, %c4_i32 : i32
    %10 = arith.extui %9 : i1 to i32
    %c0_i32_8 = arith.constant 0 : i32
    %11 = arith.cmpi ne, %10, %c0_i32_8 : i32
    scf.if %11 {
      %c0_9 = arith.constant 0 : index
      %c0_10 = arith.constant 0 : index
      %12 = vector.load %arg8[%c0_9, %c0_10] : memref<32x128xf32, #tpu.memory_space<vmem>>, vector<32x128xf32>
      %c0_11 = arith.constant 0 : index
      %c0_12 = arith.constant 0 : index
      %13 = vector.load %arg5[%c0_11, %c0_12] : memref<1x128xf32, #tpu.memory_space<vmem>>, vector<1x128xf32>
      %14 = vector.broadcast %13 : vector<1x128xf32> to vector<32x128xf32>
      %15 = arith.mulf %12, %14 : vector<32x128xf32>
      %c0_13 = arith.constant 0 : index
      %c0_14 = arith.constant 0 : index
      %16 = vector.load %arg6[%c0_13, %c0_14] : memref<1x128xf32, #tpu.memory_space<vmem>>, vector<1x128xf32>
      %17 = vector.broadcast %16 : vector<1x128xf32> to vector<32x128xf32>
      %18 = arith.addf %15, %17 : vector<32x128xf32>
      %cst_15 = arith.constant 0.000000e+00 : f32
      %19 = vector.broadcast %cst_15 : f32 to vector<32x128xf32>
      %20 = arith.maximumf %18, %19 : vector<32x128xf32>
      %21 = arith.truncf %20 : vector<32x128xf32> to vector<32x128xbf16>
      %c0_16 = arith.constant 0 : index
      %c0_17 = arith.constant 0 : index
      %22 = vector.load %arg7[%c0_16, %c0_17] : memref<32x128xbf16, #tpu.memory_space<vmem>>, vector<32x128xbf16>
      tpu.vector_store %arg7[%c0_16, %c0_17], %21 {strides = array<i32>} : memref<32x128xbf16, #tpu.memory_space<vmem>>, vector<32x128xbf16>,
    } else {
    }
    return
  }
  func.func @transform_0(%arg0: i32, %arg1: i32, %arg2: i32) -> (i32, i32) {
    %c0_i32 = arith.constant 0 : i32
    return %arg0, %arg2 : i32, i32
  }
  func.func @transform_1(%arg0: i32, %arg1: i32, %arg2: i32) -> (i32, i32) {
    %c0_i32 = arith.constant 0 : i32
    return %arg2, %arg1 : i32, i32
  }
  func.func @transform_2(%arg0: i32, %arg1: i32, %arg2: i32) -> (i32, i32) {
    %c0_i32 = arith.constant 0 : i32
    %c0_i32_0 = arith.constant 0 : i32
    return %c0_i32, %arg1 : i32, i32
  }
  func.func @transform_3(%arg0: i32, %arg1: i32, %arg2: i32) -> (i32, i32) {
    %c0_i32 = arith.constant 0 : i32
    %c0_i32_0 = arith.constant 0 : i32
    return %c0_i32, %arg1 : i32, i32
  }
  func.func @transform_4(%arg0: i32, %arg1: i32, %arg2: i32) -> (i32, i32) {
    %c0_i32 = arith.constant 0 : i32
    return %arg0, %arg1 : i32, i32
  }
}

module attributes {stable_mosaic.version = 11 : i64} {
  func.func @_mm_bn_res_kernel(%arg0: i32, %arg1: i32, %arg2: i32, %arg3: memref<32x256xbf16, #tpu.memory_space<vmem>>, %arg4: memref<256x128xbf16, #tpu.memory_space<vmem>>, %arg5: memref<1x128xf32, #tpu.memory_space<vmem>>, %arg6: memref<1x128xf32, #tpu.memory_space<vmem>>, %arg7: memref<32x128xbf16, #tpu.memory_space<vmem>>, %arg8: memref<32x128xbf16, #tpu.memory_space<vmem>>, %arg9: memref<32x128xf32, #tpu.memory_space<vmem>>) attributes {dimension_semantics = [#tpu.dimension_semantics<parallel>, #tpu.dimension_semantics<parallel>, #tpu.dimension_semantics<arbitrary>], iteration_bounds = array<i64: 1, 1, 5>, scalar_prefetch = 0 : i64, scratch_operands = 1 : i64, tpu.core_type = #tpu.core_type<tc>, window_params = [{transform_indices = @transform_0, window_bounds = array<i64: 32, 256>}, {transform_indices = @transform_1, window_bounds = array<i64: 256, 128>}, {transform_indices = @transform_2, window_bounds = array<i64: 1, 128>}, {transform_indices = @transform_3, window_bounds = array<i64: 1, 128>}, {transform_indices = @transform_4, window_bounds = array<i64: 32, 128>}, {transform_indices = @transform_5, window_bounds = array<i64: 32, 128>}]} {
    %c0_i32 = arith.constant 0 : i32
    %0 = arith.cmpi eq, %arg2, %c0_i32 : i32
    %1 = arith.extui %0 : i1 to i32
    %c0_i32_0 = arith.constant 0 : i32
    %2 = arith.cmpi ne, %1, %c0_i32_0 : i32
    scf.if %2 {
      %cst_9 = arith.constant 0.000000e+00 : f32
      %12 = vector.broadcast %cst_9 : f32 to vector<32x128xf32>
      %c0_10 = arith.constant 0 : index
      %c0_11 = arith.constant 0 : index
      %13 = vector.load %arg9[%c0_10, %c0_11] : memref<32x128xf32, #tpu.memory_space<vmem>>, vector<32x128xf32>
      tpu.vector_store %arg9[%c0_10, %c0_11], %12 {strides = array<i32>} : memref<32x128xf32, #tpu.memory_space<vmem>>, vector<32x128xf32>,
    } else {
    }
    %c0 = arith.constant 0 : index
    %c0_1 = arith.constant 0 : index
    %3 = vector.load %arg9[%c0, %c0_1] : memref<32x128xf32, #tpu.memory_space<vmem>>, vector<32x128xf32>
    %c0_2 = arith.constant 0 : index
    %c0_3 = arith.constant 0 : index
    %4 = vector.load %arg3[%c0_2, %c0_3] : memref<32x256xbf16, #tpu.memory_space<vmem>>, vector<32x256xbf16>
    %c0_4 = arith.constant 0 : index
    %c0_5 = arith.constant 0 : index
    %5 = vector.load %arg4[%c0_4, %c0_5] : memref<256x128xbf16, #tpu.memory_space<vmem>>, vector<256x128xbf16>
    %cst = arith.constant dense<0.000000e+00> : vector<32x128xf32>
    %6 = tpu.matmul %4, %5, %cst {dimension_numbers = #tpu.dot_dimension_numbers<[1], [0], [0], [1], [0, 0, 1, 1], [], []>} : vector<32x256xbf16>, vector<256x128xbf16>, vector<32x128xf32> -> vector<32x128xf32>
    %7 = arith.addf %3, %6 : vector<32x128xf32>
    %c0_6 = arith.constant 0 : index
    %c0_7 = arith.constant 0 : index
    %8 = vector.load %arg9[%c0_6, %c0_7] : memref<32x128xf32, #tpu.memory_space<vmem>>, vector<32x128xf32>
    tpu.vector_store %arg9[%c0_6, %c0_7], %7 {strides = array<i32>} : memref<32x128xf32, #tpu.memory_space<vmem>>, vector<32x128xf32>,
    %c4_i32 = arith.constant 4 : i32
    %9 = arith.cmpi eq, %arg2, %c4_i32 : i32
    %10 = arith.extui %9 : i1 to i32
    %c0_i32_8 = arith.constant 0 : i32
    %11 = arith.cmpi ne, %10, %c0_i32_8 : i32
    scf.if %11 {
      %c0_9 = arith.constant 0 : index
      %c0_10 = arith.constant 0 : index
      %12 = vector.load %arg9[%c0_9, %c0_10] : memref<32x128xf32, #tpu.memory_space<vmem>>, vector<32x128xf32>
      %c0_11 = arith.constant 0 : index
      %c0_12 = arith.constant 0 : index
      %13 = vector.load %arg5[%c0_11, %c0_12] : memref<1x128xf32, #tpu.memory_space<vmem>>, vector<1x128xf32>
      %14 = vector.broadcast %13 : vector<1x128xf32> to vector<32x128xf32>
      %15 = arith.mulf %12, %14 : vector<32x128xf32>
      %c0_13 = arith.constant 0 : index
      %c0_14 = arith.constant 0 : index
      %16 = vector.load %arg6[%c0_13, %c0_14] : memref<1x128xf32, #tpu.memory_space<vmem>>, vector<1x128xf32>
      %17 = vector.broadcast %16 : vector<1x128xf32> to vector<32x128xf32>
      %18 = arith.addf %15, %17 : vector<32x128xf32>
      %c0_15 = arith.constant 0 : index
      %c0_16 = arith.constant 0 : index
      %19 = vector.load %arg7[%c0_15, %c0_16] : memref<32x128xbf16, #tpu.memory_space<vmem>>, vector<32x128xbf16>
      %20 = arith.extf %19 : vector<32x128xbf16> to vector<32x128xf32>
      %21 = arith.addf %18, %20 : vector<32x128xf32>
      %cst_17 = arith.constant 0.000000e+00 : f32
      %22 = vector.broadcast %cst_17 : f32 to vector<32x128xf32>
      %23 = arith.maximumf %21, %22 : vector<32x128xf32>
      %24 = arith.truncf %23 : vector<32x128xf32> to vector<32x128xbf16>
      %c0_18 = arith.constant 0 : index
      %c0_19 = arith.constant 0 : index
      %25 = vector.load %arg8[%c0_18, %c0_19] : memref<32x128xbf16, #tpu.memory_space<vmem>>, vector<32x128xbf16>
      tpu.vector_store %arg8[%c0_18, %c0_19], %24 {strides = array<i32>} : memref<32x128xbf16, #tpu.memory_space<vmem>>, vector<32x128xbf16>,
    } else {
    }
    return
  }
  func.func @transform_0(%arg0: i32, %arg1: i32, %arg2: i32) -> (i32, i32) {
    %c0_i32 = arith.constant 0 : i32
    return %arg0, %arg2 : i32, i32
  }
  func.func @transform_1(%arg0: i32, %arg1: i32, %arg2: i32) -> (i32, i32) {
    %c0_i32 = arith.constant 0 : i32
    return %arg2, %arg1 : i32, i32
  }
  func.func @transform_2(%arg0: i32, %arg1: i32, %arg2: i32) -> (i32, i32) {
    %c0_i32 = arith.constant 0 : i32
    %c0_i32_0 = arith.constant 0 : i32
    return %c0_i32, %arg1 : i32, i32
  }
  func.func @transform_3(%arg0: i32, %arg1: i32, %arg2: i32) -> (i32, i32) {
    %c0_i32 = arith.constant 0 : i32
    %c0_i32_0 = arith.constant 0 : i32
    return %c0_i32, %arg1 : i32, i32
  }
  func.func @transform_4(%arg0: i32, %arg1: i32, %arg2: i32) -> (i32, i32) {
    %c0_i32 = arith.constant 0 : i32
    return %arg0, %arg1 : i32, i32
  }
  func.func @transform_5(%arg0: i32, %arg1: i32, %arg2: i32) -> (i32, i32) {
    %c0_i32 = arith.constant 0 : i32
    return %arg0, %arg1 : i32, i32
  }
}

module attributes {stable_mosaic.version = 11 : i64} {
  func.func @_mm_bn_kernel(%arg0: i32, %arg1: i32, %arg2: i32, %arg3: memref<8x256xbf16, #tpu.memory_space<vmem>>, %arg4: memref<256x256xbf16, #tpu.memory_space<vmem>>, %arg5: memref<1x256xf32, #tpu.memory_space<vmem>>, %arg6: memref<1x256xf32, #tpu.memory_space<vmem>>, %arg7: memref<8x256xbf16, #tpu.memory_space<vmem>>, %arg8: memref<8x256xf32, #tpu.memory_space<vmem>>) attributes {dimension_semantics = [#tpu.dimension_semantics<parallel>, #tpu.dimension_semantics<parallel>, #tpu.dimension_semantics<arbitrary>], iteration_bounds = array<i64: 1, 1, 5>, scalar_prefetch = 0 : i64, scratch_operands = 1 : i64, tpu.core_type = #tpu.core_type<tc>, window_params = [{transform_indices = @transform_0, window_bounds = array<i64: 8, 256>}, {transform_indices = @transform_1, window_bounds = array<i64: 256, 256>}, {transform_indices = @transform_2, window_bounds = array<i64: 1, 256>}, {transform_indices = @transform_3, window_bounds = array<i64: 1, 256>}, {transform_indices = @transform_4, window_bounds = array<i64: 8, 256>}]} {
    %c0_i32 = arith.constant 0 : i32
    %0 = arith.cmpi eq, %arg2, %c0_i32 : i32
    %1 = arith.extui %0 : i1 to i32
    %c0_i32_0 = arith.constant 0 : i32
    %2 = arith.cmpi ne, %1, %c0_i32_0 : i32
    scf.if %2 {
      %cst_9 = arith.constant 0.000000e+00 : f32
      %12 = vector.broadcast %cst_9 : f32 to vector<8x256xf32>
      %c0_10 = arith.constant 0 : index
      %c0_11 = arith.constant 0 : index
      %13 = vector.load %arg8[%c0_10, %c0_11] : memref<8x256xf32, #tpu.memory_space<vmem>>, vector<8x256xf32>
      tpu.vector_store %arg8[%c0_10, %c0_11], %12 {strides = array<i32>} : memref<8x256xf32, #tpu.memory_space<vmem>>, vector<8x256xf32>,
    } else {
    }
    %c0 = arith.constant 0 : index
    %c0_1 = arith.constant 0 : index
    %3 = vector.load %arg8[%c0, %c0_1] : memref<8x256xf32, #tpu.memory_space<vmem>>, vector<8x256xf32>
    %c0_2 = arith.constant 0 : index
    %c0_3 = arith.constant 0 : index
    %4 = vector.load %arg3[%c0_2, %c0_3] : memref<8x256xbf16, #tpu.memory_space<vmem>>, vector<8x256xbf16>
    %c0_4 = arith.constant 0 : index
    %c0_5 = arith.constant 0 : index
    %5 = vector.load %arg4[%c0_4, %c0_5] : memref<256x256xbf16, #tpu.memory_space<vmem>>, vector<256x256xbf16>
    %cst = arith.constant dense<0.000000e+00> : vector<8x256xf32>
    %6 = tpu.matmul %4, %5, %cst {dimension_numbers = #tpu.dot_dimension_numbers<[1], [0], [0], [1], [0, 0, 1, 1], [], []>} : vector<8x256xbf16>, vector<256x256xbf16>, vector<8x256xf32> -> vector<8x256xf32>
    %7 = arith.addf %3, %6 : vector<8x256xf32>
    %c0_6 = arith.constant 0 : index
    %c0_7 = arith.constant 0 : index
    %8 = vector.load %arg8[%c0_6, %c0_7] : memref<8x256xf32, #tpu.memory_space<vmem>>, vector<8x256xf32>
    tpu.vector_store %arg8[%c0_6, %c0_7], %7 {strides = array<i32>} : memref<8x256xf32, #tpu.memory_space<vmem>>, vector<8x256xf32>,
    %c4_i32 = arith.constant 4 : i32
    %9 = arith.cmpi eq, %arg2, %c4_i32 : i32
    %10 = arith.extui %9 : i1 to i32
    %c0_i32_8 = arith.constant 0 : i32
    %11 = arith.cmpi ne, %10, %c0_i32_8 : i32
    scf.if %11 {
      %c0_9 = arith.constant 0 : index
      %c0_10 = arith.constant 0 : index
      %12 = vector.load %arg8[%c0_9, %c0_10] : memref<8x256xf32, #tpu.memory_space<vmem>>, vector<8x256xf32>
      %c0_11 = arith.constant 0 : index
      %c0_12 = arith.constant 0 : index
      %13 = vector.load %arg5[%c0_11, %c0_12] : memref<1x256xf32, #tpu.memory_space<vmem>>, vector<1x256xf32>
      %14 = vector.broadcast %13 : vector<1x256xf32> to vector<8x256xf32>
      %15 = arith.mulf %12, %14 : vector<8x256xf32>
      %c0_13 = arith.constant 0 : index
      %c0_14 = arith.constant 0 : index
      %16 = vector.load %arg6[%c0_13, %c0_14] : memref<1x256xf32, #tpu.memory_space<vmem>>, vector<1x256xf32>
      %17 = vector.broadcast %16 : vector<1x256xf32> to vector<8x256xf32>
      %18 = arith.addf %15, %17 : vector<8x256xf32>
      %cst_15 = arith.constant 0.000000e+00 : f32
      %19 = vector.broadcast %cst_15 : f32 to vector<8x256xf32>
      %20 = arith.maximumf %18, %19 : vector<8x256xf32>
      %21 = arith.truncf %20 : vector<8x256xf32> to vector<8x256xbf16>
      %c0_16 = arith.constant 0 : index
      %c0_17 = arith.constant 0 : index
      %22 = vector.load %arg7[%c0_16, %c0_17] : memref<8x256xbf16, #tpu.memory_space<vmem>>, vector<8x256xbf16>
      tpu.vector_store %arg7[%c0_16, %c0_17], %21 {strides = array<i32>} : memref<8x256xbf16, #tpu.memory_space<vmem>>, vector<8x256xbf16>,
    } else {
    }
    return
  }
  func.func @transform_0(%arg0: i32, %arg1: i32, %arg2: i32) -> (i32, i32) {
    %c0_i32 = arith.constant 0 : i32
    return %arg0, %arg2 : i32, i32
  }
  func.func @transform_1(%arg0: i32, %arg1: i32, %arg2: i32) -> (i32, i32) {
    %c0_i32 = arith.constant 0 : i32
    return %arg2, %arg1 : i32, i32
  }
  func.func @transform_2(%arg0: i32, %arg1: i32, %arg2: i32) -> (i32, i32) {
    %c0_i32 = arith.constant 0 : i32
    %c0_i32_0 = arith.constant 0 : i32
    return %c0_i32, %arg1 : i32, i32
  }
  func.func @transform_3(%arg0: i32, %arg1: i32, %arg2: i32) -> (i32, i32) {
    %c0_i32 = arith.constant 0 : i32
    %c0_i32_0 = arith.constant 0 : i32
    return %c0_i32, %arg1 : i32, i32
  }
  func.func @transform_4(%arg0: i32, %arg1: i32, %arg2: i32) -> (i32, i32) {
    %c0_i32 = arith.constant 0 : i32
    return %arg0, %arg1 : i32, i32
  }
}

module attributes {stable_mosaic.version = 11 : i64} {
  func.func @_mm_bn_kernel(%arg0: i32, %arg1: i32, %arg2: i32, %arg3: memref<8x128xbf16, #tpu.memory_space<vmem>>, %arg4: memref<128x256xbf16, #tpu.memory_space<vmem>>, %arg5: memref<1x256xf32, #tpu.memory_space<vmem>>, %arg6: memref<1x256xf32, #tpu.memory_space<vmem>>, %arg7: memref<8x256xbf16, #tpu.memory_space<vmem>>, %arg8: memref<8x256xf32, #tpu.memory_space<vmem>>) attributes {dimension_semantics = [#tpu.dimension_semantics<parallel>, #tpu.dimension_semantics<parallel>, #tpu.dimension_semantics<arbitrary>], iteration_bounds = array<i64: 1, 1, 1>, scalar_prefetch = 0 : i64, scratch_operands = 1 : i64, tpu.core_type = #tpu.core_type<tc>, window_params = [{transform_indices = @transform_0, window_bounds = array<i64: 8, 128>}, {transform_indices = @transform_1, window_bounds = array<i64: 128, 256>}, {transform_indices = @transform_2, window_bounds = array<i64: 1, 256>}, {transform_indices = @transform_3, window_bounds = array<i64: 1, 256>}, {transform_indices = @transform_4, window_bounds = array<i64: 8, 256>}]} {
    %c0_i32 = arith.constant 0 : i32
    %0 = arith.cmpi eq, %arg2, %c0_i32 : i32
    %1 = arith.extui %0 : i1 to i32
    %c0_i32_0 = arith.constant 0 : i32
    %2 = arith.cmpi ne, %1, %c0_i32_0 : i32
    scf.if %2 {
      %cst_10 = arith.constant 0.000000e+00 : f32
      %12 = vector.broadcast %cst_10 : f32 to vector<8x256xf32>
      %c0_11 = arith.constant 0 : index
      %c0_12 = arith.constant 0 : index
      %13 = vector.load %arg8[%c0_11, %c0_12] : memref<8x256xf32, #tpu.memory_space<vmem>>, vector<8x256xf32>
      tpu.vector_store %arg8[%c0_11, %c0_12], %12 {strides = array<i32>} : memref<8x256xf32, #tpu.memory_space<vmem>>, vector<8x256xf32>,
    } else {
    }
    %c0 = arith.constant 0 : index
    %c0_1 = arith.constant 0 : index
    %3 = vector.load %arg8[%c0, %c0_1] : memref<8x256xf32, #tpu.memory_space<vmem>>, vector<8x256xf32>
    %c0_2 = arith.constant 0 : index
    %c0_3 = arith.constant 0 : index
    %4 = vector.load %arg3[%c0_2, %c0_3] : memref<8x128xbf16, #tpu.memory_space<vmem>>, vector<8x128xbf16>
    %c0_4 = arith.constant 0 : index
    %c0_5 = arith.constant 0 : index
    %5 = vector.load %arg4[%c0_4, %c0_5] : memref<128x256xbf16, #tpu.memory_space<vmem>>, vector<128x256xbf16>
    %cst = arith.constant dense<0.000000e+00> : vector<8x256xf32>
    %6 = tpu.matmul %4, %5, %cst {dimension_numbers = #tpu.dot_dimension_numbers<[1], [0], [0], [1], [0, 0, 1, 1], [], []>} : vector<8x128xbf16>, vector<128x256xbf16>, vector<8x256xf32> -> vector<8x256xf32>
    %7 = arith.addf %3, %6 : vector<8x256xf32>
    %c0_6 = arith.constant 0 : index
    %c0_7 = arith.constant 0 : index
    %8 = vector.load %arg8[%c0_6, %c0_7] : memref<8x256xf32, #tpu.memory_space<vmem>>, vector<8x256xf32>
    tpu.vector_store %arg8[%c0_6, %c0_7], %7 {strides = array<i32>} : memref<8x256xf32, #tpu.memory_space<vmem>>, vector<8x256xf32>,
    %c0_i32_8 = arith.constant 0 : i32
    %9 = arith.cmpi eq, %arg2, %c0_i32_8 : i32
    %10 = arith.extui %9 : i1 to i32
    %c0_i32_9 = arith.constant 0 : i32
    %11 = arith.cmpi ne, %10, %c0_i32_9 : i32
    scf.if %11 {
      %c0_10 = arith.constant 0 : index
      %c0_11 = arith.constant 0 : index
      %12 = vector.load %arg8[%c0_10, %c0_11] : memref<8x256xf32, #tpu.memory_space<vmem>>, vector<8x256xf32>
      %c0_12 = arith.constant 0 : index
      %c0_13 = arith.constant 0 : index
      %13 = vector.load %arg5[%c0_12, %c0_13] : memref<1x256xf32, #tpu.memory_space<vmem>>, vector<1x256xf32>
      %14 = vector.broadcast %13 : vector<1x256xf32> to vector<8x256xf32>
      %15 = arith.mulf %12, %14 : vector<8x256xf32>
      %c0_14 = arith.constant 0 : index
      %c0_15 = arith.constant 0 : index
      %16 = vector.load %arg6[%c0_14, %c0_15] : memref<1x256xf32, #tpu.memory_space<vmem>>, vector<1x256xf32>
      %17 = vector.broadcast %16 : vector<1x256xf32> to vector<8x256xf32>
      %18 = arith.addf %15, %17 : vector<8x256xf32>
      %19 = arith.truncf %18 : vector<8x256xf32> to vector<8x256xbf16>
      %c0_16 = arith.constant 0 : index
      %c0_17 = arith.constant 0 : index
      %20 = vector.load %arg7[%c0_16, %c0_17] : memref<8x256xbf16, #tpu.memory_space<vmem>>, vector<8x256xbf16>
      tpu.vector_store %arg7[%c0_16, %c0_17], %19 {strides = array<i32>} : memref<8x256xbf16, #tpu.memory_space<vmem>>, vector<8x256xbf16>,
    } else {
    }
    return
  }
  func.func @transform_0(%arg0: i32, %arg1: i32, %arg2: i32) -> (i32, i32) {
    %c0_i32 = arith.constant 0 : i32
    return %arg0, %arg2 : i32, i32
  }
  func.func @transform_1(%arg0: i32, %arg1: i32, %arg2: i32) -> (i32, i32) {
    %c0_i32 = arith.constant 0 : i32
    return %arg2, %arg1 : i32, i32
  }
  func.func @transform_2(%arg0: i32, %arg1: i32, %arg2: i32) -> (i32, i32) {
    %c0_i32 = arith.constant 0 : i32
    %c0_i32_0 = arith.constant 0 : i32
    return %c0_i32, %arg1 : i32, i32
  }
  func.func @transform_3(%arg0: i32, %arg1: i32, %arg2: i32) -> (i32, i32) {
    %c0_i32 = arith.constant 0 : i32
    %c0_i32_0 = arith.constant 0 : i32
    return %c0_i32, %arg1 : i32, i32
  }
  func.func @transform_4(%arg0: i32, %arg1: i32, %arg2: i32) -> (i32, i32) {
    %c0_i32 = arith.constant 0 : i32
    return %arg0, %arg1 : i32, i32
  }
}

module attributes {stable_mosaic.version = 11 : i64} {
  func.func @_mm_bn_res_kernel(%arg0: i32, %arg1: i32, %arg2: i32, %arg3: memref<8x512xbf16, #tpu.memory_space<vmem>>, %arg4: memref<512x256xbf16, #tpu.memory_space<vmem>>, %arg5: memref<1x256xf32, #tpu.memory_space<vmem>>, %arg6: memref<1x256xf32, #tpu.memory_space<vmem>>, %arg7: memref<8x256xbf16, #tpu.memory_space<vmem>>, %arg8: memref<8x256xbf16, #tpu.memory_space<vmem>>, %arg9: memref<8x256xf32, #tpu.memory_space<vmem>>) attributes {dimension_semantics = [#tpu.dimension_semantics<parallel>, #tpu.dimension_semantics<parallel>, #tpu.dimension_semantics<arbitrary>], iteration_bounds = array<i64: 1, 1, 5>, scalar_prefetch = 0 : i64, scratch_operands = 1 : i64, tpu.core_type = #tpu.core_type<tc>, window_params = [{transform_indices = @transform_0, window_bounds = array<i64: 8, 512>}, {transform_indices = @transform_1, window_bounds = array<i64: 512, 256>}, {transform_indices = @transform_2, window_bounds = array<i64: 1, 256>}, {transform_indices = @transform_3, window_bounds = array<i64: 1, 256>}, {transform_indices = @transform_4, window_bounds = array<i64: 8, 256>}, {transform_indices = @transform_5, window_bounds = array<i64: 8, 256>}]} {
    %c0_i32 = arith.constant 0 : i32
    %0 = arith.cmpi eq, %arg2, %c0_i32 : i32
    %1 = arith.extui %0 : i1 to i32
    %c0_i32_0 = arith.constant 0 : i32
    %2 = arith.cmpi ne, %1, %c0_i32_0 : i32
    scf.if %2 {
      %cst_9 = arith.constant 0.000000e+00 : f32
      %12 = vector.broadcast %cst_9 : f32 to vector<8x256xf32>
      %c0_10 = arith.constant 0 : index
      %c0_11 = arith.constant 0 : index
      %13 = vector.load %arg9[%c0_10, %c0_11] : memref<8x256xf32, #tpu.memory_space<vmem>>, vector<8x256xf32>
      tpu.vector_store %arg9[%c0_10, %c0_11], %12 {strides = array<i32>} : memref<8x256xf32, #tpu.memory_space<vmem>>, vector<8x256xf32>,
    } else {
    }
    %c0 = arith.constant 0 : index
    %c0_1 = arith.constant 0 : index
    %3 = vector.load %arg9[%c0, %c0_1] : memref<8x256xf32, #tpu.memory_space<vmem>>, vector<8x256xf32>
    %c0_2 = arith.constant 0 : index
    %c0_3 = arith.constant 0 : index
    %4 = vector.load %arg3[%c0_2, %c0_3] : memref<8x512xbf16, #tpu.memory_space<vmem>>, vector<8x512xbf16>
    %c0_4 = arith.constant 0 : index
    %c0_5 = arith.constant 0 : index
    %5 = vector.load %arg4[%c0_4, %c0_5] : memref<512x256xbf16, #tpu.memory_space<vmem>>, vector<512x256xbf16>
    %cst = arith.constant dense<0.000000e+00> : vector<8x256xf32>
    %6 = tpu.matmul %4, %5, %cst {dimension_numbers = #tpu.dot_dimension_numbers<[1], [0], [0], [1], [0, 0, 1, 1], [], []>} : vector<8x512xbf16>, vector<512x256xbf16>, vector<8x256xf32> -> vector<8x256xf32>
    %7 = arith.addf %3, %6 : vector<8x256xf32>
    %c0_6 = arith.constant 0 : index
    %c0_7 = arith.constant 0 : index
    %8 = vector.load %arg9[%c0_6, %c0_7] : memref<8x256xf32, #tpu.memory_space<vmem>>, vector<8x256xf32>
    tpu.vector_store %arg9[%c0_6, %c0_7], %7 {strides = array<i32>} : memref<8x256xf32, #tpu.memory_space<vmem>>, vector<8x256xf32>,
    %c4_i32 = arith.constant 4 : i32
    %9 = arith.cmpi eq, %arg2, %c4_i32 : i32
    %10 = arith.extui %9 : i1 to i32
    %c0_i32_8 = arith.constant 0 : i32
    %11 = arith.cmpi ne, %10, %c0_i32_8 : i32
    scf.if %11 {
      %c0_9 = arith.constant 0 : index
      %c0_10 = arith.constant 0 : index
      %12 = vector.load %arg9[%c0_9, %c0_10] : memref<8x256xf32, #tpu.memory_space<vmem>>, vector<8x256xf32>
      %c0_11 = arith.constant 0 : index
      %c0_12 = arith.constant 0 : index
      %13 = vector.load %arg5[%c0_11, %c0_12] : memref<1x256xf32, #tpu.memory_space<vmem>>, vector<1x256xf32>
      %14 = vector.broadcast %13 : vector<1x256xf32> to vector<8x256xf32>
      %15 = arith.mulf %12, %14 : vector<8x256xf32>
      %c0_13 = arith.constant 0 : index
      %c0_14 = arith.constant 0 : index
      %16 = vector.load %arg6[%c0_13, %c0_14] : memref<1x256xf32, #tpu.memory_space<vmem>>, vector<1x256xf32>
      %17 = vector.broadcast %16 : vector<1x256xf32> to vector<8x256xf32>
      %18 = arith.addf %15, %17 : vector<8x256xf32>
      %c0_15 = arith.constant 0 : index
      %c0_16 = arith.constant 0 : index
      %19 = vector.load %arg7[%c0_15, %c0_16] : memref<8x256xbf16, #tpu.memory_space<vmem>>, vector<8x256xbf16>
      %20 = arith.extf %19 : vector<8x256xbf16> to vector<8x256xf32>
      %21 = arith.addf %18, %20 : vector<8x256xf32>
      %cst_17 = arith.constant 0.000000e+00 : f32
      %22 = vector.broadcast %cst_17 : f32 to vector<8x256xf32>
      %23 = arith.maximumf %21, %22 : vector<8x256xf32>
      %24 = arith.truncf %23 : vector<8x256xf32> to vector<8x256xbf16>
      %c0_18 = arith.constant 0 : index
      %c0_19 = arith.constant 0 : index
      %25 = vector.load %arg8[%c0_18, %c0_19] : memref<8x256xbf16, #tpu.memory_space<vmem>>, vector<8x256xbf16>
      tpu.vector_store %arg8[%c0_18, %c0_19], %24 {strides = array<i32>} : memref<8x256xbf16, #tpu.memory_space<vmem>>, vector<8x256xbf16>,
    } else {
    }
    return
  }
  func.func @transform_0(%arg0: i32, %arg1: i32, %arg2: i32) -> (i32, i32) {
    %c0_i32 = arith.constant 0 : i32
    return %arg0, %arg2 : i32, i32
  }
  func.func @transform_1(%arg0: i32, %arg1: i32, %arg2: i32) -> (i32, i32) {
    %c0_i32 = arith.constant 0 : i32
    return %arg2, %arg1 : i32, i32
  }
  func.func @transform_2(%arg0: i32, %arg1: i32, %arg2: i32) -> (i32, i32) {
    %c0_i32 = arith.constant 0 : i32
    %c0_i32_0 = arith.constant 0 : i32
    return %c0_i32, %arg1 : i32, i32
  }
  func.func @transform_3(%arg0: i32, %arg1: i32, %arg2: i32) -> (i32, i32) {
    %c0_i32 = arith.constant 0 : i32
    %c0_i32_0 = arith.constant 0 : i32
    return %c0_i32, %arg1 : i32, i32
  }
  func.func @transform_4(%arg0: i32, %arg1: i32, %arg2: i32) -> (i32, i32) {
    %c0_i32 = arith.constant 0 : i32
    return %arg0, %arg1 : i32, i32
  }
  func.func @transform_5(%arg0: i32, %arg1: i32, %arg2: i32) -> (i32, i32) {
    %c0_i32 = arith.constant 0 : i32
    return %arg0, %arg1 : i32, i32
  }
}

module attributes {stable_mosaic.version = 11 : i64} {
  func.func @_mm_bn_kernel(%arg0: i32, %arg1: i32, %arg2: i32, %arg3: memref<8x512xbf16, #tpu.memory_space<vmem>>, %arg4: memref<512x256xbf16, #tpu.memory_space<vmem>>, %arg5: memref<1x256xf32, #tpu.memory_space<vmem>>, %arg6: memref<1x256xf32, #tpu.memory_space<vmem>>, %arg7: memref<8x256xbf16, #tpu.memory_space<vmem>>, %arg8: memref<8x256xf32, #tpu.memory_space<vmem>>) attributes {dimension_semantics = [#tpu.dimension_semantics<parallel>, #tpu.dimension_semantics<parallel>, #tpu.dimension_semantics<arbitrary>], iteration_bounds = array<i64: 1, 1, 5>, scalar_prefetch = 0 : i64, scratch_operands = 1 : i64, tpu.core_type = #tpu.core_type<tc>, window_params = [{transform_indices = @transform_0, window_bounds = array<i64: 8, 512>}, {transform_indices = @transform_1, window_bounds = array<i64: 512, 256>}, {transform_indices = @transform_2, window_bounds = array<i64: 1, 256>}, {transform_indices = @transform_3, window_bounds = array<i64: 1, 256>}, {transform_indices = @transform_4, window_bounds = array<i64: 8, 256>}]} {
    %c0_i32 = arith.constant 0 : i32
    %0 = arith.cmpi eq, %arg2, %c0_i32 : i32
    %1 = arith.extui %0 : i1 to i32
    %c0_i32_0 = arith.constant 0 : i32
    %2 = arith.cmpi ne, %1, %c0_i32_0 : i32
    scf.if %2 {
      %cst_9 = arith.constant 0.000000e+00 : f32
      %12 = vector.broadcast %cst_9 : f32 to vector<8x256xf32>
      %c0_10 = arith.constant 0 : index
      %c0_11 = arith.constant 0 : index
      %13 = vector.load %arg8[%c0_10, %c0_11] : memref<8x256xf32, #tpu.memory_space<vmem>>, vector<8x256xf32>
      tpu.vector_store %arg8[%c0_10, %c0_11], %12 {strides = array<i32>} : memref<8x256xf32, #tpu.memory_space<vmem>>, vector<8x256xf32>,
    } else {
    }
    %c0 = arith.constant 0 : index
    %c0_1 = arith.constant 0 : index
    %3 = vector.load %arg8[%c0, %c0_1] : memref<8x256xf32, #tpu.memory_space<vmem>>, vector<8x256xf32>
    %c0_2 = arith.constant 0 : index
    %c0_3 = arith.constant 0 : index
    %4 = vector.load %arg3[%c0_2, %c0_3] : memref<8x512xbf16, #tpu.memory_space<vmem>>, vector<8x512xbf16>
    %c0_4 = arith.constant 0 : index
    %c0_5 = arith.constant 0 : index
    %5 = vector.load %arg4[%c0_4, %c0_5] : memref<512x256xbf16, #tpu.memory_space<vmem>>, vector<512x256xbf16>
    %cst = arith.constant dense<0.000000e+00> : vector<8x256xf32>
    %6 = tpu.matmul %4, %5, %cst {dimension_numbers = #tpu.dot_dimension_numbers<[1], [0], [0], [1], [0, 0, 1, 1], [], []>} : vector<8x512xbf16>, vector<512x256xbf16>, vector<8x256xf32> -> vector<8x256xf32>
    %7 = arith.addf %3, %6 : vector<8x256xf32>
    %c0_6 = arith.constant 0 : index
    %c0_7 = arith.constant 0 : index
    %8 = vector.load %arg8[%c0_6, %c0_7] : memref<8x256xf32, #tpu.memory_space<vmem>>, vector<8x256xf32>
    tpu.vector_store %arg8[%c0_6, %c0_7], %7 {strides = array<i32>} : memref<8x256xf32, #tpu.memory_space<vmem>>, vector<8x256xf32>,
    %c4_i32 = arith.constant 4 : i32
    %9 = arith.cmpi eq, %arg2, %c4_i32 : i32
    %10 = arith.extui %9 : i1 to i32
    %c0_i32_8 = arith.constant 0 : i32
    %11 = arith.cmpi ne, %10, %c0_i32_8 : i32
    scf.if %11 {
      %c0_9 = arith.constant 0 : index
      %c0_10 = arith.constant 0 : index
      %12 = vector.load %arg8[%c0_9, %c0_10] : memref<8x256xf32, #tpu.memory_space<vmem>>, vector<8x256xf32>
      %c0_11 = arith.constant 0 : index
      %c0_12 = arith.constant 0 : index
      %13 = vector.load %arg5[%c0_11, %c0_12] : memref<1x256xf32, #tpu.memory_space<vmem>>, vector<1x256xf32>
      %14 = vector.broadcast %13 : vector<1x256xf32> to vector<8x256xf32>
      %15 = arith.mulf %12, %14 : vector<8x256xf32>
      %c0_13 = arith.constant 0 : index
      %c0_14 = arith.constant 0 : index
      %16 = vector.load %arg6[%c0_13, %c0_14] : memref<1x256xf32, #tpu.memory_space<vmem>>, vector<1x256xf32>
      %17 = vector.broadcast %16 : vector<1x256xf32> to vector<8x256xf32>
      %18 = arith.addf %15, %17 : vector<8x256xf32>
      %cst_15 = arith.constant 0.000000e+00 : f32
      %19 = vector.broadcast %cst_15 : f32 to vector<8x256xf32>
      %20 = arith.maximumf %18, %19 : vector<8x256xf32>
      %21 = arith.truncf %20 : vector<8x256xf32> to vector<8x256xbf16>
      %c0_16 = arith.constant 0 : index
      %c0_17 = arith.constant 0 : index
      %22 = vector.load %arg7[%c0_16, %c0_17] : memref<8x256xbf16, #tpu.memory_space<vmem>>, vector<8x256xbf16>
      tpu.vector_store %arg7[%c0_16, %c0_17], %21 {strides = array<i32>} : memref<8x256xbf16, #tpu.memory_space<vmem>>, vector<8x256xbf16>,
    } else {
    }
    return
  }
  func.func @transform_0(%arg0: i32, %arg1: i32, %arg2: i32) -> (i32, i32) {
    %c0_i32 = arith.constant 0 : i32
    return %arg0, %arg2 : i32, i32
  }
  func.func @transform_1(%arg0: i32, %arg1: i32, %arg2: i32) -> (i32, i32) {
    %c0_i32 = arith.constant 0 : i32
    return %arg2, %arg1 : i32, i32
  }
  func.func @transform_2(%arg0: i32, %arg1: i32, %arg2: i32) -> (i32, i32) {
    %c0_i32 = arith.constant 0 : i32
    %c0_i32_0 = arith.constant 0 : i32
    return %c0_i32, %arg1 : i32, i32
  }
  func.func @transform_3(%arg0: i32, %arg1: i32, %arg2: i32) -> (i32, i32) {
    %c0_i32 = arith.constant 0 : i32
    %c0_i32_0 = arith.constant 0 : i32
    return %c0_i32, %arg1 : i32, i32
  }
  func.func @transform_4(%arg0: i32, %arg1: i32, %arg2: i32) -> (i32, i32) {
    %c0_i32 = arith.constant 0 : i32
    return %arg0, %arg1 : i32, i32
  }
}

module attributes {stable_mosaic.version = 11 : i64} {
  func.func @_mm_bn_kernel(%arg0: i32, %arg1: i32, %arg2: i32, %arg3: memref<8x512xbf16, #tpu.memory_space<vmem>>, %arg4: memref<512x256xbf16, #tpu.memory_space<vmem>>, %arg5: memref<1x256xf32, #tpu.memory_space<vmem>>, %arg6: memref<1x256xf32, #tpu.memory_space<vmem>>, %arg7: memref<8x256xbf16, #tpu.memory_space<vmem>>, %arg8: memref<8x256xf32, #tpu.memory_space<vmem>>) attributes {dimension_semantics = [#tpu.dimension_semantics<parallel>, #tpu.dimension_semantics<parallel>, #tpu.dimension_semantics<arbitrary>], iteration_bounds = array<i64: 1, 2, 5>, scalar_prefetch = 0 : i64, scratch_operands = 1 : i64, tpu.core_type = #tpu.core_type<tc>, window_params = [{transform_indices = @transform_0, window_bounds = array<i64: 8, 512>}, {transform_indices = @transform_1, window_bounds = array<i64: 512, 256>}, {transform_indices = @transform_2, window_bounds = array<i64: 1, 256>}, {transform_indices = @transform_3, window_bounds = array<i64: 1, 256>}, {transform_indices = @transform_4, window_bounds = array<i64: 8, 256>}]} {
    %c0_i32 = arith.constant 0 : i32
    %0 = arith.cmpi eq, %arg2, %c0_i32 : i32
    %1 = arith.extui %0 : i1 to i32
    %c0_i32_0 = arith.constant 0 : i32
    %2 = arith.cmpi ne, %1, %c0_i32_0 : i32
    scf.if %2 {
      %cst_9 = arith.constant 0.000000e+00 : f32
      %12 = vector.broadcast %cst_9 : f32 to vector<8x256xf32>
      %c0_10 = arith.constant 0 : index
      %c0_11 = arith.constant 0 : index
      %13 = vector.load %arg8[%c0_10, %c0_11] : memref<8x256xf32, #tpu.memory_space<vmem>>, vector<8x256xf32>
      tpu.vector_store %arg8[%c0_10, %c0_11], %12 {strides = array<i32>} : memref<8x256xf32, #tpu.memory_space<vmem>>, vector<8x256xf32>,
    } else {
    }
    %c0 = arith.constant 0 : index
    %c0_1 = arith.constant 0 : index
    %3 = vector.load %arg8[%c0, %c0_1] : memref<8x256xf32, #tpu.memory_space<vmem>>, vector<8x256xf32>
    %c0_2 = arith.constant 0 : index
    %c0_3 = arith.constant 0 : index
    %4 = vector.load %arg3[%c0_2, %c0_3] : memref<8x512xbf16, #tpu.memory_space<vmem>>, vector<8x512xbf16>
    %c0_4 = arith.constant 0 : index
    %c0_5 = arith.constant 0 : index
    %5 = vector.load %arg4[%c0_4, %c0_5] : memref<512x256xbf16, #tpu.memory_space<vmem>>, vector<512x256xbf16>
    %cst = arith.constant dense<0.000000e+00> : vector<8x256xf32>
    %6 = tpu.matmul %4, %5, %cst {dimension_numbers = #tpu.dot_dimension_numbers<[1], [0], [0], [1], [0, 0, 1, 1], [], []>} : vector<8x512xbf16>, vector<512x256xbf16>, vector<8x256xf32> -> vector<8x256xf32>
    %7 = arith.addf %3, %6 : vector<8x256xf32>
    %c0_6 = arith.constant 0 : index
    %c0_7 = arith.constant 0 : index
    %8 = vector.load %arg8[%c0_6, %c0_7] : memref<8x256xf32, #tpu.memory_space<vmem>>, vector<8x256xf32>
    tpu.vector_store %arg8[%c0_6, %c0_7], %7 {strides = array<i32>} : memref<8x256xf32, #tpu.memory_space<vmem>>, vector<8x256xf32>,
    %c4_i32 = arith.constant 4 : i32
    %9 = arith.cmpi eq, %arg2, %c4_i32 : i32
    %10 = arith.extui %9 : i1 to i32
    %c0_i32_8 = arith.constant 0 : i32
    %11 = arith.cmpi ne, %10, %c0_i32_8 : i32
    scf.if %11 {
      %c0_9 = arith.constant 0 : index
      %c0_10 = arith.constant 0 : index
      %12 = vector.load %arg8[%c0_9, %c0_10] : memref<8x256xf32, #tpu.memory_space<vmem>>, vector<8x256xf32>
      %c0_11 = arith.constant 0 : index
      %c0_12 = arith.constant 0 : index
      %13 = vector.load %arg5[%c0_11, %c0_12] : memref<1x256xf32, #tpu.memory_space<vmem>>, vector<1x256xf32>
      %14 = vector.broadcast %13 : vector<1x256xf32> to vector<8x256xf32>
      %15 = arith.mulf %12, %14 : vector<8x256xf32>
      %c0_13 = arith.constant 0 : index
      %c0_14 = arith.constant 0 : index
      %16 = vector.load %arg6[%c0_13, %c0_14] : memref<1x256xf32, #tpu.memory_space<vmem>>, vector<1x256xf32>
      %17 = vector.broadcast %16 : vector<1x256xf32> to vector<8x256xf32>
      %18 = arith.addf %15, %17 : vector<8x256xf32>
      %cst_15 = arith.constant 0.000000e+00 : f32
      %19 = vector.broadcast %cst_15 : f32 to vector<8x256xf32>
      %20 = arith.maximumf %18, %19 : vector<8x256xf32>
      %21 = arith.truncf %20 : vector<8x256xf32> to vector<8x256xbf16>
      %c0_16 = arith.constant 0 : index
      %c0_17 = arith.constant 0 : index
      %22 = vector.load %arg7[%c0_16, %c0_17] : memref<8x256xbf16, #tpu.memory_space<vmem>>, vector<8x256xbf16>
      tpu.vector_store %arg7[%c0_16, %c0_17], %21 {strides = array<i32>} : memref<8x256xbf16, #tpu.memory_space<vmem>>, vector<8x256xbf16>,
    } else {
    }
    return
  }
  func.func @transform_0(%arg0: i32, %arg1: i32, %arg2: i32) -> (i32, i32) {
    %c0_i32 = arith.constant 0 : i32
    return %arg0, %arg2 : i32, i32
  }
  func.func @transform_1(%arg0: i32, %arg1: i32, %arg2: i32) -> (i32, i32) {
    %c0_i32 = arith.constant 0 : i32
    return %arg2, %arg1 : i32, i32
  }
  func.func @transform_2(%arg0: i32, %arg1: i32, %arg2: i32) -> (i32, i32) {
    %c0_i32 = arith.constant 0 : i32
    %c0_i32_0 = arith.constant 0 : i32
    return %c0_i32, %arg1 : i32, i32
  }
  func.func @transform_3(%arg0: i32, %arg1: i32, %arg2: i32) -> (i32, i32) {
    %c0_i32 = arith.constant 0 : i32
    %c0_i32_0 = arith.constant 0 : i32
    return %c0_i32, %arg1 : i32, i32
  }
  func.func @transform_4(%arg0: i32, %arg1: i32, %arg2: i32) -> (i32, i32) {
    %c0_i32 = arith.constant 0 : i32
    return %arg0, %arg1 : i32, i32
  }
}

module attributes {stable_mosaic.version = 11 : i64} {
  func.func @_mm_bn_kernel(%arg0: i32, %arg1: i32, %arg2: i32, %arg3: memref<8x256xbf16, #tpu.memory_space<vmem>>, %arg4: memref<256x256xbf16, #tpu.memory_space<vmem>>, %arg5: memref<1x256xf32, #tpu.memory_space<vmem>>, %arg6: memref<1x256xf32, #tpu.memory_space<vmem>>, %arg7: memref<8x256xbf16, #tpu.memory_space<vmem>>, %arg8: memref<8x256xf32, #tpu.memory_space<vmem>>) attributes {dimension_semantics = [#tpu.dimension_semantics<parallel>, #tpu.dimension_semantics<parallel>, #tpu.dimension_semantics<arbitrary>], iteration_bounds = array<i64: 1, 2, 1>, scalar_prefetch = 0 : i64, scratch_operands = 1 : i64, tpu.core_type = #tpu.core_type<tc>, window_params = [{transform_indices = @transform_0, window_bounds = array<i64: 8, 256>}, {transform_indices = @transform_1, window_bounds = array<i64: 256, 256>}, {transform_indices = @transform_2, window_bounds = array<i64: 1, 256>}, {transform_indices = @transform_3, window_bounds = array<i64: 1, 256>}, {transform_indices = @transform_4, window_bounds = array<i64: 8, 256>}]} {
    %c0_i32 = arith.constant 0 : i32
    %0 = arith.cmpi eq, %arg2, %c0_i32 : i32
    %1 = arith.extui %0 : i1 to i32
    %c0_i32_0 = arith.constant 0 : i32
    %2 = arith.cmpi ne, %1, %c0_i32_0 : i32
    scf.if %2 {
      %cst_10 = arith.constant 0.000000e+00 : f32
      %12 = vector.broadcast %cst_10 : f32 to vector<8x256xf32>
      %c0_11 = arith.constant 0 : index
      %c0_12 = arith.constant 0 : index
      %13 = vector.load %arg8[%c0_11, %c0_12] : memref<8x256xf32, #tpu.memory_space<vmem>>, vector<8x256xf32>
      tpu.vector_store %arg8[%c0_11, %c0_12], %12 {strides = array<i32>} : memref<8x256xf32, #tpu.memory_space<vmem>>, vector<8x256xf32>,
    } else {
    }
    %c0 = arith.constant 0 : index
    %c0_1 = arith.constant 0 : index
    %3 = vector.load %arg8[%c0, %c0_1] : memref<8x256xf32, #tpu.memory_space<vmem>>, vector<8x256xf32>
    %c0_2 = arith.constant 0 : index
    %c0_3 = arith.constant 0 : index
    %4 = vector.load %arg3[%c0_2, %c0_3] : memref<8x256xbf16, #tpu.memory_space<vmem>>, vector<8x256xbf16>
    %c0_4 = arith.constant 0 : index
    %c0_5 = arith.constant 0 : index
    %5 = vector.load %arg4[%c0_4, %c0_5] : memref<256x256xbf16, #tpu.memory_space<vmem>>, vector<256x256xbf16>
    %cst = arith.constant dense<0.000000e+00> : vector<8x256xf32>
    %6 = tpu.matmul %4, %5, %cst {dimension_numbers = #tpu.dot_dimension_numbers<[1], [0], [0], [1], [0, 0, 1, 1], [], []>} : vector<8x256xbf16>, vector<256x256xbf16>, vector<8x256xf32> -> vector<8x256xf32>
    %7 = arith.addf %3, %6 : vector<8x256xf32>
    %c0_6 = arith.constant 0 : index
    %c0_7 = arith.constant 0 : index
    %8 = vector.load %arg8[%c0_6, %c0_7] : memref<8x256xf32, #tpu.memory_space<vmem>>, vector<8x256xf32>
    tpu.vector_store %arg8[%c0_6, %c0_7], %7 {strides = array<i32>} : memref<8x256xf32, #tpu.memory_space<vmem>>, vector<8x256xf32>,
    %c0_i32_8 = arith.constant 0 : i32
    %9 = arith.cmpi eq, %arg2, %c0_i32_8 : i32
    %10 = arith.extui %9 : i1 to i32
    %c0_i32_9 = arith.constant 0 : i32
    %11 = arith.cmpi ne, %10, %c0_i32_9 : i32
    scf.if %11 {
      %c0_10 = arith.constant 0 : index
      %c0_11 = arith.constant 0 : index
      %12 = vector.load %arg8[%c0_10, %c0_11] : memref<8x256xf32, #tpu.memory_space<vmem>>, vector<8x256xf32>
      %c0_12 = arith.constant 0 : index
      %c0_13 = arith.constant 0 : index
      %13 = vector.load %arg5[%c0_12, %c0_13] : memref<1x256xf32, #tpu.memory_space<vmem>>, vector<1x256xf32>
      %14 = vector.broadcast %13 : vector<1x256xf32> to vector<8x256xf32>
      %15 = arith.mulf %12, %14 : vector<8x256xf32>
      %c0_14 = arith.constant 0 : index
      %c0_15 = arith.constant 0 : index
      %16 = vector.load %arg6[%c0_14, %c0_15] : memref<1x256xf32, #tpu.memory_space<vmem>>, vector<1x256xf32>
      %17 = vector.broadcast %16 : vector<1x256xf32> to vector<8x256xf32>
      %18 = arith.addf %15, %17 : vector<8x256xf32>
      %19 = arith.truncf %18 : vector<8x256xf32> to vector<8x256xbf16>
      %c0_16 = arith.constant 0 : index
      %c0_17 = arith.constant 0 : index
      %20 = vector.load %arg7[%c0_16, %c0_17] : memref<8x256xbf16, #tpu.memory_space<vmem>>, vector<8x256xbf16>
      tpu.vector_store %arg7[%c0_16, %c0_17], %19 {strides = array<i32>} : memref<8x256xbf16, #tpu.memory_space<vmem>>, vector<8x256xbf16>,
    } else {
    }
    return
  }
  func.func @transform_0(%arg0: i32, %arg1: i32, %arg2: i32) -> (i32, i32) {
    %c0_i32 = arith.constant 0 : i32
    return %arg0, %arg2 : i32, i32
  }
  func.func @transform_1(%arg0: i32, %arg1: i32, %arg2: i32) -> (i32, i32) {
    %c0_i32 = arith.constant 0 : i32
    return %arg2, %arg1 : i32, i32
  }
  func.func @transform_2(%arg0: i32, %arg1: i32, %arg2: i32) -> (i32, i32) {
    %c0_i32 = arith.constant 0 : i32
    %c0_i32_0 = arith.constant 0 : i32
    return %c0_i32, %arg1 : i32, i32
  }
  func.func @transform_3(%arg0: i32, %arg1: i32, %arg2: i32) -> (i32, i32) {
    %c0_i32 = arith.constant 0 : i32
    %c0_i32_0 = arith.constant 0 : i32
    return %c0_i32, %arg1 : i32, i32
  }
  func.func @transform_4(%arg0: i32, %arg1: i32, %arg2: i32) -> (i32, i32) {
    %c0_i32 = arith.constant 0 : i32
    return %arg0, %arg1 : i32, i32
  }
}

module attributes {stable_mosaic.version = 11 : i64} {
  func.func @_mm_bn_res_kernel(%arg0: i32, %arg1: i32, %arg2: i32, %arg3: memref<8x512xbf16, #tpu.memory_space<vmem>>, %arg4: memref<512x256xbf16, #tpu.memory_space<vmem>>, %arg5: memref<1x256xf32, #tpu.memory_space<vmem>>, %arg6: memref<1x256xf32, #tpu.memory_space<vmem>>, %arg7: memref<8x256xbf16, #tpu.memory_space<vmem>>, %arg8: memref<8x256xbf16, #tpu.memory_space<vmem>>, %arg9: memref<8x256xf32, #tpu.memory_space<vmem>>) attributes {dimension_semantics = [#tpu.dimension_semantics<parallel>, #tpu.dimension_semantics<parallel>, #tpu.dimension_semantics<arbitrary>], iteration_bounds = array<i64: 1, 2, 9>, scalar_prefetch = 0 : i64, scratch_operands = 1 : i64, tpu.core_type = #tpu.core_type<tc>, window_params = [{transform_indices = @transform_0, window_bounds = array<i64: 8, 512>}, {transform_indices = @transform_1, window_bounds = array<i64: 512, 256>}, {transform_indices = @transform_2, window_bounds = array<i64: 1, 256>}, {transform_indices = @transform_3, window_bounds = array<i64: 1, 256>}, {transform_indices = @transform_4, window_bounds = array<i64: 8, 256>}, {transform_indices = @transform_5, window_bounds = array<i64: 8, 256>}]} {
    %c0_i32 = arith.constant 0 : i32
    %0 = arith.cmpi eq, %arg2, %c0_i32 : i32
    %1 = arith.extui %0 : i1 to i32
    %c0_i32_0 = arith.constant 0 : i32
    %2 = arith.cmpi ne, %1, %c0_i32_0 : i32
    scf.if %2 {
      %cst_9 = arith.constant 0.000000e+00 : f32
      %12 = vector.broadcast %cst_9 : f32 to vector<8x256xf32>
      %c0_10 = arith.constant 0 : index
      %c0_11 = arith.constant 0 : index
      %13 = vector.load %arg9[%c0_10, %c0_11] : memref<8x256xf32, #tpu.memory_space<vmem>>, vector<8x256xf32>
      tpu.vector_store %arg9[%c0_10, %c0_11], %12 {strides = array<i32>} : memref<8x256xf32, #tpu.memory_space<vmem>>, vector<8x256xf32>,
    } else {
    }
    %c0 = arith.constant 0 : index
    %c0_1 = arith.constant 0 : index
    %3 = vector.load %arg9[%c0, %c0_1] : memref<8x256xf32, #tpu.memory_space<vmem>>, vector<8x256xf32>
    %c0_2 = arith.constant 0 : index
    %c0_3 = arith.constant 0 : index
    %4 = vector.load %arg3[%c0_2, %c0_3] : memref<8x512xbf16, #tpu.memory_space<vmem>>, vector<8x512xbf16>
    %c0_4 = arith.constant 0 : index
    %c0_5 = arith.constant 0 : index
    %5 = vector.load %arg4[%c0_4, %c0_5] : memref<512x256xbf16, #tpu.memory_space<vmem>>, vector<512x256xbf16>
    %cst = arith.constant dense<0.000000e+00> : vector<8x256xf32>
    %6 = tpu.matmul %4, %5, %cst {dimension_numbers = #tpu.dot_dimension_numbers<[1], [0], [0], [1], [0, 0, 1, 1], [], []>} : vector<8x512xbf16>, vector<512x256xbf16>, vector<8x256xf32> -> vector<8x256xf32>
    %7 = arith.addf %3, %6 : vector<8x256xf32>
    %c0_6 = arith.constant 0 : index
    %c0_7 = arith.constant 0 : index
    %8 = vector.load %arg9[%c0_6, %c0_7] : memref<8x256xf32, #tpu.memory_space<vmem>>, vector<8x256xf32>
    tpu.vector_store %arg9[%c0_6, %c0_7], %7 {strides = array<i32>} : memref<8x256xf32, #tpu.memory_space<vmem>>, vector<8x256xf32>,
    %c8_i32 = arith.constant 8 : i32
    %9 = arith.cmpi eq, %arg2, %c8_i32 : i32
    %10 = arith.extui %9 : i1 to i32
    %c0_i32_8 = arith.constant 0 : i32
    %11 = arith.cmpi ne, %10, %c0_i32_8 : i32
    scf.if %11 {
      %c0_9 = arith.constant 0 : index
      %c0_10 = arith.constant 0 : index
      %12 = vector.load %arg9[%c0_9, %c0_10] : memref<8x256xf32, #tpu.memory_space<vmem>>, vector<8x256xf32>
      %c0_11 = arith.constant 0 : index
      %c0_12 = arith.constant 0 : index
      %13 = vector.load %arg5[%c0_11, %c0_12] : memref<1x256xf32, #tpu.memory_space<vmem>>, vector<1x256xf32>
      %14 = vector.broadcast %13 : vector<1x256xf32> to vector<8x256xf32>
      %15 = arith.mulf %12, %14 : vector<8x256xf32>
      %c0_13 = arith.constant 0 : index
      %c0_14 = arith.constant 0 : index
      %16 = vector.load %arg6[%c0_13, %c0_14] : memref<1x256xf32, #tpu.memory_space<vmem>>, vector<1x256xf32>
      %17 = vector.broadcast %16 : vector<1x256xf32> to vector<8x256xf32>
      %18 = arith.addf %15, %17 : vector<8x256xf32>
      %c0_15 = arith.constant 0 : index
      %c0_16 = arith.constant 0 : index
      %19 = vector.load %arg7[%c0_15, %c0_16] : memref<8x256xbf16, #tpu.memory_space<vmem>>, vector<8x256xbf16>
      %20 = arith.extf %19 : vector<8x256xbf16> to vector<8x256xf32>
      %21 = arith.addf %18, %20 : vector<8x256xf32>
      %cst_17 = arith.constant 0.000000e+00 : f32
      %22 = vector.broadcast %cst_17 : f32 to vector<8x256xf32>
      %23 = arith.maximumf %21, %22 : vector<8x256xf32>
      %24 = arith.truncf %23 : vector<8x256xf32> to vector<8x256xbf16>
      %c0_18 = arith.constant 0 : index
      %c0_19 = arith.constant 0 : index
      %25 = vector.load %arg8[%c0_18, %c0_19] : memref<8x256xbf16, #tpu.memory_space<vmem>>, vector<8x256xbf16>
      tpu.vector_store %arg8[%c0_18, %c0_19], %24 {strides = array<i32>} : memref<8x256xbf16, #tpu.memory_space<vmem>>, vector<8x256xbf16>,
    } else {
    }
    return
  }
  func.func @transform_0(%arg0: i32, %arg1: i32, %arg2: i32) -> (i32, i32) {
    %c0_i32 = arith.constant 0 : i32
    return %arg0, %arg2 : i32, i32
  }
  func.func @transform_1(%arg0: i32, %arg1: i32, %arg2: i32) -> (i32, i32) {
    %c0_i32 = arith.constant 0 : i32
    return %arg2, %arg1 : i32, i32
  }
  func.func @transform_2(%arg0: i32, %arg1: i32, %arg2: i32) -> (i32, i32) {
    %c0_i32 = arith.constant 0 : i32
    %c0_i32_0 = arith.constant 0 : i32
    return %c0_i32, %arg1 : i32, i32
  }
  func.func @transform_3(%arg0: i32, %arg1: i32, %arg2: i32) -> (i32, i32) {
    %c0_i32 = arith.constant 0 : i32
    %c0_i32_0 = arith.constant 0 : i32
    return %c0_i32, %arg1 : i32, i32
  }
  func.func @transform_4(%arg0: i32, %arg1: i32, %arg2: i32) -> (i32, i32) {
    %c0_i32 = arith.constant 0 : i32
    return %arg0, %arg1 : i32, i32
  }
  func.func @transform_5(%arg0: i32, %arg1: i32, %arg2: i32) -> (i32, i32) {
    %c0_i32 = arith.constant 0 : i32
    return %arg0, %arg1 : i32, i32
  }
}

module attributes {stable_mosaic.version = 11 : i64} {
  func.func @_mm_bn_kernel(%arg0: i32, %arg1: i32, %arg2: i32, %arg3: memref<8x512xbf16, #tpu.memory_space<vmem>>, %arg4: memref<512x256xbf16, #tpu.memory_space<vmem>>, %arg5: memref<1x256xf32, #tpu.memory_space<vmem>>, %arg6: memref<1x256xf32, #tpu.memory_space<vmem>>, %arg7: memref<8x256xbf16, #tpu.memory_space<vmem>>, %arg8: memref<8x256xf32, #tpu.memory_space<vmem>>) attributes {dimension_semantics = [#tpu.dimension_semantics<parallel>, #tpu.dimension_semantics<parallel>, #tpu.dimension_semantics<arbitrary>], iteration_bounds = array<i64: 1, 2, 9>, scalar_prefetch = 0 : i64, scratch_operands = 1 : i64, tpu.core_type = #tpu.core_type<tc>, window_params = [{transform_indices = @transform_0, window_bounds = array<i64: 8, 512>}, {transform_indices = @transform_1, window_bounds = array<i64: 512, 256>}, {transform_indices = @transform_2, window_bounds = array<i64: 1, 256>}, {transform_indices = @transform_3, window_bounds = array<i64: 1, 256>}, {transform_indices = @transform_4, window_bounds = array<i64: 8, 256>}]} {
    %c0_i32 = arith.constant 0 : i32
    %0 = arith.cmpi eq, %arg2, %c0_i32 : i32
    %1 = arith.extui %0 : i1 to i32
    %c0_i32_0 = arith.constant 0 : i32
    %2 = arith.cmpi ne, %1, %c0_i32_0 : i32
    scf.if %2 {
      %cst_9 = arith.constant 0.000000e+00 : f32
      %12 = vector.broadcast %cst_9 : f32 to vector<8x256xf32>
      %c0_10 = arith.constant 0 : index
      %c0_11 = arith.constant 0 : index
      %13 = vector.load %arg8[%c0_10, %c0_11] : memref<8x256xf32, #tpu.memory_space<vmem>>, vector<8x256xf32>
      tpu.vector_store %arg8[%c0_10, %c0_11], %12 {strides = array<i32>} : memref<8x256xf32, #tpu.memory_space<vmem>>, vector<8x256xf32>,
    } else {
    }
    %c0 = arith.constant 0 : index
    %c0_1 = arith.constant 0 : index
    %3 = vector.load %arg8[%c0, %c0_1] : memref<8x256xf32, #tpu.memory_space<vmem>>, vector<8x256xf32>
    %c0_2 = arith.constant 0 : index
    %c0_3 = arith.constant 0 : index
    %4 = vector.load %arg3[%c0_2, %c0_3] : memref<8x512xbf16, #tpu.memory_space<vmem>>, vector<8x512xbf16>
    %c0_4 = arith.constant 0 : index
    %c0_5 = arith.constant 0 : index
    %5 = vector.load %arg4[%c0_4, %c0_5] : memref<512x256xbf16, #tpu.memory_space<vmem>>, vector<512x256xbf16>
    %cst = arith.constant dense<0.000000e+00> : vector<8x256xf32>
    %6 = tpu.matmul %4, %5, %cst {dimension_numbers = #tpu.dot_dimension_numbers<[1], [0], [0], [1], [0, 0, 1, 1], [], []>} : vector<8x512xbf16>, vector<512x256xbf16>, vector<8x256xf32> -> vector<8x256xf32>
    %7 = arith.addf %3, %6 : vector<8x256xf32>
    %c0_6 = arith.constant 0 : index
    %c0_7 = arith.constant 0 : index
    %8 = vector.load %arg8[%c0_6, %c0_7] : memref<8x256xf32, #tpu.memory_space<vmem>>, vector<8x256xf32>
    tpu.vector_store %arg8[%c0_6, %c0_7], %7 {strides = array<i32>} : memref<8x256xf32, #tpu.memory_space<vmem>>, vector<8x256xf32>,
    %c8_i32 = arith.constant 8 : i32
    %9 = arith.cmpi eq, %arg2, %c8_i32 : i32
    %10 = arith.extui %9 : i1 to i32
    %c0_i32_8 = arith.constant 0 : i32
    %11 = arith.cmpi ne, %10, %c0_i32_8 : i32
    scf.if %11 {
      %c0_9 = arith.constant 0 : index
      %c0_10 = arith.constant 0 : index
      %12 = vector.load %arg8[%c0_9, %c0_10] : memref<8x256xf32, #tpu.memory_space<vmem>>, vector<8x256xf32>
      %c0_11 = arith.constant 0 : index
      %c0_12 = arith.constant 0 : index
      %13 = vector.load %arg5[%c0_11, %c0_12] : memref<1x256xf32, #tpu.memory_space<vmem>>, vector<1x256xf32>
      %14 = vector.broadcast %13 : vector<1x256xf32> to vector<8x256xf32>
      %15 = arith.mulf %12, %14 : vector<8x256xf32>
      %c0_13 = arith.constant 0 : index
      %c0_14 = arith.constant 0 : index
      %16 = vector.load %arg6[%c0_13, %c0_14] : memref<1x256xf32, #tpu.memory_space<vmem>>, vector<1x256xf32>
      %17 = vector.broadcast %16 : vector<1x256xf32> to vector<8x256xf32>
      %18 = arith.addf %15, %17 : vector<8x256xf32>
      %cst_15 = arith.constant 0.000000e+00 : f32
      %19 = vector.broadcast %cst_15 : f32 to vector<8x256xf32>
      %20 = arith.maximumf %18, %19 : vector<8x256xf32>
      %21 = arith.truncf %20 : vector<8x256xf32> to vector<8x256xbf16>
      %c0_16 = arith.constant 0 : index
      %c0_17 = arith.constant 0 : index
      %22 = vector.load %arg7[%c0_16, %c0_17] : memref<8x256xbf16, #tpu.memory_space<vmem>>, vector<8x256xbf16>
      tpu.vector_store %arg7[%c0_16, %c0_17], %21 {strides = array<i32>} : memref<8x256xbf16, #tpu.memory_space<vmem>>, vector<8x256xbf16>,
    } else {
    }
    return
  }
  func.func @transform_0(%arg0: i32, %arg1: i32, %arg2: i32) -> (i32, i32) {
    %c0_i32 = arith.constant 0 : i32
    return %arg0, %arg2 : i32, i32
  }
  func.func @transform_1(%arg0: i32, %arg1: i32, %arg2: i32) -> (i32, i32) {
    %c0_i32 = arith.constant 0 : i32
    return %arg2, %arg1 : i32, i32
  }
  func.func @transform_2(%arg0: i32, %arg1: i32, %arg2: i32) -> (i32, i32) {
    %c0_i32 = arith.constant 0 : i32
    %c0_i32_0 = arith.constant 0 : i32
    return %c0_i32, %arg1 : i32, i32
  }
  func.func @transform_3(%arg0: i32, %arg1: i32, %arg2: i32) -> (i32, i32) {
    %c0_i32 = arith.constant 0 : i32
    %c0_i32_0 = arith.constant 0 : i32
    return %c0_i32, %arg1 : i32, i32
  }
  func.func @transform_4(%arg0: i32, %arg1: i32, %arg2: i32) -> (i32, i32) {
    %c0_i32 = arith.constant 0 : i32
    return %arg0, %arg1 : i32, i32
  }
}

module attributes {stable_mosaic.version = 11 : i64} {
  func.func @_head_kernel(%arg0: i32, %arg1: memref<1x8x512xbf16, #tpu.memory_space<vmem>>, %arg2: memref<512x128xbf16, #tpu.memory_space<vmem>>, %arg3: memref<1x128xf32, #tpu.memory_space<vmem>>, %arg4: memref<8x128xf32, #tpu.memory_space<vmem>>) attributes {dimension_semantics = [#tpu.dimension_semantics<arbitrary>], iteration_bounds = array<i64: 1>, scalar_prefetch = 0 : i64, scratch_operands = 0 : i64, tpu.core_type = #tpu.core_type<tc>, window_params = [{pipeline_mode = #tpu.pipeline_mode<synchronous>, transform_indices = @transform_0, window_bounds = array<i64: 1, 8, 512>}, {pipeline_mode = #tpu.pipeline_mode<synchronous>, transform_indices = @transform_1, window_bounds = array<i64: 512, 128>}, {pipeline_mode = #tpu.pipeline_mode<synchronous>, transform_indices = @transform_2, window_bounds = array<i64: 1, 128>}, {pipeline_mode = #tpu.pipeline_mode<synchronous>, transform_indices = @transform_3, window_bounds = array<i64: 8, 128>}]} {
    %c0 = arith.constant 0 : index
    %c0_0 = arith.constant 0 : index
    %c0_1 = arith.constant 0 : index
    %0 = vector.load %arg1[%c0, %c0_0, %c0_1] : memref<1x8x512xbf16, #tpu.memory_space<vmem>>, vector<1x8x512xbf16>
    %1 = arith.extf %0 : vector<1x8x512xbf16> to vector<1x8x512xf32>
    %cst = arith.constant dense<0.000000e+00> : vector<8x512xf32>
    %2 = vector.multi_reduction <add>, %1, %cst [0] : vector<1x8x512xf32> to vector<8x512xf32>
    %cst_2 = arith.constant 1.000000e+00 : f32
    %3 = vector.broadcast %cst_2 : f32 to vector<8x512xf32>
    %4 = arith.mulf %2, %3 : vector<8x512xf32>
    %5 = arith.truncf %4 : vector<8x512xf32> to vector<8x512xbf16>
    %c0_3 = arith.constant 0 : index
    %c0_4 = arith.constant 0 : index
    %6 = vector.load %arg2[%c0_3, %c0_4] : memref<512x128xbf16, #tpu.memory_space<vmem>>, vector<512x128xbf16>
    %cst_5 = arith.constant dense<0.000000e+00> : vector<8x128xf32>
    %7 = tpu.matmul %5, %6, %cst_5 {dimension_numbers = #tpu.dot_dimension_numbers<[1], [0], [0], [1], [0, 0, 1, 1], [], []>} : vector<8x512xbf16>, vector<512x128xbf16>, vector<8x128xf32> -> vector<8x128xf32>
    %c0_6 = arith.constant 0 : index
    %c0_7 = arith.constant 0 : index
    %8 = vector.load %arg3[%c0_6, %c0_7] : memref<1x128xf32, #tpu.memory_space<vmem>>, vector<1x128xf32>
    %9 = vector.broadcast %8 : vector<1x128xf32> to vector<8x128xf32>
    %10 = arith.addf %7, %9 : vector<8x128xf32>
    %c0_8 = arith.constant 0 : index
    %c0_9 = arith.constant 0 : index
    %11 = vector.load %arg4[%c0_8, %c0_9] : memref<8x128xf32, #tpu.memory_space<vmem>>, vector<8x128xf32>
    tpu.vector_store %arg4[%c0_8, %c0_9], %10 {strides = array<i32>} : memref<8x128xf32, #tpu.memory_space<vmem>>, vector<8x128xf32>,
    return
  }
  func.func @transform_0(%arg0: i32) -> (i32, i32, i32) {
    %c0_i32 = arith.constant 0 : i32
    %c0_i32_0 = arith.constant 0 : i32
    %c0_i32_1 = arith.constant 0 : i32
    %c0_i32_2 = arith.constant 0 : i32
    return %c0_i32, %c0_i32_0, %c0_i32_1 : i32, i32, i32
  }
  func.func @transform_1(%arg0: i32) -> (i32, i32) {
    %c0_i32 = arith.constant 0 : i32
    %c0_i32_0 = arith.constant 0 : i32
    %c0_i32_1 = arith.constant 0 : i32
    return %c0_i32, %c0_i32_0 : i32, i32
  }
  func.func @transform_2(%arg0: i32) -> (i32, i32) {
    %c0_i32 = arith.constant 0 : i32
    %c0_i32_0 = arith.constant 0 : i32
    %c0_i32_1 = arith.constant 0 : i32
    return %c0_i32, %c0_i32_0 : i32, i32
  }
  func.func @transform_3(%arg0: i32) -> (i32, i32) {
    %c0_i32 = arith.constant 0 : i32
    %c0_i32_0 = arith.constant 0 : i32
    %c0_i32_1 = arith.constant 0 : i32
    return %c0_i32, %c0_i32_0 : i32, i32
  }
}

</mosaic_0001>

<bundles_post_ra>
// kernel: resnet18_forward.23
= control target key start
LH: loop header
LB: loop body
LE: loop exit
PB: predicated region body
PF: predicated region fallthrough
CT: control target
= control target key end

     0   :  { %vm81_vm0 = vcmask 1043456   ;;  %s712_s0 = inlined_call_operand.vmem [shape: bf16[9,64,128], index: 0, kind: input, shape index: {}]   ;;  %s713_s1 = inlined_call_operand.vmem [shape: bf16[64,128], index: 1, kind: output, shape index: {}]  }
   0x1   :  { %v9_v0 = vld [vmem:[%s712_s0] sm:$0xf]  ;;  %v10_v3 = vld [vmem:[%s712_s0 + $0x4] sm:$0xf]  ;;  %v11_v39 = vld [vmem:[%s712_s0 + $0x8] sm:$0xf] }
   0x2   :  { %v17_v1 = vld [vmem:[%s712_s0 + $0x20] sm:$0xf]  ;;  %v18_v4 = vld [vmem:[%s712_s0 + $0x24] sm:$0xf]  ;;  %v84_v7 = vsel %vm81_vm0, %v9_v0, 4286644096 }
   0x3   :  { %v25_v2 = vld [vmem:[%s712_s0 + $0x40] sm:$0xf]  ;;  %v26_v5 = vld [vmem:[%s712_s0 + $0x44] sm:$0xf]  ;;  %v87_v8 = vsel %vm81_vm0, %v17_v1, 4286644096 }
   0x4   :  { %v33_v6 = vld [vmem:[%s712_s0 + $0x60] sm:$0xf]  ;;  %v91_v9 = vsel %vm81_vm0, %v25_v2, 4286644096  ;;  %v89_v11 = vmax.bf16 %v87_v8, %v84_v7  ;;  %v34_v12 = vld [vmem:[%s712_s0 + $0x64] sm:$0xf] }
   0x5   :  { %v41_v10 = vld [vmem:[%s712_s0 + $0x80] sm:$0xf]  ;;  %v95_v14 = vsel %vm81_vm0, %v33_v6, 4286644096  ;;  %v119_v16 = vsel %vm81_vm0, %v10_v3, 4286644096 }
   0x6   :  { %v49_v13 = vld [vmem:[%s712_s0 + $0xa0] sm:$0xf]  ;;  %v93_v15 = vmax.bf16 %v91_v9, %v89_v11  ;;  %v122_v17 = vsel %vm81_vm0, %v18_v4, 4286644096  ;;  %v126_v18 = vsel %vm81_vm0, %v26_v5, 4286644096 }
   0x7   :  { %v42_v19 = vld [vmem:[%s712_s0 + $0x84] sm:$0xf]  ;;  %v99_v20 = vsel %vm81_vm0, %v41_v10, 4286644096  ;;  %v124_v21 = vmax.bf16 %v122_v17, %v119_v16  ;;  %v57_v23 = vld [vmem:[%s712_s0 + $0xc0] sm:$0xf] }
   0x8   :  { %v50_v22 = vld [vmem:[%s712_s0 + $0xa4] sm:$0xf]  ;;  %v97_v24 = vmax.bf16 %v95_v14, %v93_v15  ;;  %v130_v25 = vsel %vm81_vm0, %v34_v12, 4286644096  ;;  %v103_v27 = vsel %vm81_vm0, %v49_v13, 4286644096 }
   0x9   :  { %v58_v26 = vld [vmem:[%s712_s0 + $0xc4] sm:$0xf]  ;;  %v128_v28 = vmax.bf16 %v126_v18, %v124_v21  ;;  %v65_v29 = vld [vmem:[%s712_s0 + $0xe0] sm:$0xf]  ;;  %v134_v32 = vsel %vm81_vm0, %v42_v19, 4286644096 }
   0xa   :  { %v73_v30 = vld [vmem:[%s712_s0 + $0x100] sm:$0xf]  ;;  %v101_v31 = vmax.bf16 %v99_v20, %v97_v24  ;;  %v66_v33 = vld [vmem:[%s712_s0 + $0xe4] sm:$0xf]  ;;  %v107_v34 = vsel %vm81_vm0, %v57_v23, 4286644096 }
   0xb   :  { %v132_v35 = vmax.bf16 %v130_v25, %v128_v28  ;;  %v138_v36 = vsel %vm81_vm0, %v50_v22, 4286644096  ;;  %v74_v37 = vld [vmem:[%s712_s0 + $0x104] sm:$0xf]  ;;  %v19_v40 = vld [vmem:[%s712_s0 + $0x28] sm:$0xf] }
   0xc   :  { %v105_v38 = vmax.bf16 %v103_v27, %v101_v31  ;;  %v27_v41 = vld [vmem:[%s712_s0 + $0x48] sm:$0xf]  ;;  %v111_v42 = vsel %vm81_vm0, %v65_v29, 4286644096  ;;  %v115_v43 = vsel %vm81_vm0, %v73_v30, 4286644096 }
   0xd   :  { %v136_v44 = vmax.bf16 %v134_v32, %v132_v35  ;;  %v142_v45 = vsel %vm81_vm0, %v58_v26, 4286644096  ;;  %v12_v47 = vld [vmem:[%s712_s0 + $0xc] sm:$0xf]  ;;  %v35_v48 = vld [vmem:[%s712_s0 + $0x68] sm:$0xf] }
   0xe   :  { %v109_v46 = vmax.bf16 %v107_v34, %v105_v38  ;;  %v43_v49 = vld [vmem:[%s712_s0 + $0x88] sm:$0xf]  ;;  %v154_v51 = vsel %vm81_vm0, %v11_v39, 4286644096  ;;  %v157_v52 = vsel %vm81_vm0, %v19_v40, 4286644096 }
   0xf   :  { %v140_v50 = vmax.bf16 %v138_v36, %v136_v44  ;;  %v161_v53 = vsel %vm81_vm0, %v27_v41, 4286644096  ;;  %v146_v55 = vsel %vm81_vm0, %v66_v33, 4286644096  ;;  %v20_v56 = vld [vmem:[%s712_s0 + $0x2c] sm:$0xf]  ;;  %v159_v58 = vmax.bf16 %v157_v52, %v154_v51 }
  0x10   :  { %v113_v54 = vmax.bf16 %v111_v42, %v109_v46  ;;  %v28_v57 = vld [vmem:[%s712_s0 + $0x4c] sm:$0xf]  ;;  %v150_v60 = vsel %vm81_vm0, %v74_v37, 4286644096  ;;  %v165_v62 = vsel %vm81_vm0, %v35_v48, 4286644096 }
  0x11   :  { %v144_v59 = vmax.bf16 %v142_v45, %v140_v50  ;;  %v36_v61 = vld [vmem:[%s712_s0 + $0x6c] sm:$0xf]  ;;  %v51_v63 = vld [vmem:[%s712_s0 + $0xa8] sm:$0xf]  ;;  %v163_v0 = vmax.bf16 %v161_v53, %v159_v58  ;;  %v169_v1 = vsel %vm81_vm0, %v43_v49, 4286644096 }
  0x12   :  { %v189_v2 = vsel %vm81_vm0, %v12_v47, 4286644096  ;;  %v117_v3 = vmax.bf16 %v115_v43, %v113_v54  ;;  %v192_v5 = vsel %vm81_vm0, %v20_v56, 4286644096  ;;  %v196_v6 = vsel %vm81_vm0, %v28_v57, 4286644096 }
  0x13   :  { %v148_v4 = vmax.bf16 %v146_v55, %v144_v59  ;;  %v44_v7 = vld [vmem:[%s712_s0 + $0x8c] sm:$0xf]  ;;  %v59_v8 = vld [vmem:[%s712_s0 + $0xc8] sm:$0xf]  ;;  %v167_v9 = vmax.bf16 %v165_v62, %v163_v0  ;;  %v194_v10 = vmax.bf16 %v192_v5, %v189_v2  ;;  %v173_v12 = vsel %vm81_vm0, %v51_v63, 4286644096 }
  0x14   :  { %v200_v13 = vsel %vm81_vm0, %v36_v61, 4286644096  ;;  %v52_v14 = vld [vmem:[%s712_s0 + $0xac] sm:$0xf]  ;;  %v67_v16 = vld [vmem:[%s712_s0 + $0xe8] sm:$0xf] }
  0x15   :  { %v152_v11 = vmax.bf16 %v150_v60, %v148_v4  ;;  %v60_v15 = vld [vmem:[%s712_s0 + $0xcc] sm:$0xf]  ;;  %v171_v17 = vmax.bf16 %v169_v1, %v167_v9  ;;  %v198_v18 = vmax.bf16 %v196_v6, %v194_v10  ;;  %v75_v20 = vld [vmem:[%s712_s0 + $0x108] sm:$0xf]  ;;  %v177_v21 = vsel %vm81_vm0, %v59_v8, 4286644096 }
  0x16   :  { %v204_v22 = vsel %vm81_vm0, %v44_v7, 4286644096  ;;  %v68_v23 = vld [vmem:[%s712_s0 + $0xec] sm:$0xf]  ;;  %v13_v26 = vld [vmem:[%s712_s0 + $0x10] sm:$0xf] }
  0x17   :  { %v395_v19 = vcombine.low %v117_v3, %v152_v11  ;;  %v175_v24 = vmax.bf16 %v173_v12, %v171_v17  ;;  %v202_v25 = vmax.bf16 %v200_v13, %v198_v18  ;;  %v21_v27 = vld [vmem:[%s712_s0 + $0x30] sm:$0xf]  ;;  %v76_v29 = vld [vmem:[%s712_s0 + $0x10c] sm:$0xf]  ;;  %v181_v30 = vsel %vm81_vm0, %v67_v16, 4286644096 }
  0x18   :  { %v29_v28 = vld [vmem:[%s712_s0 + $0x50] sm:$0xf]  ;;  %v208_v31 = vsel %vm81_vm0, %v52_v14, 4286644096  ;;  %v185_v33 = vsel %vm81_vm0, %v75_v20, 4286644096 }
  0x19   :  { %379 = vst [vmem:[%s713_s1] sm:$0xff] %v395_v19   ;;  %v179_v32 = vmax.bf16 %v177_v21, %v175_v24  ;;  %v206_v34 = vmax.bf16 %v204_v22, %v202_v25  ;;  %v212_v35 = vsel %vm81_vm0, %v60_v15, 4286644096  ;;  %v37_v36 = vld [vmem:[%s712_s0 + $0x70] sm:$0xf]  ;;  %v224_v37 = vsel %vm81_vm0, %v13_v26, 4286644096 }
  0x1a   :  { %v227_v38 = vsel %vm81_vm0, %v21_v27, 4286644096  ;;  %v231_v39 = vsel %vm81_vm0, %v29_v28, 4286644096  ;;  %v14_v42 = vld [vmem:[%s712_s0 + $0x14] sm:$0xf] }
  0x1b   :  { %v183_v40 = vmax.bf16 %v181_v30, %v179_v32  ;;  %v210_v41 = vmax.bf16 %v208_v31, %v206_v34  ;;  %v22_v43 = vld [vmem:[%s712_s0 + $0x34] sm:$0xf]  ;;  %v45_v44 = vld [vmem:[%s712_s0 + $0x90] sm:$0xf]  ;;  %v229_v45 = vmax.bf16 %v227_v38, %v224_v37  ;;  %v216_v46 = vsel %vm81_vm0, %v68_v23, 4286644096 }
  0x1c   :  { %v30_v47 = vld [vmem:[%s712_s0 + $0x54] sm:$0xf]  ;;  %v235_v48 = vsel %vm81_vm0, %v37_v36, 4286644096  ;;  %v220_v50 = vsel %vm81_vm0, %v76_v29, 4286644096 }
  0x1d   :  { %v214_v49 = vmax.bf16 %v212_v35, %v210_v41  ;;  %v38_v51 = vld [vmem:[%s712_s0 + $0x74] sm:$0xf]  ;;  %v53_v52 = vld [vmem:[%s712_s0 + $0xb0] sm:$0xf]  ;;  %v233_v53 = vmax.bf16 %v231_v39, %v229_v45  ;;  %v187_v54 = vmax.bf16 %v185_v33, %v183_v40  ;;  %v239_v55 = vsel %vm81_vm0, %v45_v44, 4286644096 }
  0x1e   :  { %v259_v56 = vsel %vm81_vm0, %v14_v42, 4286644096  ;;  %v262_v57 = vsel %vm81_vm0, %v22_v43, 4286644096  ;;  %v46_v59 = vld [vmem:[%s712_s0 + $0x94] sm:$0xf] }
  0x1f   :  { %v218_v58 = vmax.bf16 %v216_v46, %v214_v49  ;;  %v61_v60 = vld [vmem:[%s712_s0 + $0xd0] sm:$0xf]  ;;  %v237_v61 = vmax.bf16 %v235_v48, %v233_v53  ;;  %v264_v62 = vmax.bf16 %v262_v57, %v259_v56  ;;  %v266_v63 = vsel %vm81_vm0, %v30_v47, 4286644096  ;;  %v54_v3 = vld [vmem:[%s712_s0 + $0xb4] sm:$0xf] }
  0x20   :  { %v243_v0 = vsel %vm81_vm0, %v53_v52, 4286644096  ;;  %v270_v1 = vsel %vm81_vm0, %v38_v51, 4286644096  ;;  %v62_v4 = vld [vmem:[%s712_s0 + $0xd4] sm:$0xf] }
  0x21   :  { %v222_v2 = vmax.bf16 %v220_v50, %v218_v58  ;;  %v69_v5 = vld [vmem:[%s712_s0 + $0xf0] sm:$0xf]  ;;  %v241_v6 = vmax.bf16 %v239_v55, %v237_v61  ;;  %v268_v7 = vmax.bf16 %v266_v63, %v264_v62  ;;  %v247_v9 = vsel %vm81_vm0, %v61_v60, 4286644096  ;;  %v70_v12 = vld [vmem:[%s712_s0 + $0xf4] sm:$0xf] }
  0x22   :  { %v77_v8 = vld [vmem:[%s712_s0 + $0x110] sm:$0xf]  ;;  %v274_v10 = vsel %vm81_vm0, %v46_v59, 4286644096  ;;  %v15_v15 = vld [vmem:[%s712_s0 + $0x18] sm:$0xf] }
  0x23   :  { %v396_v11 = vcombine.low %v187_v54, %v222_v2  ;;  %v245_v13 = vmax.bf16 %v243_v0, %v241_v6  ;;  %v272_v14 = vmax.bf16 %v270_v1, %v268_v7  ;;  %v23_v16 = vld [vmem:[%s712_s0 + $0x38] sm:$0xf]  ;;  %v78_v18 = vld [vmem:[%s712_s0 + $0x114] sm:$0xf]  ;;  %v251_v19 = vsel %vm81_vm0, %v69_v5, 4286644096 }
  0x24   :  { %v31_v17 = vld [vmem:[%s712_s0 + $0x58] sm:$0xf]  ;;  %v278_v20 = vsel %vm81_vm0, %v54_v3, 4286644096  ;;  %v282_v23 = vsel %vm81_vm0, %v62_v4, 4286644096 }
  0x25   :  { %397 = vst [vmem:[%s713_s1 + $0x8] sm:$0xff] %v396_v11   ;;  %v249_v21 = vmax.bf16 %v247_v9, %v245_v13  ;;  %v276_v22 = vmax.bf16 %v274_v10, %v272_v14  ;;  %v16_v24 = vld [vmem:[%s712_s0 + $0x1c] sm:$0xf]  ;;  %v39_v25 = vld [vmem:[%s712_s0 + $0x78] sm:$0xf] }
  0x26   :  { %v294_v26 = vsel %vm81_vm0, %v15_v15, 4286644096  ;;  %v297_v27 = vsel %vm81_vm0, %v23_v16, 4286644096  ;;  %v301_v28 = vsel %vm81_vm0, %v31_v17, 4286644096 }
  0x27   :  { %v253_v29 = vmax.bf16 %v251_v19, %v249_v21  ;;  %v255_v30 = vsel %vm81_vm0, %v77_v8, 4286644096  ;;  %v280_v31 = vmax.bf16 %v278_v20, %v276_v22  ;;  %v24_v32 = vld [vmem:[%s712_s0 + $0x3c] sm:$0xf]  ;;  %v47_v33 = vld [vmem:[%s712_s0 + $0x98] sm:$0xf]  ;;  %v299_v34 = vmax.bf16 %v297_v27, %v294_v26 }
  0x28   :  { %v286_v35 = vsel %vm81_vm0, %v70_v12, 4286644096  ;;  %v32_v36 = vld [vmem:[%s712_s0 + $0x5c] sm:$0xf]  ;;  %v305_v37 = vsel %vm81_vm0, %v39_v25, 4286644096 }
  0x29   :  { %v284_v38 = vmax.bf16 %v282_v23, %v280_v31  ;;  %v290_v39 = vsel %vm81_vm0, %v78_v18, 4286644096  ;;  %v40_v40 = vld [vmem:[%s712_s0 + $0x7c] sm:$0xf]  ;;  %v55_v41 = vld [vmem:[%s712_s0 + $0xb8] sm:$0xf]  ;;  %v303_v42 = vmax.bf16 %v301_v28, %v299_v34  ;;  %v257_v43 = vmax.bf16 %v255_v30, %v253_v29 }
  0x2a   :  { %v309_v44 = vsel %vm81_vm0, %v47_v33, 4286644096  ;;  %v329_v45 = vsel %vm81_vm0, %v16_v24, 4286644096  ;;  %v332_v46 = vsel %vm81_vm0, %v24_v32, 4286644096 }
  0x2b   :  { %v288_v47 = vmax.bf16 %v286_v35, %v284_v38  ;;  %v48_v48 = vld [vmem:[%s712_s0 + $0x9c] sm:$0xf]  ;;  %v63_v49 = vld [vmem:[%s712_s0 + $0xd8] sm:$0xf]  ;;  %v307_v50 = vmax.bf16 %v305_v37, %v303_v42  ;;  %v334_v51 = vmax.bf16 %v332_v46, %v329_v45  ;;  %v336_v52 = vsel %vm81_vm0, %v32_v36, 4286644096 }
  0x2c   :  { %v313_v53 = vsel %vm81_vm0, %v55_v41, 4286644096  ;;  %v340_v54 = vsel %vm81_vm0, %v40_v40, 4286644096  ;;  %v56_v56 = vld [vmem:[%s712_s0 + $0xbc] sm:$0xf] }
  0x2d   :  { %v292_v55 = vmax.bf16 %v290_v39, %v288_v47  ;;  %v71_v57 = vld [vmem:[%s712_s0 + $0xf8] sm:$0xf]  ;;  %v311_v58 = vmax.bf16 %v309_v44, %v307_v50  ;;  %v338_v59 = vmax.bf16 %v336_v52, %v334_v51  ;;  %v317_v60 = vsel %vm81_vm0, %v63_v49, 4286644096  ;;  %v64_v63 = vld [vmem:[%s712_s0 + $0xdc] sm:$0xf] }
  0x2e   :  { %v344_v61 = vsel %vm81_vm0, %v48_v48, 4286644096  ;;  %v321_v2 = vsel %vm81_vm0, %v71_v57, 4286644096  ;;  %v348_v3 = vsel %vm81_vm0, %v56_v56, 4286644096 }
  0x2f   :  { %v398_v62 = vcombine.low %v257_v43, %v292_v55  ;;  %v315_v0 = vmax.bf16 %v313_v53, %v311_v58  ;;  %v342_v1 = vmax.bf16 %v340_v54, %v338_v59  ;;  %v72_v4 = vld [vmem:[%s712_s0 + $0xfc] sm:$0xf]  ;;  %v79_v5 = vld [vmem:[%s712_s0 + $0x118] sm:$0xf]  ;;  %v352_v8 = vsel %vm81_vm0, %v64_v63, 4286644096 }
  0x30   :  { %v80_v9 = vld [vmem:[%s712_s0 + $0x11c] sm:$0xf]  ;;  %v325_v12 = vsel %vm81_vm0, %v79_v5, 4286644096  ;;  %v356_v13 = vsel %vm81_vm0, %v72_v4, 4286644096 }
  0x31   :  { %399 = vst [vmem:[%s713_s1 + $0x10] sm:$0xff] %v398_v62   ;;  %v319_v6 = vmax.bf16 %v317_v60, %v315_v0  ;;  %v346_v7 = vmax.bf16 %v344_v61, %v342_v1  ;;  %v360_v15 = vsel %vm81_vm0, %v80_v9, 4286644096 }
  0x33   :  { %v323_v10 = vmax.bf16 %v321_v2, %v319_v6  ;;  %v350_v11 = vmax.bf16 %v348_v3, %v346_v7 }
  0x35   :  { %v354_v14 = vmax.bf16 %v352_v8, %v350_v11  ;;  %v327_v16 = vmax.bf16 %v325_v12, %v323_v10 }
  0x37   :  { %v358_v17 = vmax.bf16 %v356_v13, %v354_v14 }
  0x39   :  { %v362_v18 = vmax.bf16 %v360_v15, %v358_v17 }
  0x3b   :  { %v400_v19 = vcombine.low %v327_v16, %v362_v18 }
  0x3d   :  { %401 = vst [vmem:[%s713_s1 + $0x18] sm:$0xff] %v400_v19  }

// kernel: resnet18_forward.22
= control target key start
LH: loop header
LB: loop body
LE: loop exit
PB: predicated region body
PF: predicated region fallthrough
CT: control target
= control target key end

     0   :  { %s1843_s15 = smov 0   ;;  %s1845_s16 = smov 0   ;;  %s2054_s0 = inlined_call_operand.vmem [shape: bf16[512,256], index: 0, kind: input, shape index: {}]   ;;  %s2055_s1 = inlined_call_operand.vmem [shape: bf16[256,128], index: 1, kind: input, shape index: {}]   ;;  %s2056_s2 = inlined_call_operand.vmem [shape: f32[1,128], index: 2, kind: input, shape index: {}]   ;;  %s2057_s3 = inlined_call_operand.vmem [shape: f32[1,128], index: 3, kind: input, shape index: {}]   ;;  %s2058_s4 = inlined_call_operand.vmem [shape: bf16[512,128], index: 4, kind: output, shape index: {}]  }
   0x1   :  { %s1847_s17 = smov 0  }
   0x2 LB: > { %s33_s18 = sadd.s32 1, %s1812_s16  ;;  %p1360_p0 = scmp.ge.s32.totalorder %s1816_s17, 1  ;;  %s1816_s17 = sphi %s1847_s17, %s14_s17   ;;  %s1812_s16 = sphi %s1845_s16, %s2060_s16   ;;  %s1808_s15 = sphi %s1843_s15, %s2059_s15  }
   0x3   : > { %p35_p1 = scmp.ge.s32.totalorder %s33_s18, 2  ;;  %p224_p2 = scmp.lt.s32.totalorder %s1816_s17, 3 }
   0x5   : > { %s2062_s18 = smov (%p35_p1, %s33_s18), 0  ;;  %p225_p3 = pnand %p1360_p0, %p224_p2 }
   0x6   : > { %v1730_v0 = vld [vmem:[%s2055_s1 + $0x40] sm:$0xff] (!%p225_p3)   ;;  %s1361_s21 = sshll.u32 (!%p225_p3), %s1808_s15, 5  ;;  %v1732_v2 = vld [vmem:[%s2055_s1 + $0x48] sm:$0xff] (!%p225_p3)   ;;  %v1734_v4 = vld [vmem:[%s2055_s1 + $0x50] sm:$0xff] (!%p225_p3)  }
   0x7   : > { %228 = sbr.rel (%p225_p3) target bundleno = 322 (0x142), region = 36  ;;  %v1731_v1 = vld [vmem:[%s2055_s1] sm:$0xff] (!%p225_p3)   ;;  %1578 = vmatprep.subr.bf16.mxu0 (!%p225_p3), %v1730_v0  ;;  %1690 = vmatprep.subr.bf16.mxu1 (!%p225_p3), %v1730_v0  ;;  %v1733_v3 = vld [vmem:[%s2055_s1 + $0x8] sm:$0xff] (!%p225_p3)   ;;  %p274_p4 = scmp.lt.s32.totalorder (!%p225_p3), %s1361_s21, 63  ;;  %v1735_v5 = vld [vmem:[%s2055_s1 + $0x10] sm:$0xff] (!%p225_p3)  }
   0x8   : > { %1579 = vmatpush3.bf16.msra.mxu0 (!%p225_p3), %v1731_v1  ;;  %1698 = vmatpush3.bf16.msra.mxu1 (!%p225_p3), %v1731_v1  ;;  %v1736_v6 = vld [vmem:[%s2055_s1 + $0x58] sm:$0xff] (!%p225_p3)   ;;  %v1738_v8 = vld [vmem:[%s2055_s1 + $0x60] sm:$0xff] (!%p225_p3)   ;;  %v1740_v10 = vld [vmem:[%s2055_s1 + $0x68] sm:$0xff] (!%p225_p3)  }
   0x9   : > { %1580 = vmatprep.subr.bf16.mxu0 (!%p225_p3), %v1732_v2  ;;  %1691 = vmatprep.subr.bf16.mxu1 (!%p225_p3), %v1732_v2  ;;  %v1737_v7 = vld [vmem:[%s2055_s1 + $0x18] sm:$0xff] (!%p225_p3)   ;;  %v1739_v9 = vld [vmem:[%s2055_s1 + $0x20] sm:$0xff] (!%p225_p3)   ;;  %v1741_v13 = vld [vmem:[%s2055_s1 + $0x28] sm:$0xff] (!%p225_p3)  }
   0xa   : > { %v1742_v14 = vld [vmem:[%s2055_s1 + $0x70] sm:$0xff] (!%p225_p3)   ;;  %v1744_v16 = vld [vmem:[%s2055_s1 + $0x78] sm:$0xff] (!%p225_p3)   ;;  %v1952_v51 = vld [vmem:[%s2056_s2] ss:$0 sm:$0xff] (!%p225_p3) }
   0xb   : > { %v1743_v15 = vld [vmem:[%s2055_s1 + $0x30] sm:$0xff] (!%p225_p3)   ;;  %v1745_v17 = vld [vmem:[%s2055_s1 + $0x38] sm:$0xff] (!%p225_p3)   ;;  %v1957_v57 = vld [vmem:[%s2057_s3] ss:$0 sm:$0xff] (!%p225_p3) }
   0xc   : > { %1581 = vmatpush3.bf16.msra.mxu0 (!%p225_p3), %v1733_v3  ;;  %1699 = vmatpush3.bf16.msra.mxu1 (!%p225_p3), %v1733_v3 }
   0xd   : > { %1582 = vmatprep.subr.bf16.mxu0 (!%p225_p3), %v1734_v4  ;;  %1692 = vmatprep.subr.bf16.mxu1 (!%p225_p3), %v1734_v4 }
   0xe   : > { %s2064_s21 = smov (!%p274_p4, %s1361_s21), 63 }
   0xf   : > { %s1450_s10 = sshll.u32 %s2064_s21, 3  ;;  %s1365_s12 = sshll.u32 %s2064_s21, 2 }
  0x10   : > { %1583 = vmatpush3.bf16.msra.mxu0 %v1735_v5  ;;  %1700 = vmatpush3.bf16.msra.mxu1 %v1735_v5  ;;  %s1894_s15 = scalar_lea.vmem %s2054_s0, %s1450_s10  ;;  %s1971_s21 = scalar_lea.vmem %s2058_s4, %s1365_s12 }
  0x11   : > { %1584 = vmatprep.subr.bf16.mxu0 %v1736_v6  ;;  %1693 = vmatprep.subr.bf16.mxu1 %v1736_v6  ;;  %v1748_v11 = vld [vmem:[%s1894_s15 + $0x4] ss:$8 sps:$4 sm:$0xff]   ;;  %v1746_v18 = vld [vmem:[%s1894_s15] ss:$8 sps:$4 sm:$0xff]   ;;  %v1752_v20 = vld [vmem:[%s1894_s15 + $0x14] ss:$8 sps:$4 sm:$0xff]  }
  0x12   : > { %v1751_v12 = vld [vmem:[%s1894_s15 + $0x84] ss:$8 sps:$4 sm:$0xff]   ;;  %729 = vmatprep.mubr.bf16.mxu0 %v1748_v11  ;;  %v1749_v19 = vld [vmem:[%s1894_s15 + $0x80] ss:$8 sps:$4 sm:$0xff]   ;;  %v1754_v21 = vld [vmem:[%s1894_s15 + $0x94] ss:$8 sps:$4 sm:$0xff]  }
  0x13   : > { %793 = vmatprep.mubr.bf16.mxu1 %v1751_v12  ;;  %v1756_v22 = vld [vmem:[%s1894_s15 + $0x10] ss:$8 sps:$4 sm:$0xff]   ;;  %v1758_v24 = vld [vmem:[%s1894_s15 + $0x24] ss:$8 sps:$4 sm:$0xff]   ;;  %v1762_v26 = vld [vmem:[%s1894_s15 + $0x20] ss:$8 sps:$4 sm:$0xff]  }
  0x14   : > { %1585 = vmatpush3.bf16.msra.mxu0 %v1737_v7  ;;  %1701 = vmatpush3.bf16.msra.mxu1 %v1737_v7  ;;  %v1757_v23 = vld [vmem:[%s1894_s15 + $0x90] ss:$8 sps:$4 sm:$0xff]   ;;  %v1760_v25 = vld [vmem:[%s1894_s15 + $0xa4] ss:$8 sps:$4 sm:$0xff]   ;;  %v1763_v27 = vld [vmem:[%s1894_s15 + $0xa0] ss:$8 sps:$4 sm:$0xff]  }
  0x15   : > { %1586 = vmatprep.subr.bf16.mxu0 %v1738_v8  ;;  %1694 = vmatprep.subr.bf16.mxu1 %v1738_v8  ;;  %v1764_v28 = vld [vmem:[%s1894_s15 + $0x34] ss:$8 sps:$4 sm:$0xff]   ;;  %v1768_v30 = vld [vmem:[%s1894_s15 + $0x30] ss:$8 sps:$4 sm:$0xff]   ;;  %v1770_v32 = vld [vmem:[%s1894_s15 + $0x44] ss:$8 sps:$4 sm:$0xff]  }
  0x16   : > { %v1766_v29 = vld [vmem:[%s1894_s15 + $0xb4] ss:$8 sps:$4 sm:$0xff]   ;;  %v1769_v31 = vld [vmem:[%s1894_s15 + $0xb0] ss:$8 sps:$4 sm:$0xff]   ;;  %v1772_v33 = vld [vmem:[%s1894_s15 + $0xc4] ss:$8 sps:$4 sm:$0xff]  }
  0x17   : > { %v1774_v34 = vld [vmem:[%s1894_s15 + $0x40] ss:$8 sps:$4 sm:$0xff]   ;;  %v1776_v36 = vld [vmem:[%s1894_s15 + $0x54] ss:$8 sps:$4 sm:$0xff]   ;;  %v1780_v38 = vld [vmem:[%s1894_s15 + $0x50] ss:$8 sps:$4 sm:$0xff]  }
  0x18   : > { %1587 = vmatpush3.bf16.msra.mxu0 %v1739_v9  ;;  %1702 = vmatpush3.bf16.msra.mxu1 %v1739_v9  ;;  %v1775_v35 = vld [vmem:[%s1894_s15 + $0xc0] ss:$8 sps:$4 sm:$0xff]   ;;  %v1778_v37 = vld [vmem:[%s1894_s15 + $0xd4] ss:$8 sps:$4 sm:$0xff]   ;;  %v1781_v39 = vld [vmem:[%s1894_s15 + $0xd0] ss:$8 sps:$4 sm:$0xff]  }
  0x19   : > { %1588 = vmatprep.subr.bf16.mxu0 %v1740_v10  ;;  %1695 = vmatprep.subr.bf16.mxu1 %v1740_v10  ;;  %v1782_v40 = vld [vmem:[%s1894_s15 + $0x64] ss:$8 sps:$4 sm:$0xff]   ;;  %v1786_v42 = vld [vmem:[%s1894_s15 + $0x60] ss:$8 sps:$4 sm:$0xff]   ;;  %v1788_v44 = vld [vmem:[%s1894_s15 + $0x74] ss:$8 sps:$4 sm:$0xff]  }
  0x1a   : > { %v1784_v41 = vld [vmem:[%s1894_s15 + $0xe4] ss:$8 sps:$4 sm:$0xff]   ;;  %v1787_v43 = vld [vmem:[%s1894_s15 + $0xe0] ss:$8 sps:$4 sm:$0xff]   ;;  %v1790_v45 = vld [vmem:[%s1894_s15 + $0xf4] ss:$8 sps:$4 sm:$0xff]  }
  0x1b   : > { %v1792_v46 = vld [vmem:[%s1894_s15 + $0x70] ss:$8 sps:$4 sm:$0xff]  }
  0x1c   : > { %1589 = vmatpush3.bf16.msra.mxu0 %v1741_v13  ;;  %1703 = vmatpush3.bf16.msra.mxu1 %v1741_v13  ;;  %v1793_v47 = vld [vmem:[%s1894_s15 + $0xf0] ss:$8 sps:$4 sm:$0xff]  }
  0x1d   : > { %1590 = vmatprep.subr.bf16.mxu0 %v1742_v14  ;;  %1696 = vmatprep.subr.bf16.mxu1 %v1742_v14 }
  0x20   : > { %1591 = vmatpush3.bf16.msra.mxu0 %v1743_v15  ;;  %1704 = vmatpush3.bf16.msra.mxu1 %v1743_v15 }
  0x21   : > { %1592 = vmatprep.subr.bf16.mxu0 %v1744_v16  ;;  %1697 = vmatprep.subr.bf16.mxu1 %v1744_v16 }
  0x24   : > { %1593 = vmatpush3.bf16.msra.mxu0 %v1745_v17  ;;  %1705 = vmatpush3.bf16.msra.mxu1 %v1745_v17 }
  0x27   : > { %730 = vmatmul.mubr.bf16.vlgmr.msra.gmra.mrb[0].mxu0 %v1746_v18  ;;  %794 = vmatmul.mubr.bf16.vlgmr.msra.gmra.mrb[0].mxu1 %v1749_v19 }
  0x28   : > { %737 = vmatprep.mubr.bf16.mxu0 %v1752_v20  ;;  %801 = vmatprep.mubr.bf16.mxu1 %v1754_v21 }
  0x2f   : > { %738 = vmatmul.mubr.bf16.gmra.mrb[4].mxu0 %v1756_v22  ;;  %802 = vmatmul.mubr.bf16.gmra.mrb[4].mxu1 %v1757_v23 }
  0x30   : > { %745 = vmatprep.mubr.bf16.mxu0 %v1758_v24  ;;  %809 = vmatprep.mubr.bf16.mxu1 %v1760_v25 }
  0x37   : > { %746 = vmatmul.mubr.bf16.gmra.mrb[8].mxu0 %v1762_v26  ;;  %810 = vmatmul.mubr.bf16.gmra.mrb[8].mxu1 %v1763_v27 }
  0x38   : > { %753 = vmatprep.mubr.bf16.mxu0 %v1764_v28  ;;  %817 = vmatprep.mubr.bf16.mxu1 %v1766_v29 }
  0x3f   : > { %754 = vmatmul.mubr.bf16.gmra.mrb[12].mxu0 %v1768_v30  ;;  %818 = vmatmul.mubr.bf16.gmra.mrb[12].mxu1 %v1769_v31 }
  0x40   : > { %761 = vmatprep.mubr.bf16.mxu0 %v1770_v32  ;;  %825 = vmatprep.mubr.bf16.mxu1 %v1772_v33 }
  0x47   : > { %762 = vmatmul.mubr.bf16.gmra.mrb[16].mxu0 %v1774_v34  ;;  %826 = vmatmul.mubr.bf16.gmra.mrb[16].mxu1 %v1775_v35 }
  0x48   : > { %769 = vmatprep.mubr.bf16.mxu0 %v1776_v36  ;;  %833 = vmatprep.mubr.bf16.mxu1 %v1778_v37 }
  0x4f   : > { %770 = vmatmul.mubr.bf16.gmra.mrb[20].mxu0 %v1780_v38  ;;  %834 = vmatmul.mubr.bf16.gmra.mrb[20].mxu1 %v1781_v39 }
  0x50   : > { %777 = vmatprep.mubr.bf16.mxu0 %v1782_v40  ;;  %841 = vmatprep.mubr.bf16.mxu1 %v1784_v41 }
  0x57   : > { %778 = vmatmul.mubr.bf16.gmra.mrb[24].mxu0 %v1786_v42  ;;  %842 = vmatmul.mubr.bf16.gmra.mrb[24].mxu1 %v1787_v43 }
  0x58   : > { %785 = vmatprep.mubr.bf16.mxu0 %v1788_v44  ;;  %849 = vmatprep.mubr.bf16.mxu1 %v1790_v45 }
  0x5f   : > { %786 = vmatmul.mubr.bf16.gmra.mrb[28].mxu0 %v1792_v46  ;;  %850 = vmatmul.mubr.bf16.gmra.mrb[28].mxu1 %v1793_v47 }
  0xfa   : > { %v1594_v48 = vpop.f32.mrb[0].mxu0  ;;  %v1642_v49 = vpop.f32.mrb[0].mxu1 }
  0xfb   : > { %v1595_v50 = vpop.f32.mrb[1].mxu0  ;;  %v1643_v52 = vpop.f32.mrb[1].mxu1 }
  0xfc   : > { %v1596_v53 = vadd.f32 %v1595_v50, %v1594_v48  ;;  %v1644_v54 = vadd.f32 %v1643_v52, %v1642_v49  ;;  %v1597_v55 = vpop.f32.mrb[2].mxu0  ;;  %v1645_v56 = vpop.f32.mrb[2].mxu1 }
  0xfd   : > { %v1598_v58 = vpop.f32.mrb[3].mxu0  ;;  %v1646_v59 = vpop.f32.mrb[3].mxu1 }
  0xfe   : > { %v964_v60 = vmul.f32 %v1596_v53, %v1952_v51  ;;  %v980_v61 = vmul.f32 %v1644_v54, %v1952_v51  ;;  %v1599_v62 = vadd.f32 %v1598_v58, %v1597_v55  ;;  %v1647_v63 = vadd.f32 %v1646_v59, %v1645_v56 }
 0x100   : > { %v1003_v0 = vadd.f32 %v1957_v57, %v964_v60  ;;  %v1019_v1 = vadd.f32 %v1957_v57, %v980_v61  ;;  %v965_v2 = vmul.f32 %v1599_v62, %v1952_v51  ;;  %v981_v3 = vmul.f32 %v1647_v63, %v1952_v51 }
 0x102   : > { %v1004_v4 = vadd.f32 %v1957_v57, %v965_v2  ;;  %v1020_v5 = vadd.f32 %v1957_v57, %v981_v3  ;;  %v1600_v6 = vpop.f32.mrb[4].mxu0  ;;  %v1648_v7 = vpop.f32.mrb[4].mxu1  ;;  %v1035_v8 = vmax.f32 %v1003_v0, 0.0  ;;  %v1051_v9 = vmax.f32 %v1019_v1, 0.0 }
 0x103   : > { %v1601_v10 = vpop.f32.mrb[5].mxu0  ;;  %v1649_v11 = vpop.f32.mrb[5].mxu1 }
 0x104   : > { %v1036_v12 = vmax.f32 %v1004_v4, 0.0  ;;  %v1052_v13 = vmax.f32 %v1020_v5, 0.0  ;;  %v1602_v14 = vadd.f32 %v1601_v10, %v1600_v6  ;;  %v1650_v15 = vadd.f32 %v1649_v11, %v1648_v7  ;;  %v1603_v16 = vpop.f32.mrb[6].mxu0  ;;  %v1651_v17 = vpop.f32.mrb[6].mxu1 }
 0x105   : > { %v1604_v18 = vpop.f32.mrb[7].mxu0  ;;  %v1652_v19 = vpop.f32.mrb[7].mxu1 }
 0x106   : > { %v1486_v20 = vpack.c.bf16 %v1036_v12, %v1035_v8  ;;  %v1526_v21 = vpack.c.bf16 %v1052_v13, %v1051_v9  ;;  %v966_v22 = vmul.f32 %v1602_v14, %v1952_v51  ;;  %v982_v23 = vmul.f32 %v1650_v15, %v1952_v51 }
 0x107   : > { %v1605_v24 = vadd.f32 %v1604_v18, %v1603_v16  ;;  %v1653_v25 = vadd.f32 %v1652_v19, %v1651_v17 }
 0x108   : > { %1487 = vst [vmem:[%s1971_s21] sm:$0xff] %v1486_v20   ;;  %1570 = vst [vmem:[%s1971_s21 + $0x40] sm:$0xff] %v1526_v21   ;;  %v1005_v26 = vadd.f32 %v1957_v57, %v966_v22  ;;  %v1021_v27 = vadd.f32 %v1957_v57, %v982_v23 }
 0x109   : > { %v967_v28 = vmul.f32 %v1605_v24, %v1952_v51  ;;  %v983_v29 = vmul.f32 %v1653_v25, %v1952_v51 }
 0x10a   : > { %v1606_v30 = vpop.f32.mrb[8].mxu0  ;;  %v1654_v31 = vpop.f32.mrb[8].mxu1  ;;  %v1037_v40 = vmax.f32 %v1005_v26, 0.0  ;;  %v1053_v41 = vmax.f32 %v1021_v27, 0.0 }
 0x10b   : > { %v1006_v32 = vadd.f32 %v1957_v57, %v967_v28  ;;  %v1022_v33 = vadd.f32 %v1957_v57, %v983_v29  ;;  %v1607_v34 = vpop.f32.mrb[9].mxu0  ;;  %v1655_v35 = vpop.f32.mrb[9].mxu1 }
 0x10c   : > { %v1608_v36 = vadd.f32 %v1607_v34, %v1606_v30  ;;  %v1656_v37 = vadd.f32 %v1655_v35, %v1654_v31  ;;  %v1609_v38 = vpop.f32.mrb[10].mxu0  ;;  %v1657_v39 = vpop.f32.mrb[10].mxu1 }
 0x10d   : > { %v1038_v42 = vmax.f32 %v1006_v32, 0.0  ;;  %v1054_v43 = vmax.f32 %v1022_v33, 0.0  ;;  %v1610_v44 = vpop.f32.mrb[11].mxu0  ;;  %v1658_v45 = vpop.f32.mrb[11].mxu1 }
 0x10e   : > { %v968_v46 = vmul.f32 %v1608_v36, %v1952_v51  ;;  %v984_v47 = vmul.f32 %v1656_v37, %v1952_v51  ;;  %v1611_v48 = vadd.f32 %v1610_v44, %v1609_v38  ;;  %v1659_v49 = vadd.f32 %v1658_v45, %v1657_v39 }
 0x10f   : > { %v1491_v50 = vpack.c.bf16 %v1038_v42, %v1037_v40  ;;  %v1531_v52 = vpack.c.bf16 %v1054_v43, %v1053_v41 }
 0x110   : > { %v1007_v53 = vadd.f32 %v1957_v57, %v968_v46  ;;  %v1023_v54 = vadd.f32 %v1957_v57, %v984_v47  ;;  %v969_v55 = vmul.f32 %v1611_v48, %v1952_v51  ;;  %v985_v56 = vmul.f32 %v1659_v49, %v1952_v51 }
 0x111   : > { %1563 = vst [vmem:[%s1971_s21 + $0x8] sm:$0xff] %v1491_v50   ;;  %1571 = vst [vmem:[%s1971_s21 + $0x48] sm:$0xff] %v1531_v52  }
 0x112   : > { %v1008_v58 = vadd.f32 %v1957_v57, %v969_v55  ;;  %v1024_v59 = vadd.f32 %v1957_v57, %v985_v56  ;;  %v1612_v60 = vpop.f32.mrb[12].mxu0  ;;  %v1660_v61 = vpop.f32.mrb[12].mxu1  ;;  %v1039_v62 = vmax.f32 %v1007_v53, 0.0  ;;  %v1055_v63 = vmax.f32 %v1023_v54, 0.0 }
 0x113   : > { %v1613_v0 = vpop.f32.mrb[13].mxu0  ;;  %v1661_v1 = vpop.f32.mrb[13].mxu1 }
 0x114   : > { %v1040_v2 = vmax.f32 %v1008_v58, 0.0  ;;  %v1056_v3 = vmax.f32 %v1024_v59, 0.0  ;;  %v1614_v4 = vadd.f32 %v1613_v0, %v1612_v60  ;;  %v1662_v5 = vadd.f32 %v1661_v1, %v1660_v61  ;;  %v1615_v6 = vpop.f32.mrb[14].mxu0  ;;  %v1663_v7 = vpop.f32.mrb[14].mxu1 }
 0x115   : > { %v1616_v8 = vpop.f32.mrb[15].mxu0  ;;  %v1664_v9 = vpop.f32.mrb[15].mxu1 }
 0x116   : > { %v1496_v10 = vpack.c.bf16 %v1040_v2, %v1039_v62  ;;  %v1536_v11 = vpack.c.bf16 %v1056_v3, %v1055_v63  ;;  %v970_v12 = vmul.f32 %v1614_v4, %v1952_v51  ;;  %v986_v13 = vmul.f32 %v1662_v5, %v1952_v51 }
 0x117   : > { %v1617_v14 = vadd.f32 %v1616_v8, %v1615_v6  ;;  %v1665_v15 = vadd.f32 %v1664_v9, %v1663_v7 }
 0x118   : > { %1564 = vst [vmem:[%s1971_s21 + $0x10] sm:$0xff] %v1496_v10   ;;  %1572 = vst [vmem:[%s1971_s21 + $0x50] sm:$0xff] %v1536_v11   ;;  %v1009_v16 = vadd.f32 %v1957_v57, %v970_v12  ;;  %v1025_v17 = vadd.f32 %v1957_v57, %v986_v13 }
 0x119   : > { %v971_v18 = vmul.f32 %v1617_v14, %v1952_v51  ;;  %v987_v19 = vmul.f32 %v1665_v15, %v1952_v51 }
 0x11a   : > { %v1618_v20 = vpop.f32.mrb[16].mxu0  ;;  %v1666_v21 = vpop.f32.mrb[16].mxu1  ;;  %v1041_v30 = vmax.f32 %v1009_v16, 0.0  ;;  %v1057_v31 = vmax.f32 %v1025_v17, 0.0 }
 0x11b   : > { %v1010_v22 = vadd.f32 %v1957_v57, %v971_v18  ;;  %v1026_v23 = vadd.f32 %v1957_v57, %v987_v19  ;;  %v1619_v24 = vpop.f32.mrb[17].mxu0  ;;  %v1667_v25 = vpop.f32.mrb[17].mxu1 }
 0x11c   : > { %v1620_v26 = vadd.f32 %v1619_v24, %v1618_v20  ;;  %v1668_v27 = vadd.f32 %v1667_v25, %v1666_v21  ;;  %v1621_v28 = vpop.f32.mrb[18].mxu0  ;;  %v1669_v29 = vpop.f32.mrb[18].mxu1 }
 0x11d   : > { %v1042_v32 = vmax.f32 %v1010_v22, 0.0  ;;  %v1058_v33 = vmax.f32 %v1026_v23, 0.0  ;;  %v1622_v34 = vpop.f32.mrb[19].mxu0  ;;  %v1670_v35 = vpop.f32.mrb[19].mxu1 }
 0x11e   : > { %v972_v36 = vmul.f32 %v1620_v26, %v1952_v51  ;;  %v988_v37 = vmul.f32 %v1668_v27, %v1952_v51  ;;  %v1623_v38 = vadd.f32 %v1622_v34, %v1621_v28  ;;  %v1671_v39 = vadd.f32 %v1670_v35, %v1669_v29 }
 0x11f   : > { %v1501_v40 = vpack.c.bf16 %v1042_v32, %v1041_v30  ;;  %v1541_v41 = vpack.c.bf16 %v1058_v33, %v1057_v31 }
 0x120   : > { %v1011_v42 = vadd.f32 %v1957_v57, %v972_v36  ;;  %v1027_v43 = vadd.f32 %v1957_v57, %v988_v37  ;;  %v973_v44 = vmul.f32 %v1623_v38, %v1952_v51  ;;  %v989_v45 = vmul.f32 %v1671_v39, %v1952_v51 }
 0x121   : > { %1565 = vst [vmem:[%s1971_s21 + $0x18] sm:$0xff] %v1501_v40   ;;  %1573 = vst [vmem:[%s1971_s21 + $0x58] sm:$0xff] %v1541_v41  }
 0x122   : > { %v1012_v46 = vadd.f32 %v1957_v57, %v973_v44  ;;  %v1028_v47 = vadd.f32 %v1957_v57, %v989_v45  ;;  %v1624_v48 = vpop.f32.mrb[20].mxu0  ;;  %v1672_v49 = vpop.f32.mrb[20].mxu1  ;;  %v1043_v50 = vmax.f32 %v1011_v42, 0.0  ;;  %v1059_v52 = vmax.f32 %v1027_v43, 0.0 }
 0x123   : > { %v1625_v53 = vpop.f32.mrb[21].mxu0  ;;  %v1673_v54 = vpop.f32.mrb[21].mxu1 }
 0x124   : > { %v1044_v55 = vmax.f32 %v1012_v46, 0.0  ;;  %v1060_v56 = vmax.f32 %v1028_v47, 0.0  ;;  %v1626_v58 = vadd.f32 %v1625_v53, %v1624_v48  ;;  %v1674_v59 = vadd.f32 %v1673_v54, %v1672_v49  ;;  %v1627_v60 = vpop.f32.mrb[22].mxu0  ;;  %v1675_v61 = vpop.f32.mrb[22].mxu1 }
 0x125   : > { %v1628_v62 = vpop.f32.mrb[23].mxu0  ;;  %v1676_v63 = vpop.f32.mrb[23].mxu1 }
 0x126   : > { %v1506_v0 = vpack.c.bf16 %v1044_v55, %v1043_v50  ;;  %v1546_v1 = vpack.c.bf16 %v1060_v56, %v1059_v52  ;;  %v974_v2 = vmul.f32 %v1626_v58, %v1952_v51  ;;  %v990_v3 = vmul.f32 %v1674_v59, %v1952_v51 }
 0x127   : > { %v1629_v4 = vadd.f32 %v1628_v62, %v1627_v60  ;;  %v1677_v5 = vadd.f32 %v1676_v63, %v1675_v61 }
 0x128   : > { %1566 = vst [vmem:[%s1971_s21 + $0x20] sm:$0xff] %v1506_v0   ;;  %1574 = vst [vmem:[%s1971_s21 + $0x60] sm:$0xff] %v1546_v1   ;;  %v1013_v6 = vadd.f32 %v1957_v57, %v974_v2  ;;  %v1029_v7 = vadd.f32 %v1957_v57, %v990_v3 }
 0x129   : > { %v975_v8 = vmul.f32 %v1629_v4, %v1952_v51  ;;  %v991_v9 = vmul.f32 %v1677_v5, %v1952_v51 }
 0x12a   : > { %v1630_v10 = vpop.f32.mrb[24].mxu0  ;;  %v1678_v11 = vpop.f32.mrb[24].mxu1  ;;  %v1045_v20 = vmax.f32 %v1013_v6, 0.0  ;;  %v1061_v21 = vmax.f32 %v1029_v7, 0.0 }
 0x12b   : > { %v1014_v12 = vadd.f32 %v1957_v57, %v975_v8  ;;  %v1030_v13 = vadd.f32 %v1957_v57, %v991_v9  ;;  %v1631_v14 = vpop.f32.mrb[25].mxu0  ;;  %v1679_v15 = vpop.f32.mrb[25].mxu1 }
 0x12c   : > { %v1632_v16 = vadd.f32 %v1631_v14, %v1630_v10  ;;  %v1680_v17 = vadd.f32 %v1679_v15, %v1678_v11  ;;  %v1633_v18 = vpop.f32.mrb[26].mxu0  ;;  %v1681_v19 = vpop.f32.mrb[26].mxu1 }
 0x12d   : > { %v1046_v22 = vmax.f32 %v1014_v12, 0.0  ;;  %v1062_v23 = vmax.f32 %v1030_v13, 0.0  ;;  %v1634_v24 = vpop.f32.mrb[27].mxu0  ;;  %v1682_v25 = vpop.f32.mrb[27].mxu1 }
 0x12e   : > { %v976_v26 = vmul.f32 %v1632_v16, %v1952_v51  ;;  %v992_v27 = vmul.f32 %v1680_v17, %v1952_v51  ;;  %v1635_v28 = vadd.f32 %v1634_v24, %v1633_v18  ;;  %v1683_v29 = vadd.f32 %v1682_v25, %v1681_v19 }
 0x12f   : > { %v1511_v30 = vpack.c.bf16 %v1046_v22, %v1045_v20  ;;  %v1551_v31 = vpack.c.bf16 %v1062_v23, %v1061_v21 }
 0x130   : > { %v1015_v32 = vadd.f32 %v1957_v57, %v976_v26  ;;  %v1031_v33 = vadd.f32 %v1957_v57, %v992_v27  ;;  %v977_v34 = vmul.f32 %v1635_v28, %v1952_v51  ;;  %v993_v35 = vmul.f32 %v1683_v29, %v1952_v51 }
 0x131   : > { %1567 = vst [vmem:[%s1971_s21 + $0x28] sm:$0xff] %v1511_v30   ;;  %1575 = vst [vmem:[%s1971_s21 + $0x68] sm:$0xff] %v1551_v31  }
 0x132   : > { %v1016_v36 = vadd.f32 %v1957_v57, %v977_v34  ;;  %v1032_v37 = vadd.f32 %v1957_v57, %v993_v35  ;;  %v1636_v38 = vpop.f32.mrb[28].mxu0  ;;  %v1684_v39 = vpop.f32.mrb[28].mxu1  ;;  %v1047_v40 = vmax.f32 %v1015_v32, 0.0  ;;  %v1063_v41 = vmax.f32 %v1031_v33, 0.0 }
 0x133   : > { %v1637_v42 = vpop.f32.mrb[29].mxu0  ;;  %v1685_v43 = vpop.f32.mrb[29].mxu1 }
 0x134   : > { %v1048_v44 = vmax.f32 %v1016_v36, 0.0  ;;  %v1064_v45 = vmax.f32 %v1032_v37, 0.0  ;;  %v1638_v46 = vadd.f32 %v1637_v42, %v1636_v38  ;;  %v1686_v47 = vadd.f32 %v1685_v43, %v1684_v39  ;;  %v1639_v48 = vpop.f32.mrb[30].mxu0  ;;  %v1687_v49 = vpop.f32.mrb[30].mxu1 }
 0x135   : > { %v1640_v50 = vpop.f32.mrb[31].mxu0  ;;  %v1688_v52 = vpop.f32.mrb[31].mxu1 }
 0x136   : > { %v1516_v53 = vpack.c.bf16 %v1048_v44, %v1047_v40  ;;  %v1556_v54 = vpack.c.bf16 %v1064_v45, %v1063_v41  ;;  %v978_v55 = vmul.f32 %v1638_v46, %v1952_v51  ;;  %v994_v56 = vmul.f32 %v1686_v47, %v1952_v51 }
 0x137   : > { %v1641_v58 = vadd.f32 %v1640_v50, %v1639_v48  ;;  %v1689_v59 = vadd.f32 %v1688_v52, %v1687_v49 }
 0x138   : > { %1568 = vst [vmem:[%s1971_s21 + $0x30] sm:$0xff] %v1516_v53   ;;  %1576 = vst [vmem:[%s1971_s21 + $0x70] sm:$0xff] %v1556_v54   ;;  %v1017_v60 = vadd.f32 %v1957_v57, %v978_v55  ;;  %v1033_v61 = vadd.f32 %v1957_v57, %v994_v56 }
 0x139   : > { %v979_v62 = vmul.f32 %v1641_v58, %v1952_v51  ;;  %v995_v63 = vmul.f32 %v1689_v59, %v1952_v51 }
 0x13a   : > { %v1049_v2 = vmax.f32 %v1017_v60, 0.0  ;;  %v1065_v3 = vmax.f32 %v1033_v61, 0.0 }
 0x13b   : > { %v1018_v0 = vadd.f32 %v1957_v57, %v979_v62  ;;  %v1034_v1 = vadd.f32 %v1957_v57, %v995_v63 }
 0x13d   : > { %v1050_v4 = vmax.f32 %v1018_v0, 0.0  ;;  %v1066_v5 = vmax.f32 %v1034_v1, 0.0 }
 0x13f   : > { %v1521_v6 = vpack.c.bf16 %v1050_v4, %v1049_v2  ;;  %v1561_v7 = vpack.c.bf16 %v1066_v5, %v1065_v3 }
 0x141   : > { %1569 = vst [vmem:[%s1971_s21 + $0x38] sm:$0xff] %v1521_v6   ;;  %1577 = vst [vmem:[%s1971_s21 + $0x78] sm:$0xff] %v1561_v7  }
 0x142 PF: > { %s14_s17 = sadd.s32 1, %s1816_s17   ;;  %s2059_s15 = smov %s1812_s16 }
 0x143   : > { %p11_p5 = scmp.ge.s32.totalorder %s14_s17, 4   ;;  %s2060_s16 = smov %s2062_s18 }
 0x145   :  { %13 = sbr.rel (!%p11_p5) target bundleno = 2 (0x2), region = 83 }

// kernel: resnet18_forward.24
= control target key start
LH: loop header
LB: loop body
LE: loop exit
PB: predicated region body
PF: predicated region fallthrough
CT: control target
= control target key end

     0   :  { %s1423_s15 = smov 0   ;;  %s1425_s16 = smov 0   ;;  %s1610_s0 = inlined_call_operand.vmem [shape: bf16[128,768], index: 0, kind: input, shape index: {}]   ;;  %s1611_s1 = inlined_call_operand.vmem [shape: bf16[768,128], index: 1, kind: input, shape index: {}]   ;;  %s1612_s2 = inlined_call_operand.vmem [shape: f32[1,128], index: 2, kind: input, shape index: {}]   ;;  %s1613_s3 = inlined_call_operand.vmem [shape: f32[1,128], index: 3, kind: input, shape index: {}]   ;;  %s1614_s4 = inlined_call_operand.vmem [shape: bf16[128,128], index: 4, kind: output, shape index: {}]  }
   0x1   :  { %s1427_s17 = smov 0   ;;  %s1429_s18 = smov 0  }
   0x2   :  { %s1431_s19 = smov 0  }
   0x3 LB: > { %s26_s20 = sadd.s32 1, %s1391_s18  ;;  %p49_p1 = scmp.ne.s32.totalorder %s1383_s16, %s1379_s15  ;;  %s1395_s19 = sphi %s1431_s19, %s14_s19   ;;  %s1391_s18 = sphi %s1429_s18, %s1618_s18   ;;  %s1387_s17 = sphi %s1427_s17, %s1617_s17   ;;  %s1383_s16 = sphi %s1425_s16, %s1616_s16   ;;  %s1379_s15 = sphi %s1423_s15, %s1615_s15  }
   0x4   : > { %p27_p0 = scmp.ge.s32.totalorder %s26_s20, 3  ;;  %p50_p2 = scmp.eq.s32.totalorder %s1395_s19, 0 }
   0x5   : > { %s42_s22 = sadd.s32 1, %s1383_s16  ;;  %p1068_p5 = scmp.ge.s32.totalorder %s1395_s19, 3 }
   0x6   : > { %s1620_s20 = smov (%p27_p0, %s26_s20), 0  ;;  %p51_p3 = por %p50_p2, %p49_p1 }
   0x7   : > { %s38_s21 = ssub.s32 %s1391_s18, %s1620_s20  ;;  %195 = sbr.rel (%p1068_p5) target bundleno = 26 (0x1a), region = 24 }
   0x8   : > { %p40_p4 = scmp.eq.s32.totalorder %s38_s21, 0 }
   0xa   : > { %s1458_s23 = scalar_select %p40_p4, %s1383_s16, %s42_s22  }
   0xe   : > { %198 = sbr.rel (!%p51_p3) target bundleno = 26 (0x1a), region = 28  ;;  %s200_s24 = sand.u32 (%p51_p3), 1, %s1383_s16  }
   0xf   : > { %s1132_s25 = sshll.u32 (%p51_p3), %s1391_s18, 3  ;;  %s1069_s26 = sshll.u32 (%p51_p3), %s200_s24, 7 }
  0x10   : > { %s1466_s29 = scalar_lea.vmem (%p51_p3), %s1610_s0, %s1132_s25  ;;  %s202_s30 = scalar_lea.vmem (%p51_p3), [#allocation3], %s1069_s26 }
  0x11   : > { %v266_v0 = vld [vmem:[%s1466_s29] sm:$0xff] (%p51_p3)  ;;  %v268_v1 = vld [vmem:[%s1466_s29 + $0x18] sm:$0xff] (%p51_p3)  ;;  %v270_v2 = vld [vmem:[%s1466_s29 + $0x30] sm:$0xff] (%p51_p3) }
  0x12   : > { %267 = vst [vmem:[%s202_s30] sm:$0xff] (%p51_p3), %v266_v0  ;;  %269 = vst [vmem:[%s202_s30 + $0x8] sm:$0xff] (%p51_p3), %v268_v1  ;;  %v272_v3 = vld [vmem:[%s1466_s29 + $0x48] sm:$0xff] (%p51_p3)  ;;  %v274_v4 = vld [vmem:[%s1466_s29 + $0x60] sm:$0xff] (%p51_p3) }
  0x13   : > { %271 = vst [vmem:[%s202_s30 + $0x10] sm:$0xff] (%p51_p3), %v270_v2  ;;  %v276_v5 = vld [vmem:[%s1466_s29 + $0x78] sm:$0xff] (%p51_p3)  ;;  %273 = vst [vmem:[%s202_s30 + $0x18] sm:$0xff] (%p51_p3), %v272_v3  ;;  %v278_v6 = vld [vmem:[%s1466_s29 + $0x90] sm:$0xff] (%p51_p3) }
  0x14   : > { %275 = vst [vmem:[%s202_s30 + $0x20] sm:$0xff] (%p51_p3), %v274_v4  ;;  %277 = vst [vmem:[%s202_s30 + $0x28] sm:$0xff] (%p51_p3), %v276_v5  ;;  %v280_v7 = vld [vmem:[%s1466_s29 + $0xa8] sm:$0xff] (%p51_p3)  ;;  %v282_v8 = vld [vmem:[%s1466_s29 + $0xc0] sm:$0xff] (%p51_p3) }
  0x15   : > { %279 = vst [vmem:[%s202_s30 + $0x30] sm:$0xff] %v278_v6  ;;  %281 = vst [vmem:[%s202_s30 + $0x38] sm:$0xff] %v280_v7  ;;  %v284_v9 = vld [vmem:[%s1466_s29 + $0xd8] sm:$0xff]  ;;  %v286_v10 = vld [vmem:[%s1466_s29 + $0xf0] sm:$0xff] }
  0x16   : > { %283 = vst [vmem:[%s202_s30 + $0x40] sm:$0xff] %v282_v8  ;;  %v288_v11 = vld [vmem:[%s1466_s29 + $0x108] sm:$0xff]  ;;  %285 = vst [vmem:[%s202_s30 + $0x48] sm:$0xff] %v284_v9  ;;  %v290_v12 = vld [vmem:[%s1466_s29 + $0x120] sm:$0xff] }
  0x17   : > { %287 = vst [vmem:[%s202_s30 + $0x50] sm:$0xff] %v286_v10  ;;  %289 = vst [vmem:[%s202_s30 + $0x58] sm:$0xff] %v288_v11  ;;  %v292_v13 = vld [vmem:[%s1466_s29 + $0x138] sm:$0xff]  ;;  %v294_v14 = vld [vmem:[%s1466_s29 + $0x150] sm:$0xff] }
  0x18   : > { %291 = vst [vmem:[%s202_s30 + $0x60] sm:$0xff] %v290_v12  ;;  %293 = vst [vmem:[%s202_s30 + $0x68] sm:$0xff] %v292_v13  ;;  %v296_v15 = vld [vmem:[%s1466_s29 + $0x168] sm:$0xff] }
  0x19   : > { %295 = vst [vmem:[%s202_s30 + $0x70] sm:$0xff] %v294_v14  ;;  %297 = vst [vmem:[%s202_s30 + $0x78] sm:$0xff] %v296_v15 }
  0x1a PF: > { %p1072_p6 = scmp.ge.s32.totalorder %s1395_s19, 1  ;;  %p314_p7 = scmp.lt.s32.totalorder %s1395_s19, 4 }
  0x1c   : > { %p315_p8 = pnand %p1072_p6, %p314_p7 }
  0x1d   : > { %s321_s5 = sand.u32 (!%p315_p8), 1, %s1379_s15   ;;  %s1074_s6 = sshll.u32 (!%p315_p8), %s1387_s17, 5 }
  0x1e   : > { %318 = sbr.rel (%p315_p8) target bundleno = 341 (0x155), region = 70  ;;  %s1073_s7 = sshll.u32 (!%p315_p8), %s321_s5, 7 }
  0x1f   : > { %p366_p9 = scmp.lt.s32.totalorder (!%p315_p8), %s1074_s6, 95  ;;  %s1493_s12 = scalar_lea.vmem (!%p315_p8), [#allocation3], %s1073_s7 }
  0x20   : > { %p1076_p10 = scmp.ne.s32.totalorder (!%p315_p8), %s1387_s17, 0 }
  0x25   : > { %s1622_s6 = smov (!%p366_p9, %s1074_s6), 95  ;;  %393 = sbr.rel (%p1076_p10) target bundleno = 47 (0x2f), region = 78 }
  0x26   : > { %s1075_s8 = sshll.u32 %s1622_s6, 2  ;;  %v1397_v16 = vmov (!%p1076_p10), 0.0  }
  0x27   : > { %s1491_s11 = scalar_lea.vmem %s1611_s1, %s1075_s8  ;;  %394 = vst [vmem:[#allocation2] sm:$0xff] (!%p1076_p10), %v1397_v16  ;;  %395 = vst [vmem:[#allocation2 + $0x8] sm:$0xff] (!%p1076_p10), %v1397_v16 }
  0x28   : > { %396 = vst [vmem:[#allocation2 + $0x10] sm:$0xff] (!%p1076_p10), %v1397_v16  ;;  %397 = vst [vmem:[#allocation2 + $0x18] sm:$0xff] (!%p1076_p10), %v1397_v16 }
  0x29   : > { %398 = vst [vmem:[#allocation2 + $0x20] sm:$0xff] (!%p1076_p10), %v1397_v16  ;;  %399 = vst [vmem:[#allocation2 + $0x28] sm:$0xff] (!%p1076_p10), %v1397_v16 }
  0x2a   : > { %400 = vst [vmem:[#allocation2 + $0x30] sm:$0xff] (!%p1076_p10), %v1397_v16  ;;  %401 = vst [vmem:[#allocation2 + $0x38] sm:$0xff] (!%p1076_p10), %v1397_v16 }
  0x2b   : > { %402 = vst [vmem:[#allocation2 + $0x40] sm:$0xff] (!%p1076_p10), %v1397_v16  ;;  %403 = vst [vmem:[#allocation2 + $0x48] sm:$0xff] (!%p1076_p10), %v1397_v16 }
  0x2c   : > { %404 = vst [vmem:[#allocation2 + $0x50] sm:$0xff] %v1397_v16  ;;  %405 = vst [vmem:[#allocation2 + $0x58] sm:$0xff] %v1397_v16 }
  0x2d   : > { %406 = vst [vmem:[#allocation2 + $0x60] sm:$0xff] %v1397_v16  ;;  %407 = vst [vmem:[#allocation2 + $0x68] sm:$0xff] %v1397_v16 }
  0x2e   : > { %408 = vst [vmem:[#allocation2 + $0x70] sm:$0xff] %v1397_v16  ;;  %409 = vst [vmem:[#allocation2 + $0x78] sm:$0xff] %v1397_v16 }
  0x2f PF: > { %v1317_v17 = vld [vmem:[%s1491_s11 + $0x40] sm:$0xff]   ;;  %v1319_v19 = vld [vmem:[%s1491_s11 + $0x48] sm:$0xff]   ;;  %v1321_v21 = vld [vmem:[%s1491_s11 + $0x50] sm:$0xff]   ;;  %p1109_p11 = scmp.ne.s32.totalorder %s1387_s17, 2 }
  0x30   : > { %v1318_v18 = vld [vmem:[%s1491_s11] sm:$0xff]   ;;  %1196 = vmatprep.subr.bf16.mxu0 %v1317_v17  ;;  %1260 = vmatprep.subr.bf16.mxu1 %v1317_v17  ;;  %v1320_v20 = vld [vmem:[%s1491_s11 + $0x8] sm:$0xff]   ;;  %v1322_v22 = vld [vmem:[%s1491_s11 + $0x10] sm:$0xff]  }
  0x31   : > { %1197 = vmatpush3.bf16.msra.mxu0 %v1318_v18  ;;  %1268 = vmatpush3.bf16.msra.mxu1 %v1318_v18  ;;  %v1323_v23 = vld [vmem:[%s1491_s11 + $0x58] sm:$0xff]   ;;  %v1325_v25 = vld [vmem:[%s1491_s11 + $0x60] sm:$0xff]   ;;  %v1327_v27 = vld [vmem:[%s1491_s11 + $0x68] sm:$0xff]  }
  0x32   : > { %1198 = vmatprep.subr.bf16.mxu0 %v1319_v19  ;;  %1261 = vmatprep.subr.bf16.mxu1 %v1319_v19  ;;  %v1324_v24 = vld [vmem:[%s1491_s11 + $0x18] sm:$0xff]   ;;  %v1326_v26 = vld [vmem:[%s1491_s11 + $0x20] sm:$0xff]   ;;  %v1328_v30 = vld [vmem:[%s1491_s11 + $0x28] sm:$0xff]  }
  0x33   : > { %v1335_v28 = vld [vmem:[%s1493_s12 + $0x4] ss:$8 sps:$4 sm:$0xff]   ;;  %v1329_v31 = vld [vmem:[%s1491_s11 + $0x70] sm:$0xff]   ;;  %v1331_v33 = vld [vmem:[%s1491_s11 + $0x78] sm:$0xff]  }
  0x34   : > { %v1338_v29 = vld [vmem:[%s1493_s12 + $0x44] ss:$8 sps:$4 sm:$0xff]   ;;  %682 = vmatprep.mubr.bf16.mxu0 %v1335_v28  ;;  %v1330_v32 = vld [vmem:[%s1491_s11 + $0x30] sm:$0xff]   ;;  %v1332_v34 = vld [vmem:[%s1491_s11 + $0x38] sm:$0xff]  }
  0x35   : > { %1199 = vmatpush3.bf16.msra.mxu0 %v1320_v20  ;;  %1269 = vmatpush3.bf16.msra.mxu1 %v1320_v20  ;;  %v1333_v35 = vld [vmem:[%s1493_s12] ss:$8 sps:$4 sm:$0xff]   ;;  %v1339_v37 = vld [vmem:[%s1493_s12 + $0x14] ss:$8 sps:$4 sm:$0xff]   ;;  %v1343_v39 = vld [vmem:[%s1493_s12 + $0x10] ss:$8 sps:$4 sm:$0xff]  }
  0x36   : > { %1200 = vmatprep.subr.bf16.mxu0 %v1321_v21  ;;  %1262 = vmatprep.subr.bf16.mxu1 %v1321_v21  ;;  %v1336_v36 = vld [vmem:[%s1493_s12 + $0x40] ss:$8 sps:$4 sm:$0xff]   ;;  %v1341_v38 = vld [vmem:[%s1493_s12 + $0x54] ss:$8 sps:$4 sm:$0xff]   ;;  %v1344_v40 = vld [vmem:[%s1493_s12 + $0x50] ss:$8 sps:$4 sm:$0xff]  }
  0x37   : > { %714 = vmatprep.mubr.bf16.mxu1 %v1338_v29  ;;  %v1345_v41 = vld [vmem:[%s1493_s12 + $0x24] ss:$8 sps:$4 sm:$0xff]   ;;  %v1349_v43 = vld [vmem:[%s1493_s12 + $0x20] ss:$8 sps:$4 sm:$0xff]   ;;  %v1351_v45 = vld [vmem:[%s1493_s12 + $0x34] ss:$8 sps:$4 sm:$0xff]  }
  0x38   : > { %v1347_v42 = vld [vmem:[%s1493_s12 + $0x64] ss:$8 sps:$4 sm:$0xff]   ;;  %v1350_v44 = vld [vmem:[%s1493_s12 + $0x60] ss:$8 sps:$4 sm:$0xff]   ;;  %v1353_v46 = vld [vmem:[%s1493_s12 + $0x74] ss:$8 sps:$4 sm:$0xff]  }
  0x39   : > { %1201 = vmatpush3.bf16.msra.mxu0 %v1322_v22  ;;  %1270 = vmatpush3.bf16.msra.mxu1 %v1322_v22  ;;  %v1355_v47 = vld [vmem:[%s1493_s12 + $0x30] ss:$8 sps:$4 sm:$0xff]   ;;  %v410_v51 = vld [vmem:[#allocation2] sm:$0xff]  ;;  %v411_v59 = vld [vmem:[#allocation2 + $0x8] sm:$0xff] }
  0x3a   : > { %1202 = vmatprep.subr.bf16.mxu0 %v1323_v23  ;;  %1263 = vmatprep.subr.bf16.mxu1 %v1323_v23  ;;  %v1356_v48 = vld [vmem:[%s1493_s12 + $0x70] ss:$8 sps:$4 sm:$0xff]   ;;  %v418_v53 = vld [vmem:[#allocation2 + $0x40] sm:$0xff]  ;;  %v419_v61 = vld [vmem:[#allocation2 + $0x48] sm:$0xff] }
  0x3b   : > { %v412_v7 = vld [vmem:[#allocation2 + $0x10] sm:$0xff]  ;;  %v413_v15 = vld [vmem:[#allocation2 + $0x18] sm:$0xff]  ;;  %v422_v29 = vld [vmem:[#allocation2 + $0x60] sm:$0xff] }
  0x3c   : > { %v420_v9 = vld [vmem:[#allocation2 + $0x50] sm:$0xff]  ;;  %v421_v17 = vld [vmem:[#allocation2 + $0x58] sm:$0xff] }
  0x3d   : > { %1203 = vmatpush3.bf16.msra.mxu0 %v1324_v24  ;;  %1271 = vmatpush3.bf16.msra.mxu1 %v1324_v24 }
  0x3e   : > { %1204 = vmatprep.subr.bf16.mxu0 %v1325_v25  ;;  %1264 = vmatprep.subr.bf16.mxu1 %v1325_v25 }
  0x41   : > { %1205 = vmatpush3.bf16.msra.mxu0 %v1326_v26  ;;  %1272 = vmatpush3.bf16.msra.mxu1 %v1326_v26 }
  0x42   : > { %1206 = vmatprep.subr.bf16.mxu0 %v1327_v27  ;;  %1265 = vmatprep.subr.bf16.mxu1 %v1327_v27  ;;  %v414_v27 = vld [vmem:[#allocation2 + $0x20] sm:$0xff] }
  0x45   : > { %1207 = vmatpush3.bf16.msra.mxu0 %v1328_v30  ;;  %1273 = vmatpush3.bf16.msra.mxu1 %v1328_v30 }
  0x46   : > { %1208 = vmatprep.subr.bf16.mxu0 %v1329_v31  ;;  %1266 = vmatprep.subr.bf16.mxu1 %v1329_v31 }
  0x49   : > { %1209 = vmatpush3.bf16.msra.mxu0 %v1330_v32  ;;  %1274 = vmatpush3.bf16.msra.mxu1 %v1330_v32 }
  0x4a   : > { %1210 = vmatprep.subr.bf16.mxu0 %v1331_v33  ;;  %1267 = vmatprep.subr.bf16.mxu1 %v1331_v33 }
  0x4d   : > { %1211 = vmatpush3.bf16.msra.mxu0 %v1332_v34  ;;  %1275 = vmatpush3.bf16.msra.mxu1 %v1332_v34 }
  0x50   : > { %683 = vmatmul.mubr.bf16.vlgmr.msra.gmra.mrb[0].mxu0 %v1333_v35  ;;  %715 = vmatmul.mubr.bf16.vlgmr.msra.gmra.mrb[0].mxu1 %v1336_v36  ;;  %v415_v35 = vld [vmem:[#allocation2 + $0x28] sm:$0xff] }
  0x51   : > { %690 = vmatprep.mubr.bf16.mxu0 %v1339_v37  ;;  %722 = vmatprep.mubr.bf16.mxu1 %v1341_v38  ;;  %v423_v37 = vld [vmem:[#allocation2 + $0x68] sm:$0xff] }
  0x58   : > { %691 = vmatmul.mubr.bf16.gmra.mrb[4].mxu0 %v1343_v39  ;;  %723 = vmatmul.mubr.bf16.gmra.mrb[4].mxu1 %v1344_v40 }
  0x59   : > { %698 = vmatprep.mubr.bf16.mxu0 %v1345_v41  ;;  %730 = vmatprep.mubr.bf16.mxu1 %v1347_v42 }
  0x60   : > { %699 = vmatmul.mubr.bf16.gmra.mrb[8].mxu0 %v1349_v43  ;;  %731 = vmatmul.mubr.bf16.gmra.mrb[8].mxu1 %v1350_v44 }
  0x61   : > { %706 = vmatprep.mubr.bf16.mxu0 %v1351_v45  ;;  %738 = vmatprep.mubr.bf16.mxu1 %v1353_v46 }
  0x68   : > { %707 = vmatmul.mubr.bf16.gmra.mrb[12].mxu0 %v1355_v47  ;;  %739 = vmatmul.mubr.bf16.gmra.mrb[12].mxu1 %v1356_v48  ;;  %v416_v47 = vld [vmem:[#allocation2 + $0x30] sm:$0xff] }
 0x123   : > { %v1212_v49 = vpop.f32.mrb[0].mxu0  ;;  %v1236_v50 = vpop.f32.mrb[0].mxu1 }
 0x124   : > { %v1213_v52 = vpop.f32.mrb[1].mxu0  ;;  %v1237_v54 = vpop.f32.mrb[1].mxu1 }
 0x125   : > { %v1214_v55 = vadd.f32 %v1213_v52, %v1212_v49  ;;  %v1238_v56 = vadd.f32 %v1237_v54, %v1236_v50  ;;  %v1215_v57 = vpop.f32.mrb[2].mxu0  ;;  %v1239_v58 = vpop.f32.mrb[2].mxu1  ;;  %v424_v49 = vld [vmem:[#allocation2 + $0x70] sm:$0xff] }
 0x126   : > { %v1216_v60 = vpop.f32.mrb[3].mxu0  ;;  %v1240_v62 = vpop.f32.mrb[3].mxu1 }
 0x127   : > { %v747_v63 = vadd.f32 %v1214_v55, %v410_v51  ;;  %v755_v0 = vadd.f32 %v1238_v56, %v418_v53  ;;  %v1217_v1 = vadd.f32 %v1216_v60, %v1215_v57  ;;  %v1241_v2 = vadd.f32 %v1240_v62, %v1239_v58  ;;  %v417_v55 = vld [vmem:[#allocation2 + $0x38] sm:$0xff] }
 0x128   : > { %v425_v57 = vld [vmem:[#allocation2 + $0x78] sm:$0xff] }
 0x129   : > { %763 = vst [vmem:[#allocation2] sm:$0xff] %v747_v63  ;;  %771 = vst [vmem:[#allocation2 + $0x40] sm:$0xff] %v755_v0  ;;  %v748_v3 = vadd.f32 %v1217_v1, %v411_v59  ;;  %v756_v4 = vadd.f32 %v1241_v2, %v419_v61 }
 0x12b   : > { %764 = vst [vmem:[#allocation2 + $0x8] sm:$0xff] %v748_v3  ;;  %772 = vst [vmem:[#allocation2 + $0x48] sm:$0xff] %v756_v4  ;;  %v1218_v5 = vpop.f32.mrb[4].mxu0  ;;  %v1242_v6 = vpop.f32.mrb[4].mxu1  ;;  %v1532_v3 = vld [vmem:[%s1612_s2] ss:$0 sm:$0xff] (!%p1109_p11) }
 0x12c   : > { %v1219_v8 = vpop.f32.mrb[5].mxu0  ;;  %v1243_v10 = vpop.f32.mrb[5].mxu1 }
 0x12d   : > { %v1220_v11 = vadd.f32 %v1219_v8, %v1218_v5  ;;  %v1244_v12 = vadd.f32 %v1243_v10, %v1242_v6  ;;  %v1221_v13 = vpop.f32.mrb[6].mxu0  ;;  %v1245_v14 = vpop.f32.mrb[6].mxu1  ;;  %v1539_v6 = vld [vmem:[%s1613_s3] ss:$0 sm:$0xff] (!%p1109_p11) }
 0x12e   : > { %v1222_v16 = vpop.f32.mrb[7].mxu0  ;;  %v1246_v18 = vpop.f32.mrb[7].mxu1 }
 0x12f   : > { %v749_v19 = vadd.f32 %v1220_v11, %v412_v7  ;;  %v757_v20 = vadd.f32 %v1244_v12, %v420_v9  ;;  %v1223_v21 = vadd.f32 %v1222_v16, %v1221_v13  ;;  %v1247_v22 = vadd.f32 %v1246_v18, %v1245_v14 }
 0x130   : > { %v783_v1 = vld [vmem:[#allocation2] sm:$0xff] (!%p1109_p11) }
 0x131   : > { %765 = vst [vmem:[#allocation2 + $0x10] sm:$0xff] %v749_v19  ;;  %773 = vst [vmem:[#allocation2 + $0x50] sm:$0xff] %v757_v20  ;;  %v750_v23 = vadd.f32 %v1223_v21, %v413_v15  ;;  %v758_v24 = vadd.f32 %v1247_v22, %v421_v17  ;;  %v806_v4 = vmul.f32 (!%p1109_p11), %v1532_v3, %v783_v1 }
 0x132   : > { %v784_v2 = vld [vmem:[#allocation2 + $0x8] sm:$0xff] (!%p1109_p11) }
 0x133   : > { %766 = vst [vmem:[#allocation2 + $0x18] sm:$0xff] %v750_v23  ;;  %774 = vst [vmem:[#allocation2 + $0x58] sm:$0xff] %v758_v24  ;;  %v1224_v25 = vpop.f32.mrb[8].mxu0  ;;  %v1248_v26 = vpop.f32.mrb[8].mxu1  ;;  %v807_v5 = vmul.f32 (!%p1109_p11), %v1532_v3, %v784_v2  ;;  %v829_v14 = vadd.f32 (!%p1109_p11), %v1539_v6, %v806_v4  ;;  %v791_v23 = vld [vmem:[#allocation2 + $0x40] sm:$0xff] (!%p1109_p11) }
 0x134   : > { %v1225_v28 = vpop.f32.mrb[9].mxu0  ;;  %v1249_v30 = vpop.f32.mrb[9].mxu1 }
 0x135   : > { %v1226_v31 = vadd.f32 %v1225_v28, %v1224_v25  ;;  %v1250_v32 = vadd.f32 %v1249_v30, %v1248_v26  ;;  %v1227_v33 = vpop.f32.mrb[10].mxu0  ;;  %v1251_v34 = vpop.f32.mrb[10].mxu1  ;;  %v830_v15 = vadd.f32 (!%p1109_p11), %v1539_v6, %v807_v5  ;;  %v845_v24 = vmax.f32 (!%p1109_p11), %v829_v14, 0.0  ;;  %v792_v28 = vld [vmem:[#allocation2 + $0x48] sm:$0xff] (!%p1109_p11) }
 0x136   : > { %v1228_v36 = vpop.f32.mrb[11].mxu0  ;;  %v1252_v38 = vpop.f32.mrb[11].mxu1 }
 0x137   : > { %v751_v39 = vadd.f32 %v1226_v31, %v414_v27  ;;  %v759_v40 = vadd.f32 %v1250_v32, %v422_v29  ;;  %v1229_v41 = vadd.f32 %v1228_v36, %v1227_v33  ;;  %v1253_v42 = vadd.f32 %v1252_v38, %v1251_v34 }
 0x138   : > { %v785_v7 = vld [vmem:[#allocation2 + $0x10] sm:$0xff] (!%p1109_p11)  ;;  %v846_v25 = vmax.f32 (!%p1109_p11), %v830_v15, 0.0  ;;  %v814_v38 = vmul.f32 (!%p1109_p11), %v1532_v3, %v791_v23 }
 0x139   : > { %767 = vst [vmem:[#allocation2 + $0x20] sm:$0xff] %v751_v39  ;;  %775 = vst [vmem:[#allocation2 + $0x60] sm:$0xff] %v759_v40  ;;  %v752_v43 = vadd.f32 %v1229_v41, %v415_v35  ;;  %v760_v44 = vadd.f32 %v1253_v42, %v423_v37  ;;  %v808_v9 = vmul.f32 (!%p1109_p11), %v1532_v3, %v785_v7  ;;  %v793_v33 = vld [vmem:[#allocation2 + $0x50] sm:$0xff] (!%p1109_p11) }
 0x13a   : > { %v786_v8 = vld [vmem:[#allocation2 + $0x18] sm:$0xff] (!%p1109_p11)  ;;  %v1152_v35 = vpack.c.bf16 (!%p1109_p11), %v846_v25, %v845_v24 }
 0x13b   : > { %768 = vst [vmem:[#allocation2 + $0x28] sm:$0xff] %v752_v43  ;;  %776 = vst [vmem:[#allocation2 + $0x68] sm:$0xff] %v760_v44  ;;  %v1230_v45 = vpop.f32.mrb[12].mxu0  ;;  %v1254_v46 = vpop.f32.mrb[12].mxu1  ;;  %v809_v10 = vmul.f32 (!%p1109_p11), %v1532_v3, %v786_v8  ;;  %v831_v19 = vadd.f32 (!%p1109_p11), %v1539_v6, %v808_v9  ;;  %v794_v34 = vld [vmem:[#allocation2 + $0x58] sm:$0xff] (!%p1109_p11)  ;;  %v815_v44 = vmul.f32 (!%p1109_p11), %v1532_v3, %v792_v28 }
 0x13c   : > { %v1231_v48 = vpop.f32.mrb[13].mxu0  ;;  %v1255_v50 = vpop.f32.mrb[13].mxu1  ;;  %1153 = vst [vmem:[%s1614_s4] sm:$0xff] (!%p1109_p11), %v1152_v35  }
 0x13d   : > { %v1232_v51 = vadd.f32 %v1231_v48, %v1230_v45  ;;  %v1256_v52 = vadd.f32 %v1255_v50, %v1254_v46  ;;  %v1233_v53 = vpop.f32.mrb[14].mxu0  ;;  %v1257_v54 = vpop.f32.mrb[14].mxu1  ;;  %782 = sbr.rel (%p1109_p11) target bundleno = 341 (0x155), region = 82  ;;  %v832_v20 = vadd.f32 (!%p1109_p11), %v1539_v6, %v809_v10  ;;  %v847_v29 = vmax.f32 (!%p1109_p11), %v831_v19, 0.0 }
 0x13e   : > { %v1234_v56 = vpop.f32.mrb[15].mxu0  ;;  %v1258_v58 = vpop.f32.mrb[15].mxu1  ;;  %v816_v48 = vmul.f32 (!%p1109_p11), %v1532_v3, %v793_v33 }
 0x13f   : > { %v753_v59 = vadd.f32 %v1232_v51, %v416_v47  ;;  %v761_v60 = vadd.f32 %v1256_v52, %v424_v49  ;;  %v1235_v61 = vadd.f32 %v1234_v56, %v1233_v53  ;;  %v1259_v62 = vadd.f32 %v1258_v58, %v1257_v54 }
 0x140   : > { %v787_v11 = vld [vmem:[#allocation2 + $0x20] sm:$0xff] (!%p1109_p11)  ;;  %v848_v30 = vmax.f32 (!%p1109_p11), %v832_v20, 0.0  ;;  %v837_v47 = vadd.f32 (!%p1109_p11), %v1539_v6, %v814_v38  ;;  %v817_v49 = vmul.f32 (!%p1109_p11), %v1532_v3, %v794_v34  ;;  %v838_v52 = vadd.f32 (!%p1109_p11), %v1539_v6, %v815_v44 }
 0x141   : > { %769 = vst [vmem:[#allocation2 + $0x30] sm:$0xff] %v753_v59  ;;  %777 = vst [vmem:[#allocation2 + $0x70] sm:$0xff] %v761_v60  ;;  %v754_v63 = vadd.f32 %v1235_v61, %v417_v55  ;;  %v762_v0 = vadd.f32 %v1259_v62, %v425_v57  ;;  %v810_v16 = vmul.f32 (!%p1109_p11), %v1532_v3, %v787_v11  ;;  %v795_v39 = vld [vmem:[#allocation2 + $0x60] sm:$0xff] (!%p1109_p11) }
 0x142   : > { %v788_v12 = vld [vmem:[#allocation2 + $0x28] sm:$0xff] (!%p1109_p11)  ;;  %v1157_v41 = vpack.c.bf16 (!%p1109_p11), %v848_v30, %v847_v29  ;;  %v818_v53 = vmul.f32 (!%p1109_p11), %v1532_v3, %v795_v39  ;;  %v853_v55 = vmax.f32 (!%p1109_p11), %v837_v47, 0.0  ;;  %v839_v56 = vadd.f32 (!%p1109_p11), %v1539_v6, %v816_v48 }
 0x143   : > { %770 = vst [vmem:[#allocation2 + $0x38] sm:$0xff] %v754_v63  ;;  %778 = vst [vmem:[#allocation2 + $0x78] sm:$0xff] %v762_v0  ;;  %v811_v17 = vmul.f32 (!%p1109_p11), %v1532_v3, %v788_v12  ;;  %v833_v26 = vadd.f32 (!%p1109_p11), %v1539_v6, %v810_v16  ;;  %v796_v40 = vld [vmem:[#allocation2 + $0x68] sm:$0xff] (!%p1109_p11)  ;;  %v840_v57 = vadd.f32 (!%p1109_p11), %v1539_v6, %v817_v49  ;;  %v854_v59 = vmax.f32 (!%p1109_p11), %v838_v52, 0.0 }
 0x144   : > { %1189 = vst [vmem:[%s1614_s4 + $0x8] sm:$0xff] %v1157_v41   ;;  %v819_v54 = vmul.f32 %v1532_v3, %v796_v40  ;;  %v841_v60 = vadd.f32 %v1539_v6, %v818_v53  ;;  %v855_v63 = vmax.f32 %v839_v56, 0.0 }
 0x145   : > { %v834_v27 = vadd.f32 %v1539_v6, %v811_v17  ;;  %v849_v36 = vmax.f32 %v833_v26, 0.0  ;;  %v856_v0 = vmax.f32 %v840_v57, 0.0  ;;  %v1172_v2 = vpack.c.bf16 %v854_v59, %v853_v55 }
 0x146   : > { %v842_v61 = vadd.f32 %v1539_v6, %v819_v54  ;;  %v857_v4 = vmax.f32 %v841_v60, 0.0 }
 0x147   : > { %v850_v37 = vmax.f32 %v834_v27, 0.0  ;;  %v1177_v8 = vpack.c.bf16 %v856_v0, %v855_v63  ;;  %1192 = vst [vmem:[%s1614_s4 + $0x20] sm:$0xff] %v1172_v2  }
 0x148   : > { %v789_v13 = vld [vmem:[#allocation2 + $0x30] sm:$0xff]  ;;  %v858_v5 = vmax.f32 %v842_v61, 0.0 }
 0x149   : > { %v812_v21 = vmul.f32 %v1532_v3, %v789_v13  ;;  %v797_v45 = vld [vmem:[#allocation2 + $0x70] sm:$0xff]  ;;  %v1162_v46 = vpack.c.bf16 %v850_v37, %v849_v36  ;;  %1193 = vst [vmem:[%s1614_s4 + $0x28] sm:$0xff] %v1177_v8  }
 0x14a   : > { %v790_v18 = vld [vmem:[#allocation2 + $0x38] sm:$0xff]  ;;  %v820_v58 = vmul.f32 %v1532_v3, %v797_v45  ;;  %v1182_v10 = vpack.c.bf16 %v858_v5, %v857_v4 }
 0x14b   : > { %v813_v22 = vmul.f32 %v1532_v3, %v790_v18  ;;  %v835_v31 = vadd.f32 %v1539_v6, %v812_v21  ;;  %v798_v50 = vld [vmem:[#allocation2 + $0x78] sm:$0xff]  ;;  %1190 = vst [vmem:[%s1614_s4 + $0x10] sm:$0xff] %v1162_v46  }
 0x14c   : > { %v821_v62 = vmul.f32 %v1532_v3, %v798_v50  ;;  %v843_v1 = vadd.f32 %v1539_v6, %v820_v58  ;;  %1194 = vst [vmem:[%s1614_s4 + $0x30] sm:$0xff] %v1182_v10  }
 0x14d   : > { %v836_v32 = vadd.f32 %v1539_v6, %v813_v22  ;;  %v851_v42 = vmax.f32 %v835_v31, 0.0 }
 0x14e   : > { %v844_v7 = vadd.f32 %v1539_v6, %v821_v62  ;;  %v859_v9 = vmax.f32 %v843_v1, 0.0 }
 0x14f   : > { %v852_v43 = vmax.f32 %v836_v32, 0.0 }
 0x150   : > { %v860_v11 = vmax.f32 %v844_v7, 0.0 }
 0x151   : > { %v1167_v51 = vpack.c.bf16 %v852_v43, %v851_v42 }
 0x152   : > { %v1187_v3 = vpack.c.bf16 %v860_v11, %v859_v9 }
 0x153   : > { %1191 = vst [vmem:[%s1614_s4 + $0x18] sm:$0xff] %v1167_v51  }
 0x154   : > { %1195 = vst [vmem:[%s1614_s4 + $0x38] sm:$0xff] %v1187_v3  }
 0x155 PF: > { %s14_s19 = sadd.s32 1, %s1395_s19   ;;  %s1615_s15 = smov %s1383_s16 }
 0x156   : > { %p11_p12 = scmp.ge.s32.totalorder %s14_s19, 5   ;;  %s1616_s16 = smov %s1458_s23 }
 0x157   : > { %s1617_s17 = smov %s1391_s18  ;;  %s1618_s18 = smov %s1620_s20 }
 0x158   :  { %13 = sbr.rel (!%p11_p12) target bundleno = 3 (0x3), region = 126 }

// kernel: resnet18_forward.25
= control target key start
LH: loop header
LB: loop body
LE: loop exit
PB: predicated region body
PF: predicated region fallthrough
CT: control target
= control target key end

     0   :  { %s1594_s18 = smov 0   ;;  %s1596_s19 = smov 0   ;;  %s1805_s0 = inlined_call_operand.vmem [shape: bf16[128,768], index: 0, kind: input, shape index: {}]   ;;  %s1806_s1 = inlined_call_operand.vmem [shape: bf16[768,128], index: 1, kind: input, shape index: {}]   ;;  %s1807_s2 = inlined_call_operand.vmem [shape: f32[1,128], index: 2, kind: input, shape index: {}]   ;;  %s1808_s3 = inlined_call_operand.vmem [shape: f32[1,128], index: 3, kind: input, shape index: {}]   ;;  %s1809_s4 = inlined_call_operand.vmem [shape: bf16[128,128], index: 4, kind: input, shape index: {}]   ;;  %s1810_s5 = inlined_call_operand.vmem [shape: bf16[128,128], index: 5, kind: output, shape index: {}]  }
   0x1   :  { %s1598_s20 = smov 0   ;;  %s1600_s21 = smov 0  }
   0x2   :  { %s1602_s22 = smov 0  }
   0x3 LB: > { %s27_s23 = sadd.s32 1, %s1557_s21  ;;  %p50_p1 = scmp.ne.s32.totalorder %s1549_s19, %s1545_s18  ;;  %s1561_s22 = sphi %s1602_s22, %s15_s22   ;;  %s1557_s21 = sphi %s1600_s21, %s1814_s21   ;;  %s1553_s20 = sphi %s1598_s20, %s1813_s20   ;;  %s1549_s19 = sphi %s1596_s19, %s1812_s19   ;;  %s1545_s18 = sphi %s1594_s18, %s1811_s18  }
   0x4   : > { %p28_p0 = scmp.ge.s32.totalorder %s27_s23, 3  ;;  %p51_p2 = scmp.eq.s32.totalorder %s1561_s22, 0 }
   0x5   : > { %s43_s25 = sadd.s32 1, %s1549_s19  ;;  %p1195_p5 = scmp.ge.s32.totalorder %s1561_s22, 3 }
   0x6   : > { %s1816_s23 = smov (%p28_p0, %s27_s23), 0  ;;  %p52_p3 = por %p51_p2, %p50_p1 }
   0x7   : > { %s39_s24 = ssub.s32 %s1557_s21, %s1816_s23  ;;  %236 = sbr.rel (%p1195_p5) target bundleno = 26 (0x1a), region = 28 }
   0x8   : > { %p41_p4 = scmp.eq.s32.totalorder %s39_s24, 0 }
   0xa   : > { %s1629_s26 = scalar_select %p41_p4, %s1549_s19, %s43_s25  }
   0xe   : > { %239 = sbr.rel (!%p52_p3) target bundleno = 26 (0x1a), region = 32  ;;  %s241_s27 = sand.u32 (%p52_p3), 1, %s1549_s19  }
   0xf   : > { %s1259_s28 = sshll.u32 (%p52_p3), %s1557_s21, 3  ;;  %s1196_s29 = sshll.u32 (%p52_p3), %s241_s27, 7 }
  0x10   : > { %s1637_s7 = scalar_lea.vmem (%p52_p3), %s1805_s0, %s1259_s28  ;;  %s243_s8 = scalar_lea.vmem (%p52_p3), [#allocation3], %s1196_s29 }
  0x11   : > { %v307_v0 = vld [vmem:[%s1637_s7] sm:$0xff] (%p52_p3)  ;;  %v309_v1 = vld [vmem:[%s1637_s7 + $0x18] sm:$0xff] (%p52_p3)  ;;  %v311_v2 = vld [vmem:[%s1637_s7 + $0x30] sm:$0xff] (%p52_p3) }
  0x12   : > { %308 = vst [vmem:[%s243_s8] sm:$0xff] (%p52_p3), %v307_v0  ;;  %310 = vst [vmem:[%s243_s8 + $0x8] sm:$0xff] (%p52_p3), %v309_v1  ;;  %v313_v3 = vld [vmem:[%s1637_s7 + $0x48] sm:$0xff] (%p52_p3)  ;;  %v315_v4 = vld [vmem:[%s1637_s7 + $0x60] sm:$0xff] (%p52_p3) }
  0x13   : > { %312 = vst [vmem:[%s243_s8 + $0x10] sm:$0xff] (%p52_p3), %v311_v2  ;;  %v317_v5 = vld [vmem:[%s1637_s7 + $0x78] sm:$0xff] (%p52_p3)  ;;  %314 = vst [vmem:[%s243_s8 + $0x18] sm:$0xff] (%p52_p3), %v313_v3  ;;  %v319_v6 = vld [vmem:[%s1637_s7 + $0x90] sm:$0xff] (%p52_p3) }
  0x14   : > { %316 = vst [vmem:[%s243_s8 + $0x20] sm:$0xff] (%p52_p3), %v315_v4  ;;  %318 = vst [vmem:[%s243_s8 + $0x28] sm:$0xff] (%p52_p3), %v317_v5  ;;  %v321_v7 = vld [vmem:[%s1637_s7 + $0xa8] sm:$0xff] (%p52_p3)  ;;  %v323_v8 = vld [vmem:[%s1637_s7 + $0xc0] sm:$0xff] (%p52_p3) }
  0x15   : > { %320 = vst [vmem:[%s243_s8 + $0x30] sm:$0xff] %v319_v6  ;;  %322 = vst [vmem:[%s243_s8 + $0x38] sm:$0xff] %v321_v7  ;;  %v325_v9 = vld [vmem:[%s1637_s7 + $0xd8] sm:$0xff]  ;;  %v327_v10 = vld [vmem:[%s1637_s7 + $0xf0] sm:$0xff] }
  0x16   : > { %324 = vst [vmem:[%s243_s8 + $0x40] sm:$0xff] %v323_v8  ;;  %v329_v11 = vld [vmem:[%s1637_s7 + $0x108] sm:$0xff]  ;;  %326 = vst [vmem:[%s243_s8 + $0x48] sm:$0xff] %v325_v9  ;;  %v331_v12 = vld [vmem:[%s1637_s7 + $0x120] sm:$0xff] }
  0x17   : > { %328 = vst [vmem:[%s243_s8 + $0x50] sm:$0xff] %v327_v10  ;;  %330 = vst [vmem:[%s243_s8 + $0x58] sm:$0xff] %v329_v11  ;;  %v333_v13 = vld [vmem:[%s1637_s7 + $0x138] sm:$0xff]  ;;  %v335_v14 = vld [vmem:[%s1637_s7 + $0x150] sm:$0xff] }
  0x18   : > { %332 = vst [vmem:[%s243_s8 + $0x60] sm:$0xff] %v331_v12  ;;  %334 = vst [vmem:[%s243_s8 + $0x68] sm:$0xff] %v333_v13  ;;  %v337_v15 = vld [vmem:[%s1637_s7 + $0x168] sm:$0xff] }
  0x19   : > { %336 = vst [vmem:[%s243_s8 + $0x70] sm:$0xff] %v335_v14  ;;  %338 = vst [vmem:[%s243_s8 + $0x78] sm:$0xff] %v337_v15 }
  0x1a PF: > { %p1199_p6 = scmp.ge.s32.totalorder %s1561_s22, 1  ;;  %p355_p7 = scmp.lt.s32.totalorder %s1561_s22, 4 }
  0x1c   : > { %p356_p8 = pnand %p1199_p6, %p355_p7 }
  0x1d   : > { %s362_s9 = sand.u32 (!%p356_p8), 1, %s1545_s18   ;;  %s1201_s10 = sshll.u32 (!%p356_p8), %s1553_s20, 5 }
  0x1e   : > { %359 = sbr.rel (%p356_p8) target bundleno = 343 (0x157), region = 74  ;;  %s1200_s11 = sshll.u32 (!%p356_p8), %s362_s9, 7 }
  0x1f   : > { %p417_p9 = scmp.lt.s32.totalorder (!%p356_p8), %s1201_s10, 95  ;;  %s1664_s16 = scalar_lea.vmem (!%p356_p8), [#allocation3], %s1200_s11 }
  0x20   : > { %p1203_p10 = scmp.ne.s32.totalorder (!%p356_p8), %s1553_s20, 0 }
  0x25   : > { %s1818_s10 = smov (!%p417_p9, %s1201_s10), 95  ;;  %453 = sbr.rel (%p1203_p10) target bundleno = 47 (0x2f), region = 82 }
  0x26   : > { %s1202_s12 = sshll.u32 %s1818_s10, 2  ;;  %v1563_v16 = vmov (!%p1203_p10), 0.0  }
  0x27   : > { %s1662_s15 = scalar_lea.vmem %s1806_s1, %s1202_s12  ;;  %454 = vst [vmem:[#allocation2] sm:$0xff] (!%p1203_p10), %v1563_v16  ;;  %455 = vst [vmem:[#allocation2 + $0x8] sm:$0xff] (!%p1203_p10), %v1563_v16 }
  0x28   : > { %456 = vst [vmem:[#allocation2 + $0x10] sm:$0xff] (!%p1203_p10), %v1563_v16  ;;  %457 = vst [vmem:[#allocation2 + $0x18] sm:$0xff] (!%p1203_p10), %v1563_v16 }
  0x29   : > { %458 = vst [vmem:[#allocation2 + $0x20] sm:$0xff] (!%p1203_p10), %v1563_v16  ;;  %459 = vst [vmem:[#allocation2 + $0x28] sm:$0xff] (!%p1203_p10), %v1563_v16 }
  0x2a   : > { %460 = vst [vmem:[#allocation2 + $0x30] sm:$0xff] (!%p1203_p10), %v1563_v16  ;;  %461 = vst [vmem:[#allocation2 + $0x38] sm:$0xff] (!%p1203_p10), %v1563_v16 }
  0x2b   : > { %462 = vst [vmem:[#allocation2 + $0x40] sm:$0xff] (!%p1203_p10), %v1563_v16  ;;  %463 = vst [vmem:[#allocation2 + $0x48] sm:$0xff] (!%p1203_p10), %v1563_v16 }
  0x2c   : > { %464 = vst [vmem:[#allocation2 + $0x50] sm:$0xff] %v1563_v16  ;;  %465 = vst [vmem:[#allocation2 + $0x58] sm:$0xff] %v1563_v16 }
  0x2d   : > { %466 = vst [vmem:[#allocation2 + $0x60] sm:$0xff] %v1563_v16  ;;  %467 = vst [vmem:[#allocation2 + $0x68] sm:$0xff] %v1563_v16 }
  0x2e   : > { %468 = vst [vmem:[#allocation2 + $0x70] sm:$0xff] %v1563_v16  ;;  %469 = vst [vmem:[#allocation2 + $0x78] sm:$0xff] %v1563_v16 }
  0x2f PF: > { %v1483_v17 = vld [vmem:[%s1662_s15 + $0x40] sm:$0xff]   ;;  %v1485_v19 = vld [vmem:[%s1662_s15 + $0x48] sm:$0xff]   ;;  %v1487_v21 = vld [vmem:[%s1662_s15 + $0x50] sm:$0xff]   ;;  %p1236_p11 = scmp.ne.s32.totalorder %s1553_s20, 2 }
  0x30   : > { %v1484_v18 = vld [vmem:[%s1662_s15] sm:$0xff]   ;;  %1362 = vmatprep.subr.bf16.mxu0 %v1483_v17  ;;  %1426 = vmatprep.subr.bf16.mxu1 %v1483_v17  ;;  %v1486_v20 = vld [vmem:[%s1662_s15 + $0x8] sm:$0xff]   ;;  %v1488_v22 = vld [vmem:[%s1662_s15 + $0x10] sm:$0xff]  }
  0x31   : > { %1363 = vmatpush3.bf16.msra.mxu0 %v1484_v18  ;;  %1434 = vmatpush3.bf16.msra.mxu1 %v1484_v18  ;;  %v1489_v23 = vld [vmem:[%s1662_s15 + $0x58] sm:$0xff]   ;;  %v1491_v25 = vld [vmem:[%s1662_s15 + $0x60] sm:$0xff]   ;;  %v1493_v27 = vld [vmem:[%s1662_s15 + $0x68] sm:$0xff]  }
  0x32   : > { %1364 = vmatprep.subr.bf16.mxu0 %v1485_v19  ;;  %1427 = vmatprep.subr.bf16.mxu1 %v1485_v19  ;;  %v1490_v24 = vld [vmem:[%s1662_s15 + $0x18] sm:$0xff]   ;;  %v1492_v26 = vld [vmem:[%s1662_s15 + $0x20] sm:$0xff]   ;;  %v1494_v30 = vld [vmem:[%s1662_s15 + $0x28] sm:$0xff]  }
  0x33   : > { %v1501_v28 = vld [vmem:[%s1664_s16 + $0x4] ss:$8 sps:$4 sm:$0xff]   ;;  %v1495_v31 = vld [vmem:[%s1662_s15 + $0x70] sm:$0xff]   ;;  %v1497_v33 = vld [vmem:[%s1662_s15 + $0x78] sm:$0xff]  }
  0x34   : > { %v1504_v29 = vld [vmem:[%s1664_s16 + $0x44] ss:$8 sps:$4 sm:$0xff]   ;;  %742 = vmatprep.mubr.bf16.mxu0 %v1501_v28  ;;  %v1496_v32 = vld [vmem:[%s1662_s15 + $0x30] sm:$0xff]   ;;  %v1498_v34 = vld [vmem:[%s1662_s15 + $0x38] sm:$0xff]  }
  0x35   : > { %1365 = vmatpush3.bf16.msra.mxu0 %v1486_v20  ;;  %1435 = vmatpush3.bf16.msra.mxu1 %v1486_v20  ;;  %v1499_v35 = vld [vmem:[%s1664_s16] ss:$8 sps:$4 sm:$0xff]   ;;  %v1505_v37 = vld [vmem:[%s1664_s16 + $0x14] ss:$8 sps:$4 sm:$0xff]   ;;  %v1509_v39 = vld [vmem:[%s1664_s16 + $0x10] ss:$8 sps:$4 sm:$0xff]  }
  0x36   : > { %1366 = vmatprep.subr.bf16.mxu0 %v1487_v21  ;;  %1428 = vmatprep.subr.bf16.mxu1 %v1487_v21  ;;  %v1502_v36 = vld [vmem:[%s1664_s16 + $0x40] ss:$8 sps:$4 sm:$0xff]   ;;  %v1507_v38 = vld [vmem:[%s1664_s16 + $0x54] ss:$8 sps:$4 sm:$0xff]   ;;  %v1510_v40 = vld [vmem:[%s1664_s16 + $0x50] ss:$8 sps:$4 sm:$0xff]  }
  0x37   : > { %774 = vmatprep.mubr.bf16.mxu1 %v1504_v29  ;;  %v1511_v41 = vld [vmem:[%s1664_s16 + $0x24] ss:$8 sps:$4 sm:$0xff]   ;;  %v1515_v43 = vld [vmem:[%s1664_s16 + $0x20] ss:$8 sps:$4 sm:$0xff]   ;;  %v1517_v45 = vld [vmem:[%s1664_s16 + $0x34] ss:$8 sps:$4 sm:$0xff]  }
  0x38   : > { %v1513_v42 = vld [vmem:[%s1664_s16 + $0x64] ss:$8 sps:$4 sm:$0xff]   ;;  %v1516_v44 = vld [vmem:[%s1664_s16 + $0x60] ss:$8 sps:$4 sm:$0xff]   ;;  %v1519_v46 = vld [vmem:[%s1664_s16 + $0x74] ss:$8 sps:$4 sm:$0xff]  }
  0x39   : > { %1367 = vmatpush3.bf16.msra.mxu0 %v1488_v22  ;;  %1436 = vmatpush3.bf16.msra.mxu1 %v1488_v22  ;;  %v1521_v47 = vld [vmem:[%s1664_s16 + $0x30] ss:$8 sps:$4 sm:$0xff]   ;;  %v470_v51 = vld [vmem:[#allocation2] sm:$0xff]  ;;  %v471_v59 = vld [vmem:[#allocation2 + $0x8] sm:$0xff] }
  0x3a   : > { %1368 = vmatprep.subr.bf16.mxu0 %v1489_v23  ;;  %1429 = vmatprep.subr.bf16.mxu1 %v1489_v23  ;;  %v1522_v48 = vld [vmem:[%s1664_s16 + $0x70] ss:$8 sps:$4 sm:$0xff]   ;;  %v478_v53 = vld [vmem:[#allocation2 + $0x40] sm:$0xff]  ;;  %v479_v61 = vld [vmem:[#allocation2 + $0x48] sm:$0xff] }
  0x3b   : > { %v472_v7 = vld [vmem:[#allocation2 + $0x10] sm:$0xff]  ;;  %v473_v15 = vld [vmem:[#allocation2 + $0x18] sm:$0xff]  ;;  %v482_v29 = vld [vmem:[#allocation2 + $0x60] sm:$0xff] }
  0x3c   : > { %v480_v9 = vld [vmem:[#allocation2 + $0x50] sm:$0xff]  ;;  %v481_v17 = vld [vmem:[#allocation2 + $0x58] sm:$0xff] }
  0x3d   : > { %1369 = vmatpush3.bf16.msra.mxu0 %v1490_v24  ;;  %1437 = vmatpush3.bf16.msra.mxu1 %v1490_v24 }
  0x3e   : > { %1370 = vmatprep.subr.bf16.mxu0 %v1491_v25  ;;  %1430 = vmatprep.subr.bf16.mxu1 %v1491_v25 }
  0x41   : > { %1371 = vmatpush3.bf16.msra.mxu0 %v1492_v26  ;;  %1438 = vmatpush3.bf16.msra.mxu1 %v1492_v26 }
  0x42   : > { %1372 = vmatprep.subr.bf16.mxu0 %v1493_v27  ;;  %1431 = vmatprep.subr.bf16.mxu1 %v1493_v27  ;;  %v474_v27 = vld [vmem:[#allocation2 + $0x20] sm:$0xff] }
  0x45   : > { %1373 = vmatpush3.bf16.msra.mxu0 %v1494_v30  ;;  %1439 = vmatpush3.bf16.msra.mxu1 %v1494_v30 }
  0x46   : > { %1374 = vmatprep.subr.bf16.mxu0 %v1495_v31  ;;  %1432 = vmatprep.subr.bf16.mxu1 %v1495_v31 }
  0x49   : > { %1375 = vmatpush3.bf16.msra.mxu0 %v1496_v32  ;;  %1440 = vmatpush3.bf16.msra.mxu1 %v1496_v32 }
  0x4a   : > { %1376 = vmatprep.subr.bf16.mxu0 %v1497_v33  ;;  %1433 = vmatprep.subr.bf16.mxu1 %v1497_v33 }
  0x4d   : > { %1377 = vmatpush3.bf16.msra.mxu0 %v1498_v34  ;;  %1441 = vmatpush3.bf16.msra.mxu1 %v1498_v34 }
  0x50   : > { %743 = vmatmul.mubr.bf16.vlgmr.msra.gmra.mrb[0].mxu0 %v1499_v35  ;;  %775 = vmatmul.mubr.bf16.vlgmr.msra.gmra.mrb[0].mxu1 %v1502_v36  ;;  %v475_v35 = vld [vmem:[#allocation2 + $0x28] sm:$0xff] }
  0x51   : > { %750 = vmatprep.mubr.bf16.mxu0 %v1505_v37  ;;  %782 = vmatprep.mubr.bf16.mxu1 %v1507_v38  ;;  %v483_v37 = vld [vmem:[#allocation2 + $0x68] sm:$0xff] }
  0x58   : > { %751 = vmatmul.mubr.bf16.gmra.mrb[4].mxu0 %v1509_v39  ;;  %783 = vmatmul.mubr.bf16.gmra.mrb[4].mxu1 %v1510_v40 }
  0x59   : > { %758 = vmatprep.mubr.bf16.mxu0 %v1511_v41  ;;  %790 = vmatprep.mubr.bf16.mxu1 %v1513_v42 }
  0x60   : > { %759 = vmatmul.mubr.bf16.gmra.mrb[8].mxu0 %v1515_v43  ;;  %791 = vmatmul.mubr.bf16.gmra.mrb[8].mxu1 %v1516_v44 }
  0x61   : > { %766 = vmatprep.mubr.bf16.mxu0 %v1517_v45  ;;  %798 = vmatprep.mubr.bf16.mxu1 %v1519_v46 }
  0x68   : > { %767 = vmatmul.mubr.bf16.gmra.mrb[12].mxu0 %v1521_v47  ;;  %799 = vmatmul.mubr.bf16.gmra.mrb[12].mxu1 %v1522_v48  ;;  %v476_v47 = vld [vmem:[#allocation2 + $0x30] sm:$0xff] }
 0x123   : > { %v1378_v49 = vpop.f32.mrb[0].mxu0  ;;  %v1402_v50 = vpop.f32.mrb[0].mxu1 }
 0x124   : > { %v1379_v52 = vpop.f32.mrb[1].mxu0  ;;  %v1403_v54 = vpop.f32.mrb[1].mxu1 }
 0x125   : > { %v1380_v55 = vadd.f32 %v1379_v52, %v1378_v49  ;;  %v1404_v56 = vadd.f32 %v1403_v54, %v1402_v50  ;;  %v1381_v57 = vpop.f32.mrb[2].mxu0  ;;  %v1405_v58 = vpop.f32.mrb[2].mxu1  ;;  %v484_v49 = vld [vmem:[#allocation2 + $0x70] sm:$0xff] }
 0x126   : > { %v1382_v60 = vpop.f32.mrb[3].mxu0  ;;  %v1406_v62 = vpop.f32.mrb[3].mxu1 }
 0x127   : > { %v807_v63 = vadd.f32 %v1380_v55, %v470_v51  ;;  %v815_v0 = vadd.f32 %v1404_v56, %v478_v53  ;;  %v1383_v1 = vadd.f32 %v1382_v60, %v1381_v57  ;;  %v1407_v2 = vadd.f32 %v1406_v62, %v1405_v58  ;;  %v477_v55 = vld [vmem:[#allocation2 + $0x38] sm:$0xff] }
 0x128   : > { %v485_v57 = vld [vmem:[#allocation2 + $0x78] sm:$0xff] }
 0x129   : > { %823 = vst [vmem:[#allocation2] sm:$0xff] %v807_v63  ;;  %831 = vst [vmem:[#allocation2 + $0x40] sm:$0xff] %v815_v0  ;;  %v808_v3 = vadd.f32 %v1383_v1, %v471_v59  ;;  %v816_v4 = vadd.f32 %v1407_v2, %v479_v61 }
 0x12b   : > { %824 = vst [vmem:[#allocation2 + $0x8] sm:$0xff] %v808_v3  ;;  %832 = vst [vmem:[#allocation2 + $0x48] sm:$0xff] %v816_v4  ;;  %v1384_v5 = vpop.f32.mrb[4].mxu0  ;;  %v1408_v6 = vpop.f32.mrb[4].mxu1  ;;  %v1703_v3 = vld [vmem:[%s1807_s2] ss:$0 sm:$0xff] (!%p1236_p11) }
 0x12c   : > { %v1385_v8 = vpop.f32.mrb[5].mxu0  ;;  %v1409_v10 = vpop.f32.mrb[5].mxu1 }
 0x12d   : > { %v1386_v11 = vadd.f32 %v1385_v8, %v1384_v5  ;;  %v1410_v12 = vadd.f32 %v1409_v10, %v1408_v6  ;;  %v1387_v13 = vpop.f32.mrb[6].mxu0  ;;  %v1411_v14 = vpop.f32.mrb[6].mxu1  ;;  %v1710_v6 = vld [vmem:[%s1808_s3] ss:$0 sm:$0xff] (!%p1236_p11) }
 0x12e   : > { %v1388_v16 = vpop.f32.mrb[7].mxu0  ;;  %v1412_v18 = vpop.f32.mrb[7].mxu1 }
 0x12f   : > { %v809_v19 = vadd.f32 %v1386_v11, %v472_v7  ;;  %v817_v20 = vadd.f32 %v1410_v12, %v480_v9  ;;  %v1389_v21 = vadd.f32 %v1388_v16, %v1387_v13  ;;  %v1413_v22 = vadd.f32 %v1412_v18, %v1411_v14  ;;  %v1277_v7 = vld [vmem:[%s1809_s4] sm:$0xff] (!%p1236_p11)   ;;  %v1348_v13 = vld [vmem:[%s1809_s4 + $0x8] sm:$0xff] (!%p1236_p11)  }
 0x130   : > { %v843_v1 = vld [vmem:[#allocation2] sm:$0xff] (!%p1236_p11)  ;;  %v1278_v9 = vunpack.c.l.bf16 (!%p1236_p11), %v1277_v7  ;;  %v1279_v10 = vunpack.c.h.bf16 (!%p1236_p11), %v1277_v7  ;;  %v1282_v18 = vunpack.c.l.bf16 (!%p1236_p11), %v1348_v13 }
 0x131   : > { %825 = vst [vmem:[#allocation2 + $0x10] sm:$0xff] %v809_v19  ;;  %833 = vst [vmem:[#allocation2 + $0x50] sm:$0xff] %v817_v20  ;;  %v810_v23 = vadd.f32 %v1389_v21, %v473_v15  ;;  %v818_v24 = vadd.f32 %v1413_v22, %v481_v17  ;;  %v866_v4 = vmul.f32 (!%p1236_p11), %v1703_v3, %v843_v1  ;;  %v1349_v20 = vld [vmem:[%s1809_s4 + $0x10] sm:$0xff] (!%p1236_p11)   ;;  %v1283_v22 = vunpack.c.h.bf16 (!%p1236_p11), %v1348_v13 }
 0x132   : > { %v844_v2 = vld [vmem:[#allocation2 + $0x8] sm:$0xff] (!%p1236_p11) }
 0x133   : > { %826 = vst [vmem:[#allocation2 + $0x18] sm:$0xff] %v810_v23  ;;  %834 = vst [vmem:[#allocation2 + $0x58] sm:$0xff] %v818_v24  ;;  %v1390_v25 = vpop.f32.mrb[8].mxu0  ;;  %v1414_v26 = vpop.f32.mrb[8].mxu1  ;;  %v867_v5 = vmul.f32 (!%p1236_p11), %v1703_v3, %v844_v2  ;;  %v889_v15 = vadd.f32 (!%p1236_p11), %v1710_v6, %v866_v4 }
 0x134   : > { %v1391_v28 = vpop.f32.mrb[9].mxu0  ;;  %v1415_v30 = vpop.f32.mrb[9].mxu1 }
 0x135   : > { %v1392_v31 = vadd.f32 %v1391_v28, %v1390_v25  ;;  %v1416_v32 = vadd.f32 %v1415_v30, %v1414_v26  ;;  %v1393_v33 = vpop.f32.mrb[10].mxu0  ;;  %v1417_v34 = vpop.f32.mrb[10].mxu1  ;;  %v890_v16 = vadd.f32 (!%p1236_p11), %v1710_v6, %v867_v5  ;;  %v937_v26 = vadd.f32 (!%p1236_p11), %v1278_v9, %v889_v15 }
 0x136   : > { %v1394_v36 = vpop.f32.mrb[11].mxu0  ;;  %v1418_v38 = vpop.f32.mrb[11].mxu1 }
 0x137   : > { %v811_v39 = vadd.f32 %v1392_v31, %v474_v27  ;;  %v819_v40 = vadd.f32 %v1416_v32, %v482_v29  ;;  %v1395_v41 = vadd.f32 %v1394_v36, %v1393_v33  ;;  %v1419_v42 = vadd.f32 %v1418_v38, %v1417_v34 }
 0x138   : > { %v845_v8 = vld [vmem:[#allocation2 + $0x10] sm:$0xff] (!%p1236_p11)  ;;  %v938_v27 = vadd.f32 (!%p1236_p11), %v1279_v10, %v890_v16  ;;  %v1286_v29 = vunpack.c.l.bf16 (!%p1236_p11), %v1349_v20  ;;  %v1287_v34 = vunpack.c.h.bf16 (!%p1236_p11), %v1349_v20  ;;  %v953_v36 = vmax.f32 (!%p1236_p11), %v937_v26, 0.0 }
 0x139   : > { %827 = vst [vmem:[#allocation2 + $0x20] sm:$0xff] %v811_v39  ;;  %835 = vst [vmem:[#allocation2 + $0x60] sm:$0xff] %v819_v40  ;;  %v812_v43 = vadd.f32 %v1395_v41, %v475_v35  ;;  %v820_v44 = vadd.f32 %v1419_v42, %v483_v37  ;;  %v868_v12 = vmul.f32 (!%p1236_p11), %v1703_v3, %v845_v8  ;;  %v1350_v35 = vld [vmem:[%s1809_s4 + $0x18] sm:$0xff] (!%p1236_p11)   ;;  %v1353_v10 = vld [vmem:[%s1809_s4 + $0x30] sm:$0xff] (!%p1236_p11)  }
 0x13a   : > { %v846_v11 = vld [vmem:[#allocation2 + $0x18] sm:$0xff] (!%p1236_p11)  ;;  %v954_v37 = vmax.f32 (!%p1236_p11), %v938_v27, 0.0 }
 0x13b   : > { %828 = vst [vmem:[#allocation2 + $0x28] sm:$0xff] %v812_v43  ;;  %836 = vst [vmem:[#allocation2 + $0x68] sm:$0xff] %v820_v44  ;;  %v1396_v45 = vpop.f32.mrb[12].mxu0  ;;  %v1420_v46 = vpop.f32.mrb[12].mxu1  ;;  %v869_v17 = vmul.f32 (!%p1236_p11), %v1703_v3, %v846_v11  ;;  %v891_v21 = vadd.f32 (!%p1236_p11), %v1710_v6, %v868_v12  ;;  %v851_v44 = vld [vmem:[#allocation2 + $0x40] sm:$0xff] (!%p1236_p11) }
 0x13c   : > { %v1397_v48 = vpop.f32.mrb[13].mxu0  ;;  %v1421_v50 = vpop.f32.mrb[13].mxu1 }
 0x13d   : > { %v1398_v51 = vadd.f32 %v1397_v48, %v1396_v45  ;;  %v1422_v52 = vadd.f32 %v1421_v50, %v1420_v46  ;;  %v1399_v53 = vpop.f32.mrb[14].mxu0  ;;  %v1423_v54 = vpop.f32.mrb[14].mxu1  ;;  %842 = sbr.rel (%p1236_p11) target bundleno = 343 (0x157), region = 86  ;;  %v892_v28 = vadd.f32 (!%p1236_p11), %v1710_v6, %v869_v17  ;;  %v939_v31 = vadd.f32 (!%p1236_p11), %v1282_v18, %v891_v21  ;;  %v852_v45 = vld [vmem:[#allocation2 + $0x48] sm:$0xff] (!%p1236_p11)  ;;  %v1351_v50 = vld [vmem:[%s1809_s4 + $0x20] sm:$0xff] (!%p1236_p11)  }
 0x13e   : > { %v1400_v56 = vpop.f32.mrb[15].mxu0  ;;  %v1424_v58 = vpop.f32.mrb[15].mxu1  ;;  %v1311_v46 = vpack.c.bf16 (!%p1236_p11), %v954_v37, %v953_v36  ;;  %v1295_v1 = vunpack.c.h.bf16 (!%p1236_p11), %v1351_v50 }
 0x13f   : > { %v813_v59 = vadd.f32 %v1398_v51, %v476_v47  ;;  %v821_v60 = vadd.f32 %v1422_v52, %v484_v49  ;;  %v1401_v61 = vadd.f32 %v1400_v56, %v1399_v53  ;;  %v1425_v62 = vadd.f32 %v1424_v58, %v1423_v54 }
 0x140   : > { %v847_v14 = vld [vmem:[#allocation2 + $0x20] sm:$0xff] (!%p1236_p11)  ;;  %v940_v38 = vadd.f32 (!%p1236_p11), %v1283_v22, %v892_v28  ;;  %v955_v40 = vmax.f32 (!%p1236_p11), %v939_v31, 0.0  ;;  %v1290_v49 = vunpack.c.l.bf16 (!%p1236_p11), %v1350_v35  ;;  %v1291_v54 = vunpack.c.h.bf16 (!%p1236_p11), %v1350_v35  ;;  %1312 = vst [vmem:[%s1810_s5] sm:$0xff] (!%p1236_p11), %v1311_v46  }
 0x141   : > { %829 = vst [vmem:[#allocation2 + $0x30] sm:$0xff] %v813_v59  ;;  %837 = vst [vmem:[#allocation2 + $0x70] sm:$0xff] %v821_v60  ;;  %v814_v63 = vadd.f32 %v1401_v61, %v477_v55  ;;  %v822_v0 = vadd.f32 %v1425_v62, %v485_v57  ;;  %v870_v23 = vmul.f32 (!%p1236_p11), %v1703_v3, %v847_v14  ;;  %v853_v55 = vld [vmem:[#allocation2 + $0x50] sm:$0xff] (!%p1236_p11)  ;;  %v854_v60 = vld [vmem:[#allocation2 + $0x58] sm:$0xff] (!%p1236_p11) }
 0x142   : > { %v848_v19 = vld [vmem:[#allocation2 + $0x28] sm:$0xff] (!%p1236_p11)  ;;  %v956_v47 = vmax.f32 (!%p1236_p11), %v940_v38, 0.0  ;;  %v874_v58 = vmul.f32 (!%p1236_p11), %v1703_v3, %v851_v44  ;;  %v875_v59 = vmul.f32 (!%p1236_p11), %v1703_v3, %v852_v45  ;;  %v855_v2 = vld [vmem:[#allocation2 + $0x60] sm:$0xff] (!%p1236_p11)  ;;  %v876_v8 = vmul.f32 (!%p1236_p11), %v1703_v3, %v853_v55 }
 0x143   : > { %830 = vst [vmem:[#allocation2 + $0x38] sm:$0xff] %v814_v63  ;;  %838 = vst [vmem:[#allocation2 + $0x78] sm:$0xff] %v822_v0  ;;  %v871_v24 = vmul.f32 (!%p1236_p11), %v1703_v3, %v848_v19  ;;  %v893_v32 = vadd.f32 (!%p1236_p11), %v1710_v6, %v870_v23  ;;  %v1352_v61 = vld [vmem:[%s1809_s4 + $0x28] sm:$0xff] (!%p1236_p11)   ;;  %v1294_v0 = vunpack.c.l.bf16 (!%p1236_p11), %v1351_v50  ;;  %v877_v12 = vmul.f32 (!%p1236_p11), %v1703_v3, %v854_v60 }
 0x144   : > { %v1316_v56 = vpack.c.bf16 %v956_v47, %v955_v40  ;;  %v897_v5 = vadd.f32 %v1710_v6, %v874_v58  ;;  %v898_v7 = vadd.f32 %v1710_v6, %v875_v59  ;;  %v856_v9 = vld [vmem:[#allocation2 + $0x68] sm:$0xff]  ;;  %v1298_v13 = vunpack.c.l.bf16 %v1352_v61 }
 0x145   : > { %v894_v33 = vadd.f32 %v1710_v6, %v871_v24  ;;  %v941_v41 = vadd.f32 %v1286_v29, %v893_v32  ;;  %v1299_v14 = vunpack.c.h.bf16 %v1352_v61  ;;  %v899_v17 = vadd.f32 %v1710_v6, %v876_v8  ;;  %v1354_v29 = vld [vmem:[%s1809_s4 + $0x38] sm:$0xff]  }
 0x146   : > { %1355 = vst [vmem:[%s1810_s5 + $0x8] sm:$0xff] %v1316_v56   ;;  %v945_v15 = vadd.f32 %v1294_v0, %v897_v5  ;;  %v946_v16 = vadd.f32 %v1295_v1, %v898_v7  ;;  %v878_v18 = vmul.f32 %v1703_v3, %v855_v2  ;;  %v900_v21 = vadd.f32 %v1710_v6, %v877_v12 }
 0x147   : > { %v942_v42 = vadd.f32 %v1287_v34, %v894_v33  ;;  %v957_v51 = vmax.f32 %v941_v41, 0.0  ;;  %v879_v22 = vmul.f32 %v1703_v3, %v856_v9  ;;  %v1302_v23 = vunpack.c.l.bf16 %v1353_v10 }
 0x148   : > { %v849_v25 = vld [vmem:[#allocation2 + $0x30] sm:$0xff]  ;;  %v962_v26 = vmax.f32 %v946_v16, 0.0  ;;  %v947_v27 = vadd.f32 %v1298_v13, %v899_v17  ;;  %v901_v28 = vadd.f32 %v1710_v6, %v878_v18  ;;  %v1303_v32 = vunpack.c.h.bf16 %v1353_v10 }
 0x149   : > { %v872_v39 = vmul.f32 %v1703_v3, %v849_v25  ;;  %v958_v52 = vmax.f32 %v942_v42, 0.0  ;;  %v857_v19 = vld [vmem:[#allocation2 + $0x70] sm:$0xff]  ;;  %v961_v25 = vmax.f32 %v945_v15, 0.0  ;;  %v902_v31 = vadd.f32 %v1710_v6, %v879_v22 }
 0x14a   : > { %v850_v30 = vld [vmem:[#allocation2 + $0x38] sm:$0xff]  ;;  %v880_v33 = vmul.f32 %v1703_v3, %v857_v19  ;;  %v963_v35 = vmax.f32 %v947_v27, 0.0  ;;  %v949_v36 = vadd.f32 %v1302_v23, %v901_v28  ;;  %v1306_v41 = vunpack.c.l.bf16 %v1354_v29 }
 0x14b   : > { %v873_v43 = vmul.f32 %v1703_v3, %v850_v30  ;;  %v895_v48 = vadd.f32 %v1710_v6, %v872_v39  ;;  %v1321_v62 = vpack.c.bf16 %v958_v52, %v957_v51  ;;  %v858_v24 = vld [vmem:[#allocation2 + $0x78] sm:$0xff]  ;;  %v948_v30 = vadd.f32 %v1299_v14, %v900_v21 }
 0x14c   : > { %v1331_v34 = vpack.c.bf16 %v962_v26, %v961_v25  ;;  %v881_v37 = vmul.f32 %v1703_v3, %v858_v24  ;;  %v950_v39 = vadd.f32 %v1303_v32, %v902_v31  ;;  %v903_v40 = vadd.f32 %v1710_v6, %v880_v33 }
 0x14d   : > { %v896_v53 = vadd.f32 %v1710_v6, %v873_v43  ;;  %v943_v57 = vadd.f32 %v1290_v49, %v895_v48  ;;  %1356 = vst [vmem:[%s1810_s5 + $0x10] sm:$0xff] %v1321_v62   ;;  %v964_v38 = vmax.f32 %v948_v30, 0.0  ;;  %v965_v42 = vmax.f32 %v949_v36, 0.0 }
 0x14e   : > { %1358 = vst [vmem:[%s1810_s5 + $0x20] sm:$0xff] %v1331_v34   ;;  %v904_v43 = vadd.f32 %v1710_v6, %v881_v37  ;;  %v1307_v44 = vunpack.c.h.bf16 %v1354_v29  ;;  %v966_v46 = vmax.f32 %v950_v39, 0.0  ;;  %v951_v47 = vadd.f32 %v1306_v41, %v903_v40 }
 0x14f   : > { %v944_v63 = vadd.f32 %v1291_v54, %v896_v53  ;;  %v959_v4 = vmax.f32 %v943_v57, 0.0  ;;  %v1336_v45 = vpack.c.bf16 %v964_v38, %v963_v35 }
 0x150   : > { %v952_v48 = vadd.f32 %v1307_v44, %v904_v43  ;;  %v1341_v3 = vpack.c.bf16 %v966_v46, %v965_v42  ;;  %v967_v49 = vmax.f32 %v951_v47, 0.0 }
 0x151   : > { %v960_v11 = vmax.f32 %v944_v63, 0.0  ;;  %1359 = vst [vmem:[%s1810_s5 + $0x28] sm:$0xff] %v1336_v45  }
 0x152   : > { %v968_v50 = vmax.f32 %v952_v48, 0.0  ;;  %1360 = vst [vmem:[%s1810_s5 + $0x30] sm:$0xff] %v1341_v3  }
 0x153   : > { %v1326_v20 = vpack.c.bf16 %v960_v11, %v959_v4 }
 0x154   : > { %v1346_v51 = vpack.c.bf16 %v968_v50, %v967_v49 }
 0x155   : > { %1357 = vst [vmem:[%s1810_s5 + $0x18] sm:$0xff] %v1326_v20  }
 0x156   : > { %1361 = vst [vmem:[%s1810_s5 + $0x38] sm:$0xff] %v1346_v51  }
 0x157 PF: > { %s15_s22 = sadd.s32 1, %s1561_s22   ;;  %s1811_s18 = smov %s1549_s19 }
 0x158   : > { %p12_p12 = scmp.ge.s32.totalorder %s15_s22, 5   ;;  %s1812_s19 = smov %s1629_s26 }
 0x159   : > { %s1813_s20 = smov %s1557_s21  ;;  %s1814_s21 = smov %s1816_s23 }
 0x15a   :  { %14 = sbr.rel (!%p12_p12) target bundleno = 3 (0x3), region = 133 }

// kernel: resnet18_forward.28
= control target key start
LH: loop header
LB: loop body
LE: loop exit
PB: predicated region body
PF: predicated region fallthrough
CT: control target
= control target key end

     0   :  { %s973_s15 = smov 0   ;;  %s975_s16 = smov 0   ;;  %s1076_s0 = inlined_call_operand.vmem [shape: bf16[32,768], index: 0, kind: input, shape index: {}]   ;;  %s1077_s1 = inlined_call_operand.vmem [shape: bf16[768,128], index: 1, kind: input, shape index: {}]   ;;  %s1078_s2 = inlined_call_operand.vmem [shape: f32[1,128], index: 2, kind: input, shape index: {}]   ;;  %s1079_s3 = inlined_call_operand.vmem [shape: f32[1,128], index: 3, kind: input, shape index: {}]   ;;  %s1080_s4 = inlined_call_operand.vmem [shape: bf16[32,128], index: 4, kind: output, shape index: {}]  }
   0x1   :  { %s977_s17 = smov 0   ;;  %s979_s18 = smov 0  }
   0x2   :  { %s981_s19 = smov 0  }
   0x3 LB: > { %s26_s20 = sadd.s32 1, %s941_s18  ;;  %p49_p1 = scmp.ne.s32.totalorder %s933_s16, %s929_s15  ;;  %s945_s19 = sphi %s981_s19, %s14_s19   ;;  %s941_s18 = sphi %s979_s18, %s1084_s18   ;;  %s937_s17 = sphi %s977_s17, %s1083_s17   ;;  %s933_s16 = sphi %s975_s16, %s1082_s16   ;;  %s929_s15 = sphi %s973_s15, %s1081_s15  }
   0x4   : > { %p27_p0 = scmp.ge.s32.totalorder %s26_s20, 3  ;;  %p50_p2 = scmp.eq.s32.totalorder %s945_s19, 0 }
   0x5   : > { %s42_s22 = sadd.s32 1, %s933_s16  ;;  %p744_p5 = scmp.ge.s32.totalorder %s945_s19, 3 }
   0x6   : > { %s1086_s20 = smov (%p27_p0, %s26_s20), 0  ;;  %p51_p3 = por %p50_p2, %p49_p1 }
   0x7   : > { %s38_s21 = ssub.s32 %s941_s18, %s1086_s20  ;;  %195 = sbr.rel (%p744_p5) target bundleno = 21 (0x15), region = 24 }
   0x8   : > { %p40_p4 = scmp.eq.s32.totalorder %s38_s21, 0 }
   0xa   : > { %s1008_s23 = scalar_select %p40_p4, %s933_s16, %s42_s22  }
   0xe   : > { %198 = sbr.rel (!%p51_p3) target bundleno = 21 (0x15), region = 28  ;;  %s200_s24 = sand.u32 (%p51_p3), 1, %s933_s16  }
   0xf   : > { %s784_s25 = sshll.u32 (%p51_p3), %s941_s18, 3  ;;  %s745_s26 = sshll.u32 (%p51_p3), %s200_s24, 5 }
  0x10   : > { %s208_s29 = scalar_lea.vmem (%p51_p3), %s1076_s0, %s784_s25  ;;  %s202_s30 = scalar_lea.vmem (%p51_p3), [#allocation3], %s745_s26 }
  0x11   : > { %v242_v0 = vld [vmem:[%s208_s29] sm:$0xff] (%p51_p3)  ;;  %v244_v1 = vld [vmem:[%s208_s29 + $0x18] sm:$0xff] (%p51_p3)  ;;  %v246_v2 = vld [vmem:[%s208_s29 + $0x30] sm:$0xff] (%p51_p3) }
  0x12   : > { %243 = vst [vmem:[%s202_s30] sm:$0xff] (%p51_p3), %v242_v0  ;;  %245 = vst [vmem:[%s202_s30 + $0x8] sm:$0xff] (%p51_p3), %v244_v1  ;;  %v248_v3 = vld [vmem:[%s208_s29 + $0x48] sm:$0xff] (%p51_p3) }
  0x13   : > { %247 = vst [vmem:[%s202_s30 + $0x10] sm:$0xff] (%p51_p3), %v246_v2  ;;  %249 = vst [vmem:[%s202_s30 + $0x18] sm:$0xff] (%p51_p3), %v248_v3 }
  0x15 PF: > { %p748_p6 = scmp.ge.s32.totalorder %s945_s19, 1  ;;  %p266_p7 = scmp.lt.s32.totalorder %s945_s19, 4 }
  0x17   : > { %p267_p8 = pnand %p748_p6, %p266_p7 }
  0x18   : > { %s273_s5 = sand.u32 (!%p267_p8), 1, %s929_s15   ;;  %s750_s6 = sshll.u32 (!%p267_p8), %s937_s17, 5 }
  0x19   : > { %270 = sbr.rel (%p267_p8) target bundleno = 308 (0x134), region = 70  ;;  %s749_s7 = sshll.u32 (!%p267_p8), %s273_s5, 5 }
  0x1a   : > { %p318_p9 = scmp.lt.s32.totalorder (!%p267_p8), %s750_s6, 95  ;;  %s1025_s12 = scalar_lea.vmem (!%p267_p8), [#allocation3], %s749_s7 }
  0x1b   : > { %p752_p10 = scmp.ne.s32.totalorder (!%p267_p8), %s937_s17, 0 }
  0x20   : > { %s1088_s6 = smov (!%p318_p9, %s750_s6), 95  ;;  %345 = sbr.rel (%p752_p10) target bundleno = 39 (0x27), region = 78 }
  0x21   : > { %s751_s8 = sshll.u32 %s1088_s6, 2  ;;  %v947_v4 = vmov (!%p752_p10), 0.0  }
  0x22   : > { %s1023_s11 = scalar_lea.vmem %s1077_s1, %s751_s8  ;;  %346 = vst [vmem:[#allocation2] sm:$0xff] (!%p752_p10), %v947_v4  ;;  %347 = vst [vmem:[#allocation2 + $0x8] sm:$0xff] (!%p752_p10), %v947_v4 }
  0x23   : > { %348 = vst [vmem:[#allocation2 + $0x10] sm:$0xff] (!%p752_p10), %v947_v4  ;;  %349 = vst [vmem:[#allocation2 + $0x18] sm:$0xff] (!%p752_p10), %v947_v4 }
  0x27 PF: > { %v885_v5 = vld [vmem:[%s1023_s11 + $0x40] sm:$0xff]   ;;  %v887_v7 = vld [vmem:[%s1023_s11 + $0x48] sm:$0xff]   ;;  %v889_v9 = vld [vmem:[%s1023_s11 + $0x50] sm:$0xff]   ;;  %p773_p11 = scmp.ne.s32.totalorder %s937_s17, 2 }
  0x28   : > { %v886_v6 = vld [vmem:[%s1023_s11] sm:$0xff]   ;;  %800 = vmatprep.subr.bf16.mxu0 %v885_v5  ;;  %828 = vmatprep.subr.bf16.mxu1 %v885_v5  ;;  %v888_v8 = vld [vmem:[%s1023_s11 + $0x8] sm:$0xff]   ;;  %v890_v10 = vld [vmem:[%s1023_s11 + $0x10] sm:$0xff]  }
  0x29   : > { %801 = vmatpush3.bf16.msra.mxu0 %v886_v6  ;;  %836 = vmatpush3.bf16.msra.mxu1 %v886_v6  ;;  %v891_v11 = vld [vmem:[%s1023_s11 + $0x58] sm:$0xff]   ;;  %v893_v13 = vld [vmem:[%s1023_s11 + $0x60] sm:$0xff]   ;;  %v895_v15 = vld [vmem:[%s1023_s11 + $0x68] sm:$0xff]  }
  0x2a   : > { %802 = vmatprep.subr.bf16.mxu0 %v887_v7  ;;  %829 = vmatprep.subr.bf16.mxu1 %v887_v7  ;;  %v892_v12 = vld [vmem:[%s1023_s11 + $0x18] sm:$0xff]   ;;  %v894_v14 = vld [vmem:[%s1023_s11 + $0x20] sm:$0xff]   ;;  %v896_v18 = vld [vmem:[%s1023_s11 + $0x28] sm:$0xff]  }
  0x2b   : > { %v903_v16 = vld [vmem:[%s1025_s12 + $0x4] ss:$8 sps:$4 sm:$0xff]   ;;  %v906_v17 = vld [vmem:[%s1025_s12 + $0x14] ss:$8 sps:$4 sm:$0xff]   ;;  %v901_v23 = vld [vmem:[%s1025_s12] ss:$8 sps:$4 sm:$0xff]  }
  0x2c   : > { %v897_v19 = vld [vmem:[%s1023_s11 + $0x70] sm:$0xff]   ;;  %538 = vmatprep.mubr.bf16.mxu0 %v903_v16  ;;  %546 = vmatprep.mubr.bf16.mxu1 %v906_v17  ;;  %v899_v21 = vld [vmem:[%s1023_s11 + $0x78] sm:$0xff]   ;;  %v350_v27 = vld [vmem:[#allocation2] sm:$0xff] }
  0x2d   : > { %803 = vmatpush3.bf16.msra.mxu0 %v888_v8  ;;  %837 = vmatpush3.bf16.msra.mxu1 %v888_v8  ;;  %v898_v20 = vld [vmem:[%s1023_s11 + $0x30] sm:$0xff]   ;;  %v900_v22 = vld [vmem:[%s1023_s11 + $0x38] sm:$0xff]   ;;  %v351_v35 = vld [vmem:[#allocation2 + $0x8] sm:$0xff] }
  0x2e   : > { %804 = vmatprep.subr.bf16.mxu0 %v889_v9  ;;  %830 = vmatprep.subr.bf16.mxu1 %v889_v9  ;;  %v904_v24 = vld [vmem:[%s1025_s12 + $0x10] ss:$8 sps:$4 sm:$0xff]   ;;  %v774_v47 = vld [vmem:[%s1078_s2] ss:$0 sm:$0xff] (!%p773_p11) }
  0x2f   : > { %v352_v29 = vld [vmem:[#allocation2 + $0x10] sm:$0xff]  ;;  %v353_v37 = vld [vmem:[#allocation2 + $0x18] sm:$0xff]  ;;  %v775_v50 = vld [vmem:[%s1079_s3] ss:$0 sm:$0xff] (!%p773_p11) }
  0x31   : > { %805 = vmatpush3.bf16.msra.mxu0 %v890_v10  ;;  %838 = vmatpush3.bf16.msra.mxu1 %v890_v10 }
  0x32   : > { %806 = vmatprep.subr.bf16.mxu0 %v891_v11  ;;  %831 = vmatprep.subr.bf16.mxu1 %v891_v11 }
  0x35   : > { %807 = vmatpush3.bf16.msra.mxu0 %v892_v12  ;;  %839 = vmatpush3.bf16.msra.mxu1 %v892_v12 }
  0x36   : > { %808 = vmatprep.subr.bf16.mxu0 %v893_v13  ;;  %832 = vmatprep.subr.bf16.mxu1 %v893_v13 }
  0x39   : > { %809 = vmatpush3.bf16.msra.mxu0 %v894_v14  ;;  %840 = vmatpush3.bf16.msra.mxu1 %v894_v14 }
  0x3a   : > { %810 = vmatprep.subr.bf16.mxu0 %v895_v15  ;;  %833 = vmatprep.subr.bf16.mxu1 %v895_v15 }
  0x3d   : > { %811 = vmatpush3.bf16.msra.mxu0 %v896_v18  ;;  %841 = vmatpush3.bf16.msra.mxu1 %v896_v18 }
  0x3e   : > { %812 = vmatprep.subr.bf16.mxu0 %v897_v19  ;;  %834 = vmatprep.subr.bf16.mxu1 %v897_v19 }
  0x41   : > { %813 = vmatpush3.bf16.msra.mxu0 %v898_v20  ;;  %842 = vmatpush3.bf16.msra.mxu1 %v898_v20 }
  0x42   : > { %814 = vmatprep.subr.bf16.mxu0 %v899_v21  ;;  %835 = vmatprep.subr.bf16.mxu1 %v899_v21 }
  0x45   : > { %815 = vmatpush3.bf16.msra.mxu0 %v900_v22  ;;  %843 = vmatpush3.bf16.msra.mxu1 %v900_v22 }
  0x48   : > { %539 = vmatmul.mubr.bf16.vlgmr.msra.gmra.mrb[0].mxu0 %v901_v23  ;;  %547 = vmatmul.mubr.bf16.vlgmr.msra.gmra.mrb[0].mxu1 %v904_v24 }
 0x11b   : > { %v816_v25 = vpop.f32.mrb[0].mxu0  ;;  %v822_v26 = vpop.f32.mrb[0].mxu1 }
 0x11c   : > { %v817_v28 = vpop.f32.mrb[1].mxu0  ;;  %v823_v30 = vpop.f32.mrb[1].mxu1 }
 0x11d   : > { %v818_v31 = vadd.f32 %v817_v28, %v816_v25  ;;  %v824_v32 = vadd.f32 %v823_v30, %v822_v26  ;;  %v819_v33 = vpop.f32.mrb[2].mxu0  ;;  %v825_v34 = vpop.f32.mrb[2].mxu1  ;;  %566 = sbr.rel (%p773_p11) target bundleno = 308 (0x134), region = 82 }
 0x11e   : > { %v820_v36 = vpop.f32.mrb[3].mxu0  ;;  %v826_v38 = vpop.f32.mrb[3].mxu1 }
 0x11f   : > { %v555_v39 = vadd.f32 %v818_v31, %v350_v27  ;;  %v557_v40 = vadd.f32 %v824_v32, %v352_v29  ;;  %v821_v41 = vadd.f32 %v820_v36, %v819_v33  ;;  %v827_v42 = vadd.f32 %v826_v38, %v825_v34 }
 0x121   : > { %559 = vst [vmem:[#allocation2] sm:$0xff] %v555_v39  ;;  %561 = vst [vmem:[#allocation2 + $0x10] sm:$0xff] %v557_v40  ;;  %v556_v43 = vadd.f32 %v821_v41, %v351_v35  ;;  %v558_v44 = vadd.f32 %v827_v42, %v353_v37 }
 0x123   : > { %560 = vst [vmem:[#allocation2 + $0x8] sm:$0xff] %v556_v43  ;;  %562 = vst [vmem:[#allocation2 + $0x18] sm:$0xff] %v558_v44 }
 0x128   : > { %v567_v45 = vld [vmem:[#allocation2] sm:$0xff]  ;;  %v569_v51 = vld [vmem:[#allocation2 + $0x10] sm:$0xff] }
 0x129   : > { %v578_v48 = vmul.f32 %v774_v47, %v567_v45  ;;  %v580_v53 = vmul.f32 %v774_v47, %v569_v51 }
 0x12a   : > { %v568_v46 = vld [vmem:[#allocation2 + $0x8] sm:$0xff]  ;;  %v570_v52 = vld [vmem:[#allocation2 + $0x18] sm:$0xff] }
 0x12b   : > { %v579_v49 = vmul.f32 %v774_v47, %v568_v46  ;;  %v581_v54 = vmul.f32 %v774_v47, %v570_v52  ;;  %v589_v55 = vadd.f32 %v775_v50, %v578_v48  ;;  %v591_v57 = vadd.f32 %v775_v50, %v580_v53 }
 0x12d   : > { %v590_v56 = vadd.f32 %v775_v50, %v579_v49  ;;  %v592_v58 = vadd.f32 %v775_v50, %v581_v54  ;;  %v593_v59 = vmax.f32 %v589_v55, 0.0  ;;  %v595_v61 = vmax.f32 %v591_v57, 0.0 }
 0x12f   : > { %v594_v60 = vmax.f32 %v590_v56, 0.0  ;;  %v596_v62 = vmax.f32 %v592_v58, 0.0 }
 0x131   : > { %v792_v63 = vpack.c.bf16 %v594_v60, %v593_v59  ;;  %v797_v0 = vpack.c.bf16 %v596_v62, %v595_v61 }
 0x133   : > { %793 = vst [vmem:[%s1080_s4] sm:$0xff] %v792_v63   ;;  %799 = vst [vmem:[%s1080_s4 + $0x8] sm:$0xff] %v797_v0  }
 0x134 PF: > { %s14_s19 = sadd.s32 1, %s945_s19   ;;  %s1081_s15 = smov %s933_s16 }
 0x135   : > { %p11_p12 = scmp.ge.s32.totalorder %s14_s19, 5   ;;  %s1082_s16 = smov %s1008_s23 }
 0x136   : > { %s1083_s17 = smov %s941_s18  ;;  %s1084_s18 = smov %s1086_s20 }
 0x137   :  { %13 = sbr.rel (!%p11_p12) target bundleno = 3 (0x3), region = 126 }

// kernel: resnet18_forward.29
= control target key start
LH: loop header
LB: loop body
LE: loop exit
PB: predicated region body
PF: predicated region fallthrough
CT: control target
= control target key end

     0   :  { %s358_s1 = inlined_call_operand.vmem [shape: bf16[128,128], index: 1, kind: input, shape index: {}]   ;;  %s359_s0 = inlined_call_operand.vmem [shape: bf16[32,128], index: 0, kind: input, shape index: {}]   ;;  %s360_s2 = inlined_call_operand.vmem [shape: f32[1,128], index: 2, kind: input, shape index: {}]   ;;  %s361_s3 = inlined_call_operand.vmem [shape: f32[1,128], index: 3, kind: input, shape index: {}]   ;;  %s362_s4 = inlined_call_operand.vmem [shape: bf16[32,128], index: 4, kind: output, shape index: {}]  }
   0x1   :  { %v281_v0 = vld [vmem:[%s358_s1] sm:$0xff]   ;;  %v282_v1 = vld [vmem:[%s358_s1 + $0x8] sm:$0xff]   ;;  %v283_v2 = vld [vmem:[%s358_s1 + $0x10] sm:$0xff]  }
   0x2   :  { %261 = vmatprep.subr.bf16.mxu0 %v281_v0  ;;  %v284_v3 = vld [vmem:[%s358_s1 + $0x18] sm:$0xff]   ;;  %v289_v4 = vld [vmem:[%s359_s0] sm:$0xff]   ;;  %v286_v6 = vld [vmem:[%s358_s1 + $0x28] sm:$0xff]  }
   0x3   :  { %262 = vmatpush3.bf16.msra.mxu0 %v281_v0  ;;  %277 = vmatprep.mubr.bf16.mxu0 %v289_v4  ;;  %v285_v5 = vld [vmem:[%s358_s1 + $0x20] sm:$0xff]   ;;  %v287_v7 = vld [vmem:[%s358_s1 + $0x30] sm:$0xff]   ;;  %v288_v8 = vld [vmem:[%s358_s1 + $0x38] sm:$0xff]  }
   0x4   :  { %263 = vmatprep.subr.bf16.mxu0 %v282_v1  ;;  %v290_v9 = vld [vmem:[%s359_s0 + $0x8] sm:$0xff]   ;;  %v230_v10 = vld [vmem:[%s360_s2] ss:$0 sm:$0xff] }
   0x5   :  { %v231_v14 = vld [vmem:[%s361_s3] ss:$0 sm:$0xff] }
   0x7   :  { %264 = vmatpush3.bf16.msra.mxu0 %v282_v1 }
   0x8   :  { %265 = vmatprep.subr.bf16.mxu0 %v283_v2 }
   0xb   :  { %266 = vmatpush3.bf16.msra.mxu0 %v283_v2 }
   0xc   :  { %267 = vmatprep.subr.bf16.mxu0 %v284_v3 }
   0xf   :  { %268 = vmatpush3.bf16.msra.mxu0 %v284_v3 }
  0x10   :  { %269 = vmatprep.subr.bf16.mxu0 %v285_v5 }
  0x13   :  { %270 = vmatpush3.bf16.msra.mxu0 %v285_v5 }
  0x14   :  { %271 = vmatprep.subr.bf16.mxu0 %v286_v6 }
  0x17   :  { %272 = vmatpush3.bf16.msra.mxu0 %v286_v6 }
  0x18   :  { %273 = vmatprep.subr.bf16.mxu0 %v287_v7 }
  0x1b   :  { %274 = vmatpush3.bf16.msra.mxu0 %v287_v7 }
  0x1c   :  { %275 = vmatprep.subr.bf16.mxu0 %v288_v8 }
  0x1f   :  { %276 = vmatpush3.bf16.msra.mxu0 %v288_v8 }
  0x22   :  { %278 = vmatmul.mubr.bf16.vlgmr.msra.gmra.mrb[0].mxu0 %v290_v9 }
  0xf5   :  { %v279_v11 = vpop.f32.mrb[0].mxu0 }
  0xf6   :  { %v183_v12 = vmul.f32 %v279_v11, %v230_v10  ;;  %v144_v13 = vpop.f32.mrb[1].mxu0 }
  0xf7   :  { %v181_v15 = vmul.f32 %v230_v10, %v144_v13  ;;  %v280_v16 = vpop.f32.mrb[2].mxu0 }
  0xf8   :  { %v184_v17 = vmul.f32 %v280_v16, %v230_v10  ;;  %v147_v18 = vpop.f32.mrb[3].mxu0  ;;  %v194_v20 = vadd.f32 %v231_v14, %v183_v12 }
  0xf9   :  { %v182_v19 = vmul.f32 %v230_v10, %v147_v18  ;;  %v192_v22 = vadd.f32 %v231_v14, %v181_v15 }
  0xfa   :  { %v195_v21 = vadd.f32 %v231_v14, %v184_v17 }
  0xfb   :  { %v193_v23 = vadd.f32 %v231_v14, %v182_v19 }
  0xfc   :  { %v248_v24 = vpack.c.bf16 %v195_v21, %v194_v20 }
  0xfd   :  { %v243_v25 = vpack.c.bf16 %v193_v23, %v192_v22 }
  0xfe   :  { %250 = vst [vmem:[%s362_s4 + $0x8] sm:$0xff] %v248_v24  }
  0xff   :  { %244 = vst [vmem:[%s362_s4] sm:$0xff] %v243_v25  }

// kernel: resnet18_forward.31
= control target key start
LH: loop header
LB: loop body
LE: loop exit
PB: predicated region body
PF: predicated region fallthrough
CT: control target
= control target key end

     0   :  { %s973_s15 = smov 0   ;;  %s975_s16 = smov 0   ;;  %s1076_s0 = inlined_call_operand.vmem [shape: bf16[32,1280], index: 0, kind: input, shape index: {}]   ;;  %s1077_s1 = inlined_call_operand.vmem [shape: bf16[1280,128], index: 1, kind: input, shape index: {}]   ;;  %s1078_s2 = inlined_call_operand.vmem [shape: f32[1,128], index: 2, kind: input, shape index: {}]   ;;  %s1079_s3 = inlined_call_operand.vmem [shape: f32[1,128], index: 3, kind: input, shape index: {}]   ;;  %s1080_s4 = inlined_call_operand.vmem [shape: bf16[32,128], index: 4, kind: output, shape index: {}]  }
   0x1   :  { %s977_s17 = smov 0   ;;  %s979_s18 = smov 0  }
   0x2   :  { %s981_s19 = smov 0  }
   0x3 LB: > { %s26_s20 = sadd.s32 1, %s941_s18  ;;  %p49_p1 = scmp.ne.s32.totalorder %s933_s16, %s929_s15  ;;  %s945_s19 = sphi %s981_s19, %s14_s19   ;;  %s941_s18 = sphi %s979_s18, %s1084_s18   ;;  %s937_s17 = sphi %s977_s17, %s1083_s17   ;;  %s933_s16 = sphi %s975_s16, %s1082_s16   ;;  %s929_s15 = sphi %s973_s15, %s1081_s15  }
   0x4   : > { %p27_p0 = scmp.ge.s32.totalorder %s26_s20, 5  ;;  %p50_p2 = scmp.eq.s32.totalorder %s945_s19, 0 }
   0x5   : > { %s42_s22 = sadd.s32 1, %s933_s16  ;;  %p744_p5 = scmp.ge.s32.totalorder %s945_s19, 5 }
   0x6   : > { %s1086_s20 = smov (%p27_p0, %s26_s20), 0  ;;  %p51_p3 = por %p50_p2, %p49_p1 }
   0x7   : > { %s38_s21 = ssub.s32 %s941_s18, %s1086_s20  ;;  %195 = sbr.rel (%p744_p5) target bundleno = 21 (0x15), region = 24 }
   0x8   : > { %p40_p4 = scmp.eq.s32.totalorder %s38_s21, 0 }
   0xa   : > { %s1008_s23 = scalar_select %p40_p4, %s933_s16, %s42_s22  }
   0xe   : > { %198 = sbr.rel (!%p51_p3) target bundleno = 21 (0x15), region = 28  ;;  %s200_s24 = sand.u32 (%p51_p3), 1, %s933_s16  }
   0xf   : > { %s784_s25 = sshll.u32 (%p51_p3), %s941_s18, 3  ;;  %s745_s26 = sshll.u32 (%p51_p3), %s200_s24, 5 }
  0x10   : > { %s208_s29 = scalar_lea.vmem (%p51_p3), %s1076_s0, %s784_s25  ;;  %s202_s30 = scalar_lea.vmem (%p51_p3), [#allocation3], %s745_s26 }
  0x11   : > { %v242_v0 = vld [vmem:[%s208_s29] sm:$0xff] (%p51_p3)  ;;  %v244_v1 = vld [vmem:[%s208_s29 + $0x28] sm:$0xff] (%p51_p3)  ;;  %v246_v2 = vld [vmem:[%s208_s29 + $0x50] sm:$0xff] (%p51_p3) }
  0x12   : > { %243 = vst [vmem:[%s202_s30] sm:$0xff] (%p51_p3), %v242_v0  ;;  %245 = vst [vmem:[%s202_s30 + $0x8] sm:$0xff] (%p51_p3), %v244_v1  ;;  %v248_v3 = vld [vmem:[%s208_s29 + $0x78] sm:$0xff] (%p51_p3) }
  0x13   : > { %247 = vst [vmem:[%s202_s30 + $0x10] sm:$0xff] (%p51_p3), %v246_v2  ;;  %249 = vst [vmem:[%s202_s30 + $0x18] sm:$0xff] (%p51_p3), %v248_v3 }
  0x15 PF: > { %p748_p6 = scmp.ge.s32.totalorder %s945_s19, 1  ;;  %p266_p7 = scmp.lt.s32.totalorder %s945_s19, 6 }
  0x17   : > { %p267_p8 = pnand %p748_p6, %p266_p7 }
  0x18   : > { %s273_s5 = sand.u32 (!%p267_p8), 1, %s929_s15   ;;  %s750_s6 = sshll.u32 (!%p267_p8), %s937_s17, 5 }
  0x19   : > { %270 = sbr.rel (%p267_p8) target bundleno = 308 (0x134), region = 70  ;;  %s749_s7 = sshll.u32 (!%p267_p8), %s273_s5, 5 }
  0x1a   : > { %p318_p9 = scmp.lt.s32.totalorder (!%p267_p8), %s750_s6, 159  ;;  %s1025_s12 = scalar_lea.vmem (!%p267_p8), [#allocation3], %s749_s7 }
  0x1b   : > { %p752_p10 = scmp.ne.s32.totalorder (!%p267_p8), %s937_s17, 0 }
  0x20   : > { %s1088_s6 = smov (!%p318_p9, %s750_s6), 159  ;;  %345 = sbr.rel (%p752_p10) target bundleno = 39 (0x27), region = 78 }
  0x21   : > { %s751_s8 = sshll.u32 %s1088_s6, 2  ;;  %v947_v4 = vmov (!%p752_p10), 0.0  }
  0x22   : > { %s1023_s11 = scalar_lea.vmem %s1077_s1, %s751_s8  ;;  %346 = vst [vmem:[#allocation2] sm:$0xff] (!%p752_p10), %v947_v4  ;;  %347 = vst [vmem:[#allocation2 + $0x8] sm:$0xff] (!%p752_p10), %v947_v4 }
  0x23   : > { %348 = vst [vmem:[#allocation2 + $0x10] sm:$0xff] (!%p752_p10), %v947_v4  ;;  %349 = vst [vmem:[#allocation2 + $0x18] sm:$0xff] (!%p752_p10), %v947_v4 }
  0x27 PF: > { %v885_v5 = vld [vmem:[%s1023_s11 + $0x40] sm:$0xff]   ;;  %v887_v7 = vld [vmem:[%s1023_s11 + $0x48] sm:$0xff]   ;;  %v889_v9 = vld [vmem:[%s1023_s11 + $0x50] sm:$0xff]   ;;  %p773_p11 = scmp.ne.s32.totalorder %s937_s17, 4 }
  0x28   : > { %v886_v6 = vld [vmem:[%s1023_s11] sm:$0xff]   ;;  %800 = vmatprep.subr.bf16.mxu0 %v885_v5  ;;  %828 = vmatprep.subr.bf16.mxu1 %v885_v5  ;;  %v888_v8 = vld [vmem:[%s1023_s11 + $0x8] sm:$0xff]   ;;  %v890_v10 = vld [vmem:[%s1023_s11 + $0x10] sm:$0xff]  }
  0x29   : > { %801 = vmatpush3.bf16.msra.mxu0 %v886_v6  ;;  %836 = vmatpush3.bf16.msra.mxu1 %v886_v6  ;;  %v891_v11 = vld [vmem:[%s1023_s11 + $0x58] sm:$0xff]   ;;  %v893_v13 = vld [vmem:[%s1023_s11 + $0x60] sm:$0xff]   ;;  %v895_v15 = vld [vmem:[%s1023_s11 + $0x68] sm:$0xff]  }
  0x2a   : > { %802 = vmatprep.subr.bf16.mxu0 %v887_v7  ;;  %829 = vmatprep.subr.bf16.mxu1 %v887_v7  ;;  %v892_v12 = vld [vmem:[%s1023_s11 + $0x18] sm:$0xff]   ;;  %v894_v14 = vld [vmem:[%s1023_s11 + $0x20] sm:$0xff]   ;;  %v896_v18 = vld [vmem:[%s1023_s11 + $0x28] sm:$0xff]  }
  0x2b   : > { %v903_v16 = vld [vmem:[%s1025_s12 + $0x4] ss:$8 sps:$4 sm:$0xff]   ;;  %v906_v17 = vld [vmem:[%s1025_s12 + $0x14] ss:$8 sps:$4 sm:$0xff]   ;;  %v901_v23 = vld [vmem:[%s1025_s12] ss:$8 sps:$4 sm:$0xff]  }
  0x2c   : > { %v897_v19 = vld [vmem:[%s1023_s11 + $0x70] sm:$0xff]   ;;  %538 = vmatprep.mubr.bf16.mxu0 %v903_v16  ;;  %546 = vmatprep.mubr.bf16.mxu1 %v906_v17  ;;  %v899_v21 = vld [vmem:[%s1023_s11 + $0x78] sm:$0xff]   ;;  %v350_v27 = vld [vmem:[#allocation2] sm:$0xff] }
  0x2d   : > { %803 = vmatpush3.bf16.msra.mxu0 %v888_v8  ;;  %837 = vmatpush3.bf16.msra.mxu1 %v888_v8  ;;  %v898_v20 = vld [vmem:[%s1023_s11 + $0x30] sm:$0xff]   ;;  %v900_v22 = vld [vmem:[%s1023_s11 + $0x38] sm:$0xff]   ;;  %v351_v35 = vld [vmem:[#allocation2 + $0x8] sm:$0xff] }
  0x2e   : > { %804 = vmatprep.subr.bf16.mxu0 %v889_v9  ;;  %830 = vmatprep.subr.bf16.mxu1 %v889_v9  ;;  %v904_v24 = vld [vmem:[%s1025_s12 + $0x10] ss:$8 sps:$4 sm:$0xff]   ;;  %v774_v47 = vld [vmem:[%s1078_s2] ss:$0 sm:$0xff] (!%p773_p11) }
  0x2f   : > { %v352_v29 = vld [vmem:[#allocation2 + $0x10] sm:$0xff]  ;;  %v353_v37 = vld [vmem:[#allocation2 + $0x18] sm:$0xff]  ;;  %v775_v50 = vld [vmem:[%s1079_s3] ss:$0 sm:$0xff] (!%p773_p11) }
  0x31   : > { %805 = vmatpush3.bf16.msra.mxu0 %v890_v10  ;;  %838 = vmatpush3.bf16.msra.mxu1 %v890_v10 }
  0x32   : > { %806 = vmatprep.subr.bf16.mxu0 %v891_v11  ;;  %831 = vmatprep.subr.bf16.mxu1 %v891_v11 }
  0x35   : > { %807 = vmatpush3.bf16.msra.mxu0 %v892_v12  ;;  %839 = vmatpush3.bf16.msra.mxu1 %v892_v12 }
  0x36   : > { %808 = vmatprep.subr.bf16.mxu0 %v893_v13  ;;  %832 = vmatprep.subr.bf16.mxu1 %v893_v13 }
  0x39   : > { %809 = vmatpush3.bf16.msra.mxu0 %v894_v14  ;;  %840 = vmatpush3.bf16.msra.mxu1 %v894_v14 }
  0x3a   : > { %810 = vmatprep.subr.bf16.mxu0 %v895_v15  ;;  %833 = vmatprep.subr.bf16.mxu1 %v895_v15 }
  0x3d   : > { %811 = vmatpush3.bf16.msra.mxu0 %v896_v18  ;;  %841 = vmatpush3.bf16.msra.mxu1 %v896_v18 }
  0x3e   : > { %812 = vmatprep.subr.bf16.mxu0 %v897_v19  ;;  %834 = vmatprep.subr.bf16.mxu1 %v897_v19 }
  0x41   : > { %813 = vmatpush3.bf16.msra.mxu0 %v898_v20  ;;  %842 = vmatpush3.bf16.msra.mxu1 %v898_v20 }
  0x42   : > { %814 = vmatprep.subr.bf16.mxu0 %v899_v21  ;;  %835 = vmatprep.subr.bf16.mxu1 %v899_v21 }
  0x45   : > { %815 = vmatpush3.bf16.msra.mxu0 %v900_v22  ;;  %843 = vmatpush3.bf16.msra.mxu1 %v900_v22 }
  0x48   : > { %539 = vmatmul.mubr.bf16.vlgmr.msra.gmra.mrb[0].mxu0 %v901_v23  ;;  %547 = vmatmul.mubr.bf16.vlgmr.msra.gmra.mrb[0].mxu1 %v904_v24 }
 0x11b   : > { %v816_v25 = vpop.f32.mrb[0].mxu0  ;;  %v822_v26 = vpop.f32.mrb[0].mxu1 }
 0x11c   : > { %v817_v28 = vpop.f32.mrb[1].mxu0  ;;  %v823_v30 = vpop.f32.mrb[1].mxu1 }
 0x11d   : > { %v818_v31 = vadd.f32 %v817_v28, %v816_v25  ;;  %v824_v32 = vadd.f32 %v823_v30, %v822_v26  ;;  %v819_v33 = vpop.f32.mrb[2].mxu0  ;;  %v825_v34 = vpop.f32.mrb[2].mxu1  ;;  %566 = sbr.rel (%p773_p11) target bundleno = 308 (0x134), region = 82 }
 0x11e   : > { %v820_v36 = vpop.f32.mrb[3].mxu0  ;;  %v826_v38 = vpop.f32.mrb[3].mxu1 }
 0x11f   : > { %v555_v39 = vadd.f32 %v818_v31, %v350_v27  ;;  %v557_v40 = vadd.f32 %v824_v32, %v352_v29  ;;  %v821_v41 = vadd.f32 %v820_v36, %v819_v33  ;;  %v827_v42 = vadd.f32 %v826_v38, %v825_v34 }
 0x121   : > { %559 = vst [vmem:[#allocation2] sm:$0xff] %v555_v39  ;;  %561 = vst [vmem:[#allocation2 + $0x10] sm:$0xff] %v557_v40  ;;  %v556_v43 = vadd.f32 %v821_v41, %v351_v35  ;;  %v558_v44 = vadd.f32 %v827_v42, %v353_v37 }
 0x123   : > { %560 = vst [vmem:[#allocation2 + $0x8] sm:$0xff] %v556_v43  ;;  %562 = vst [vmem:[#allocation2 + $0x18] sm:$0xff] %v558_v44 }
 0x128   : > { %v567_v45 = vld [vmem:[#allocation2] sm:$0xff]  ;;  %v569_v51 = vld [vmem:[#allocation2 + $0x10] sm:$0xff] }
 0x129   : > { %v578_v48 = vmul.f32 %v774_v47, %v567_v45  ;;  %v580_v53 = vmul.f32 %v774_v47, %v569_v51 }
 0x12a   : > { %v568_v46 = vld [vmem:[#allocation2 + $0x8] sm:$0xff]  ;;  %v570_v52 = vld [vmem:[#allocation2 + $0x18] sm:$0xff] }
 0x12b   : > { %v579_v49 = vmul.f32 %v774_v47, %v568_v46  ;;  %v581_v54 = vmul.f32 %v774_v47, %v570_v52  ;;  %v589_v55 = vadd.f32 %v775_v50, %v578_v48  ;;  %v591_v57 = vadd.f32 %v775_v50, %v580_v53 }
 0x12d   : > { %v590_v56 = vadd.f32 %v775_v50, %v579_v49  ;;  %v592_v58 = vadd.f32 %v775_v50, %v581_v54  ;;  %v593_v59 = vmax.f32 %v589_v55, 0.0  ;;  %v595_v61 = vmax.f32 %v591_v57, 0.0 }
 0x12f   : > { %v594_v60 = vmax.f32 %v590_v56, 0.0  ;;  %v596_v62 = vmax.f32 %v592_v58, 0.0 }
 0x131   : > { %v792_v63 = vpack.c.bf16 %v594_v60, %v593_v59  ;;  %v797_v0 = vpack.c.bf16 %v596_v62, %v595_v61 }
 0x133   : > { %793 = vst [vmem:[%s1080_s4] sm:$0xff] %v792_v63   ;;  %799 = vst [vmem:[%s1080_s4 + $0x8] sm:$0xff] %v797_v0  }
 0x134 PF: > { %s14_s19 = sadd.s32 1, %s945_s19   ;;  %s1081_s15 = smov %s933_s16 }
 0x135   : > { %p11_p12 = scmp.ge.s32.totalorder %s14_s19, 7   ;;  %s1082_s16 = smov %s1008_s23 }
 0x136   : > { %s1083_s17 = smov %s941_s18  ;;  %s1084_s18 = smov %s1086_s20 }
 0x137   :  { %13 = sbr.rel (!%p11_p12) target bundleno = 3 (0x3), region = 126 }

// kernel: resnet18_forward.30
= control target key start
LH: loop header
LB: loop body
LE: loop exit
PB: predicated region body
PF: predicated region fallthrough
CT: control target
= control target key end

     0   :  { %s1078_s18 = smov 0   ;;  %s1080_s19 = smov 0   ;;  %s1187_s0 = inlined_call_operand.vmem [shape: bf16[32,1280], index: 0, kind: input, shape index: {}]   ;;  %s1188_s1 = inlined_call_operand.vmem [shape: bf16[1280,128], index: 1, kind: input, shape index: {}]   ;;  %s1189_s2 = inlined_call_operand.vmem [shape: f32[1,128], index: 2, kind: input, shape index: {}]   ;;  %s1190_s3 = inlined_call_operand.vmem [shape: f32[1,128], index: 3, kind: input, shape index: {}]   ;;  %s1191_s4 = inlined_call_operand.vmem [shape: bf16[32,128], index: 4, kind: input, shape index: {}]   ;;  %s1192_s5 = inlined_call_operand.vmem [shape: bf16[32,128], index: 5, kind: output, shape index: {}]  }
   0x1   :  { %s1082_s20 = smov 0   ;;  %s1084_s21 = smov 0  }
   0x2   :  { %s1086_s22 = smov 0  }
   0x3 LB: > { %s27_s23 = sadd.s32 1, %s1041_s21  ;;  %p50_p1 = scmp.ne.s32.totalorder %s1033_s19, %s1029_s18  ;;  %s1045_s22 = sphi %s1086_s22, %s15_s22   ;;  %s1041_s21 = sphi %s1084_s21, %s1196_s21   ;;  %s1037_s20 = sphi %s1082_s20, %s1195_s20   ;;  %s1033_s19 = sphi %s1080_s19, %s1194_s19   ;;  %s1029_s18 = sphi %s1078_s18, %s1193_s18  }
   0x4   : > { %p28_p0 = scmp.ge.s32.totalorder %s27_s23, 5  ;;  %p51_p2 = scmp.eq.s32.totalorder %s1045_s22, 0 }
   0x5   : > { %s43_s25 = sadd.s32 1, %s1033_s19  ;;  %p835_p5 = scmp.ge.s32.totalorder %s1045_s22, 5 }
   0x6   : > { %s1198_s23 = smov (%p28_p0, %s27_s23), 0  ;;  %p52_p3 = por %p51_p2, %p50_p1 }
   0x7   : > { %s39_s24 = ssub.s32 %s1041_s21, %s1198_s23  ;;  %236 = sbr.rel (%p835_p5) target bundleno = 21 (0x15), region = 28 }
   0x8   : > { %p41_p4 = scmp.eq.s32.totalorder %s39_s24, 0 }
   0xa   : > { %s1113_s26 = scalar_select %p41_p4, %s1033_s19, %s43_s25  }
   0xe   : > { %239 = sbr.rel (!%p52_p3) target bundleno = 21 (0x15), region = 32  ;;  %s241_s27 = sand.u32 (%p52_p3), 1, %s1033_s19  }
   0xf   : > { %s875_s28 = sshll.u32 (%p52_p3), %s1041_s21, 3  ;;  %s836_s29 = sshll.u32 (%p52_p3), %s241_s27, 5 }
  0x10   : > { %s249_s7 = scalar_lea.vmem (%p52_p3), %s1187_s0, %s875_s28  ;;  %s243_s8 = scalar_lea.vmem (%p52_p3), [#allocation3], %s836_s29 }
  0x11   : > { %v283_v0 = vld [vmem:[%s249_s7] sm:$0xff] (%p52_p3)  ;;  %v285_v1 = vld [vmem:[%s249_s7 + $0x28] sm:$0xff] (%p52_p3)  ;;  %v287_v2 = vld [vmem:[%s249_s7 + $0x50] sm:$0xff] (%p52_p3) }
  0x12   : > { %284 = vst [vmem:[%s243_s8] sm:$0xff] (%p52_p3), %v283_v0  ;;  %286 = vst [vmem:[%s243_s8 + $0x8] sm:$0xff] (%p52_p3), %v285_v1  ;;  %v289_v3 = vld [vmem:[%s249_s7 + $0x78] sm:$0xff] (%p52_p3) }
  0x13   : > { %288 = vst [vmem:[%s243_s8 + $0x10] sm:$0xff] (%p52_p3), %v287_v2  ;;  %290 = vst [vmem:[%s243_s8 + $0x18] sm:$0xff] (%p52_p3), %v289_v3 }
  0x15 PF: > { %p839_p6 = scmp.ge.s32.totalorder %s1045_s22, 1  ;;  %p307_p7 = scmp.lt.s32.totalorder %s1045_s22, 6 }
  0x17   : > { %p308_p8 = pnand %p839_p6, %p307_p7 }
  0x18   : > { %s314_s9 = sand.u32 (!%p308_p8), 1, %s1029_s18   ;;  %s841_s10 = sshll.u32 (!%p308_p8), %s1037_s20, 5 }
  0x19   : > { %311 = sbr.rel (%p308_p8) target bundleno = 310 (0x136), region = 74  ;;  %s840_s11 = sshll.u32 (!%p308_p8), %s314_s9, 5 }
  0x1a   : > { %p369_p9 = scmp.lt.s32.totalorder (!%p308_p8), %s841_s10, 159  ;;  %s1130_s16 = scalar_lea.vmem (!%p308_p8), [#allocation3], %s840_s11 }
  0x1b   : > { %p843_p10 = scmp.ne.s32.totalorder (!%p308_p8), %s1037_s20, 0 }
  0x20   : > { %s1200_s10 = smov (!%p369_p9, %s841_s10), 159  ;;  %405 = sbr.rel (%p843_p10) target bundleno = 39 (0x27), region = 82 }
  0x21   : > { %s842_s12 = sshll.u32 %s1200_s10, 2  ;;  %v1047_v4 = vmov (!%p843_p10), 0.0  }
  0x22   : > { %s1128_s15 = scalar_lea.vmem %s1188_s1, %s842_s12  ;;  %406 = vst [vmem:[#allocation2] sm:$0xff] (!%p843_p10), %v1047_v4  ;;  %407 = vst [vmem:[#allocation2 + $0x8] sm:$0xff] (!%p843_p10), %v1047_v4 }
  0x23   : > { %408 = vst [vmem:[#allocation2 + $0x10] sm:$0xff] (!%p843_p10), %v1047_v4  ;;  %409 = vst [vmem:[#allocation2 + $0x18] sm:$0xff] (!%p843_p10), %v1047_v4 }
  0x27 PF: > { %v985_v5 = vld [vmem:[%s1128_s15 + $0x40] sm:$0xff]   ;;  %v987_v7 = vld [vmem:[%s1128_s15 + $0x48] sm:$0xff]   ;;  %v989_v9 = vld [vmem:[%s1128_s15 + $0x50] sm:$0xff]   ;;  %p864_p11 = scmp.ne.s32.totalorder %s1037_s20, 4 }
  0x28   : > { %v986_v6 = vld [vmem:[%s1128_s15] sm:$0xff]   ;;  %900 = vmatprep.subr.bf16.mxu0 %v985_v5  ;;  %928 = vmatprep.subr.bf16.mxu1 %v985_v5  ;;  %v988_v8 = vld [vmem:[%s1128_s15 + $0x8] sm:$0xff]   ;;  %v990_v10 = vld [vmem:[%s1128_s15 + $0x10] sm:$0xff]  }
  0x29   : > { %901 = vmatpush3.bf16.msra.mxu0 %v986_v6  ;;  %936 = vmatpush3.bf16.msra.mxu1 %v986_v6  ;;  %v991_v11 = vld [vmem:[%s1128_s15 + $0x58] sm:$0xff]   ;;  %v993_v13 = vld [vmem:[%s1128_s15 + $0x60] sm:$0xff]   ;;  %v995_v15 = vld [vmem:[%s1128_s15 + $0x68] sm:$0xff]  }
  0x2a   : > { %902 = vmatprep.subr.bf16.mxu0 %v987_v7  ;;  %929 = vmatprep.subr.bf16.mxu1 %v987_v7  ;;  %v992_v12 = vld [vmem:[%s1128_s15 + $0x18] sm:$0xff]   ;;  %v994_v14 = vld [vmem:[%s1128_s15 + $0x20] sm:$0xff]   ;;  %v996_v18 = vld [vmem:[%s1128_s15 + $0x28] sm:$0xff]  }
  0x2b   : > { %v1003_v16 = vld [vmem:[%s1130_s16 + $0x4] ss:$8 sps:$4 sm:$0xff]   ;;  %v1006_v17 = vld [vmem:[%s1130_s16 + $0x14] ss:$8 sps:$4 sm:$0xff]   ;;  %v1001_v23 = vld [vmem:[%s1130_s16] ss:$8 sps:$4 sm:$0xff]  }
  0x2c   : > { %v997_v19 = vld [vmem:[%s1128_s15 + $0x70] sm:$0xff]   ;;  %598 = vmatprep.mubr.bf16.mxu0 %v1003_v16  ;;  %606 = vmatprep.mubr.bf16.mxu1 %v1006_v17  ;;  %v999_v21 = vld [vmem:[%s1128_s15 + $0x78] sm:$0xff]   ;;  %v410_v27 = vld [vmem:[#allocation2] sm:$0xff] }
  0x2d   : > { %903 = vmatpush3.bf16.msra.mxu0 %v988_v8  ;;  %937 = vmatpush3.bf16.msra.mxu1 %v988_v8  ;;  %v998_v20 = vld [vmem:[%s1128_s15 + $0x30] sm:$0xff]   ;;  %v1000_v22 = vld [vmem:[%s1128_s15 + $0x38] sm:$0xff]   ;;  %v411_v35 = vld [vmem:[#allocation2 + $0x8] sm:$0xff] }
  0x2e   : > { %904 = vmatprep.subr.bf16.mxu0 %v989_v9  ;;  %930 = vmatprep.subr.bf16.mxu1 %v989_v9  ;;  %v1004_v24 = vld [vmem:[%s1130_s16 + $0x10] ss:$8 sps:$4 sm:$0xff]   ;;  %v865_v47 = vld [vmem:[%s1189_s2] ss:$0 sm:$0xff] (!%p864_p11)  ;;  %v898_v57 = vld [vmem:[%s1191_s4 + $0x8] sm:$0xff] (!%p864_p11)  }
  0x2f   : > { %v412_v29 = vld [vmem:[#allocation2 + $0x10] sm:$0xff]  ;;  %v413_v37 = vld [vmem:[#allocation2 + $0x18] sm:$0xff]  ;;  %v866_v50 = vld [vmem:[%s1190_s3] ss:$0 sm:$0xff] (!%p864_p11)  ;;  %v886_v61 = vunpack.c.l.bf16 (!%p864_p11), %v898_v57  ;;  %v887_v63 = vunpack.c.h.bf16 (!%p864_p11), %v898_v57 }
  0x30   : > { %v881_v51 = vld [vmem:[%s1191_s4] sm:$0xff] (!%p864_p11)  }
  0x31   : > { %905 = vmatpush3.bf16.msra.mxu0 %v990_v10  ;;  %938 = vmatpush3.bf16.msra.mxu1 %v990_v10  ;;  %v882_v53 = vunpack.c.l.bf16 (!%p864_p11), %v881_v51  ;;  %v883_v54 = vunpack.c.h.bf16 (!%p864_p11), %v881_v51 }
  0x32   : > { %906 = vmatprep.subr.bf16.mxu0 %v991_v11  ;;  %931 = vmatprep.subr.bf16.mxu1 %v991_v11 }
  0x35   : > { %907 = vmatpush3.bf16.msra.mxu0 %v992_v12  ;;  %939 = vmatpush3.bf16.msra.mxu1 %v992_v12 }
  0x36   : > { %908 = vmatprep.subr.bf16.mxu0 %v993_v13  ;;  %932 = vmatprep.subr.bf16.mxu1 %v993_v13 }
  0x39   : > { %909 = vmatpush3.bf16.msra.mxu0 %v994_v14  ;;  %940 = vmatpush3.bf16.msra.mxu1 %v994_v14 }
  0x3a   : > { %910 = vmatprep.subr.bf16.mxu0 %v995_v15  ;;  %933 = vmatprep.subr.bf16.mxu1 %v995_v15 }
  0x3d   : > { %911 = vmatpush3.bf16.msra.mxu0 %v996_v18  ;;  %941 = vmatpush3.bf16.msra.mxu1 %v996_v18 }
  0x3e   : > { %912 = vmatprep.subr.bf16.mxu0 %v997_v19  ;;  %934 = vmatprep.subr.bf16.mxu1 %v997_v19 }
  0x41   : > { %913 = vmatpush3.bf16.msra.mxu0 %v998_v20  ;;  %942 = vmatpush3.bf16.msra.mxu1 %v998_v20 }
  0x42   : > { %914 = vmatprep.subr.bf16.mxu0 %v999_v21  ;;  %935 = vmatprep.subr.bf16.mxu1 %v999_v21 }
  0x45   : > { %915 = vmatpush3.bf16.msra.mxu0 %v1000_v22  ;;  %943 = vmatpush3.bf16.msra.mxu1 %v1000_v22 }
  0x48   : > { %599 = vmatmul.mubr.bf16.vlgmr.msra.gmra.mrb[0].mxu0 %v1001_v23  ;;  %607 = vmatmul.mubr.bf16.vlgmr.msra.gmra.mrb[0].mxu1 %v1004_v24 }
 0x11b   : > { %v916_v25 = vpop.f32.mrb[0].mxu0  ;;  %v922_v26 = vpop.f32.mrb[0].mxu1 }
 0x11c   : > { %v917_v28 = vpop.f32.mrb[1].mxu0  ;;  %v923_v30 = vpop.f32.mrb[1].mxu1 }
 0x11d   : > { %v918_v31 = vadd.f32 %v917_v28, %v916_v25  ;;  %v924_v32 = vadd.f32 %v923_v30, %v922_v26  ;;  %v919_v33 = vpop.f32.mrb[2].mxu0  ;;  %v925_v34 = vpop.f32.mrb[2].mxu1  ;;  %626 = sbr.rel (%p864_p11) target bundleno = 310 (0x136), region = 86 }
 0x11e   : > { %v920_v36 = vpop.f32.mrb[3].mxu0  ;;  %v926_v38 = vpop.f32.mrb[3].mxu1 }
 0x11f   : > { %v615_v39 = vadd.f32 %v918_v31, %v410_v27  ;;  %v617_v40 = vadd.f32 %v924_v32, %v412_v29  ;;  %v921_v41 = vadd.f32 %v920_v36, %v919_v33  ;;  %v927_v42 = vadd.f32 %v926_v38, %v925_v34 }
 0x121   : > { %619 = vst [vmem:[#allocation2] sm:$0xff] %v615_v39  ;;  %621 = vst [vmem:[#allocation2 + $0x10] sm:$0xff] %v617_v40  ;;  %v616_v43 = vadd.f32 %v921_v41, %v411_v35  ;;  %v618_v44 = vadd.f32 %v927_v42, %v413_v37 }
 0x123   : > { %620 = vst [vmem:[#allocation2 + $0x8] sm:$0xff] %v616_v43  ;;  %622 = vst [vmem:[#allocation2 + $0x18] sm:$0xff] %v618_v44 }
 0x128   : > { %v627_v45 = vld [vmem:[#allocation2] sm:$0xff]  ;;  %v629_v52 = vld [vmem:[#allocation2 + $0x10] sm:$0xff] }
 0x129   : > { %v638_v48 = vmul.f32 %v865_v47, %v627_v45  ;;  %v640_v56 = vmul.f32 %v865_v47, %v629_v52 }
 0x12a   : > { %v628_v46 = vld [vmem:[#allocation2 + $0x8] sm:$0xff]  ;;  %v630_v55 = vld [vmem:[#allocation2 + $0x18] sm:$0xff] }
 0x12b   : > { %v639_v49 = vmul.f32 %v865_v47, %v628_v46  ;;  %v649_v58 = vadd.f32 %v866_v50, %v638_v48  ;;  %v641_v60 = vmul.f32 %v865_v47, %v630_v55  ;;  %v651_v62 = vadd.f32 %v866_v50, %v640_v56 }
 0x12d   : > { %v650_v59 = vadd.f32 %v866_v50, %v639_v49  ;;  %v661_v0 = vadd.f32 %v882_v53, %v649_v58  ;;  %v652_v2 = vadd.f32 %v866_v50, %v641_v60  ;;  %v663_v3 = vadd.f32 %v886_v61, %v651_v62 }
 0x12f   : > { %v662_v1 = vadd.f32 %v883_v54, %v650_v59  ;;  %v665_v4 = vmax.f32 %v661_v0, 0.0  ;;  %v664_v6 = vadd.f32 %v887_v63, %v652_v2  ;;  %v667_v7 = vmax.f32 %v663_v3, 0.0 }
 0x131   : > { %v666_v5 = vmax.f32 %v662_v1, 0.0  ;;  %v668_v9 = vmax.f32 %v664_v6, 0.0 }
 0x133   : > { %v891_v8 = vpack.c.bf16 %v666_v5, %v665_v4  ;;  %v896_v10 = vpack.c.bf16 %v668_v9, %v667_v7 }
 0x135   : > { %892 = vst [vmem:[%s1192_s5] sm:$0xff] %v891_v8   ;;  %899 = vst [vmem:[%s1192_s5 + $0x8] sm:$0xff] %v896_v10  }
 0x136 PF: > { %s15_s22 = sadd.s32 1, %s1045_s22   ;;  %s1193_s18 = smov %s1033_s19 }
 0x137   : > { %p12_p12 = scmp.ge.s32.totalorder %s15_s22, 7   ;;  %s1194_s19 = smov %s1113_s26 }
 0x138   : > { %s1195_s20 = smov %s1041_s21  ;;  %s1196_s21 = smov %s1198_s23 }
 0x139   :  { %14 = sbr.rel (!%p12_p12) target bundleno = 3 (0x3), region = 133 }

// kernel: resnet18_forward.33
= control target key start
LH: loop header
LB: loop body
LE: loop exit
PB: predicated region body
PF: predicated region fallthrough
CT: control target
= control target key end

     0   :  { %s929_s15 = smov 0   ;;  %s931_s16 = smov 0   ;;  %s1014_s0 = inlined_call_operand.vmem [shape: bf16[8,1280], index: 0, kind: input, shape index: {}]   ;;  %s1015_s1 = inlined_call_operand.vmem [shape: bf16[1280,256], index: 1, kind: input, shape index: {}]   ;;  %s1016_s2 = inlined_call_operand.vmem [shape: f32[1,256], index: 2, kind: input, shape index: {}]   ;;  %s1017_s3 = inlined_call_operand.vmem [shape: f32[1,256], index: 3, kind: input, shape index: {}]   ;;  %s1018_s4 = inlined_call_operand.vmem [shape: bf16[8,256], index: 4, kind: output, shape index: {}]  }
   0x1   :  { %s933_s17 = smov 0  }
   0x2 LB: > { %s26_s18 = sadd.s32 1, %s897_s16  ;;  %p755_p0 = scmp.ge.s32.totalorder %s901_s17, 1  ;;  %s901_s17 = sphi %s933_s17, %s14_s17   ;;  %s897_s16 = sphi %s931_s16, %s1020_s16   ;;  %s893_s15 = sphi %s929_s15, %s1019_s15  }
   0x3   : > { %p27_p1 = scmp.ge.s32.totalorder %s26_s18, 5  ;;  %p229_p2 = scmp.lt.s32.totalorder %s901_s17, 6 }
   0x5   : > { %s1022_s18 = smov (%p27_p1, %s26_s18), 0  ;;  %p230_p3 = pnand %p755_p0, %p229_p2 }
   0x6   : > { %s756_s19 = sshll.u32 (!%p230_p3), %s893_s15, 1  ;;  %s758_s20 = sshll.u32 (!%p230_p3), %s893_s15, 5 }
   0x7   : > { %233 = sbr.rel (%p230_p3) target bundleno = 321 (0x141), region = 36  ;;  %p284_p4 = scmp.lt.s32.totalorder (!%p230_p3), %s756_s19, 9 }
   0x8   : > { %p293_p5 = scmp.lt.s32.totalorder (!%p230_p3), %s758_s20, 159  ;;  %p761_p6 = scmp.ne.s32.totalorder (!%p230_p3), %s893_s15, 0 }
   0xe   : > { %s1024_s19 = smov (!%p284_p4, %s756_s19), 9  ;;  %s1026_s20 = smov (!%p293_p5, %s758_s20), 159 }
   0xf   : > { %s757_s21 = sshll.u32 %s1024_s19, 2  ;;  %s802_s25 = sshll.u32 %s1026_s20, 3  ;;  %v903_v0 = vmov (!%p761_p6), 0.0  }
  0x10   : > { %s954_s24 = scalar_lea.vmem %s1014_s0, %s757_s21  ;;  %s959_s28 = scalar_lea.vmem %s1015_s1, %s802_s25  ;;  %327 = vst [vmem:[#allocation2] sm:$0xff] (!%p761_p6), %v903_v0  ;;  %328 = vst [vmem:[#allocation2 + $0x8] sm:$0xff] (!%p761_p6), %v903_v0 }
  0x11   : > { %326 = sbr.rel (%p761_p6) target bundleno = 24 (0x18), region = 40 }
  0x18 PF: > { %v829_v1 = vld [vmem:[%s959_s28 + $0x4] ss:$8 sps:$4 sm:$0xff]   ;;  %v831_v2 = vld [vmem:[%s959_s28] ss:$8 sps:$4 sm:$0xff]   ;;  %v832_v3 = vld [vmem:[%s959_s28 + $0x14] ss:$8 sps:$4 sm:$0xff]  }
  0x19   : > { %531 = vmatprep.subr.bf16.mxu0 %v829_v1  ;;  %v834_v4 = vld [vmem:[%s959_s28 + $0x10] ss:$8 sps:$4 sm:$0xff]   ;;  %v835_v5 = vld [vmem:[%s959_s28 + $0x24] ss:$8 sps:$4 sm:$0xff]   ;;  %v837_v6 = vld [vmem:[%s959_s28 + $0x20] ss:$8 sps:$4 sm:$0xff]  }
  0x1a   : > { %532 = vmatpush1.bf16.msra.mxu0 %v831_v2  ;;  %v838_v7 = vld [vmem:[%s959_s28 + $0x34] ss:$8 sps:$4 sm:$0xff]   ;;  %v840_v8 = vld [vmem:[%s959_s28 + $0x30] ss:$8 sps:$4 sm:$0xff]   ;;  %v841_v9 = vld [vmem:[%s959_s28 + $0x44] ss:$8 sps:$4 sm:$0xff]  }
  0x1b   : > { %533 = vmatprep.subr.bf16.mxu0 %v832_v3  ;;  %v843_v10 = vld [vmem:[%s959_s28 + $0x40] ss:$8 sps:$4 sm:$0xff]   ;;  %v844_v11 = vld [vmem:[%s959_s28 + $0x54] ss:$8 sps:$4 sm:$0xff]   ;;  %v846_v12 = vld [vmem:[%s959_s28 + $0x50] ss:$8 sps:$4 sm:$0xff]  }
  0x1c   : > { %v847_v13 = vld [vmem:[%s959_s28 + $0x64] ss:$8 sps:$4 sm:$0xff]   ;;  %v849_v16 = vld [vmem:[%s959_s28 + $0x60] ss:$8 sps:$4 sm:$0xff]   ;;  %v850_v17 = vld [vmem:[%s959_s28 + $0x74] ss:$8 sps:$4 sm:$0xff]  }
  0x1d   : > { %v331_v14 = vld [vmem:[%s954_s24] sm:$0xff]  ;;  %v852_v18 = vld [vmem:[%s959_s28 + $0x70] ss:$8 sps:$4 sm:$0xff]   ;;  %v856_v21 = vld [vmem:[%s959_s28 + $0x94] ss:$8 sps:$4 sm:$0xff]   ;;  %p796_p7 = scmp.ne.s32.totalorder %s893_s15, 4 }
  0x1e   : > { %534 = vmatpush1.bf16.msra.mxu0 %v834_v4  ;;  %v763_v15 = vcombine.high %v331_v14, %v331_v14  ;;  %v853_v19 = vld [vmem:[%s959_s28 + $0x84] ss:$8 sps:$4 sm:$0xff]   ;;  %v855_v20 = vld [vmem:[%s959_s28 + $0x80] ss:$8 sps:$4 sm:$0xff]   ;;  %v858_v22 = vld [vmem:[%s959_s28 + $0x90] ss:$8 sps:$4 sm:$0xff]   ;;  %v762_v35 = vcombine.low %v331_v14, %v331_v14  ;;  %v584_v44 = vlaneseq (!%p796_p7) }
  0x1f   : > { %535 = vmatprep.subr.bf16.mxu0 %v835_v5  ;;  %v859_v23 = vld [vmem:[%s959_s28 + $0xa4] ss:$8 sps:$4 sm:$0xff]   ;;  %v861_v24 = vld [vmem:[%s959_s28 + $0xa0] ss:$8 sps:$4 sm:$0xff]   ;;  %v862_v25 = vld [vmem:[%s959_s28 + $0xb4] ss:$8 sps:$4 sm:$0xff]  }
  0x20   : > { %563 = vmatprep.mubr.bf16.mxu0 %v763_v15  ;;  %v864_v26 = vld [vmem:[%s959_s28 + $0xb0] ss:$8 sps:$4 sm:$0xff]   ;;  %v865_v27 = vld [vmem:[%s959_s28 + $0xc4] ss:$8 sps:$4 sm:$0xff]   ;;  %v867_v28 = vld [vmem:[%s959_s28 + $0xc0] ss:$8 sps:$4 sm:$0xff]  }
  0x21   : > { %v868_v29 = vld [vmem:[%s959_s28 + $0xd4] ss:$8 sps:$4 sm:$0xff]   ;;  %v870_v30 = vld [vmem:[%s959_s28 + $0xd0] ss:$8 sps:$4 sm:$0xff]   ;;  %v871_v31 = vld [vmem:[%s959_s28 + $0xe4] ss:$8 sps:$4 sm:$0xff]  }
  0x22   : > { %536 = vmatpush1.bf16.msra.mxu0 %v837_v6  ;;  %v873_v32 = vld [vmem:[%s959_s28 + $0xe0] ss:$8 sps:$4 sm:$0xff]   ;;  %v874_v33 = vld [vmem:[%s959_s28 + $0xf4] ss:$8 sps:$4 sm:$0xff]   ;;  %v876_v34 = vld [vmem:[%s959_s28 + $0xf0] ss:$8 sps:$4 sm:$0xff]  }
  0x23   : > { %537 = vmatprep.subr.bf16.mxu0 %v838_v7  ;;  %v329_v36 = vld [vmem:[#allocation2] sm:$0xff]  ;;  %v330_v37 = vld [vmem:[#allocation2 + $0x8] sm:$0xff]  ;;  %v585_v45 = vshrl.u32 (!%p796_p7), %v584_v44, 7 }
  0x24   : > { %v582_v46 = vld [vmem:[%s1016_s2] sm:$0x3] (!%p796_p7) }
  0x25   : > { %v596_v47 = vld [vmem:[%s1017_s3] sm:$0x3] (!%p796_p7)  ;;  %v586_v48 = vsub.s32 (!%p796_p7), 0, %v585_v45  ;;  %v590_v49 = vsub.s32 (!%p796_p7), 1, %v585_v45 }
  0x26   : > { %538 = vmatpush1.bf16.msra.mxu0 %v840_v8 }
  0x27   : > { %539 = vmatprep.subr.bf16.mxu0 %v841_v9  ;;  %v587_v52 = vrot.slane (!%p796_p7), %v582_v46, %v586_v48  ;;  %v591_v53 = vrot.slane (!%p796_p7), %v582_v46, %v590_v49  ;;  %v601_v54 = vrot.slane (!%p796_p7), %v596_v47, %v586_v48  ;;  %v605_v55 = vrot.slane (!%p796_p7), %v596_v47, %v590_v49 }
  0x2a   : > { %540 = vmatpush1.bf16.msra.mxu0 %v843_v10 }
  0x2b   : > { %541 = vmatprep.subr.bf16.mxu0 %v844_v11 }
  0x2e   : > { %542 = vmatpush1.bf16.msra.mxu0 %v846_v12 }
  0x2f   : > { %543 = vmatprep.subr.bf16.mxu0 %v847_v13 }
  0x32   : > { %544 = vmatpush1.bf16.msra.mxu0 %v849_v16 }
  0x33   : > { %545 = vmatprep.subr.bf16.mxu0 %v850_v17 }
  0x36   : > { %546 = vmatpush1.bf16.msra.mxu0 %v852_v18 }
  0x37   : > { %547 = vmatprep.subr.bf16.mxu0 %v853_v19 }
  0x3a   : > { %548 = vmatpush1.bf16.msra.mxu0 %v855_v20 }
  0x3b   : > { %549 = vmatprep.subr.bf16.mxu0 %v856_v21 }
  0x3e   : > { %550 = vmatpush1.bf16.msra.mxu0 %v858_v22 }
  0x3f   : > { %551 = vmatprep.subr.bf16.mxu0 %v859_v23 }
  0x42   : > { %552 = vmatpush1.bf16.msra.mxu0 %v861_v24 }
  0x43   : > { %553 = vmatprep.subr.bf16.mxu0 %v862_v25 }
  0x46   : > { %554 = vmatpush1.bf16.msra.mxu0 %v864_v26 }
  0x47   : > { %555 = vmatprep.subr.bf16.mxu0 %v865_v27 }
  0x4a   : > { %556 = vmatpush1.bf16.msra.mxu0 %v867_v28 }
  0x4b   : > { %557 = vmatprep.subr.bf16.mxu0 %v868_v29 }
  0x4e   : > { %558 = vmatpush1.bf16.msra.mxu0 %v870_v30 }
  0x4f   : > { %559 = vmatprep.subr.bf16.mxu0 %v871_v31 }
  0x52   : > { %560 = vmatpush1.bf16.msra.mxu0 %v873_v32 }
  0x53   : > { %561 = vmatprep.subr.bf16.mxu0 %v874_v33 }
  0x56   : > { %562 = vmatpush1.bf16.msra.mxu0 %v876_v34 }
  0x59   : > { %564 = vmatmul.mubr.bf16.vlgmr.msra.gmra.mrb[0].mxu0 %v762_v35 }
 0x12a   : > { %579 = sbr.rel (%p796_p7) target bundleno = 321 (0x141), region = 44 }
 0x12c   : > { %v565_v38 = vpop.f32.mrb[0].mxu0 }
 0x12d   : > { %v572_v39 = vadd.f32 %v565_v38, %v329_v36  ;;  %v567_v40 = vpop.f32.mrb[1].mxu0 }
 0x12e   : > { %v573_v41 = vadd.f32 %v567_v40, %v330_v37  ;;  %v569_v42 = vpop.f32.mrb[2].mxu0 }
 0x12f   : > { %574 = vst [vmem:[#allocation2] sm:$0xff] %v572_v39  ;;  %v570_v43 = vpop.f32.mrb[3].mxu0 }
 0x130   : > { %575 = vst [vmem:[#allocation2 + $0x8] sm:$0xff] %v573_v41 }
 0x136   : > { %v580_v50 = vld [vmem:[#allocation2] sm:$0xff] }
 0x137   : > { %v581_v51 = vld [vmem:[#allocation2 + $0x8] sm:$0xff]  ;;  %v594_v56 = vmul.f32 %v587_v52, %v580_v50 }
 0x138   : > { %v595_v57 = vmul.f32 %v591_v53, %v581_v51 }
 0x139   : > { %v608_v58 = vadd.f32 %v601_v54, %v594_v56 }
 0x13a   : > { %v609_v59 = vadd.f32 %v605_v55, %v595_v57 }
 0x13b   : > { %v610_v60 = vmax.f32 %v608_v58, 0.0 }
 0x13c   : > { %v611_v61 = vmax.f32 %v609_v59, 0.0 }
 0x13e   : > { %v803_v62 = vpack.c.bf16 %v611_v61, %v610_v60 }
 0x140   : > { %620 = vst [vmem:[%s1018_s4] sm:$0xff] %v803_v62 }
 0x141 PF: > { %s14_s17 = sadd.s32 1, %s901_s17   ;;  %s1019_s15 = smov %s897_s16 }
 0x142   : > { %p11_p8 = scmp.ge.s32.totalorder %s14_s17, 7   ;;  %s1020_s16 = smov %s1022_s18 }
 0x144   :  { %13 = sbr.rel (!%p11_p8) target bundleno = 2 (0x2), region = 83 }

// kernel: resnet18_forward.34
= control target key start
LH: loop header
LB: loop body
LE: loop exit
PB: predicated region body
PF: predicated region fallthrough
CT: control target
= control target key end

     0   :  { %v257_v1 = vmov 0   ;;  %v175_v18 = vlaneseq  ;;  %s343_s1 = inlined_call_operand.vmem [shape: bf16[128,256], index: 1, kind: input, shape index: {}]   ;;  %s344_s0 = inlined_call_operand.vmem [shape: bf16[8,128], index: 0, kind: input, shape index: {}]   ;;  %s345_s2 = inlined_call_operand.vmem [shape: f32[1,256], index: 2, kind: input, shape index: {}]   ;;  %s346_s3 = inlined_call_operand.vmem [shape: f32[1,256], index: 3, kind: input, shape index: {}]   ;;  %s347_s4 = inlined_call_operand.vmem [shape: bf16[8,256], index: 4, kind: output, shape index: {}]  }
   0x1   :  { %v233_v0 = vld [vmem:[%s343_s1 + $0x4] ss:$8 sps:$4 sm:$0xff]   ;;  %155 = vmatprep.mubr.bf16.mxu0 %v257_v1  ;;  %v235_v2 = vld [vmem:[%s343_s1] ss:$8 sps:$4 sm:$0xff]   ;;  %v236_v3 = vld [vmem:[%s343_s1 + $0x14] ss:$8 sps:$4 sm:$0xff]  }
   0x2   :  { %123 = vmatprep.subr.bf16.mxu0 %v233_v0  ;;  %v238_v4 = vld [vmem:[%s343_s1 + $0x10] ss:$8 sps:$4 sm:$0xff]   ;;  %v239_v5 = vld [vmem:[%s343_s1 + $0x24] ss:$8 sps:$4 sm:$0xff]   ;;  %v241_v6 = vld [vmem:[%s343_s1 + $0x20] ss:$8 sps:$4 sm:$0xff]  }
   0x3   :  { %124 = vmatpush1.bf16.msra.mxu0 %v235_v2  ;;  %v242_v7 = vld [vmem:[%s343_s1 + $0x34] ss:$8 sps:$4 sm:$0xff]   ;;  %v244_v8 = vld [vmem:[%s343_s1 + $0x30] ss:$8 sps:$4 sm:$0xff]   ;;  %v245_v9 = vld [vmem:[%s343_s1 + $0x44] ss:$8 sps:$4 sm:$0xff]  }
   0x4   :  { %125 = vmatprep.subr.bf16.mxu0 %v236_v3  ;;  %v247_v10 = vld [vmem:[%s343_s1 + $0x40] ss:$8 sps:$4 sm:$0xff]   ;;  %v248_v11 = vld [vmem:[%s343_s1 + $0x54] ss:$8 sps:$4 sm:$0xff]   ;;  %v250_v12 = vld [vmem:[%s343_s1 + $0x50] ss:$8 sps:$4 sm:$0xff]  }
   0x5   :  { %v251_v13 = vld [vmem:[%s343_s1 + $0x64] ss:$8 sps:$4 sm:$0xff]   ;;  %v253_v14 = vld [vmem:[%s343_s1 + $0x60] ss:$8 sps:$4 sm:$0xff]   ;;  %v254_v15 = vld [vmem:[%s343_s1 + $0x74] ss:$8 sps:$4 sm:$0xff]  }
   0x6   :  { %v256_v16 = vld [vmem:[%s343_s1 + $0x70] ss:$8 sps:$4 sm:$0xff]   ;;  %v26_v17 = vld [vmem:[%s344_s0] sm:$0xf]  ;;  %v176_v19 = vshrl.u32 %v175_v18, 7 }
   0x7   :  { %126 = vmatpush1.bf16.msra.mxu0 %v238_v4  ;;  %v173_v21 = vld [vmem:[%s345_s2] sm:$0x3] }
   0x8   :  { %127 = vmatprep.subr.bf16.mxu0 %v239_v5  ;;  %v177_v20 = vsub.s32 0, %v176_v19  ;;  %v181_v22 = vsub.s32 1, %v176_v19  ;;  %v187_v23 = vld [vmem:[%s346_s3] sm:$0x3] }
   0xa   :  { %v178_v24 = vrot.slane %v173_v21, %v177_v20  ;;  %v182_v25 = vrot.slane %v173_v21, %v181_v22  ;;  %v192_v26 = vrot.slane %v187_v23, %v177_v20  ;;  %v196_v28 = vrot.slane %v187_v23, %v181_v22 }
   0xb   :  { %128 = vmatpush1.bf16.msra.mxu0 %v241_v6 }
   0xc   :  { %129 = vmatprep.subr.bf16.mxu0 %v242_v7 }
   0xf   :  { %130 = vmatpush1.bf16.msra.mxu0 %v244_v8 }
  0x10   :  { %131 = vmatprep.subr.bf16.mxu0 %v245_v9 }
  0x13   :  { %132 = vmatpush1.bf16.msra.mxu0 %v247_v10 }
  0x14   :  { %133 = vmatprep.subr.bf16.mxu0 %v248_v11 }
  0x17   :  { %134 = vmatpush1.bf16.msra.mxu0 %v250_v12 }
  0x18   :  { %135 = vmatprep.subr.bf16.mxu0 %v251_v13 }
  0x1b   :  { %136 = vmatpush1.bf16.msra.mxu0 %v253_v14 }
  0x1c   :  { %137 = vmatprep.subr.bf16.mxu0 %v254_v15 }
  0x1f   :  { %138 = vmatpush1.bf16.msra.mxu0 %v256_v16 }
  0x22   :  { %156 = vmatmul.mubr.bf16.vlgmr.msra.gmra.mrb[0].mxu0 %v26_v17 }
  0xf5   :  { %v157_v27 = vpop.f32.mrb[0].mxu0 }
  0xf6   :  { %v185_v29 = vmul.f32 %v178_v24, %v157_v27  ;;  %v159_v30 = vpop.f32.mrb[1].mxu0 }
  0xf7   :  { %v186_v31 = vmul.f32 %v182_v25, %v159_v30  ;;  %v161_v32 = vpop.f32.mrb[2].mxu0 }
  0xf8   :  { %v199_v33 = vadd.f32 %v192_v26, %v185_v29  ;;  %v162_v34 = vpop.f32.mrb[3].mxu0 }
  0xf9   :  { %v200_v35 = vadd.f32 %v196_v28, %v186_v31 }
  0xfb   :  { %v231_v36 = vpack.c.bf16 %v200_v35, %v199_v33 }
  0xfd   :  { %209 = vst [vmem:[%s347_s4] sm:$0xff] %v231_v36 }

// kernel: resnet18_forward.35
= control target key start
LH: loop header
LB: loop body
LE: loop exit
PB: predicated region body
PF: predicated region fallthrough
CT: control target
= control target key end

     0   :  { %s1349_s18 = smov 0   ;;  %s1351_s19 = smov 0   ;;  %s1470_s0 = inlined_call_operand.vmem [shape: bf16[8,2560], index: 0, kind: input, shape index: {}]   ;;  %s1471_s1 = inlined_call_operand.vmem [shape: bf16[2560,256], index: 1, kind: input, shape index: {}]   ;;  %s1472_s2 = inlined_call_operand.vmem [shape: f32[1,256], index: 2, kind: input, shape index: {}]   ;;  %s1473_s3 = inlined_call_operand.vmem [shape: f32[1,256], index: 3, kind: input, shape index: {}]   ;;  %s1474_s4 = inlined_call_operand.vmem [shape: bf16[8,256], index: 4, kind: input, shape index: {}]   ;;  %s1475_s5 = inlined_call_operand.vmem [shape: bf16[8,256], index: 5, kind: output, shape index: {}]  }
   0x1   :  { %s1353_s20 = smov 0  }
   0x2 LB: > { %s27_s21 = sadd.s32 1, %s1312_s19  ;;  %p1086_p0 = scmp.ge.s32.totalorder %s1316_s20, 1  ;;  %s1316_s20 = sphi %s1353_s20, %s15_s20   ;;  %s1312_s19 = sphi %s1351_s19, %s1477_s19   ;;  %s1308_s18 = sphi %s1349_s18, %s1476_s18  }
   0x3   : > { %p28_p1 = scmp.ge.s32.totalorder %s27_s21, 5  ;;  %p271_p2 = scmp.lt.s32.totalorder %s1316_s20, 6 }
   0x5   : > { %s1479_s21 = smov (%p28_p1, %s27_s21), 0  ;;  %p272_p3 = pnand %p1086_p0, %p271_p2 }
   0x6   : > { %s1087_s22 = sshll.u32 (!%p272_p3), %s1308_s18, 2  ;;  %s1089_s23 = sshll.u32 (!%p272_p3), %s1308_s18, 6 }
   0x7   : > { %275 = sbr.rel (%p272_p3) target bundleno = 326 (0x146), region = 40  ;;  %p337_p4 = scmp.lt.s32.totalorder (!%p272_p3), %s1087_s22, 19 }
   0x8   : > { %p346_p5 = scmp.lt.s32.totalorder (!%p272_p3), %s1089_s23, 319  ;;  %p1092_p6 = scmp.ne.s32.totalorder (!%p272_p3), %s1308_s18, 0 }
   0xe   : > { %s1481_s22 = smov (!%p337_p4, %s1087_s22), 19  ;;  %s1483_s23 = smov (!%p346_p5, %s1089_s23), 319 }
   0xf   : > { %s1088_s24 = sshll.u32 %s1481_s22, 2  ;;  %s1167_s28 = sshll.u32 %s1483_s23, 3  ;;  %v1318_v0 = vmov (!%p1092_p6), 0.0  }
  0x10   : > { %s1374_s27 = scalar_lea.vmem %s1470_s0, %s1088_s24  ;;  %s1379_s6 = scalar_lea.vmem %s1471_s1, %s1167_s28  ;;  %390 = vst [vmem:[#allocation2] sm:$0xff] (!%p1092_p6), %v1318_v0  ;;  %391 = vst [vmem:[#allocation2 + $0x8] sm:$0xff] (!%p1092_p6), %v1318_v0 }
  0x11   : > { %389 = sbr.rel (%p1092_p6) target bundleno = 24 (0x18), region = 44 }
  0x18 PF: > { %v1194_v1 = vld [vmem:[%s1379_s6 + $0x4] ss:$8 sps:$4 sm:$0xff]   ;;  %v1198_v3 = vld [vmem:[%s1379_s6] ss:$8 sps:$4 sm:$0xff]   ;;  %v1200_v5 = vld [vmem:[%s1379_s6 + $0x14] ss:$8 sps:$4 sm:$0xff]  }
  0x19   : > { %v1196_v2 = vld [vmem:[%s1379_s6 + $0x104] ss:$8 sps:$4 sm:$0xff]   ;;  %794 = vmatprep.subr.bf16.mxu0 %v1194_v1  ;;  %v1199_v4 = vld [vmem:[%s1379_s6 + $0x100] ss:$8 sps:$4 sm:$0xff]   ;;  %v1202_v6 = vld [vmem:[%s1379_s6 + $0x114] ss:$8 sps:$4 sm:$0xff]  }
  0x1a   : > { %835 = vmatprep.subr.bf16.mxu1 %v1196_v2  ;;  %795 = vmatpush1.bf16.msra.mxu0 %v1198_v3  ;;  %v1204_v7 = vld [vmem:[%s1379_s6 + $0x10] ss:$8 sps:$4 sm:$0xff]   ;;  %v1206_v9 = vld [vmem:[%s1379_s6 + $0x24] ss:$8 sps:$4 sm:$0xff]   ;;  %v1210_v11 = vld [vmem:[%s1379_s6 + $0x20] ss:$8 sps:$4 sm:$0xff]  }
  0x1b   : > { %836 = vmatpush1.bf16.msra.mxu1 %v1199_v4  ;;  %796 = vmatprep.subr.bf16.mxu0 %v1200_v5  ;;  %v1205_v8 = vld [vmem:[%s1379_s6 + $0x110] ss:$8 sps:$4 sm:$0xff]   ;;  %v1208_v10 = vld [vmem:[%s1379_s6 + $0x124] ss:$8 sps:$4 sm:$0xff]   ;;  %v1211_v12 = vld [vmem:[%s1379_s6 + $0x120] ss:$8 sps:$4 sm:$0xff]  }
  0x1c   : > { %837 = vmatprep.subr.bf16.mxu1 %v1202_v6  ;;  %v1212_v13 = vld [vmem:[%s1379_s6 + $0x34] ss:$8 sps:$4 sm:$0xff]   ;;  %v1216_v15 = vld [vmem:[%s1379_s6 + $0x30] ss:$8 sps:$4 sm:$0xff]   ;;  %v1218_v17 = vld [vmem:[%s1379_s6 + $0x44] ss:$8 sps:$4 sm:$0xff]  }
  0x1d   : > { %v1214_v14 = vld [vmem:[%s1379_s6 + $0x134] ss:$8 sps:$4 sm:$0xff]   ;;  %v1217_v16 = vld [vmem:[%s1379_s6 + $0x130] ss:$8 sps:$4 sm:$0xff]   ;;  %v1220_v18 = vld [vmem:[%s1379_s6 + $0x144] ss:$8 sps:$4 sm:$0xff]  }
  0x1e   : > { %797 = vmatpush1.bf16.msra.mxu0 %v1204_v7  ;;  %v1222_v19 = vld [vmem:[%s1379_s6 + $0x40] ss:$8 sps:$4 sm:$0xff]   ;;  %v1224_v21 = vld [vmem:[%s1379_s6 + $0x54] ss:$8 sps:$4 sm:$0xff]   ;;  %v1228_v23 = vld [vmem:[%s1379_s6 + $0x50] ss:$8 sps:$4 sm:$0xff]  }
  0x1f   : > { %838 = vmatpush1.bf16.msra.mxu1 %v1205_v8  ;;  %798 = vmatprep.subr.bf16.mxu0 %v1206_v9  ;;  %v1223_v20 = vld [vmem:[%s1379_s6 + $0x140] ss:$8 sps:$4 sm:$0xff]   ;;  %v1226_v22 = vld [vmem:[%s1379_s6 + $0x154] ss:$8 sps:$4 sm:$0xff]   ;;  %v1229_v24 = vld [vmem:[%s1379_s6 + $0x150] ss:$8 sps:$4 sm:$0xff]  }
  0x20   : > { %839 = vmatprep.subr.bf16.mxu1 %v1208_v10  ;;  %v1230_v25 = vld [vmem:[%s1379_s6 + $0x64] ss:$8 sps:$4 sm:$0xff]   ;;  %v1234_v27 = vld [vmem:[%s1379_s6 + $0x60] ss:$8 sps:$4 sm:$0xff]   ;;  %v1236_v29 = vld [vmem:[%s1379_s6 + $0x74] ss:$8 sps:$4 sm:$0xff]  }
  0x21   : > { %v1232_v26 = vld [vmem:[%s1379_s6 + $0x164] ss:$8 sps:$4 sm:$0xff]   ;;  %v1235_v28 = vld [vmem:[%s1379_s6 + $0x160] ss:$8 sps:$4 sm:$0xff]   ;;  %v1238_v30 = vld [vmem:[%s1379_s6 + $0x174] ss:$8 sps:$4 sm:$0xff]  }
  0x22   : > { %799 = vmatpush1.bf16.msra.mxu0 %v1210_v11  ;;  %v1240_v31 = vld [vmem:[%s1379_s6 + $0x70] ss:$8 sps:$4 sm:$0xff]   ;;  %v1242_v33 = vld [vmem:[%s1379_s6 + $0x84] ss:$8 sps:$4 sm:$0xff]   ;;  %v1246_v35 = vld [vmem:[%s1379_s6 + $0x80] ss:$8 sps:$4 sm:$0xff]  }
  0x23   : > { %840 = vmatpush1.bf16.msra.mxu1 %v1211_v12  ;;  %800 = vmatprep.subr.bf16.mxu0 %v1212_v13  ;;  %v1241_v32 = vld [vmem:[%s1379_s6 + $0x170] ss:$8 sps:$4 sm:$0xff]   ;;  %v1244_v34 = vld [vmem:[%s1379_s6 + $0x184] ss:$8 sps:$4 sm:$0xff]   ;;  %v1247_v36 = vld [vmem:[%s1379_s6 + $0x180] ss:$8 sps:$4 sm:$0xff]  }
  0x24   : > { %841 = vmatprep.subr.bf16.mxu1 %v1214_v14  ;;  %v1248_v37 = vld [vmem:[%s1379_s6 + $0x94] ss:$8 sps:$4 sm:$0xff]   ;;  %v1252_v39 = vld [vmem:[%s1379_s6 + $0x90] ss:$8 sps:$4 sm:$0xff]   ;;  %v1254_v41 = vld [vmem:[%s1379_s6 + $0xa4] ss:$8 sps:$4 sm:$0xff]  }
  0x25   : > { %v1250_v38 = vld [vmem:[%s1379_s6 + $0x194] ss:$8 sps:$4 sm:$0xff]   ;;  %v1253_v40 = vld [vmem:[%s1379_s6 + $0x190] ss:$8 sps:$4 sm:$0xff]   ;;  %v1256_v42 = vld [vmem:[%s1379_s6 + $0x1a4] ss:$8 sps:$4 sm:$0xff]  }
  0x26   : > { %801 = vmatpush1.bf16.msra.mxu0 %v1216_v15  ;;  %v1258_v43 = vld [vmem:[%s1379_s6 + $0xa0] ss:$8 sps:$4 sm:$0xff]   ;;  %v1260_v45 = vld [vmem:[%s1379_s6 + $0xb4] ss:$8 sps:$4 sm:$0xff]   ;;  %v1264_v50 = vld [vmem:[%s1379_s6 + $0xb0] ss:$8 sps:$4 sm:$0xff]  }
  0x27   : > { %842 = vmatpush1.bf16.msra.mxu1 %v1217_v16  ;;  %802 = vmatprep.subr.bf16.mxu0 %v1218_v17  ;;  %v1259_v44 = vld [vmem:[%s1379_s6 + $0x1a0] ss:$8 sps:$4 sm:$0xff]   ;;  %v1262_v46 = vld [vmem:[%s1379_s6 + $0x1b4] ss:$8 sps:$4 sm:$0xff]   ;;  %v1265_v51 = vld [vmem:[%s1379_s6 + $0x1b0] ss:$8 sps:$4 sm:$0xff]  }
  0x28   : > { %843 = vmatprep.subr.bf16.mxu1 %v1220_v18  ;;  %v394_v47 = vld [vmem:[%s1374_s27] sm:$0xff]  ;;  %v395_v49 = vld [vmem:[%s1374_s27 + $0x8] sm:$0xff]  ;;  %v1272_v57 = vld [vmem:[%s1379_s6 + $0xd4] ss:$8 sps:$4 sm:$0xff]   ;;  %p1161_p7 = scmp.ne.s32.totalorder %s1308_s18, 4 }
  0x29   : > { %v1094_v48 = vcombine.high %v394_v47, %v394_v47  ;;  %v1096_v52 = vcombine.high %v395_v49, %v395_v49  ;;  %v1266_v53 = vld [vmem:[%s1379_s6 + $0xc4] ss:$8 sps:$4 sm:$0xff]   ;;  %v1270_v55 = vld [vmem:[%s1379_s6 + $0xc0] ss:$8 sps:$4 sm:$0xff]   ;;  %v1274_v58 = vld [vmem:[%s1379_s6 + $0x1d4] ss:$8 sps:$4 sm:$0xff]   ;;  %v1093_v5 = vcombine.low %v394_v47, %v394_v47  ;;  %v1095_v6 = vcombine.low %v395_v49, %v395_v49 }
  0x2a   : > { %803 = vmatpush1.bf16.msra.mxu0 %v1222_v19  ;;  %v1268_v54 = vld [vmem:[%s1379_s6 + $0x1c4] ss:$8 sps:$4 sm:$0xff]   ;;  %v1271_v56 = vld [vmem:[%s1379_s6 + $0x1c0] ss:$8 sps:$4 sm:$0xff]   ;;  %v1276_v59 = vld [vmem:[%s1379_s6 + $0xd0] ss:$8 sps:$4 sm:$0xff]  }
  0x2b   : > { %844 = vmatpush1.bf16.msra.mxu1 %v1223_v20  ;;  %804 = vmatprep.subr.bf16.mxu0 %v1224_v21  ;;  %v1277_v60 = vld [vmem:[%s1379_s6 + $0x1d0] ss:$8 sps:$4 sm:$0xff]   ;;  %v1278_v61 = vld [vmem:[%s1379_s6 + $0xe4] ss:$8 sps:$4 sm:$0xff]   ;;  %v1282_v63 = vld [vmem:[%s1379_s6 + $0xe0] ss:$8 sps:$4 sm:$0xff]   ;;  %v888_v21 = vlaneseq (!%p1161_p7) }
  0x2c   : > { %845 = vmatprep.subr.bf16.mxu1 %v1226_v22  ;;  %826 = vmatprep.mubr.bf16.mxu0 %v1094_v48  ;;  %v1280_v62 = vld [vmem:[%s1379_s6 + $0x1e4] ss:$8 sps:$4 sm:$0xff]   ;;  %v1283_v0 = vld [vmem:[%s1379_s6 + $0x1e0] ss:$8 sps:$4 sm:$0xff]   ;;  %v1284_v1 = vld [vmem:[%s1379_s6 + $0xf4] ss:$8 sps:$4 sm:$0xff]  }
  0x2d   : > { %867 = vmatprep.mubr.bf16.mxu1 %v1096_v52  ;;  %v1286_v2 = vld [vmem:[%s1379_s6 + $0x1f4] ss:$8 sps:$4 sm:$0xff]   ;;  %v1288_v3 = vld [vmem:[%s1379_s6 + $0xf0] ss:$8 sps:$4 sm:$0xff]   ;;  %v392_v8 = vld [vmem:[#allocation2] sm:$0xff]  ;;  %v889_v22 = vshrl.u32 (!%p1161_p7), %v888_v21, 7 }
  0x2e   : > { %805 = vmatpush1.bf16.msra.mxu0 %v1228_v23  ;;  %v1289_v4 = vld [vmem:[%s1379_s6 + $0x1f0] ss:$8 sps:$4 sm:$0xff]   ;;  %v393_v12 = vld [vmem:[#allocation2 + $0x8] sm:$0xff]  ;;  %v886_v23 = vld [vmem:[%s1472_s2] sm:$0x3] (!%p1161_p7) }
  0x2f   : > { %846 = vmatpush1.bf16.msra.mxu1 %v1229_v24  ;;  %806 = vmatprep.subr.bf16.mxu0 %v1230_v25  ;;  %v900_v24 = vld [vmem:[%s1473_s3] sm:$0x3] (!%p1161_p7)  ;;  %v890_v25 = vsub.s32 (!%p1161_p7), 0, %v889_v22 }
  0x30   : > { %847 = vmatprep.subr.bf16.mxu1 %v1232_v26  ;;  %v894_v26 = vsub.s32 (!%p1161_p7), 1, %v889_v22 }
  0x32   : > { %807 = vmatpush1.bf16.msra.mxu0 %v1234_v27 }
  0x33   : > { %848 = vmatpush1.bf16.msra.mxu1 %v1235_v28  ;;  %808 = vmatprep.subr.bf16.mxu0 %v1236_v29  ;;  %v914_v29 = vld [vmem:[%s1474_s4] sm:$0xff] (!%p1161_p7) }
  0x34   : > { %849 = vmatprep.subr.bf16.mxu1 %v1238_v30  ;;  %v891_v30 = vrot.slane (!%p1161_p7), %v886_v23, %v890_v25 }
  0x36   : > { %809 = vmatpush1.bf16.msra.mxu0 %v1240_v31  ;;  %v895_v31 = vrot.slane (!%p1161_p7), %v886_v23, %v894_v26 }
  0x37   : > { %850 = vmatpush1.bf16.msra.mxu1 %v1241_v32  ;;  %810 = vmatprep.subr.bf16.mxu0 %v1242_v33  ;;  %v905_v32 = vrot.slane (!%p1161_p7), %v900_v24, %v890_v25  ;;  %v909_v33 = vrot.slane (!%p1161_p7), %v900_v24, %v894_v26 }
  0x38   : > { %851 = vmatprep.subr.bf16.mxu1 %v1244_v34 }
  0x3a   : > { %811 = vmatpush1.bf16.msra.mxu0 %v1246_v35 }
  0x3b   : > { %852 = vmatpush1.bf16.msra.mxu1 %v1247_v36  ;;  %812 = vmatprep.subr.bf16.mxu0 %v1248_v37  ;;  %v915_v36 = vunpack.c.l.bf16 (!%p1161_p7), %v914_v29  ;;  %v916_v37 = vunpack.c.h.bf16 (!%p1161_p7), %v914_v29 }
  0x3c   : > { %853 = vmatprep.subr.bf16.mxu1 %v1250_v38 }
  0x3e   : > { %813 = vmatpush1.bf16.msra.mxu0 %v1252_v39 }
  0x3f   : > { %854 = vmatpush1.bf16.msra.mxu1 %v1253_v40  ;;  %814 = vmatprep.subr.bf16.mxu0 %v1254_v41 }
  0x40   : > { %855 = vmatprep.subr.bf16.mxu1 %v1256_v42 }
  0x42   : > { %815 = vmatpush1.bf16.msra.mxu0 %v1258_v43 }
  0x43   : > { %856 = vmatpush1.bf16.msra.mxu1 %v1259_v44  ;;  %816 = vmatprep.subr.bf16.mxu0 %v1260_v45 }
  0x44   : > { %857 = vmatprep.subr.bf16.mxu1 %v1262_v46 }
  0x46   : > { %817 = vmatpush1.bf16.msra.mxu0 %v1264_v50 }
  0x47   : > { %858 = vmatpush1.bf16.msra.mxu1 %v1265_v51  ;;  %818 = vmatprep.subr.bf16.mxu0 %v1266_v53 }
  0x48   : > { %859 = vmatprep.subr.bf16.mxu1 %v1268_v54 }
  0x4a   : > { %819 = vmatpush1.bf16.msra.mxu0 %v1270_v55 }
  0x4b   : > { %860 = vmatpush1.bf16.msra.mxu1 %v1271_v56  ;;  %820 = vmatprep.subr.bf16.mxu0 %v1272_v57 }
  0x4c   : > { %861 = vmatprep.subr.bf16.mxu1 %v1274_v58 }
  0x4e   : > { %821 = vmatpush1.bf16.msra.mxu0 %v1276_v59 }
  0x4f   : > { %862 = vmatpush1.bf16.msra.mxu1 %v1277_v60  ;;  %822 = vmatprep.subr.bf16.mxu0 %v1278_v61 }
  0x50   : > { %863 = vmatprep.subr.bf16.mxu1 %v1280_v62 }
  0x52   : > { %823 = vmatpush1.bf16.msra.mxu0 %v1282_v63 }
  0x53   : > { %864 = vmatpush1.bf16.msra.mxu1 %v1283_v0  ;;  %824 = vmatprep.subr.bf16.mxu0 %v1284_v1 }
  0x54   : > { %865 = vmatprep.subr.bf16.mxu1 %v1286_v2 }
  0x56   : > { %825 = vmatpush1.bf16.msra.mxu0 %v1288_v3 }
  0x57   : > { %866 = vmatpush1.bf16.msra.mxu1 %v1289_v4 }
  0x59   : > { %827 = vmatmul.mubr.bf16.vlgmr.msra.gmra.mrb[0].mxu0 %v1093_v5 }
  0x5a   : > { %868 = vmatmul.mubr.bf16.vlgmr.msra.gmra.mrb[0].mxu1 %v1095_v6 }
 0x12c   : > { %v828_v7 = vpop.f32.mrb[0].mxu0 }
 0x12d   : > { %v869_v9 = vpop.f32.mrb[0].mxu1  ;;  %v830_v11 = vpop.f32.mrb[1].mxu0  ;;  %883 = sbr.rel (%p1161_p7) target bundleno = 326 (0x146), region = 48 }
 0x12e   : > { %v870_v10 = vadd.f32 %v869_v9, %v828_v7  ;;  %v871_v13 = vpop.f32.mrb[1].mxu1  ;;  %v832_v15 = vpop.f32.mrb[2].mxu0 }
 0x12f   : > { %v872_v14 = vadd.f32 %v871_v13, %v830_v11  ;;  %v873_v16 = vpop.f32.mrb[2].mxu1  ;;  %v833_v18 = vpop.f32.mrb[3].mxu0 }
 0x130   : > { %v876_v17 = vadd.f32 %v870_v10, %v392_v8  ;;  %v874_v19 = vpop.f32.mrb[3].mxu1 }
 0x131   : > { %v877_v20 = vadd.f32 %v872_v14, %v393_v12 }
 0x132   : > { %878 = vst [vmem:[#allocation2] sm:$0xff] %v876_v17 }
 0x133   : > { %879 = vst [vmem:[#allocation2 + $0x8] sm:$0xff] %v877_v20 }
 0x139   : > { %v884_v27 = vld [vmem:[#allocation2] sm:$0xff] }
 0x13a   : > { %v885_v28 = vld [vmem:[#allocation2 + $0x8] sm:$0xff]  ;;  %v898_v34 = vmul.f32 %v891_v30, %v884_v27 }
 0x13b   : > { %v899_v35 = vmul.f32 %v895_v31, %v885_v28 }
 0x13c   : > { %v912_v38 = vadd.f32 %v905_v32, %v898_v34 }
 0x13d   : > { %v913_v39 = vadd.f32 %v909_v33, %v899_v35 }
 0x13e   : > { %v917_v40 = vadd.f32 %v915_v36, %v912_v38 }
 0x13f   : > { %v918_v41 = vadd.f32 %v916_v37, %v913_v39 }
 0x140   : > { %v919_v42 = vmax.f32 %v917_v40, 0.0 }
 0x141   : > { %v920_v43 = vmax.f32 %v918_v41, 0.0 }
 0x143   : > { %v1168_v44 = vpack.c.bf16 %v920_v43, %v919_v42 }
 0x145   : > { %929 = vst [vmem:[%s1475_s5] sm:$0xff] %v1168_v44 }
 0x146 PF: > { %s15_s20 = sadd.s32 1, %s1316_s20   ;;  %s1476_s18 = smov %s1312_s19 }
 0x147   : > { %p12_p8 = scmp.ge.s32.totalorder %s15_s20, 7   ;;  %s1477_s19 = smov %s1479_s21 }
 0x149   :  { %14 = sbr.rel (!%p12_p8) target bundleno = 2 (0x2), region = 90 }

// kernel: resnet18_forward.36
= control target key start
LH: loop header
LB: loop body
LE: loop exit
PB: predicated region body
PF: predicated region fallthrough
CT: control target
= control target key end

     0   :  { %s1254_s15 = smov 0   ;;  %s1256_s16 = smov 0   ;;  %s1372_s0 = inlined_call_operand.vmem [shape: bf16[8,2560], index: 0, kind: input, shape index: {}]   ;;  %s1373_s1 = inlined_call_operand.vmem [shape: bf16[2560,256], index: 1, kind: input, shape index: {}]   ;;  %s1374_s2 = inlined_call_operand.vmem [shape: f32[1,256], index: 2, kind: input, shape index: {}]   ;;  %s1375_s3 = inlined_call_operand.vmem [shape: f32[1,256], index: 3, kind: input, shape index: {}]   ;;  %s1376_s4 = inlined_call_operand.vmem [shape: bf16[8,256], index: 4, kind: output, shape index: {}]  }
   0x1   :  { %s1258_s17 = smov 0  }
   0x2 LB: > { %s26_s18 = sadd.s32 1, %s1222_s16  ;;  %p996_p0 = scmp.ge.s32.totalorder %s1226_s17, 1  ;;  %s1226_s17 = sphi %s1258_s17, %s14_s17   ;;  %s1222_s16 = sphi %s1256_s16, %s1378_s16   ;;  %s1218_s15 = sphi %s1254_s15, %s1377_s15  }
   0x3   : > { %p27_p1 = scmp.ge.s32.totalorder %s26_s18, 5  ;;  %p229_p2 = scmp.lt.s32.totalorder %s1226_s17, 6 }
   0x5   : > { %s1380_s18 = smov (%p27_p1, %s26_s18), 0  ;;  %p230_p3 = pnand %p996_p0, %p229_p2 }
   0x6   : > { %s997_s19 = sshll.u32 (!%p230_p3), %s1218_s15, 2  ;;  %s999_s20 = sshll.u32 (!%p230_p3), %s1218_s15, 6 }
   0x7   : > { %233 = sbr.rel (%p230_p3) target bundleno = 324 (0x144), region = 36  ;;  %p284_p4 = scmp.lt.s32.totalorder (!%p230_p3), %s997_s19, 19 }
   0x8   : > { %p293_p5 = scmp.lt.s32.totalorder (!%p230_p3), %s999_s20, 319  ;;  %p1002_p6 = scmp.ne.s32.totalorder (!%p230_p3), %s1218_s15, 0 }
   0xe   : > { %s1382_s19 = smov (!%p284_p4, %s997_s19), 19  ;;  %s1384_s20 = smov (!%p293_p5, %s999_s20), 319 }
   0xf   : > { %s998_s21 = sshll.u32 %s1382_s19, 2  ;;  %s1077_s25 = sshll.u32 %s1384_s20, 3  ;;  %v1228_v0 = vmov (!%p1002_p6), 0.0  }
  0x10   : > { %s1279_s24 = scalar_lea.vmem %s1372_s0, %s998_s21  ;;  %s1284_s28 = scalar_lea.vmem %s1373_s1, %s1077_s25  ;;  %327 = vst [vmem:[#allocation2] sm:$0xff] (!%p1002_p6), %v1228_v0  ;;  %328 = vst [vmem:[#allocation2 + $0x8] sm:$0xff] (!%p1002_p6), %v1228_v0 }
  0x11   : > { %326 = sbr.rel (%p1002_p6) target bundleno = 24 (0x18), region = 40 }
  0x18 PF: > { %v1104_v1 = vld [vmem:[%s1284_s28 + $0x4] ss:$8 sps:$4 sm:$0xff]   ;;  %v1108_v3 = vld [vmem:[%s1284_s28] ss:$8 sps:$4 sm:$0xff]   ;;  %v1110_v5 = vld [vmem:[%s1284_s28 + $0x14] ss:$8 sps:$4 sm:$0xff]  }
  0x19   : > { %v1106_v2 = vld [vmem:[%s1284_s28 + $0x104] ss:$8 sps:$4 sm:$0xff]   ;;  %731 = vmatprep.subr.bf16.mxu0 %v1104_v1  ;;  %v1109_v4 = vld [vmem:[%s1284_s28 + $0x100] ss:$8 sps:$4 sm:$0xff]   ;;  %v1112_v6 = vld [vmem:[%s1284_s28 + $0x114] ss:$8 sps:$4 sm:$0xff]  }
  0x1a   : > { %772 = vmatprep.subr.bf16.mxu1 %v1106_v2  ;;  %732 = vmatpush1.bf16.msra.mxu0 %v1108_v3  ;;  %v1114_v7 = vld [vmem:[%s1284_s28 + $0x10] ss:$8 sps:$4 sm:$0xff]   ;;  %v1116_v9 = vld [vmem:[%s1284_s28 + $0x24] ss:$8 sps:$4 sm:$0xff]   ;;  %v1120_v11 = vld [vmem:[%s1284_s28 + $0x20] ss:$8 sps:$4 sm:$0xff]  }
  0x1b   : > { %773 = vmatpush1.bf16.msra.mxu1 %v1109_v4  ;;  %733 = vmatprep.subr.bf16.mxu0 %v1110_v5  ;;  %v1115_v8 = vld [vmem:[%s1284_s28 + $0x110] ss:$8 sps:$4 sm:$0xff]   ;;  %v1118_v10 = vld [vmem:[%s1284_s28 + $0x124] ss:$8 sps:$4 sm:$0xff]   ;;  %v1121_v12 = vld [vmem:[%s1284_s28 + $0x120] ss:$8 sps:$4 sm:$0xff]  }
  0x1c   : > { %774 = vmatprep.subr.bf16.mxu1 %v1112_v6  ;;  %v1122_v13 = vld [vmem:[%s1284_s28 + $0x34] ss:$8 sps:$4 sm:$0xff]   ;;  %v1126_v15 = vld [vmem:[%s1284_s28 + $0x30] ss:$8 sps:$4 sm:$0xff]   ;;  %v1128_v17 = vld [vmem:[%s1284_s28 + $0x44] ss:$8 sps:$4 sm:$0xff]  }
  0x1d   : > { %v1124_v14 = vld [vmem:[%s1284_s28 + $0x134] ss:$8 sps:$4 sm:$0xff]   ;;  %v1127_v16 = vld [vmem:[%s1284_s28 + $0x130] ss:$8 sps:$4 sm:$0xff]   ;;  %v1130_v18 = vld [vmem:[%s1284_s28 + $0x144] ss:$8 sps:$4 sm:$0xff]  }
  0x1e   : > { %734 = vmatpush1.bf16.msra.mxu0 %v1114_v7  ;;  %v1132_v19 = vld [vmem:[%s1284_s28 + $0x40] ss:$8 sps:$4 sm:$0xff]   ;;  %v1134_v21 = vld [vmem:[%s1284_s28 + $0x54] ss:$8 sps:$4 sm:$0xff]   ;;  %v1138_v23 = vld [vmem:[%s1284_s28 + $0x50] ss:$8 sps:$4 sm:$0xff]  }
  0x1f   : > { %775 = vmatpush1.bf16.msra.mxu1 %v1115_v8  ;;  %735 = vmatprep.subr.bf16.mxu0 %v1116_v9  ;;  %v1133_v20 = vld [vmem:[%s1284_s28 + $0x140] ss:$8 sps:$4 sm:$0xff]   ;;  %v1136_v22 = vld [vmem:[%s1284_s28 + $0x154] ss:$8 sps:$4 sm:$0xff]   ;;  %v1139_v24 = vld [vmem:[%s1284_s28 + $0x150] ss:$8 sps:$4 sm:$0xff]  }
  0x20   : > { %776 = vmatprep.subr.bf16.mxu1 %v1118_v10  ;;  %v1140_v25 = vld [vmem:[%s1284_s28 + $0x64] ss:$8 sps:$4 sm:$0xff]   ;;  %v1144_v27 = vld [vmem:[%s1284_s28 + $0x60] ss:$8 sps:$4 sm:$0xff]   ;;  %v1146_v29 = vld [vmem:[%s1284_s28 + $0x74] ss:$8 sps:$4 sm:$0xff]  }
  0x21   : > { %v1142_v26 = vld [vmem:[%s1284_s28 + $0x164] ss:$8 sps:$4 sm:$0xff]   ;;  %v1145_v28 = vld [vmem:[%s1284_s28 + $0x160] ss:$8 sps:$4 sm:$0xff]   ;;  %v1148_v30 = vld [vmem:[%s1284_s28 + $0x174] ss:$8 sps:$4 sm:$0xff]  }
  0x22   : > { %736 = vmatpush1.bf16.msra.mxu0 %v1120_v11  ;;  %v1150_v31 = vld [vmem:[%s1284_s28 + $0x70] ss:$8 sps:$4 sm:$0xff]   ;;  %v1152_v33 = vld [vmem:[%s1284_s28 + $0x84] ss:$8 sps:$4 sm:$0xff]   ;;  %v1156_v35 = vld [vmem:[%s1284_s28 + $0x80] ss:$8 sps:$4 sm:$0xff]  }
  0x23   : > { %777 = vmatpush1.bf16.msra.mxu1 %v1121_v12  ;;  %737 = vmatprep.subr.bf16.mxu0 %v1122_v13  ;;  %v1151_v32 = vld [vmem:[%s1284_s28 + $0x170] ss:$8 sps:$4 sm:$0xff]   ;;  %v1154_v34 = vld [vmem:[%s1284_s28 + $0x184] ss:$8 sps:$4 sm:$0xff]   ;;  %v1157_v36 = vld [vmem:[%s1284_s28 + $0x180] ss:$8 sps:$4 sm:$0xff]  }
  0x24   : > { %778 = vmatprep.subr.bf16.mxu1 %v1124_v14  ;;  %v1158_v37 = vld [vmem:[%s1284_s28 + $0x94] ss:$8 sps:$4 sm:$0xff]   ;;  %v1162_v39 = vld [vmem:[%s1284_s28 + $0x90] ss:$8 sps:$4 sm:$0xff]   ;;  %v1164_v41 = vld [vmem:[%s1284_s28 + $0xa4] ss:$8 sps:$4 sm:$0xff]  }
  0x25   : > { %v1160_v38 = vld [vmem:[%s1284_s28 + $0x194] ss:$8 sps:$4 sm:$0xff]   ;;  %v1163_v40 = vld [vmem:[%s1284_s28 + $0x190] ss:$8 sps:$4 sm:$0xff]   ;;  %v1166_v42 = vld [vmem:[%s1284_s28 + $0x1a4] ss:$8 sps:$4 sm:$0xff]  }
  0x26   : > { %738 = vmatpush1.bf16.msra.mxu0 %v1126_v15  ;;  %v1168_v43 = vld [vmem:[%s1284_s28 + $0xa0] ss:$8 sps:$4 sm:$0xff]   ;;  %v1170_v45 = vld [vmem:[%s1284_s28 + $0xb4] ss:$8 sps:$4 sm:$0xff]   ;;  %v1174_v50 = vld [vmem:[%s1284_s28 + $0xb0] ss:$8 sps:$4 sm:$0xff]  }
  0x27   : > { %779 = vmatpush1.bf16.msra.mxu1 %v1127_v16  ;;  %739 = vmatprep.subr.bf16.mxu0 %v1128_v17  ;;  %v1169_v44 = vld [vmem:[%s1284_s28 + $0x1a0] ss:$8 sps:$4 sm:$0xff]   ;;  %v1172_v46 = vld [vmem:[%s1284_s28 + $0x1b4] ss:$8 sps:$4 sm:$0xff]   ;;  %v1175_v51 = vld [vmem:[%s1284_s28 + $0x1b0] ss:$8 sps:$4 sm:$0xff]  }
  0x28   : > { %780 = vmatprep.subr.bf16.mxu1 %v1130_v18  ;;  %v331_v47 = vld [vmem:[%s1279_s24] sm:$0xff]  ;;  %v332_v49 = vld [vmem:[%s1279_s24 + $0x8] sm:$0xff]  ;;  %v1182_v57 = vld [vmem:[%s1284_s28 + $0xd4] ss:$8 sps:$4 sm:$0xff]   ;;  %p1071_p7 = scmp.ne.s32.totalorder %s1218_s15, 4 }
  0x29   : > { %v1004_v48 = vcombine.high %v331_v47, %v331_v47  ;;  %v1006_v52 = vcombine.high %v332_v49, %v332_v49  ;;  %v1176_v53 = vld [vmem:[%s1284_s28 + $0xc4] ss:$8 sps:$4 sm:$0xff]   ;;  %v1180_v55 = vld [vmem:[%s1284_s28 + $0xc0] ss:$8 sps:$4 sm:$0xff]   ;;  %v1184_v58 = vld [vmem:[%s1284_s28 + $0x1d4] ss:$8 sps:$4 sm:$0xff]   ;;  %v1003_v5 = vcombine.low %v331_v47, %v331_v47  ;;  %v1005_v6 = vcombine.low %v332_v49, %v332_v49 }
  0x2a   : > { %740 = vmatpush1.bf16.msra.mxu0 %v1132_v19  ;;  %v1178_v54 = vld [vmem:[%s1284_s28 + $0x1c4] ss:$8 sps:$4 sm:$0xff]   ;;  %v1181_v56 = vld [vmem:[%s1284_s28 + $0x1c0] ss:$8 sps:$4 sm:$0xff]   ;;  %v1186_v59 = vld [vmem:[%s1284_s28 + $0xd0] ss:$8 sps:$4 sm:$0xff]  }
  0x2b   : > { %781 = vmatpush1.bf16.msra.mxu1 %v1133_v20  ;;  %741 = vmatprep.subr.bf16.mxu0 %v1134_v21  ;;  %v1187_v60 = vld [vmem:[%s1284_s28 + $0x1d0] ss:$8 sps:$4 sm:$0xff]   ;;  %v1188_v61 = vld [vmem:[%s1284_s28 + $0xe4] ss:$8 sps:$4 sm:$0xff]   ;;  %v1192_v63 = vld [vmem:[%s1284_s28 + $0xe0] ss:$8 sps:$4 sm:$0xff]   ;;  %v825_v21 = vlaneseq (!%p1071_p7) }
  0x2c   : > { %782 = vmatprep.subr.bf16.mxu1 %v1136_v22  ;;  %763 = vmatprep.mubr.bf16.mxu0 %v1004_v48  ;;  %v1190_v62 = vld [vmem:[%s1284_s28 + $0x1e4] ss:$8 sps:$4 sm:$0xff]   ;;  %v1193_v0 = vld [vmem:[%s1284_s28 + $0x1e0] ss:$8 sps:$4 sm:$0xff]   ;;  %v1194_v1 = vld [vmem:[%s1284_s28 + $0xf4] ss:$8 sps:$4 sm:$0xff]  }
  0x2d   : > { %804 = vmatprep.mubr.bf16.mxu1 %v1006_v52  ;;  %v1196_v2 = vld [vmem:[%s1284_s28 + $0x1f4] ss:$8 sps:$4 sm:$0xff]   ;;  %v1198_v3 = vld [vmem:[%s1284_s28 + $0xf0] ss:$8 sps:$4 sm:$0xff]   ;;  %v329_v8 = vld [vmem:[#allocation2] sm:$0xff]  ;;  %v826_v22 = vshrl.u32 (!%p1071_p7), %v825_v21, 7 }
  0x2e   : > { %742 = vmatpush1.bf16.msra.mxu0 %v1138_v23  ;;  %v1199_v4 = vld [vmem:[%s1284_s28 + $0x1f0] ss:$8 sps:$4 sm:$0xff]   ;;  %v330_v12 = vld [vmem:[#allocation2 + $0x8] sm:$0xff]  ;;  %v823_v23 = vld [vmem:[%s1374_s2] sm:$0x3] (!%p1071_p7) }
  0x2f   : > { %783 = vmatpush1.bf16.msra.mxu1 %v1139_v24  ;;  %743 = vmatprep.subr.bf16.mxu0 %v1140_v25  ;;  %v837_v24 = vld [vmem:[%s1375_s3] sm:$0x3] (!%p1071_p7)  ;;  %v827_v25 = vsub.s32 (!%p1071_p7), 0, %v826_v22 }
  0x30   : > { %784 = vmatprep.subr.bf16.mxu1 %v1142_v26  ;;  %v831_v26 = vsub.s32 (!%p1071_p7), 1, %v826_v22 }
  0x32   : > { %744 = vmatpush1.bf16.msra.mxu0 %v1144_v27 }
  0x33   : > { %785 = vmatpush1.bf16.msra.mxu1 %v1145_v28  ;;  %745 = vmatprep.subr.bf16.mxu0 %v1146_v29  ;;  %v828_v29 = vrot.slane (!%p1071_p7), %v823_v23, %v827_v25 }
  0x34   : > { %786 = vmatprep.subr.bf16.mxu1 %v1148_v30  ;;  %v832_v30 = vrot.slane (!%p1071_p7), %v823_v23, %v831_v26 }
  0x36   : > { %746 = vmatpush1.bf16.msra.mxu0 %v1150_v31  ;;  %v842_v31 = vrot.slane (!%p1071_p7), %v837_v24, %v827_v25 }
  0x37   : > { %787 = vmatpush1.bf16.msra.mxu1 %v1151_v32  ;;  %747 = vmatprep.subr.bf16.mxu0 %v1152_v33  ;;  %v846_v32 = vrot.slane (!%p1071_p7), %v837_v24, %v831_v26 }
  0x38   : > { %788 = vmatprep.subr.bf16.mxu1 %v1154_v34 }
  0x3a   : > { %748 = vmatpush1.bf16.msra.mxu0 %v1156_v35 }
  0x3b   : > { %789 = vmatpush1.bf16.msra.mxu1 %v1157_v36  ;;  %749 = vmatprep.subr.bf16.mxu0 %v1158_v37 }
  0x3c   : > { %790 = vmatprep.subr.bf16.mxu1 %v1160_v38 }
  0x3e   : > { %750 = vmatpush1.bf16.msra.mxu0 %v1162_v39 }
  0x3f   : > { %791 = vmatpush1.bf16.msra.mxu1 %v1163_v40  ;;  %751 = vmatprep.subr.bf16.mxu0 %v1164_v41 }
  0x40   : > { %792 = vmatprep.subr.bf16.mxu1 %v1166_v42 }
  0x42   : > { %752 = vmatpush1.bf16.msra.mxu0 %v1168_v43 }
  0x43   : > { %793 = vmatpush1.bf16.msra.mxu1 %v1169_v44  ;;  %753 = vmatprep.subr.bf16.mxu0 %v1170_v45 }
  0x44   : > { %794 = vmatprep.subr.bf16.mxu1 %v1172_v46 }
  0x46   : > { %754 = vmatpush1.bf16.msra.mxu0 %v1174_v50 }
  0x47   : > { %795 = vmatpush1.bf16.msra.mxu1 %v1175_v51  ;;  %755 = vmatprep.subr.bf16.mxu0 %v1176_v53 }
  0x48   : > { %796 = vmatprep.subr.bf16.mxu1 %v1178_v54 }
  0x4a   : > { %756 = vmatpush1.bf16.msra.mxu0 %v1180_v55 }
  0x4b   : > { %797 = vmatpush1.bf16.msra.mxu1 %v1181_v56  ;;  %757 = vmatprep.subr.bf16.mxu0 %v1182_v57 }
  0x4c   : > { %798 = vmatprep.subr.bf16.mxu1 %v1184_v58 }
  0x4e   : > { %758 = vmatpush1.bf16.msra.mxu0 %v1186_v59 }
  0x4f   : > { %799 = vmatpush1.bf16.msra.mxu1 %v1187_v60  ;;  %759 = vmatprep.subr.bf16.mxu0 %v1188_v61 }
  0x50   : > { %800 = vmatprep.subr.bf16.mxu1 %v1190_v62 }
  0x52   : > { %760 = vmatpush1.bf16.msra.mxu0 %v1192_v63 }
  0x53   : > { %801 = vmatpush1.bf16.msra.mxu1 %v1193_v0  ;;  %761 = vmatprep.subr.bf16.mxu0 %v1194_v1 }
  0x54   : > { %802 = vmatprep.subr.bf16.mxu1 %v1196_v2 }
  0x56   : > { %762 = vmatpush1.bf16.msra.mxu0 %v1198_v3 }
  0x57   : > { %803 = vmatpush1.bf16.msra.mxu1 %v1199_v4 }
  0x59   : > { %764 = vmatmul.mubr.bf16.vlgmr.msra.gmra.mrb[0].mxu0 %v1003_v5 }
  0x5a   : > { %805 = vmatmul.mubr.bf16.vlgmr.msra.gmra.mrb[0].mxu1 %v1005_v6 }
 0x12c   : > { %v765_v7 = vpop.f32.mrb[0].mxu0 }
 0x12d   : > { %v806_v9 = vpop.f32.mrb[0].mxu1  ;;  %v767_v11 = vpop.f32.mrb[1].mxu0  ;;  %820 = sbr.rel (%p1071_p7) target bundleno = 324 (0x144), region = 44 }
 0x12e   : > { %v807_v10 = vadd.f32 %v806_v9, %v765_v7  ;;  %v808_v13 = vpop.f32.mrb[1].mxu1  ;;  %v769_v15 = vpop.f32.mrb[2].mxu0 }
 0x12f   : > { %v809_v14 = vadd.f32 %v808_v13, %v767_v11  ;;  %v810_v16 = vpop.f32.mrb[2].mxu1  ;;  %v770_v18 = vpop.f32.mrb[3].mxu0 }
 0x130   : > { %v813_v17 = vadd.f32 %v807_v10, %v329_v8  ;;  %v811_v19 = vpop.f32.mrb[3].mxu1 }
 0x131   : > { %v814_v20 = vadd.f32 %v809_v14, %v330_v12 }
 0x132   : > { %815 = vst [vmem:[#allocation2] sm:$0xff] %v813_v17 }
 0x133   : > { %816 = vst [vmem:[#allocation2 + $0x8] sm:$0xff] %v814_v20 }
 0x139   : > { %v821_v27 = vld [vmem:[#allocation2] sm:$0xff] }
 0x13a   : > { %v822_v28 = vld [vmem:[#allocation2 + $0x8] sm:$0xff]  ;;  %v835_v33 = vmul.f32 %v828_v29, %v821_v27 }
 0x13b   : > { %v836_v34 = vmul.f32 %v832_v30, %v822_v28 }
 0x13c   : > { %v849_v35 = vadd.f32 %v842_v31, %v835_v33 }
 0x13d   : > { %v850_v36 = vadd.f32 %v846_v32, %v836_v34 }
 0x13e   : > { %v851_v37 = vmax.f32 %v849_v35, 0.0 }
 0x13f   : > { %v852_v38 = vmax.f32 %v850_v36, 0.0 }
 0x141   : > { %v1078_v39 = vpack.c.bf16 %v852_v38, %v851_v37 }
 0x143   : > { %861 = vst [vmem:[%s1376_s4] sm:$0xff] %v1078_v39 }
 0x144 PF: > { %s14_s17 = sadd.s32 1, %s1226_s17   ;;  %s1377_s15 = smov %s1222_s16 }
 0x145   : > { %p11_p8 = scmp.ge.s32.totalorder %s14_s17, 7   ;;  %s1378_s16 = smov %s1380_s18 }
 0x147   :  { %13 = sbr.rel (!%p11_p8) target bundleno = 2 (0x2), region = 83 }

// kernel: resnet18_forward.38
= control target key start
LH: loop header
LB: loop body
LE: loop exit
PB: predicated region body
PF: predicated region fallthrough
CT: control target
= control target key end

     0   :  { %s1598_s15 = smov 0   ;;  %s1600_s16 = smov 0   ;;  %s1918_s0 = inlined_call_operand.vmem [shape: bf16[8,2560], index: 0, kind: input, shape index: {}]   ;;  %s1919_s1 = inlined_call_operand.vmem [shape: bf16[2560,512], index: 1, kind: input, shape index: {}]   ;;  %s1920_s2 = inlined_call_operand.vmem [shape: f32[1,512], index: 2, kind: input, shape index: {}]   ;;  %s1921_s3 = inlined_call_operand.vmem [shape: f32[1,512], index: 3, kind: input, shape index: {}]   ;;  %s1922_s4 = inlined_call_operand.vmem [shape: bf16[8,512], index: 4, kind: output, shape index: {}]  }
   0x1   :  { %s1602_s17 = smov 0   ;;  %s1604_s18 = smov 0  }
   0x2   :  { %s1606_s19 = smov 0   ;;  %s1608_s20 = smov 0  }
   0x3   :  { %s1610_s21 = smov 0  }
   0x4 LB: > { %s26_s22 = sadd.s32 1, %s1562_s19  ;;  %s29_s23 = sadd.s32 1, %s1566_s20  ;;  %s1570_s21 = sphi %s1610_s21, %s14_s21   ;;  %s1566_s20 = sphi %s1608_s20, %s1928_s20   ;;  %s1562_s19 = sphi %s1606_s19, %s1927_s19   ;;  %s1558_s18 = sphi %s1604_s18, %s1926_s18   ;;  %s1554_s17 = sphi %s1602_s17, %s1925_s17   ;;  %s1550_s16 = sphi %s1600_s16, %s1924_s16   ;;  %s1546_s15 = sphi %s1598_s15, %s1923_s15  }
   0x5   : > { %p27_p0 = scmp.ge.s32.totalorder %s26_s22, 5  ;;  %p77_p1 = scmp.ne.s32.totalorder %s1550_s16, %s1546_s15 }
   0x6   : > { %p78_p2 = scmp.eq.s32.totalorder %s1570_s21, 0  ;;  %s70_s27 = sadd.s32 1, %s1550_s16 }
   0x7   : > { %s1930_s22 = smov (%p27_p0, %s26_s22), 0  ;;  %s1932_s23 = smov (!%p27_p0, %s29_s23), %s1566_s20 }
   0x8   : > { %p79_p3 = por %p78_p2, %p77_p1  ;;  %p31_p4 = scmp.ge.s32.totalorder %s1932_s23, 2 }
   0x9   : > { %s65_s24 = ssub.s32 %s1562_s19, %s1930_s22  ;;  %p1270_p6 = scmp.ge.s32.totalorder %s1570_s21, 10 }
   0xa   : > { %s1934_s23 = smov (%p31_p4, %s1932_s23), 0 }
   0xb   : > { %s66_s25 = ssub.s32 %s1566_s20, %s1934_s23  ;;  %183 = sbr.rel (%p1270_p6) target bundleno = 57 (0x39), region = 16 }
   0xc   : > { %s67_s26 = sor.u32 %s66_s25, %s65_s24 }
   0xd   : > { %p68_p5 = scmp.eq.s32.totalorder %s67_s26, 0 }
   0xf   : > { %s1649_s28 = scalar_select %p68_p5, %s1550_s16, %s70_s27  }
  0x12   : > { %199 = sbr.rel (!%p79_p3) target bundleno = 57 (0x39), region = 24  ;;  %s201_s29 = sand.u32 (%p79_p3), 1, %s1550_s16  }
  0x13   : > { %s1273_s30 = sshll.u32 (%p79_p3), %s1566_s20, 1  ;;  %s1271_s5 = sshll.u32 (%p79_p3), %s201_s29, 9 }
  0x14   : > { %s1357_s6 = sshll.u32 (%p79_p3), %s1562_s19, 8  ;;  %s1663_s12 = scalar_lea.vmem (%p79_p3), [#allocation3], %s1271_s5 }
  0x15   : > { %s207_s7 = sadd.s32 (%p79_p3), %s1357_s6, %s1273_s30 }
  0x16   : > { %s1275_s8 = sshll.u32 (%p79_p3), %s207_s7, 2 }
  0x17   : > { %s1658_s11 = scalar_lea.vmem (%p79_p3), %s1919_s1, %s1275_s8 }
  0x18   : > { %v363_v0 = vld [vmem:[%s1658_s11] sm:$0xff] (%p79_p3)  ;;  %v365_v1 = vld [vmem:[%s1658_s11 + $0x10] sm:$0xff] (%p79_p3) }
  0x19   : > { %v367_v2 = vld [vmem:[%s1658_s11 + $0x20] sm:$0xff]  ;;  %364 = vst [vmem:[%s1663_s12] sm:$0xff] %v363_v0  ;;  %366 = vst [vmem:[%s1663_s12 + $0x8] sm:$0xff] %v365_v1  ;;  %v369_v3 = vld [vmem:[%s1658_s11 + $0x30] sm:$0xff] }
  0x1a   : > { %368 = vst [vmem:[%s1663_s12 + $0x10] sm:$0xff] %v367_v2  ;;  %v371_v4 = vld [vmem:[%s1658_s11 + $0x40] sm:$0xff]  ;;  %v373_v5 = vld [vmem:[%s1658_s11 + $0x50] sm:$0xff]  ;;  %370 = vst [vmem:[%s1663_s12 + $0x18] sm:$0xff] %v369_v3 }
  0x1b   : > { %372 = vst [vmem:[%s1663_s12 + $0x20] sm:$0xff] %v371_v4  ;;  %374 = vst [vmem:[%s1663_s12 + $0x28] sm:$0xff] %v373_v5  ;;  %v375_v6 = vld [vmem:[%s1658_s11 + $0x60] sm:$0xff]  ;;  %v377_v7 = vld [vmem:[%s1658_s11 + $0x70] sm:$0xff] }
  0x1c   : > { %v379_v8 = vld [vmem:[%s1658_s11 + $0x80] sm:$0xff]  ;;  %376 = vst [vmem:[%s1663_s12 + $0x30] sm:$0xff] %v375_v6  ;;  %378 = vst [vmem:[%s1663_s12 + $0x38] sm:$0xff] %v377_v7  ;;  %v381_v9 = vld [vmem:[%s1658_s11 + $0x90] sm:$0xff] }
  0x1d   : > { %380 = vst [vmem:[%s1663_s12 + $0x40] sm:$0xff] %v379_v8  ;;  %v383_v10 = vld [vmem:[%s1658_s11 + $0xa0] sm:$0xff]  ;;  %v385_v11 = vld [vmem:[%s1658_s11 + $0xb0] sm:$0xff]  ;;  %382 = vst [vmem:[%s1663_s12 + $0x48] sm:$0xff] %v381_v9 }
  0x1e   : > { %384 = vst [vmem:[%s1663_s12 + $0x50] sm:$0xff] %v383_v10  ;;  %386 = vst [vmem:[%s1663_s12 + $0x58] sm:$0xff] %v385_v11  ;;  %v387_v12 = vld [vmem:[%s1658_s11 + $0xc0] sm:$0xff]  ;;  %v389_v13 = vld [vmem:[%s1658_s11 + $0xd0] sm:$0xff] }
  0x1f   : > { %v391_v14 = vld [vmem:[%s1658_s11 + $0xe0] sm:$0xff]  ;;  %388 = vst [vmem:[%s1663_s12 + $0x60] sm:$0xff] %v387_v12  ;;  %390 = vst [vmem:[%s1663_s12 + $0x68] sm:$0xff] %v389_v13  ;;  %v393_v15 = vld [vmem:[%s1658_s11 + $0xf0] sm:$0xff] }
  0x20   : > { %392 = vst [vmem:[%s1663_s12 + $0x70] sm:$0xff] %v391_v14  ;;  %v395_v16 = vld [vmem:[%s1658_s11 + $0x100] sm:$0xff]  ;;  %v397_v17 = vld [vmem:[%s1658_s11 + $0x110] sm:$0xff]  ;;  %394 = vst [vmem:[%s1663_s12 + $0x78] sm:$0xff] %v393_v15 }
  0x21   : > { %396 = vst [vmem:[%s1663_s12 + $0x80] sm:$0xff] %v395_v16  ;;  %398 = vst [vmem:[%s1663_s12 + $0x88] sm:$0xff] %v397_v17  ;;  %v399_v18 = vld [vmem:[%s1658_s11 + $0x120] sm:$0xff]  ;;  %v401_v19 = vld [vmem:[%s1658_s11 + $0x130] sm:$0xff] }
  0x22   : > { %v403_v20 = vld [vmem:[%s1658_s11 + $0x140] sm:$0xff]  ;;  %400 = vst [vmem:[%s1663_s12 + $0x90] sm:$0xff] %v399_v18  ;;  %402 = vst [vmem:[%s1663_s12 + $0x98] sm:$0xff] %v401_v19  ;;  %v405_v21 = vld [vmem:[%s1658_s11 + $0x150] sm:$0xff] }
  0x23   : > { %404 = vst [vmem:[%s1663_s12 + $0xa0] sm:$0xff] %v403_v20  ;;  %v407_v22 = vld [vmem:[%s1658_s11 + $0x160] sm:$0xff]  ;;  %v409_v23 = vld [vmem:[%s1658_s11 + $0x170] sm:$0xff]  ;;  %406 = vst [vmem:[%s1663_s12 + $0xa8] sm:$0xff] %v405_v21 }
  0x24   : > { %408 = vst [vmem:[%s1663_s12 + $0xb0] sm:$0xff] %v407_v22  ;;  %410 = vst [vmem:[%s1663_s12 + $0xb8] sm:$0xff] %v409_v23  ;;  %v411_v24 = vld [vmem:[%s1658_s11 + $0x180] sm:$0xff]  ;;  %v413_v25 = vld [vmem:[%s1658_s11 + $0x190] sm:$0xff] }
  0x25   : > { %v415_v26 = vld [vmem:[%s1658_s11 + $0x1a0] sm:$0xff]  ;;  %412 = vst [vmem:[%s1663_s12 + $0xc0] sm:$0xff] %v411_v24  ;;  %414 = vst [vmem:[%s1663_s12 + $0xc8] sm:$0xff] %v413_v25  ;;  %v417_v27 = vld [vmem:[%s1658_s11 + $0x1b0] sm:$0xff] }
  0x26   : > { %416 = vst [vmem:[%s1663_s12 + $0xd0] sm:$0xff] %v415_v26  ;;  %v419_v28 = vld [vmem:[%s1658_s11 + $0x1c0] sm:$0xff]  ;;  %v421_v29 = vld [vmem:[%s1658_s11 + $0x1d0] sm:$0xff]  ;;  %418 = vst [vmem:[%s1663_s12 + $0xd8] sm:$0xff] %v417_v27 }
  0x27   : > { %420 = vst [vmem:[%s1663_s12 + $0xe0] sm:$0xff] %v419_v28  ;;  %422 = vst [vmem:[%s1663_s12 + $0xe8] sm:$0xff] %v421_v29  ;;  %v423_v30 = vld [vmem:[%s1658_s11 + $0x1e0] sm:$0xff]  ;;  %v425_v31 = vld [vmem:[%s1658_s11 + $0x1f0] sm:$0xff] }
  0x28   : > { %v427_v32 = vld [vmem:[%s1658_s11 + $0x200] sm:$0xff]  ;;  %424 = vst [vmem:[%s1663_s12 + $0xf0] sm:$0xff] %v423_v30  ;;  %426 = vst [vmem:[%s1663_s12 + $0xf8] sm:$0xff] %v425_v31  ;;  %v429_v33 = vld [vmem:[%s1658_s11 + $0x210] sm:$0xff] }
  0x29   : > { %428 = vst [vmem:[%s1663_s12 + $0x100] sm:$0xff] %v427_v32  ;;  %v431_v34 = vld [vmem:[%s1658_s11 + $0x220] sm:$0xff]  ;;  %v433_v35 = vld [vmem:[%s1658_s11 + $0x230] sm:$0xff]  ;;  %430 = vst [vmem:[%s1663_s12 + $0x108] sm:$0xff] %v429_v33 }
  0x2a   : > { %432 = vst [vmem:[%s1663_s12 + $0x110] sm:$0xff] %v431_v34  ;;  %434 = vst [vmem:[%s1663_s12 + $0x118] sm:$0xff] %v433_v35  ;;  %v435_v36 = vld [vmem:[%s1658_s11 + $0x240] sm:$0xff]  ;;  %v437_v37 = vld [vmem:[%s1658_s11 + $0x250] sm:$0xff] }
  0x2b   : > { %v439_v38 = vld [vmem:[%s1658_s11 + $0x260] sm:$0xff]  ;;  %436 = vst [vmem:[%s1663_s12 + $0x120] sm:$0xff] %v435_v36  ;;  %438 = vst [vmem:[%s1663_s12 + $0x128] sm:$0xff] %v437_v37  ;;  %v441_v39 = vld [vmem:[%s1658_s11 + $0x270] sm:$0xff] }
  0x2c   : > { %440 = vst [vmem:[%s1663_s12 + $0x130] sm:$0xff] %v439_v38  ;;  %v443_v40 = vld [vmem:[%s1658_s11 + $0x280] sm:$0xff]  ;;  %v445_v41 = vld [vmem:[%s1658_s11 + $0x290] sm:$0xff]  ;;  %442 = vst [vmem:[%s1663_s12 + $0x138] sm:$0xff] %v441_v39 }
  0x2d   : > { %444 = vst [vmem:[%s1663_s12 + $0x140] sm:$0xff] %v443_v40  ;;  %446 = vst [vmem:[%s1663_s12 + $0x148] sm:$0xff] %v445_v41  ;;  %v447_v42 = vld [vmem:[%s1658_s11 + $0x2a0] sm:$0xff]  ;;  %v449_v43 = vld [vmem:[%s1658_s11 + $0x2b0] sm:$0xff] }
  0x2e   : > { %v451_v44 = vld [vmem:[%s1658_s11 + $0x2c0] sm:$0xff]  ;;  %448 = vst [vmem:[%s1663_s12 + $0x150] sm:$0xff] %v447_v42  ;;  %450 = vst [vmem:[%s1663_s12 + $0x158] sm:$0xff] %v449_v43  ;;  %v453_v45 = vld [vmem:[%s1658_s11 + $0x2d0] sm:$0xff] }
  0x2f   : > { %452 = vst [vmem:[%s1663_s12 + $0x160] sm:$0xff] %v451_v44  ;;  %v455_v46 = vld [vmem:[%s1658_s11 + $0x2e0] sm:$0xff]  ;;  %v457_v47 = vld [vmem:[%s1658_s11 + $0x2f0] sm:$0xff]  ;;  %454 = vst [vmem:[%s1663_s12 + $0x168] sm:$0xff] %v453_v45 }
  0x30   : > { %456 = vst [vmem:[%s1663_s12 + $0x170] sm:$0xff] %v455_v46  ;;  %458 = vst [vmem:[%s1663_s12 + $0x178] sm:$0xff] %v457_v47  ;;  %v459_v48 = vld [vmem:[%s1658_s11 + $0x300] sm:$0xff]  ;;  %v461_v49 = vld [vmem:[%s1658_s11 + $0x310] sm:$0xff] }
  0x31   : > { %v463_v50 = vld [vmem:[%s1658_s11 + $0x320] sm:$0xff]  ;;  %460 = vst [vmem:[%s1663_s12 + $0x180] sm:$0xff] %v459_v48  ;;  %462 = vst [vmem:[%s1663_s12 + $0x188] sm:$0xff] %v461_v49  ;;  %v465_v51 = vld [vmem:[%s1658_s11 + $0x330] sm:$0xff] }
  0x32   : > { %464 = vst [vmem:[%s1663_s12 + $0x190] sm:$0xff] %v463_v50  ;;  %v467_v52 = vld [vmem:[%s1658_s11 + $0x340] sm:$0xff]  ;;  %v469_v53 = vld [vmem:[%s1658_s11 + $0x350] sm:$0xff]  ;;  %466 = vst [vmem:[%s1663_s12 + $0x198] sm:$0xff] %v465_v51 }
  0x33   : > { %468 = vst [vmem:[%s1663_s12 + $0x1a0] sm:$0xff] %v467_v52  ;;  %470 = vst [vmem:[%s1663_s12 + $0x1a8] sm:$0xff] %v469_v53  ;;  %v471_v54 = vld [vmem:[%s1658_s11 + $0x360] sm:$0xff]  ;;  %v473_v55 = vld [vmem:[%s1658_s11 + $0x370] sm:$0xff] }
  0x34   : > { %v475_v56 = vld [vmem:[%s1658_s11 + $0x380] sm:$0xff]  ;;  %472 = vst [vmem:[%s1663_s12 + $0x1b0] sm:$0xff] %v471_v54  ;;  %474 = vst [vmem:[%s1663_s12 + $0x1b8] sm:$0xff] %v473_v55  ;;  %v477_v57 = vld [vmem:[%s1658_s11 + $0x390] sm:$0xff] }
  0x35   : > { %476 = vst [vmem:[%s1663_s12 + $0x1c0] sm:$0xff] %v475_v56  ;;  %v479_v58 = vld [vmem:[%s1658_s11 + $0x3a0] sm:$0xff]  ;;  %v481_v59 = vld [vmem:[%s1658_s11 + $0x3b0] sm:$0xff]  ;;  %478 = vst [vmem:[%s1663_s12 + $0x1c8] sm:$0xff] %v477_v57 }
  0x36   : > { %480 = vst [vmem:[%s1663_s12 + $0x1d0] sm:$0xff] %v479_v58  ;;  %482 = vst [vmem:[%s1663_s12 + $0x1d8] sm:$0xff] %v481_v59  ;;  %v483_v60 = vld [vmem:[%s1658_s11 + $0x3c0] sm:$0xff]  ;;  %v485_v61 = vld [vmem:[%s1658_s11 + $0x3d0] sm:$0xff] }
  0x37   : > { %v487_v62 = vld [vmem:[%s1658_s11 + $0x3e0] sm:$0xff]  ;;  %484 = vst [vmem:[%s1663_s12 + $0x1e0] sm:$0xff] %v483_v60  ;;  %486 = vst [vmem:[%s1663_s12 + $0x1e8] sm:$0xff] %v485_v61  ;;  %v489_v63 = vld [vmem:[%s1658_s11 + $0x3f0] sm:$0xff] }
  0x38   : > { %488 = vst [vmem:[%s1663_s12 + $0x1f0] sm:$0xff] %v487_v62  ;;  %490 = vst [vmem:[%s1663_s12 + $0x1f8] sm:$0xff] %v489_v63 }
  0x39 PF: > { %p1276_p7 = scmp.ge.s32.totalorder %s1570_s21, 1  ;;  %p511_p8 = scmp.lt.s32.totalorder %s1570_s21, 11 }
  0x3b   : > { %p512_p9 = pnand %p1276_p7, %p511_p8 }
  0x3c   : > { %s518_s13 = sand.u32 (!%p512_p9), 1, %s1546_s15   ;;  %s1278_s14 = sshll.u32 (!%p512_p9), %s1554_s17, 2 }
  0x3d   : > { %515 = sbr.rel (%p512_p9) target bundleno = 378 (0x17a), region = 70  ;;  %s1277_s24 = sshll.u32 (!%p512_p9), %s518_s13, 9 }
  0x3e   : > { %p567_p10 = scmp.lt.s32.totalorder (!%p512_p9), %s1278_s14, 19  ;;  %s1280_s25 = sshll.u32 (!%p512_p9), %s1558_s18, 1 }
  0x3f   : > { %p577_p11 = scmp.lt.s32.totalorder (!%p512_p9), %s1280_s25, 3  ;;  %s1816_s13 = scalar_lea.vmem (!%p512_p9), [#allocation3], %s1277_s24 }
  0x40   : > { %p1284_p12 = scmp.ne.s32.totalorder (!%p512_p9), %s1554_s17, 0 }
  0x44   : > { %s1936_s14 = smov (!%p567_p10, %s1278_s14), 19  ;;  %s1938_s25 = smov (!%p577_p11, %s1280_s25), 3 }
  0x45   : > { %s1279_s26 = sshll.u32 %s1936_s14, 2  ;;  %s579_s15 = scalar_lea.vmem %s1920_s2, %s1938_s25  ;;  %v1572_v0 = vmov (!%p1284_p12), 0.0  }
  0x46   : > { %s1798_s30 = scalar_lea.vmem %s1918_s0, %s1279_s26  ;;  %s584_s18 = scalar_lea.vmem %s1921_s3, %s1938_s25  ;;  %600 = vst [vmem:[#allocation2] sm:$0xff] (!%p1284_p12), %v1572_v0  ;;  %601 = vst [vmem:[#allocation2 + $0x8] sm:$0xff] (!%p1284_p12), %v1572_v0 }
  0x47   : > { %s1283_s9 = sshll.u32 %s1938_s25, 2  ;;  %599 = sbr.rel (%p1284_p12) target bundleno = 78 (0x4e), region = 78 }
  0x48   : > { %s1814_s12 = scalar_lea.vmem %s1922_s4, %s1283_s9 }
  0x4e PF: > { %v1416_v1 = vld [vmem:[%s1816_s13 + $0x4] ss:$8 sps:$4 sm:$0xff]   ;;  %v1420_v3 = vld [vmem:[%s1816_s13] ss:$8 sps:$4 sm:$0xff]   ;;  %v1422_v5 = vld [vmem:[%s1816_s13 + $0x14] ss:$8 sps:$4 sm:$0xff]  }
  0x4f   : > { %v1418_v2 = vld [vmem:[%s1816_s13 + $0x104] ss:$8 sps:$4 sm:$0xff]   ;;  %1004 = vmatprep.subr.bf16.mxu0 %v1416_v1  ;;  %v1421_v4 = vld [vmem:[%s1816_s13 + $0x100] ss:$8 sps:$4 sm:$0xff]   ;;  %v1424_v6 = vld [vmem:[%s1816_s13 + $0x114] ss:$8 sps:$4 sm:$0xff]  }
  0x50   : > { %1045 = vmatprep.subr.bf16.mxu1 %v1418_v2  ;;  %1005 = vmatpush1.bf16.msra.mxu0 %v1420_v3  ;;  %v1426_v7 = vld [vmem:[%s1816_s13 + $0x10] ss:$8 sps:$4 sm:$0xff]   ;;  %v1428_v9 = vld [vmem:[%s1816_s13 + $0x24] ss:$8 sps:$4 sm:$0xff]   ;;  %v1432_v11 = vld [vmem:[%s1816_s13 + $0x20] ss:$8 sps:$4 sm:$0xff]  }
  0x51   : > { %1046 = vmatpush1.bf16.msra.mxu1 %v1421_v4  ;;  %1006 = vmatprep.subr.bf16.mxu0 %v1422_v5  ;;  %v1427_v8 = vld [vmem:[%s1816_s13 + $0x110] ss:$8 sps:$4 sm:$0xff]   ;;  %v1430_v10 = vld [vmem:[%s1816_s13 + $0x124] ss:$8 sps:$4 sm:$0xff]   ;;  %v1433_v12 = vld [vmem:[%s1816_s13 + $0x120] ss:$8 sps:$4 sm:$0xff]  }
  0x52   : > { %1047 = vmatprep.subr.bf16.mxu1 %v1424_v6  ;;  %v1434_v13 = vld [vmem:[%s1816_s13 + $0x34] ss:$8 sps:$4 sm:$0xff]   ;;  %v1438_v15 = vld [vmem:[%s1816_s13 + $0x30] ss:$8 sps:$4 sm:$0xff]   ;;  %v1440_v17 = vld [vmem:[%s1816_s13 + $0x44] ss:$8 sps:$4 sm:$0xff]  }
  0x53   : > { %v1436_v14 = vld [vmem:[%s1816_s13 + $0x134] ss:$8 sps:$4 sm:$0xff]   ;;  %v1439_v16 = vld [vmem:[%s1816_s13 + $0x130] ss:$8 sps:$4 sm:$0xff]   ;;  %v1442_v18 = vld [vmem:[%s1816_s13 + $0x144] ss:$8 sps:$4 sm:$0xff]  }
  0x54   : > { %1007 = vmatpush1.bf16.msra.mxu0 %v1426_v7  ;;  %v1444_v19 = vld [vmem:[%s1816_s13 + $0x40] ss:$8 sps:$4 sm:$0xff]   ;;  %v1446_v21 = vld [vmem:[%s1816_s13 + $0x54] ss:$8 sps:$4 sm:$0xff]   ;;  %v1450_v23 = vld [vmem:[%s1816_s13 + $0x50] ss:$8 sps:$4 sm:$0xff]  }
  0x55   : > { %1048 = vmatpush1.bf16.msra.mxu1 %v1427_v8  ;;  %1008 = vmatprep.subr.bf16.mxu0 %v1428_v9  ;;  %v1445_v20 = vld [vmem:[%s1816_s13 + $0x140] ss:$8 sps:$4 sm:$0xff]   ;;  %v1448_v22 = vld [vmem:[%s1816_s13 + $0x154] ss:$8 sps:$4 sm:$0xff]   ;;  %v1451_v24 = vld [vmem:[%s1816_s13 + $0x150] ss:$8 sps:$4 sm:$0xff]  }
  0x56   : > { %1049 = vmatprep.subr.bf16.mxu1 %v1430_v10  ;;  %v1452_v25 = vld [vmem:[%s1816_s13 + $0x64] ss:$8 sps:$4 sm:$0xff]   ;;  %v1456_v27 = vld [vmem:[%s1816_s13 + $0x60] ss:$8 sps:$4 sm:$0xff]   ;;  %v1458_v29 = vld [vmem:[%s1816_s13 + $0x74] ss:$8 sps:$4 sm:$0xff]  }
  0x57   : > { %v1454_v26 = vld [vmem:[%s1816_s13 + $0x164] ss:$8 sps:$4 sm:$0xff]   ;;  %v1457_v28 = vld [vmem:[%s1816_s13 + $0x160] ss:$8 sps:$4 sm:$0xff]   ;;  %v1460_v30 = vld [vmem:[%s1816_s13 + $0x174] ss:$8 sps:$4 sm:$0xff]  }
  0x58   : > { %1009 = vmatpush1.bf16.msra.mxu0 %v1432_v11  ;;  %v1462_v31 = vld [vmem:[%s1816_s13 + $0x70] ss:$8 sps:$4 sm:$0xff]   ;;  %v1464_v33 = vld [vmem:[%s1816_s13 + $0x84] ss:$8 sps:$4 sm:$0xff]   ;;  %v1468_v35 = vld [vmem:[%s1816_s13 + $0x80] ss:$8 sps:$4 sm:$0xff]  }
  0x59   : > { %1050 = vmatpush1.bf16.msra.mxu1 %v1433_v12  ;;  %1010 = vmatprep.subr.bf16.mxu0 %v1434_v13  ;;  %v1463_v32 = vld [vmem:[%s1816_s13 + $0x170] ss:$8 sps:$4 sm:$0xff]   ;;  %v1466_v34 = vld [vmem:[%s1816_s13 + $0x184] ss:$8 sps:$4 sm:$0xff]   ;;  %v1469_v36 = vld [vmem:[%s1816_s13 + $0x180] ss:$8 sps:$4 sm:$0xff]  }
  0x5a   : > { %1051 = vmatprep.subr.bf16.mxu1 %v1436_v14  ;;  %v1470_v37 = vld [vmem:[%s1816_s13 + $0x94] ss:$8 sps:$4 sm:$0xff]   ;;  %v1474_v39 = vld [vmem:[%s1816_s13 + $0x90] ss:$8 sps:$4 sm:$0xff]   ;;  %v1476_v41 = vld [vmem:[%s1816_s13 + $0xa4] ss:$8 sps:$4 sm:$0xff]  }
  0x5b   : > { %v1472_v38 = vld [vmem:[%s1816_s13 + $0x194] ss:$8 sps:$4 sm:$0xff]   ;;  %v1475_v40 = vld [vmem:[%s1816_s13 + $0x190] ss:$8 sps:$4 sm:$0xff]   ;;  %v1478_v42 = vld [vmem:[%s1816_s13 + $0x1a4] ss:$8 sps:$4 sm:$0xff]  }
  0x5c   : > { %1011 = vmatpush1.bf16.msra.mxu0 %v1438_v15  ;;  %v1480_v43 = vld [vmem:[%s1816_s13 + $0xa0] ss:$8 sps:$4 sm:$0xff]   ;;  %v1482_v45 = vld [vmem:[%s1816_s13 + $0xb4] ss:$8 sps:$4 sm:$0xff]   ;;  %v1486_v50 = vld [vmem:[%s1816_s13 + $0xb0] ss:$8 sps:$4 sm:$0xff]  }
  0x5d   : > { %1052 = vmatpush1.bf16.msra.mxu1 %v1439_v16  ;;  %1012 = vmatprep.subr.bf16.mxu0 %v1440_v17  ;;  %v1481_v44 = vld [vmem:[%s1816_s13 + $0x1a0] ss:$8 sps:$4 sm:$0xff]   ;;  %v1484_v46 = vld [vmem:[%s1816_s13 + $0x1b4] ss:$8 sps:$4 sm:$0xff]   ;;  %v1487_v51 = vld [vmem:[%s1816_s13 + $0x1b0] ss:$8 sps:$4 sm:$0xff]  }
  0x5e   : > { %1053 = vmatprep.subr.bf16.mxu1 %v1442_v18  ;;  %v604_v47 = vld [vmem:[%s1798_s30] sm:$0xff]  ;;  %v605_v49 = vld [vmem:[%s1798_s30 + $0x8] sm:$0xff]  ;;  %v1488_v53 = vld [vmem:[%s1816_s13 + $0xc4] ss:$8 sps:$4 sm:$0xff]   ;;  %p1353_p13 = scmp.ne.s32.totalorder %s1554_s17, 4 }
  0x5f   : > { %v1286_v48 = vcombine.high %v604_v47, %v604_v47  ;;  %v1288_v52 = vcombine.high %v605_v49, %v605_v49  ;;  %v1490_v54 = vld [vmem:[%s1816_s13 + $0x1c4] ss:$8 sps:$4 sm:$0xff]   ;;  %v1492_v55 = vld [vmem:[%s1816_s13 + $0xc0] ss:$8 sps:$4 sm:$0xff]   ;;  %v1494_v57 = vld [vmem:[%s1816_s13 + $0xd4] ss:$8 sps:$4 sm:$0xff]   ;;  %v1285_v5 = vcombine.low %v604_v47, %v604_v47  ;;  %v1287_v6 = vcombine.low %v605_v49, %v605_v49 }
  0x60   : > { %1013 = vmatpush1.bf16.msra.mxu0 %v1444_v19  ;;  %v1493_v56 = vld [vmem:[%s1816_s13 + $0x1c0] ss:$8 sps:$4 sm:$0xff]   ;;  %v1496_v58 = vld [vmem:[%s1816_s13 + $0x1d4] ss:$8 sps:$4 sm:$0xff]   ;;  %v1498_v59 = vld [vmem:[%s1816_s13 + $0xd0] ss:$8 sps:$4 sm:$0xff]  }
  0x61   : > { %1054 = vmatpush1.bf16.msra.mxu1 %v1445_v20  ;;  %1014 = vmatprep.subr.bf16.mxu0 %v1446_v21  ;;  %v1499_v60 = vld [vmem:[%s1816_s13 + $0x1d0] ss:$8 sps:$4 sm:$0xff]   ;;  %v1500_v61 = vld [vmem:[%s1816_s13 + $0xe4] ss:$8 sps:$4 sm:$0xff]   ;;  %v1504_v63 = vld [vmem:[%s1816_s13 + $0xe0] ss:$8 sps:$4 sm:$0xff]   ;;  %v1098_v21 = vlaneseq (!%p1353_p13) }
  0x62   : > { %1055 = vmatprep.subr.bf16.mxu1 %v1448_v22  ;;  %1036 = vmatprep.mubr.bf16.mxu0 %v1286_v48  ;;  %v1502_v62 = vld [vmem:[%s1816_s13 + $0x1e4] ss:$8 sps:$4 sm:$0xff]   ;;  %v1505_v0 = vld [vmem:[%s1816_s13 + $0x1e0] ss:$8 sps:$4 sm:$0xff]   ;;  %v1506_v1 = vld [vmem:[%s1816_s13 + $0xf4] ss:$8 sps:$4 sm:$0xff]  }
  0x63   : > { %1077 = vmatprep.mubr.bf16.mxu1 %v1288_v52  ;;  %v1508_v2 = vld [vmem:[%s1816_s13 + $0x1f4] ss:$8 sps:$4 sm:$0xff]   ;;  %v1510_v3 = vld [vmem:[%s1816_s13 + $0xf0] ss:$8 sps:$4 sm:$0xff]   ;;  %v1099_v22 = vshrl.u32 (!%p1353_p13), %v1098_v21, 7 }
  0x64   : > { %1015 = vmatpush1.bf16.msra.mxu0 %v1450_v23  ;;  %v1511_v4 = vld [vmem:[%s1816_s13 + $0x1f0] ss:$8 sps:$4 sm:$0xff]  }
  0x65   : > { %1056 = vmatpush1.bf16.msra.mxu1 %v1451_v24  ;;  %1016 = vmatprep.subr.bf16.mxu0 %v1452_v25  ;;  %v602_v8 = vld [vmem:[#allocation2] sm:$0xff]  ;;  %v603_v12 = vld [vmem:[#allocation2 + $0x8] sm:$0xff]  ;;  %v1100_v25 = vsub.s32 (!%p1353_p13), 0, %v1099_v22 }
  0x66   : > { %1057 = vmatprep.subr.bf16.mxu1 %v1454_v26  ;;  %v1096_v23 = vld [vmem:[%s579_s15] sm:$0x3] (!%p1353_p13)  ;;  %v1104_v26 = vsub.s32 (!%p1353_p13), 1, %v1099_v22 }
  0x67   : > { %v1110_v24 = vld [vmem:[%s584_s18] sm:$0x3] (!%p1353_p13) }
  0x68   : > { %1017 = vmatpush1.bf16.msra.mxu0 %v1456_v27 }
  0x69   : > { %1058 = vmatpush1.bf16.msra.mxu1 %v1457_v28  ;;  %1018 = vmatprep.subr.bf16.mxu0 %v1458_v29  ;;  %v1101_v29 = vrot.slane (!%p1353_p13), %v1096_v23, %v1100_v25 }
  0x6a   : > { %1059 = vmatprep.subr.bf16.mxu1 %v1460_v30  ;;  %v1105_v30 = vrot.slane (!%p1353_p13), %v1096_v23, %v1104_v26 }
  0x6c   : > { %1019 = vmatpush1.bf16.msra.mxu0 %v1462_v31  ;;  %v1115_v31 = vrot.slane (!%p1353_p13), %v1110_v24, %v1100_v25 }
  0x6d   : > { %1060 = vmatpush1.bf16.msra.mxu1 %v1463_v32  ;;  %1020 = vmatprep.subr.bf16.mxu0 %v1464_v33  ;;  %v1119_v32 = vrot.slane (!%p1353_p13), %v1110_v24, %v1104_v26 }
  0x6e   : > { %1061 = vmatprep.subr.bf16.mxu1 %v1466_v34 }
  0x70   : > { %1021 = vmatpush1.bf16.msra.mxu0 %v1468_v35 }
  0x71   : > { %1062 = vmatpush1.bf16.msra.mxu1 %v1469_v36  ;;  %1022 = vmatprep.subr.bf16.mxu0 %v1470_v37 }
  0x72   : > { %1063 = vmatprep.subr.bf16.mxu1 %v1472_v38 }
  0x74   : > { %1023 = vmatpush1.bf16.msra.mxu0 %v1474_v39 }
  0x75   : > { %1064 = vmatpush1.bf16.msra.mxu1 %v1475_v40  ;;  %1024 = vmatprep.subr.bf16.mxu0 %v1476_v41 }
  0x76   : > { %1065 = vmatprep.subr.bf16.mxu1 %v1478_v42 }
  0x78   : > { %1025 = vmatpush1.bf16.msra.mxu0 %v1480_v43 }
  0x79   : > { %1066 = vmatpush1.bf16.msra.mxu1 %v1481_v44  ;;  %1026 = vmatprep.subr.bf16.mxu0 %v1482_v45 }
  0x7a   : > { %1067 = vmatprep.subr.bf16.mxu1 %v1484_v46 }
  0x7c   : > { %1027 = vmatpush1.bf16.msra.mxu0 %v1486_v50 }
  0x7d   : > { %1068 = vmatpush1.bf16.msra.mxu1 %v1487_v51  ;;  %1028 = vmatprep.subr.bf16.mxu0 %v1488_v53 }
  0x7e   : > { %1069 = vmatprep.subr.bf16.mxu1 %v1490_v54 }
  0x80   : > { %1029 = vmatpush1.bf16.msra.mxu0 %v1492_v55 }
  0x81   : > { %1070 = vmatpush1.bf16.msra.mxu1 %v1493_v56  ;;  %1030 = vmatprep.subr.bf16.mxu0 %v1494_v57 }
  0x82   : > { %1071 = vmatprep.subr.bf16.mxu1 %v1496_v58 }
  0x84   : > { %1031 = vmatpush1.bf16.msra.mxu0 %v1498_v59 }
  0x85   : > { %1072 = vmatpush1.bf16.msra.mxu1 %v1499_v60  ;;  %1032 = vmatprep.subr.bf16.mxu0 %v1500_v61 }
  0x86   : > { %1073 = vmatprep.subr.bf16.mxu1 %v1502_v62 }
  0x88   : > { %1033 = vmatpush1.bf16.msra.mxu0 %v1504_v63 }
  0x89   : > { %1074 = vmatpush1.bf16.msra.mxu1 %v1505_v0  ;;  %1034 = vmatprep.subr.bf16.mxu0 %v1506_v1 }
  0x8a   : > { %1075 = vmatprep.subr.bf16.mxu1 %v1508_v2 }
  0x8c   : > { %1035 = vmatpush1.bf16.msra.mxu0 %v1510_v3 }
  0x8d   : > { %1076 = vmatpush1.bf16.msra.mxu1 %v1511_v4 }
  0x8f   : > { %1037 = vmatmul.mubr.bf16.vlgmr.msra.gmra.mrb[0].mxu0 %v1285_v5 }
  0x90   : > { %1078 = vmatmul.mubr.bf16.vlgmr.msra.gmra.mrb[0].mxu1 %v1287_v6 }
 0x162   : > { %v1038_v7 = vpop.f32.mrb[0].mxu0 }
 0x163   : > { %v1079_v9 = vpop.f32.mrb[0].mxu1  ;;  %v1040_v11 = vpop.f32.mrb[1].mxu0  ;;  %1093 = sbr.rel (%p1353_p13) target bundleno = 378 (0x17a), region = 82 }
 0x164   : > { %v1080_v10 = vadd.f32 %v1079_v9, %v1038_v7  ;;  %v1081_v13 = vpop.f32.mrb[1].mxu1  ;;  %v1042_v15 = vpop.f32.mrb[2].mxu0 }
 0x165   : > { %v1082_v14 = vadd.f32 %v1081_v13, %v1040_v11  ;;  %v1083_v16 = vpop.f32.mrb[2].mxu1  ;;  %v1043_v18 = vpop.f32.mrb[3].mxu0 }
 0x166   : > { %v1086_v17 = vadd.f32 %v1080_v10, %v602_v8  ;;  %v1084_v19 = vpop.f32.mrb[3].mxu1 }
 0x167   : > { %v1087_v20 = vadd.f32 %v1082_v14, %v603_v12 }
 0x168   : > { %1088 = vst [vmem:[#allocation2] sm:$0xff] %v1086_v17 }
 0x169   : > { %1089 = vst [vmem:[#allocation2 + $0x8] sm:$0xff] %v1087_v20 }
 0x16f   : > { %v1094_v27 = vld [vmem:[#allocation2] sm:$0xff] }
 0x170   : > { %v1095_v28 = vld [vmem:[#allocation2 + $0x8] sm:$0xff]  ;;  %v1108_v33 = vmul.f32 %v1101_v29, %v1094_v27 }
 0x171   : > { %v1109_v34 = vmul.f32 %v1105_v30, %v1095_v28 }
 0x172   : > { %v1122_v35 = vadd.f32 %v1115_v31, %v1108_v33 }
 0x173   : > { %v1123_v36 = vadd.f32 %v1119_v32, %v1109_v34 }
 0x174   : > { %v1124_v37 = vmax.f32 %v1122_v35, 0.0 }
 0x175   : > { %v1125_v38 = vmax.f32 %v1123_v36, 0.0 }
 0x177   : > { %v1358_v39 = vpack.c.bf16 %v1125_v38, %v1124_v37 }
 0x179   : > { %1134 = vst [vmem:[%s1814_s12] sm:$0xff] %v1358_v39 }
 0x17a PF: > { %s14_s21 = sadd.s32 1, %s1570_s21   ;;  %s1923_s15 = smov %s1550_s16 }
 0x17b   : > { %p11_p0 = scmp.ge.s32.totalorder %s14_s21, 12   ;;  %s1924_s16 = smov %s1649_s28 }
 0x17c   : > { %s1925_s17 = smov %s1562_s19  ;;  %s1926_s18 = smov %s1566_s20 }
 0x17d   : > { %s1927_s19 = smov %s1930_s22  ;;  %s1928_s20 = smov %s1934_s23 }
 0x17e   :  { %13 = sbr.rel (!%p11_p0) target bundleno = 4 (0x4), region = 126 }

// kernel: resnet18_forward.39
= control target key start
LH: loop header
LB: loop body
LE: loop exit
PB: predicated region body
PF: predicated region fallthrough
CT: control target
= control target key end

     0   :  { %s1103_s15 = smov 0   ;;  %s1105_s16 = smov 0   ;;  %s1285_s0 = inlined_call_operand.vmem [shape: bf16[8,256], index: 0, kind: input, shape index: {}]   ;;  %s1286_s1 = inlined_call_operand.vmem [shape: bf16[256,512], index: 1, kind: input, shape index: {}]   ;;  %s1287_s2 = inlined_call_operand.vmem [shape: f32[1,512], index: 2, kind: input, shape index: {}]   ;;  %s1288_s3 = inlined_call_operand.vmem [shape: f32[1,512], index: 3, kind: input, shape index: {}]   ;;  %s1289_s4 = inlined_call_operand.vmem [shape: bf16[8,512], index: 4, kind: output, shape index: {}]  }
   0x1   :  { %s1107_s17 = smov 0   ;;  %s1109_s18 = smov 0  }
   0x2   :  { %s1111_s19 = smov 0  }
   0x3 LB: > { %s29_s20 = sadd.s32 1, %s1072_s18  ;;  %p77_p1 = scmp.ne.s32.totalorder %s1064_s16, %s1060_s15  ;;  %s1076_s19 = sphi %s1111_s19, %s14_s19   ;;  %s1072_s18 = sphi %s1109_s18, %s1293_s18   ;;  %s1068_s17 = sphi %s1107_s17, %s1292_s17   ;;  %s1064_s16 = sphi %s1105_s16, %s1291_s16   ;;  %s1060_s15 = sphi %s1103_s15, %s1290_s15  }
   0x4   : > { %p31_p0 = scmp.ge.s32.totalorder %s29_s20, 2  ;;  %p78_p2 = scmp.eq.s32.totalorder %s1076_s19, 0 }
   0x5   : > { %s70_s22 = sadd.s32 1, %s1064_s16  ;;  %p899_p5 = scmp.ge.s32.totalorder %s1076_s19, 2 }
   0x6   : > { %s1295_s20 = smov (%p31_p0, %s29_s20), 0  ;;  %p79_p3 = por %p78_p2, %p77_p1 }
   0x7   : > { %s66_s21 = ssub.s32 %s1072_s18, %s1295_s20  ;;  %196 = sbr.rel (%p899_p5) target bundleno = 34 (0x22), region = 20 }
   0x8   : > { %p68_p4 = scmp.eq.s32.totalorder %s66_s21, 0 }
   0xa   : > { %s1138_s23 = scalar_select %p68_p4, %s1064_s16, %s70_s22  }
   0xe   : > { %199 = sbr.rel (!%p79_p3) target bundleno = 34 (0x22), region = 24  ;;  %s201_s24 = sand.u32 (%p79_p3), 1, %s1064_s16  }
   0xf   : > { %s946_s25 = sshll.u32 (%p79_p3), %s1072_s18, 3  ;;  %s900_s26 = sshll.u32 (%p79_p3), %s201_s24, 8 }
  0x10   : > { %s1146_s29 = scalar_lea.vmem (%p79_p3), %s1286_s1, %s946_s25  ;;  %s1151_s30 = scalar_lea.vmem (%p79_p3), [#allocation3], %s900_s26 }
  0x11   : > { %v299_v0 = vld [vmem:[%s1146_s29] sm:$0xff] (%p79_p3)  ;;  %v301_v1 = vld [vmem:[%s1146_s29 + $0x10] sm:$0xff] (%p79_p3) }
  0x12   : > { %v303_v2 = vld [vmem:[%s1146_s29 + $0x20] sm:$0xff] (%p79_p3)  ;;  %300 = vst [vmem:[%s1151_s30] sm:$0xff] (%p79_p3), %v299_v0  ;;  %302 = vst [vmem:[%s1151_s30 + $0x8] sm:$0xff] (%p79_p3), %v301_v1  ;;  %v305_v3 = vld [vmem:[%s1146_s29 + $0x30] sm:$0xff] (%p79_p3) }
  0x13   : > { %304 = vst [vmem:[%s1151_s30 + $0x10] sm:$0xff] (%p79_p3), %v303_v2  ;;  %v307_v4 = vld [vmem:[%s1146_s29 + $0x40] sm:$0xff] (%p79_p3)  ;;  %v309_v5 = vld [vmem:[%s1146_s29 + $0x50] sm:$0xff] (%p79_p3)  ;;  %306 = vst [vmem:[%s1151_s30 + $0x18] sm:$0xff] (%p79_p3), %v305_v3 }
  0x14   : > { %308 = vst [vmem:[%s1151_s30 + $0x20] sm:$0xff] (%p79_p3), %v307_v4  ;;  %310 = vst [vmem:[%s1151_s30 + $0x28] sm:$0xff] (%p79_p3), %v309_v5  ;;  %v311_v6 = vld [vmem:[%s1146_s29 + $0x60] sm:$0xff] (%p79_p3)  ;;  %v313_v7 = vld [vmem:[%s1146_s29 + $0x70] sm:$0xff] (%p79_p3) }
  0x15   : > { %v315_v8 = vld [vmem:[%s1146_s29 + $0x80] sm:$0xff]  ;;  %312 = vst [vmem:[%s1151_s30 + $0x30] sm:$0xff] %v311_v6  ;;  %314 = vst [vmem:[%s1151_s30 + $0x38] sm:$0xff] %v313_v7  ;;  %v317_v9 = vld [vmem:[%s1146_s29 + $0x90] sm:$0xff] }
  0x16   : > { %316 = vst [vmem:[%s1151_s30 + $0x40] sm:$0xff] %v315_v8  ;;  %v319_v10 = vld [vmem:[%s1146_s29 + $0xa0] sm:$0xff]  ;;  %v321_v11 = vld [vmem:[%s1146_s29 + $0xb0] sm:$0xff]  ;;  %318 = vst [vmem:[%s1151_s30 + $0x48] sm:$0xff] %v317_v9 }
  0x17   : > { %320 = vst [vmem:[%s1151_s30 + $0x50] sm:$0xff] %v319_v10  ;;  %322 = vst [vmem:[%s1151_s30 + $0x58] sm:$0xff] %v321_v11  ;;  %v323_v12 = vld [vmem:[%s1146_s29 + $0xc0] sm:$0xff]  ;;  %v325_v13 = vld [vmem:[%s1146_s29 + $0xd0] sm:$0xff] }
  0x18   : > { %v327_v14 = vld [vmem:[%s1146_s29 + $0xe0] sm:$0xff]  ;;  %324 = vst [vmem:[%s1151_s30 + $0x60] sm:$0xff] %v323_v12  ;;  %326 = vst [vmem:[%s1151_s30 + $0x68] sm:$0xff] %v325_v13  ;;  %v329_v15 = vld [vmem:[%s1146_s29 + $0xf0] sm:$0xff] }
  0x19   : > { %328 = vst [vmem:[%s1151_s30 + $0x70] sm:$0xff] %v327_v14  ;;  %v331_v16 = vld [vmem:[%s1146_s29 + $0x100] sm:$0xff]  ;;  %v333_v17 = vld [vmem:[%s1146_s29 + $0x110] sm:$0xff]  ;;  %330 = vst [vmem:[%s1151_s30 + $0x78] sm:$0xff] %v329_v15 }
  0x1a   : > { %332 = vst [vmem:[%s1151_s30 + $0x80] sm:$0xff] %v331_v16  ;;  %334 = vst [vmem:[%s1151_s30 + $0x88] sm:$0xff] %v333_v17  ;;  %v335_v18 = vld [vmem:[%s1146_s29 + $0x120] sm:$0xff]  ;;  %v337_v19 = vld [vmem:[%s1146_s29 + $0x130] sm:$0xff] }
  0x1b   : > { %v339_v20 = vld [vmem:[%s1146_s29 + $0x140] sm:$0xff]  ;;  %336 = vst [vmem:[%s1151_s30 + $0x90] sm:$0xff] %v335_v18  ;;  %338 = vst [vmem:[%s1151_s30 + $0x98] sm:$0xff] %v337_v19  ;;  %v341_v21 = vld [vmem:[%s1146_s29 + $0x150] sm:$0xff] }
  0x1c   : > { %340 = vst [vmem:[%s1151_s30 + $0xa0] sm:$0xff] %v339_v20  ;;  %v343_v22 = vld [vmem:[%s1146_s29 + $0x160] sm:$0xff]  ;;  %v345_v23 = vld [vmem:[%s1146_s29 + $0x170] sm:$0xff]  ;;  %342 = vst [vmem:[%s1151_s30 + $0xa8] sm:$0xff] %v341_v21 }
  0x1d   : > { %344 = vst [vmem:[%s1151_s30 + $0xb0] sm:$0xff] %v343_v22  ;;  %346 = vst [vmem:[%s1151_s30 + $0xb8] sm:$0xff] %v345_v23  ;;  %v347_v24 = vld [vmem:[%s1146_s29 + $0x180] sm:$0xff]  ;;  %v349_v25 = vld [vmem:[%s1146_s29 + $0x190] sm:$0xff] }
  0x1e   : > { %v351_v26 = vld [vmem:[%s1146_s29 + $0x1a0] sm:$0xff]  ;;  %348 = vst [vmem:[%s1151_s30 + $0xc0] sm:$0xff] %v347_v24  ;;  %350 = vst [vmem:[%s1151_s30 + $0xc8] sm:$0xff] %v349_v25  ;;  %v353_v27 = vld [vmem:[%s1146_s29 + $0x1b0] sm:$0xff] }
  0x1f   : > { %352 = vst [vmem:[%s1151_s30 + $0xd0] sm:$0xff] %v351_v26  ;;  %v355_v28 = vld [vmem:[%s1146_s29 + $0x1c0] sm:$0xff]  ;;  %v357_v29 = vld [vmem:[%s1146_s29 + $0x1d0] sm:$0xff]  ;;  %354 = vst [vmem:[%s1151_s30 + $0xd8] sm:$0xff] %v353_v27 }
  0x20   : > { %356 = vst [vmem:[%s1151_s30 + $0xe0] sm:$0xff] %v355_v28  ;;  %358 = vst [vmem:[%s1151_s30 + $0xe8] sm:$0xff] %v357_v29  ;;  %v359_v30 = vld [vmem:[%s1146_s29 + $0x1e0] sm:$0xff]  ;;  %v361_v31 = vld [vmem:[%s1146_s29 + $0x1f0] sm:$0xff] }
  0x21   : > { %360 = vst [vmem:[%s1151_s30 + $0xf0] sm:$0xff] %v359_v30  ;;  %362 = vst [vmem:[%s1151_s30 + $0xf8] sm:$0xff] %v361_v31 }
  0x22 PF: > { %p903_p6 = scmp.ge.s32.totalorder %s1076_s19, 1  ;;  %p383_p7 = scmp.lt.s32.totalorder %s1076_s19, 3 }
  0x24   : > { %p384_p8 = pnand %p903_p6, %p383_p7 }
  0x25   : > { %s390_s5 = sand.u32 (!%p384_p8), 1, %s1060_s15   ;;  %v1220_v32 = vld [vmem:[%s1285_s0] sm:$0xff] (!%p384_p8)  ;;  %s905_s10 = sshll.u32 (!%p384_p8), %s1068_s17, 1  ;;  %v728_v3 = vlaneseq (!%p384_p8) }
  0x26   : > { %387 = sbr.rel (%p384_p8) target bundleno = 325 (0x145), region = 70  ;;  %s904_s8 = sshll.u32 (!%p384_p8), %s390_s5, 8  ;;  %v910_v33 = vcombine.high (!%p384_p8), %v1220_v32, %v1220_v32  ;;  %v909_v2 = vcombine.low (!%p384_p8), %v1220_v32, %v1220_v32 }
  0x27   : > { %s1224_s9 = scalar_lea.vmem (!%p384_p8), [#allocation3], %s904_s8  ;;  %p449_p9 = scmp.lt.s32.totalorder (!%p384_p8), %s905_s10, 3  ;;  %v729_v4 = vshrl.u32 (!%p384_p8), %v728_v3, 7 }
  0x28   : > { %v988_v34 = vld [vmem:[%s1224_s9 + $0x4] ss:$8 sps:$4 sm:$0xff] (!%p384_p8)   ;;  %708 = vmatprep.mubr.bf16.mxu0 (!%p384_p8), %v910_v33  ;;  %v990_v35 = vld [vmem:[%s1224_s9] ss:$8 sps:$4 sm:$0xff] (!%p384_p8)   ;;  %v991_v36 = vld [vmem:[%s1224_s9 + $0x14] ss:$8 sps:$4 sm:$0xff] (!%p384_p8)  }
  0x29   : > { %676 = vmatprep.subr.bf16.mxu0 (!%p384_p8), %v988_v34  ;;  %v993_v37 = vld [vmem:[%s1224_s9 + $0x10] ss:$8 sps:$4 sm:$0xff] (!%p384_p8)   ;;  %v994_v38 = vld [vmem:[%s1224_s9 + $0x24] ss:$8 sps:$4 sm:$0xff] (!%p384_p8)   ;;  %v996_v39 = vld [vmem:[%s1224_s9 + $0x20] ss:$8 sps:$4 sm:$0xff] (!%p384_p8)  }
  0x2a   : > { %677 = vmatpush1.bf16.msra.mxu0 (!%p384_p8), %v990_v35  ;;  %v997_v40 = vld [vmem:[%s1224_s9 + $0x34] ss:$8 sps:$4 sm:$0xff] (!%p384_p8)   ;;  %v999_v41 = vld [vmem:[%s1224_s9 + $0x30] ss:$8 sps:$4 sm:$0xff] (!%p384_p8)   ;;  %v1000_v42 = vld [vmem:[%s1224_s9 + $0x44] ss:$8 sps:$4 sm:$0xff] (!%p384_p8)  }
  0x2b   : > { %678 = vmatprep.subr.bf16.mxu0 (!%p384_p8), %v991_v36  ;;  %v1002_v43 = vld [vmem:[%s1224_s9 + $0x40] ss:$8 sps:$4 sm:$0xff] (!%p384_p8)   ;;  %v1003_v44 = vld [vmem:[%s1224_s9 + $0x54] ss:$8 sps:$4 sm:$0xff] (!%p384_p8)   ;;  %v1005_v45 = vld [vmem:[%s1224_s9 + $0x50] ss:$8 sps:$4 sm:$0xff] (!%p384_p8)  }
  0x2c   : > { %v1006_v46 = vld [vmem:[%s1224_s9 + $0x64] ss:$8 sps:$4 sm:$0xff] (!%p384_p8)   ;;  %v1008_v47 = vld [vmem:[%s1224_s9 + $0x60] ss:$8 sps:$4 sm:$0xff] (!%p384_p8)   ;;  %v1009_v48 = vld [vmem:[%s1224_s9 + $0x74] ss:$8 sps:$4 sm:$0xff] (!%p384_p8)  }
  0x2d   : > { %v1011_v49 = vld [vmem:[%s1224_s9 + $0x70] ss:$8 sps:$4 sm:$0xff]   ;;  %v1012_v50 = vld [vmem:[%s1224_s9 + $0x84] ss:$8 sps:$4 sm:$0xff]   ;;  %v1014_v51 = vld [vmem:[%s1224_s9 + $0x80] ss:$8 sps:$4 sm:$0xff]  }
  0x2e   : > { %679 = vmatpush1.bf16.msra.mxu0 %v993_v37  ;;  %v1015_v52 = vld [vmem:[%s1224_s9 + $0x94] ss:$8 sps:$4 sm:$0xff]   ;;  %v1017_v53 = vld [vmem:[%s1224_s9 + $0x90] ss:$8 sps:$4 sm:$0xff]   ;;  %v1018_v54 = vld [vmem:[%s1224_s9 + $0xa4] ss:$8 sps:$4 sm:$0xff]  }
  0x2f   : > { %680 = vmatprep.subr.bf16.mxu0 %v994_v38  ;;  %v1020_v55 = vld [vmem:[%s1224_s9 + $0xa0] ss:$8 sps:$4 sm:$0xff]   ;;  %v1021_v56 = vld [vmem:[%s1224_s9 + $0xb4] ss:$8 sps:$4 sm:$0xff]   ;;  %v1023_v57 = vld [vmem:[%s1224_s9 + $0xb0] ss:$8 sps:$4 sm:$0xff]  }
  0x30   : > { %v1024_v58 = vld [vmem:[%s1224_s9 + $0xc4] ss:$8 sps:$4 sm:$0xff]   ;;  %v1026_v59 = vld [vmem:[%s1224_s9 + $0xc0] ss:$8 sps:$4 sm:$0xff]   ;;  %v1027_v60 = vld [vmem:[%s1224_s9 + $0xd4] ss:$8 sps:$4 sm:$0xff]  }
  0x31   : > { %v1029_v61 = vld [vmem:[%s1224_s9 + $0xd0] ss:$8 sps:$4 sm:$0xff]   ;;  %v1030_v62 = vld [vmem:[%s1224_s9 + $0xe4] ss:$8 sps:$4 sm:$0xff]   ;;  %v1032_v63 = vld [vmem:[%s1224_s9 + $0xe0] ss:$8 sps:$4 sm:$0xff]  }
  0x32   : > { %681 = vmatpush1.bf16.msra.mxu0 %v996_v39  ;;  %v1033_v0 = vld [vmem:[%s1224_s9 + $0xf4] ss:$8 sps:$4 sm:$0xff]   ;;  %v1035_v1 = vld [vmem:[%s1224_s9 + $0xf0] ss:$8 sps:$4 sm:$0xff]   ;;  %s1297_s10 = smov (!%p449_p9, %s905_s10), 3  ;;  %v730_v5 = vsub.s32 0, %v729_v4 }
  0x33   : > { %682 = vmatprep.subr.bf16.mxu0 %v997_v40  ;;  %s451_s13 = scalar_lea.vmem %s1287_s2, %s1297_s10  ;;  %s456_s21 = scalar_lea.vmem %s1288_s3, %s1297_s10  ;;  %v734_v7 = vsub.s32 1, %v729_v4 }
  0x34   : > { %v726_v6 = vld [vmem:[%s451_s13] sm:$0x3]  ;;  %s908_s17 = sshll.u32 %s1297_s10, 2 }
  0x35   : > { %v740_v8 = vld [vmem:[%s456_s21] sm:$0x3]  ;;  %v731_v9 = vrot.slane %v726_v6, %v730_v5  ;;  %v735_v10 = vrot.slane %v726_v6, %v734_v7  ;;  %s466_s25 = scalar_lea.vmem %s1289_s4, %s908_s17 }
  0x36   : > { %683 = vmatpush1.bf16.msra.mxu0 %v999_v41  ;;  %v745_v11 = vrot.slane %v740_v8, %v730_v5  ;;  %v749_v13 = vrot.slane %v740_v8, %v734_v7 }
  0x37   : > { %684 = vmatprep.subr.bf16.mxu0 %v1000_v42 }
  0x3a   : > { %685 = vmatpush1.bf16.msra.mxu0 %v1002_v43 }
  0x3b   : > { %686 = vmatprep.subr.bf16.mxu0 %v1003_v44 }
  0x3e   : > { %687 = vmatpush1.bf16.msra.mxu0 %v1005_v45 }
  0x3f   : > { %688 = vmatprep.subr.bf16.mxu0 %v1006_v46 }
  0x42   : > { %689 = vmatpush1.bf16.msra.mxu0 %v1008_v47 }
  0x43   : > { %690 = vmatprep.subr.bf16.mxu0 %v1009_v48 }
  0x46   : > { %691 = vmatpush1.bf16.msra.mxu0 %v1011_v49 }
  0x47   : > { %692 = vmatprep.subr.bf16.mxu0 %v1012_v50 }
  0x4a   : > { %693 = vmatpush1.bf16.msra.mxu0 %v1014_v51 }
  0x4b   : > { %694 = vmatprep.subr.bf16.mxu0 %v1015_v52 }
  0x4e   : > { %695 = vmatpush1.bf16.msra.mxu0 %v1017_v53 }
  0x4f   : > { %696 = vmatprep.subr.bf16.mxu0 %v1018_v54 }
  0x52   : > { %697 = vmatpush1.bf16.msra.mxu0 %v1020_v55 }
  0x53   : > { %698 = vmatprep.subr.bf16.mxu0 %v1021_v56 }
  0x56   : > { %699 = vmatpush1.bf16.msra.mxu0 %v1023_v57 }
  0x57   : > { %700 = vmatprep.subr.bf16.mxu0 %v1024_v58 }
  0x5a   : > { %701 = vmatpush1.bf16.msra.mxu0 %v1026_v59 }
  0x5b   : > { %702 = vmatprep.subr.bf16.mxu0 %v1027_v60 }
  0x5e   : > { %703 = vmatpush1.bf16.msra.mxu0 %v1029_v61 }
  0x5f   : > { %704 = vmatprep.subr.bf16.mxu0 %v1030_v62 }
  0x62   : > { %705 = vmatpush1.bf16.msra.mxu0 %v1032_v63 }
  0x63   : > { %706 = vmatprep.subr.bf16.mxu0 %v1033_v0 }
  0x66   : > { %707 = vmatpush1.bf16.msra.mxu0 %v1035_v1 }
  0x69   : > { %709 = vmatmul.mubr.bf16.vlgmr.msra.gmra.mrb[0].mxu0 %v909_v2 }
 0x13c   : > { %v710_v12 = vpop.f32.mrb[0].mxu0 }
 0x13d   : > { %v738_v14 = vmul.f32 %v731_v9, %v710_v12  ;;  %v712_v15 = vpop.f32.mrb[1].mxu0 }
 0x13e   : > { %v739_v16 = vmul.f32 %v735_v10, %v712_v15  ;;  %v714_v17 = vpop.f32.mrb[2].mxu0 }
 0x13f   : > { %v752_v18 = vadd.f32 %v745_v11, %v738_v14  ;;  %v715_v19 = vpop.f32.mrb[3].mxu0 }
 0x140   : > { %v753_v20 = vadd.f32 %v749_v13, %v739_v16 }
 0x142   : > { %v947_v21 = vpack.c.bf16 %v753_v20, %v752_v18 }
 0x144   : > { %762 = vst [vmem:[%s466_s25] sm:$0xff] %v947_v21 }
 0x145 PF: > { %s14_s19 = sadd.s32 1, %s1076_s19   ;;  %s1290_s15 = smov %s1064_s16 }
 0x146   : > { %p11_p10 = scmp.ge.s32.totalorder %s14_s19, 4   ;;  %s1291_s16 = smov %s1138_s23 }
 0x147   : > { %s1292_s17 = smov %s1072_s18  ;;  %s1293_s18 = smov %s1295_s20 }
 0x148   :  { %13 = sbr.rel (!%p11_p10) target bundleno = 3 (0x3), region = 126 }

// kernel: resnet18_forward.40
= control target key start
LH: loop header
LB: loop body
LE: loop exit
PB: predicated region body
PF: predicated region fallthrough
CT: control target
= control target key end

     0   :  { %s1691_s18 = smov 0   ;;  %s1693_s19 = smov 0   ;;  %s2017_s0 = inlined_call_operand.vmem [shape: bf16[8,4608], index: 0, kind: input, shape index: {}]   ;;  %s2018_s1 = inlined_call_operand.vmem [shape: bf16[4608,512], index: 1, kind: input, shape index: {}]   ;;  %s2019_s2 = inlined_call_operand.vmem [shape: f32[1,512], index: 2, kind: input, shape index: {}]   ;;  %s2020_s3 = inlined_call_operand.vmem [shape: f32[1,512], index: 3, kind: input, shape index: {}]   ;;  %s2021_s4 = inlined_call_operand.vmem [shape: bf16[8,512], index: 4, kind: input, shape index: {}]   ;;  %s2022_s5 = inlined_call_operand.vmem [shape: bf16[8,512], index: 5, kind: output, shape index: {}]  }
   0x1   :  { %s1695_s20 = smov 0   ;;  %s1697_s21 = smov 0  }
   0x2   :  { %s1699_s22 = smov 0   ;;  %s1701_s23 = smov 0  }
   0x3   :  { %s1703_s24 = smov 0  }
   0x4 LB: > { %s27_s25 = sadd.s32 1, %s1650_s22  ;;  %s30_s26 = sadd.s32 1, %s1654_s23  ;;  %s1658_s24 = sphi %s1703_s24, %s15_s24   ;;  %s1654_s23 = sphi %s1701_s23, %s2028_s23   ;;  %s1650_s22 = sphi %s1699_s22, %s2027_s22   ;;  %s1646_s21 = sphi %s1697_s21, %s2026_s21   ;;  %s1642_s20 = sphi %s1695_s20, %s2025_s20   ;;  %s1638_s19 = sphi %s1693_s19, %s2024_s19   ;;  %s1634_s18 = sphi %s1691_s18, %s2023_s18  }
   0x5   : > { %p28_p0 = scmp.ge.s32.totalorder %s27_s25, 9  ;;  %p78_p1 = scmp.ne.s32.totalorder %s1638_s19, %s1634_s18 }
   0x6   : > { %p79_p2 = scmp.eq.s32.totalorder %s1658_s24, 0  ;;  %s71_s30 = sadd.s32 1, %s1638_s19 }
   0x7   : > { %s2030_s25 = smov (%p28_p0, %s27_s25), 0  ;;  %s2032_s26 = smov (!%p28_p0, %s30_s26), %s1654_s23 }
   0x8   : > { %p80_p3 = por %p79_p2, %p78_p1  ;;  %p32_p4 = scmp.ge.s32.totalorder %s2032_s26, 2 }
   0x9   : > { %s66_s27 = ssub.s32 %s1650_s22, %s2030_s25  ;;  %p1356_p6 = scmp.ge.s32.totalorder %s1658_s24, 18 }
   0xa   : > { %s2034_s26 = smov (%p32_p4, %s2032_s26), 0 }
   0xb   : > { %s67_s28 = ssub.s32 %s1654_s23, %s2034_s26  ;;  %212 = sbr.rel (%p1356_p6) target bundleno = 57 (0x39), region = 16 }
   0xc   : > { %s68_s29 = sor.u32 %s67_s28, %s66_s27 }
   0xd   : > { %p69_p5 = scmp.eq.s32.totalorder %s68_s29, 0 }
   0xf   : > { %s1742_s6 = scalar_select %p69_p5, %s1638_s19, %s71_s30  }
  0x12   : > { %228 = sbr.rel (!%p80_p3) target bundleno = 57 (0x39), region = 24  ;;  %s230_s7 = sand.u32 (%p80_p3), 1, %s1638_s19  }
  0x13   : > { %s1359_s8 = sshll.u32 (%p80_p3), %s1654_s23, 1  ;;  %s1357_s9 = sshll.u32 (%p80_p3), %s230_s7, 9 }
  0x14   : > { %s1445_s10 = sshll.u32 (%p80_p3), %s1650_s22, 8  ;;  %s1756_s16 = scalar_lea.vmem (%p80_p3), [#allocation3], %s1357_s9 }
  0x15   : > { %s236_s11 = sadd.s32 (%p80_p3), %s1445_s10, %s1359_s8 }
  0x16   : > { %s1361_s12 = sshll.u32 (%p80_p3), %s236_s11, 2 }
  0x17   : > { %s1751_s15 = scalar_lea.vmem (%p80_p3), %s2018_s1, %s1361_s12 }
  0x18   : > { %v392_v0 = vld [vmem:[%s1751_s15] sm:$0xff] (%p80_p3)  ;;  %v394_v1 = vld [vmem:[%s1751_s15 + $0x10] sm:$0xff] (%p80_p3) }
  0x19   : > { %v396_v2 = vld [vmem:[%s1751_s15 + $0x20] sm:$0xff]  ;;  %393 = vst [vmem:[%s1756_s16] sm:$0xff] %v392_v0  ;;  %395 = vst [vmem:[%s1756_s16 + $0x8] sm:$0xff] %v394_v1  ;;  %v398_v3 = vld [vmem:[%s1751_s15 + $0x30] sm:$0xff] }
  0x1a   : > { %397 = vst [vmem:[%s1756_s16 + $0x10] sm:$0xff] %v396_v2  ;;  %v400_v4 = vld [vmem:[%s1751_s15 + $0x40] sm:$0xff]  ;;  %v402_v5 = vld [vmem:[%s1751_s15 + $0x50] sm:$0xff]  ;;  %399 = vst [vmem:[%s1756_s16 + $0x18] sm:$0xff] %v398_v3 }
  0x1b   : > { %401 = vst [vmem:[%s1756_s16 + $0x20] sm:$0xff] %v400_v4  ;;  %403 = vst [vmem:[%s1756_s16 + $0x28] sm:$0xff] %v402_v5  ;;  %v404_v6 = vld [vmem:[%s1751_s15 + $0x60] sm:$0xff]  ;;  %v406_v7 = vld [vmem:[%s1751_s15 + $0x70] sm:$0xff] }
  0x1c   : > { %v408_v8 = vld [vmem:[%s1751_s15 + $0x80] sm:$0xff]  ;;  %405 = vst [vmem:[%s1756_s16 + $0x30] sm:$0xff] %v404_v6  ;;  %407 = vst [vmem:[%s1756_s16 + $0x38] sm:$0xff] %v406_v7  ;;  %v410_v9 = vld [vmem:[%s1751_s15 + $0x90] sm:$0xff] }
  0x1d   : > { %409 = vst [vmem:[%s1756_s16 + $0x40] sm:$0xff] %v408_v8  ;;  %v412_v10 = vld [vmem:[%s1751_s15 + $0xa0] sm:$0xff]  ;;  %v414_v11 = vld [vmem:[%s1751_s15 + $0xb0] sm:$0xff]  ;;  %411 = vst [vmem:[%s1756_s16 + $0x48] sm:$0xff] %v410_v9 }
  0x1e   : > { %413 = vst [vmem:[%s1756_s16 + $0x50] sm:$0xff] %v412_v10  ;;  %415 = vst [vmem:[%s1756_s16 + $0x58] sm:$0xff] %v414_v11  ;;  %v416_v12 = vld [vmem:[%s1751_s15 + $0xc0] sm:$0xff]  ;;  %v418_v13 = vld [vmem:[%s1751_s15 + $0xd0] sm:$0xff] }
  0x1f   : > { %v420_v14 = vld [vmem:[%s1751_s15 + $0xe0] sm:$0xff]  ;;  %417 = vst [vmem:[%s1756_s16 + $0x60] sm:$0xff] %v416_v12  ;;  %419 = vst [vmem:[%s1756_s16 + $0x68] sm:$0xff] %v418_v13  ;;  %v422_v15 = vld [vmem:[%s1751_s15 + $0xf0] sm:$0xff] }
  0x20   : > { %421 = vst [vmem:[%s1756_s16 + $0x70] sm:$0xff] %v420_v14  ;;  %v424_v16 = vld [vmem:[%s1751_s15 + $0x100] sm:$0xff]  ;;  %v426_v17 = vld [vmem:[%s1751_s15 + $0x110] sm:$0xff]  ;;  %423 = vst [vmem:[%s1756_s16 + $0x78] sm:$0xff] %v422_v15 }
  0x21   : > { %425 = vst [vmem:[%s1756_s16 + $0x80] sm:$0xff] %v424_v16  ;;  %427 = vst [vmem:[%s1756_s16 + $0x88] sm:$0xff] %v426_v17  ;;  %v428_v18 = vld [vmem:[%s1751_s15 + $0x120] sm:$0xff]  ;;  %v430_v19 = vld [vmem:[%s1751_s15 + $0x130] sm:$0xff] }
  0x22   : > { %v432_v20 = vld [vmem:[%s1751_s15 + $0x140] sm:$0xff]  ;;  %429 = vst [vmem:[%s1756_s16 + $0x90] sm:$0xff] %v428_v18  ;;  %431 = vst [vmem:[%s1756_s16 + $0x98] sm:$0xff] %v430_v19  ;;  %v434_v21 = vld [vmem:[%s1751_s15 + $0x150] sm:$0xff] }
  0x23   : > { %433 = vst [vmem:[%s1756_s16 + $0xa0] sm:$0xff] %v432_v20  ;;  %v436_v22 = vld [vmem:[%s1751_s15 + $0x160] sm:$0xff]  ;;  %v438_v23 = vld [vmem:[%s1751_s15 + $0x170] sm:$0xff]  ;;  %435 = vst [vmem:[%s1756_s16 + $0xa8] sm:$0xff] %v434_v21 }
  0x24   : > { %437 = vst [vmem:[%s1756_s16 + $0xb0] sm:$0xff] %v436_v22  ;;  %439 = vst [vmem:[%s1756_s16 + $0xb8] sm:$0xff] %v438_v23  ;;  %v440_v24 = vld [vmem:[%s1751_s15 + $0x180] sm:$0xff]  ;;  %v442_v25 = vld [vmem:[%s1751_s15 + $0x190] sm:$0xff] }
  0x25   : > { %v444_v26 = vld [vmem:[%s1751_s15 + $0x1a0] sm:$0xff]  ;;  %441 = vst [vmem:[%s1756_s16 + $0xc0] sm:$0xff] %v440_v24  ;;  %443 = vst [vmem:[%s1756_s16 + $0xc8] sm:$0xff] %v442_v25  ;;  %v446_v27 = vld [vmem:[%s1751_s15 + $0x1b0] sm:$0xff] }
  0x26   : > { %445 = vst [vmem:[%s1756_s16 + $0xd0] sm:$0xff] %v444_v26  ;;  %v448_v28 = vld [vmem:[%s1751_s15 + $0x1c0] sm:$0xff]  ;;  %v450_v29 = vld [vmem:[%s1751_s15 + $0x1d0] sm:$0xff]  ;;  %447 = vst [vmem:[%s1756_s16 + $0xd8] sm:$0xff] %v446_v27 }
  0x27   : > { %449 = vst [vmem:[%s1756_s16 + $0xe0] sm:$0xff] %v448_v28  ;;  %451 = vst [vmem:[%s1756_s16 + $0xe8] sm:$0xff] %v450_v29  ;;  %v452_v30 = vld [vmem:[%s1751_s15 + $0x1e0] sm:$0xff]  ;;  %v454_v31 = vld [vmem:[%s1751_s15 + $0x1f0] sm:$0xff] }
  0x28   : > { %v456_v32 = vld [vmem:[%s1751_s15 + $0x200] sm:$0xff]  ;;  %453 = vst [vmem:[%s1756_s16 + $0xf0] sm:$0xff] %v452_v30  ;;  %455 = vst [vmem:[%s1756_s16 + $0xf8] sm:$0xff] %v454_v31  ;;  %v458_v33 = vld [vmem:[%s1751_s15 + $0x210] sm:$0xff] }
  0x29   : > { %457 = vst [vmem:[%s1756_s16 + $0x100] sm:$0xff] %v456_v32  ;;  %v460_v34 = vld [vmem:[%s1751_s15 + $0x220] sm:$0xff]  ;;  %v462_v35 = vld [vmem:[%s1751_s15 + $0x230] sm:$0xff]  ;;  %459 = vst [vmem:[%s1756_s16 + $0x108] sm:$0xff] %v458_v33 }
  0x2a   : > { %461 = vst [vmem:[%s1756_s16 + $0x110] sm:$0xff] %v460_v34  ;;  %463 = vst [vmem:[%s1756_s16 + $0x118] sm:$0xff] %v462_v35  ;;  %v464_v36 = vld [vmem:[%s1751_s15 + $0x240] sm:$0xff]  ;;  %v466_v37 = vld [vmem:[%s1751_s15 + $0x250] sm:$0xff] }
  0x2b   : > { %v468_v38 = vld [vmem:[%s1751_s15 + $0x260] sm:$0xff]  ;;  %465 = vst [vmem:[%s1756_s16 + $0x120] sm:$0xff] %v464_v36  ;;  %467 = vst [vmem:[%s1756_s16 + $0x128] sm:$0xff] %v466_v37  ;;  %v470_v39 = vld [vmem:[%s1751_s15 + $0x270] sm:$0xff] }
  0x2c   : > { %469 = vst [vmem:[%s1756_s16 + $0x130] sm:$0xff] %v468_v38  ;;  %v472_v40 = vld [vmem:[%s1751_s15 + $0x280] sm:$0xff]  ;;  %v474_v41 = vld [vmem:[%s1751_s15 + $0x290] sm:$0xff]  ;;  %471 = vst [vmem:[%s1756_s16 + $0x138] sm:$0xff] %v470_v39 }
  0x2d   : > { %473 = vst [vmem:[%s1756_s16 + $0x140] sm:$0xff] %v472_v40  ;;  %475 = vst [vmem:[%s1756_s16 + $0x148] sm:$0xff] %v474_v41  ;;  %v476_v42 = vld [vmem:[%s1751_s15 + $0x2a0] sm:$0xff]  ;;  %v478_v43 = vld [vmem:[%s1751_s15 + $0x2b0] sm:$0xff] }
  0x2e   : > { %v480_v44 = vld [vmem:[%s1751_s15 + $0x2c0] sm:$0xff]  ;;  %477 = vst [vmem:[%s1756_s16 + $0x150] sm:$0xff] %v476_v42  ;;  %479 = vst [vmem:[%s1756_s16 + $0x158] sm:$0xff] %v478_v43  ;;  %v482_v45 = vld [vmem:[%s1751_s15 + $0x2d0] sm:$0xff] }
  0x2f   : > { %481 = vst [vmem:[%s1756_s16 + $0x160] sm:$0xff] %v480_v44  ;;  %v484_v46 = vld [vmem:[%s1751_s15 + $0x2e0] sm:$0xff]  ;;  %v486_v47 = vld [vmem:[%s1751_s15 + $0x2f0] sm:$0xff]  ;;  %483 = vst [vmem:[%s1756_s16 + $0x168] sm:$0xff] %v482_v45 }
  0x30   : > { %485 = vst [vmem:[%s1756_s16 + $0x170] sm:$0xff] %v484_v46  ;;  %487 = vst [vmem:[%s1756_s16 + $0x178] sm:$0xff] %v486_v47  ;;  %v488_v48 = vld [vmem:[%s1751_s15 + $0x300] sm:$0xff]  ;;  %v490_v49 = vld [vmem:[%s1751_s15 + $0x310] sm:$0xff] }
  0x31   : > { %v492_v50 = vld [vmem:[%s1751_s15 + $0x320] sm:$0xff]  ;;  %489 = vst [vmem:[%s1756_s16 + $0x180] sm:$0xff] %v488_v48  ;;  %491 = vst [vmem:[%s1756_s16 + $0x188] sm:$0xff] %v490_v49  ;;  %v494_v51 = vld [vmem:[%s1751_s15 + $0x330] sm:$0xff] }
  0x32   : > { %493 = vst [vmem:[%s1756_s16 + $0x190] sm:$0xff] %v492_v50  ;;  %v496_v52 = vld [vmem:[%s1751_s15 + $0x340] sm:$0xff]  ;;  %v498_v53 = vld [vmem:[%s1751_s15 + $0x350] sm:$0xff]  ;;  %495 = vst [vmem:[%s1756_s16 + $0x198] sm:$0xff] %v494_v51 }
  0x33   : > { %497 = vst [vmem:[%s1756_s16 + $0x1a0] sm:$0xff] %v496_v52  ;;  %499 = vst [vmem:[%s1756_s16 + $0x1a8] sm:$0xff] %v498_v53  ;;  %v500_v54 = vld [vmem:[%s1751_s15 + $0x360] sm:$0xff]  ;;  %v502_v55 = vld [vmem:[%s1751_s15 + $0x370] sm:$0xff] }
  0x34   : > { %v504_v56 = vld [vmem:[%s1751_s15 + $0x380] sm:$0xff]  ;;  %501 = vst [vmem:[%s1756_s16 + $0x1b0] sm:$0xff] %v500_v54  ;;  %503 = vst [vmem:[%s1756_s16 + $0x1b8] sm:$0xff] %v502_v55  ;;  %v506_v57 = vld [vmem:[%s1751_s15 + $0x390] sm:$0xff] }
  0x35   : > { %505 = vst [vmem:[%s1756_s16 + $0x1c0] sm:$0xff] %v504_v56  ;;  %v508_v58 = vld [vmem:[%s1751_s15 + $0x3a0] sm:$0xff]  ;;  %v510_v59 = vld [vmem:[%s1751_s15 + $0x3b0] sm:$0xff]  ;;  %507 = vst [vmem:[%s1756_s16 + $0x1c8] sm:$0xff] %v506_v57 }
  0x36   : > { %509 = vst [vmem:[%s1756_s16 + $0x1d0] sm:$0xff] %v508_v58  ;;  %511 = vst [vmem:[%s1756_s16 + $0x1d8] sm:$0xff] %v510_v59  ;;  %v512_v60 = vld [vmem:[%s1751_s15 + $0x3c0] sm:$0xff]  ;;  %v514_v61 = vld [vmem:[%s1751_s15 + $0x3d0] sm:$0xff] }
  0x37   : > { %v516_v62 = vld [vmem:[%s1751_s15 + $0x3e0] sm:$0xff]  ;;  %513 = vst [vmem:[%s1756_s16 + $0x1e0] sm:$0xff] %v512_v60  ;;  %515 = vst [vmem:[%s1756_s16 + $0x1e8] sm:$0xff] %v514_v61  ;;  %v518_v63 = vld [vmem:[%s1751_s15 + $0x3f0] sm:$0xff] }
  0x38   : > { %517 = vst [vmem:[%s1756_s16 + $0x1f0] sm:$0xff] %v516_v62  ;;  %519 = vst [vmem:[%s1756_s16 + $0x1f8] sm:$0xff] %v518_v63 }
  0x39 PF: > { %p1362_p7 = scmp.ge.s32.totalorder %s1658_s24, 1  ;;  %p553_p8 = scmp.lt.s32.totalorder %s1658_s24, 19 }
  0x3b   : > { %p554_p9 = pnand %p1362_p7, %p553_p8 }
  0x3c   : > { %s560_s17 = sand.u32 (!%p554_p9), 1, %s1634_s18   ;;  %s1364_s27 = sshll.u32 (!%p554_p9), %s1642_s20, 2 }
  0x3d   : > { %557 = sbr.rel (%p554_p9) target bundleno = 380 (0x17c), region = 74  ;;  %s1363_s28 = sshll.u32 (!%p554_p9), %s560_s17, 9 }
  0x3e   : > { %p620_p10 = scmp.lt.s32.totalorder (!%p554_p9), %s1364_s27, 35  ;;  %s1366_s29 = sshll.u32 (!%p554_p9), %s1646_s21, 1 }
  0x3f   : > { %p630_p11 = scmp.lt.s32.totalorder (!%p554_p9), %s1366_s29, 3  ;;  %s1914_s8 = scalar_lea.vmem (!%p554_p9), [#allocation3], %s1363_s28 }
  0x40   : > { %p1372_p12 = scmp.ne.s32.totalorder (!%p554_p9), %s1642_s20, 0 }
  0x44   : > { %s2036_s27 = smov (!%p620_p10, %s1364_s27), 35  ;;  %s2038_s29 = smov (!%p630_p11, %s1366_s29), 3 }
  0x45   : > { %s1365_s30 = sshll.u32 %s2036_s27, 2  ;;  %s632_s18 = scalar_lea.vmem %s2019_s2, %s2038_s29  ;;  %v1660_v0 = vmov (!%p1372_p12), 0.0  }
  0x46   : > { %s1891_s9 = scalar_lea.vmem %s2017_s0, %s1365_s30  ;;  %s637_s21 = scalar_lea.vmem %s2020_s3, %s2038_s29  ;;  %663 = vst [vmem:[#allocation2] sm:$0xff] (!%p1372_p12), %v1660_v0  ;;  %664 = vst [vmem:[#allocation2 + $0x8] sm:$0xff] (!%p1372_p12), %v1660_v0 }
  0x47   : > { %s1369_s14 = sshll.u32 %s2038_s29, 2  ;;  %662 = sbr.rel (%p1372_p12) target bundleno = 78 (0x4e), region = 82 }
  0x48   : > { %s1907_s17 = scalar_lea.vmem %s2021_s4, %s1369_s14  ;;  %s1912_s7 = scalar_lea.vmem %s2022_s5, %s1369_s14 }
  0x4e PF: > { %v1504_v1 = vld [vmem:[%s1914_s8 + $0x4] ss:$8 sps:$4 sm:$0xff]   ;;  %v1508_v3 = vld [vmem:[%s1914_s8] ss:$8 sps:$4 sm:$0xff]   ;;  %v1510_v5 = vld [vmem:[%s1914_s8 + $0x14] ss:$8 sps:$4 sm:$0xff]  }
  0x4f   : > { %v1506_v2 = vld [vmem:[%s1914_s8 + $0x104] ss:$8 sps:$4 sm:$0xff]   ;;  %1067 = vmatprep.subr.bf16.mxu0 %v1504_v1  ;;  %v1509_v4 = vld [vmem:[%s1914_s8 + $0x100] ss:$8 sps:$4 sm:$0xff]   ;;  %v1512_v6 = vld [vmem:[%s1914_s8 + $0x114] ss:$8 sps:$4 sm:$0xff]  }
  0x50   : > { %1108 = vmatprep.subr.bf16.mxu1 %v1506_v2  ;;  %1068 = vmatpush1.bf16.msra.mxu0 %v1508_v3  ;;  %v1514_v7 = vld [vmem:[%s1914_s8 + $0x10] ss:$8 sps:$4 sm:$0xff]   ;;  %v1516_v9 = vld [vmem:[%s1914_s8 + $0x24] ss:$8 sps:$4 sm:$0xff]   ;;  %v1520_v11 = vld [vmem:[%s1914_s8 + $0x20] ss:$8 sps:$4 sm:$0xff]  }
  0x51   : > { %1109 = vmatpush1.bf16.msra.mxu1 %v1509_v4  ;;  %1069 = vmatprep.subr.bf16.mxu0 %v1510_v5  ;;  %v1515_v8 = vld [vmem:[%s1914_s8 + $0x110] ss:$8 sps:$4 sm:$0xff]   ;;  %v1518_v10 = vld [vmem:[%s1914_s8 + $0x124] ss:$8 sps:$4 sm:$0xff]   ;;  %v1521_v12 = vld [vmem:[%s1914_s8 + $0x120] ss:$8 sps:$4 sm:$0xff]  }
  0x52   : > { %1110 = vmatprep.subr.bf16.mxu1 %v1512_v6  ;;  %v1522_v13 = vld [vmem:[%s1914_s8 + $0x34] ss:$8 sps:$4 sm:$0xff]   ;;  %v1526_v15 = vld [vmem:[%s1914_s8 + $0x30] ss:$8 sps:$4 sm:$0xff]   ;;  %v1528_v17 = vld [vmem:[%s1914_s8 + $0x44] ss:$8 sps:$4 sm:$0xff]  }
  0x53   : > { %v1524_v14 = vld [vmem:[%s1914_s8 + $0x134] ss:$8 sps:$4 sm:$0xff]   ;;  %v1527_v16 = vld [vmem:[%s1914_s8 + $0x130] ss:$8 sps:$4 sm:$0xff]   ;;  %v1530_v18 = vld [vmem:[%s1914_s8 + $0x144] ss:$8 sps:$4 sm:$0xff]  }
  0x54   : > { %1070 = vmatpush1.bf16.msra.mxu0 %v1514_v7  ;;  %v1532_v19 = vld [vmem:[%s1914_s8 + $0x40] ss:$8 sps:$4 sm:$0xff]   ;;  %v1534_v21 = vld [vmem:[%s1914_s8 + $0x54] ss:$8 sps:$4 sm:$0xff]   ;;  %v1538_v23 = vld [vmem:[%s1914_s8 + $0x50] ss:$8 sps:$4 sm:$0xff]  }
  0x55   : > { %1111 = vmatpush1.bf16.msra.mxu1 %v1515_v8  ;;  %1071 = vmatprep.subr.bf16.mxu0 %v1516_v9  ;;  %v1533_v20 = vld [vmem:[%s1914_s8 + $0x140] ss:$8 sps:$4 sm:$0xff]   ;;  %v1536_v22 = vld [vmem:[%s1914_s8 + $0x154] ss:$8 sps:$4 sm:$0xff]   ;;  %v1539_v24 = vld [vmem:[%s1914_s8 + $0x150] ss:$8 sps:$4 sm:$0xff]  }
  0x56   : > { %1112 = vmatprep.subr.bf16.mxu1 %v1518_v10  ;;  %v1540_v25 = vld [vmem:[%s1914_s8 + $0x64] ss:$8 sps:$4 sm:$0xff]   ;;  %v1544_v27 = vld [vmem:[%s1914_s8 + $0x60] ss:$8 sps:$4 sm:$0xff]   ;;  %v1546_v29 = vld [vmem:[%s1914_s8 + $0x74] ss:$8 sps:$4 sm:$0xff]  }
  0x57   : > { %v1542_v26 = vld [vmem:[%s1914_s8 + $0x164] ss:$8 sps:$4 sm:$0xff]   ;;  %v1545_v28 = vld [vmem:[%s1914_s8 + $0x160] ss:$8 sps:$4 sm:$0xff]   ;;  %v1548_v30 = vld [vmem:[%s1914_s8 + $0x174] ss:$8 sps:$4 sm:$0xff]  }
  0x58   : > { %1072 = vmatpush1.bf16.msra.mxu0 %v1520_v11  ;;  %v1550_v31 = vld [vmem:[%s1914_s8 + $0x70] ss:$8 sps:$4 sm:$0xff]   ;;  %v1552_v33 = vld [vmem:[%s1914_s8 + $0x84] ss:$8 sps:$4 sm:$0xff]   ;;  %v1556_v35 = vld [vmem:[%s1914_s8 + $0x80] ss:$8 sps:$4 sm:$0xff]  }
  0x59   : > { %1113 = vmatpush1.bf16.msra.mxu1 %v1521_v12  ;;  %1073 = vmatprep.subr.bf16.mxu0 %v1522_v13  ;;  %v1551_v32 = vld [vmem:[%s1914_s8 + $0x170] ss:$8 sps:$4 sm:$0xff]   ;;  %v1554_v34 = vld [vmem:[%s1914_s8 + $0x184] ss:$8 sps:$4 sm:$0xff]   ;;  %v1557_v36 = vld [vmem:[%s1914_s8 + $0x180] ss:$8 sps:$4 sm:$0xff]  }
  0x5a   : > { %1114 = vmatprep.subr.bf16.mxu1 %v1524_v14  ;;  %v1558_v37 = vld [vmem:[%s1914_s8 + $0x94] ss:$8 sps:$4 sm:$0xff]   ;;  %v1562_v39 = vld [vmem:[%s1914_s8 + $0x90] ss:$8 sps:$4 sm:$0xff]   ;;  %v1564_v41 = vld [vmem:[%s1914_s8 + $0xa4] ss:$8 sps:$4 sm:$0xff]  }
  0x5b   : > { %v1560_v38 = vld [vmem:[%s1914_s8 + $0x194] ss:$8 sps:$4 sm:$0xff]   ;;  %v1563_v40 = vld [vmem:[%s1914_s8 + $0x190] ss:$8 sps:$4 sm:$0xff]   ;;  %v1566_v42 = vld [vmem:[%s1914_s8 + $0x1a4] ss:$8 sps:$4 sm:$0xff]  }
  0x5c   : > { %1074 = vmatpush1.bf16.msra.mxu0 %v1526_v15  ;;  %v1568_v43 = vld [vmem:[%s1914_s8 + $0xa0] ss:$8 sps:$4 sm:$0xff]   ;;  %v1570_v45 = vld [vmem:[%s1914_s8 + $0xb4] ss:$8 sps:$4 sm:$0xff]   ;;  %v1574_v50 = vld [vmem:[%s1914_s8 + $0xb0] ss:$8 sps:$4 sm:$0xff]  }
  0x5d   : > { %1115 = vmatpush1.bf16.msra.mxu1 %v1527_v16  ;;  %1075 = vmatprep.subr.bf16.mxu0 %v1528_v17  ;;  %v1569_v44 = vld [vmem:[%s1914_s8 + $0x1a0] ss:$8 sps:$4 sm:$0xff]   ;;  %v1572_v46 = vld [vmem:[%s1914_s8 + $0x1b4] ss:$8 sps:$4 sm:$0xff]   ;;  %v1575_v51 = vld [vmem:[%s1914_s8 + $0x1b0] ss:$8 sps:$4 sm:$0xff]  }
  0x5e   : > { %1116 = vmatprep.subr.bf16.mxu1 %v1530_v18  ;;  %v667_v47 = vld [vmem:[%s1891_s9] sm:$0xff]  ;;  %v668_v49 = vld [vmem:[%s1891_s9 + $0x8] sm:$0xff]  ;;  %v1576_v53 = vld [vmem:[%s1914_s8 + $0xc4] ss:$8 sps:$4 sm:$0xff]   ;;  %p1441_p13 = scmp.ne.s32.totalorder %s1642_s20, 8 }
  0x5f   : > { %v1374_v48 = vcombine.high %v667_v47, %v667_v47  ;;  %v1376_v52 = vcombine.high %v668_v49, %v668_v49  ;;  %v1578_v54 = vld [vmem:[%s1914_s8 + $0x1c4] ss:$8 sps:$4 sm:$0xff]   ;;  %v1580_v55 = vld [vmem:[%s1914_s8 + $0xc0] ss:$8 sps:$4 sm:$0xff]   ;;  %v1582_v57 = vld [vmem:[%s1914_s8 + $0xd4] ss:$8 sps:$4 sm:$0xff]   ;;  %v1373_v5 = vcombine.low %v667_v47, %v667_v47  ;;  %v1375_v6 = vcombine.low %v668_v49, %v668_v49 }
  0x60   : > { %1076 = vmatpush1.bf16.msra.mxu0 %v1532_v19  ;;  %v1581_v56 = vld [vmem:[%s1914_s8 + $0x1c0] ss:$8 sps:$4 sm:$0xff]   ;;  %v1584_v58 = vld [vmem:[%s1914_s8 + $0x1d4] ss:$8 sps:$4 sm:$0xff]   ;;  %v1586_v59 = vld [vmem:[%s1914_s8 + $0xd0] ss:$8 sps:$4 sm:$0xff]  }
  0x61   : > { %1117 = vmatpush1.bf16.msra.mxu1 %v1533_v20  ;;  %1077 = vmatprep.subr.bf16.mxu0 %v1534_v21  ;;  %v1587_v60 = vld [vmem:[%s1914_s8 + $0x1d0] ss:$8 sps:$4 sm:$0xff]   ;;  %v1588_v61 = vld [vmem:[%s1914_s8 + $0xe4] ss:$8 sps:$4 sm:$0xff]   ;;  %v1592_v63 = vld [vmem:[%s1914_s8 + $0xe0] ss:$8 sps:$4 sm:$0xff]   ;;  %v1161_v21 = vlaneseq (!%p1441_p13) }
  0x62   : > { %1118 = vmatprep.subr.bf16.mxu1 %v1536_v22  ;;  %1099 = vmatprep.mubr.bf16.mxu0 %v1374_v48  ;;  %v1590_v62 = vld [vmem:[%s1914_s8 + $0x1e4] ss:$8 sps:$4 sm:$0xff]   ;;  %v1593_v0 = vld [vmem:[%s1914_s8 + $0x1e0] ss:$8 sps:$4 sm:$0xff]   ;;  %v1594_v1 = vld [vmem:[%s1914_s8 + $0xf4] ss:$8 sps:$4 sm:$0xff]  }
  0x63   : > { %1140 = vmatprep.mubr.bf16.mxu1 %v1376_v52  ;;  %v1596_v2 = vld [vmem:[%s1914_s8 + $0x1f4] ss:$8 sps:$4 sm:$0xff]   ;;  %v1598_v3 = vld [vmem:[%s1914_s8 + $0xf0] ss:$8 sps:$4 sm:$0xff]   ;;  %v1162_v22 = vshrl.u32 (!%p1441_p13), %v1161_v21, 7 }
  0x64   : > { %1078 = vmatpush1.bf16.msra.mxu0 %v1538_v23  ;;  %v1599_v4 = vld [vmem:[%s1914_s8 + $0x1f0] ss:$8 sps:$4 sm:$0xff]  }
  0x65   : > { %1119 = vmatpush1.bf16.msra.mxu1 %v1539_v24  ;;  %1079 = vmatprep.subr.bf16.mxu0 %v1540_v25  ;;  %v665_v8 = vld [vmem:[#allocation2] sm:$0xff]  ;;  %v666_v12 = vld [vmem:[#allocation2 + $0x8] sm:$0xff]  ;;  %v1163_v25 = vsub.s32 (!%p1441_p13), 0, %v1162_v22 }
  0x66   : > { %1120 = vmatprep.subr.bf16.mxu1 %v1542_v26  ;;  %v1159_v23 = vld [vmem:[%s632_s18] sm:$0x3] (!%p1441_p13)  ;;  %v1167_v26 = vsub.s32 (!%p1441_p13), 1, %v1162_v22 }
  0x67   : > { %v1173_v24 = vld [vmem:[%s637_s21] sm:$0x3] (!%p1441_p13) }
  0x68   : > { %1080 = vmatpush1.bf16.msra.mxu0 %v1544_v27 }
  0x69   : > { %1121 = vmatpush1.bf16.msra.mxu1 %v1545_v28  ;;  %1081 = vmatprep.subr.bf16.mxu0 %v1546_v29  ;;  %v1187_v29 = vld [vmem:[%s1907_s17] sm:$0xff] (!%p1441_p13) }
  0x6a   : > { %1122 = vmatprep.subr.bf16.mxu1 %v1548_v30  ;;  %v1164_v30 = vrot.slane (!%p1441_p13), %v1159_v23, %v1163_v25 }
  0x6c   : > { %1082 = vmatpush1.bf16.msra.mxu0 %v1550_v31  ;;  %v1168_v31 = vrot.slane (!%p1441_p13), %v1159_v23, %v1167_v26 }
  0x6d   : > { %1123 = vmatpush1.bf16.msra.mxu1 %v1551_v32  ;;  %1083 = vmatprep.subr.bf16.mxu0 %v1552_v33  ;;  %v1178_v32 = vrot.slane (!%p1441_p13), %v1173_v24, %v1163_v25  ;;  %v1182_v33 = vrot.slane (!%p1441_p13), %v1173_v24, %v1167_v26 }
  0x6e   : > { %1124 = vmatprep.subr.bf16.mxu1 %v1554_v34 }
  0x70   : > { %1084 = vmatpush1.bf16.msra.mxu0 %v1556_v35 }
  0x71   : > { %1125 = vmatpush1.bf16.msra.mxu1 %v1557_v36  ;;  %1085 = vmatprep.subr.bf16.mxu0 %v1558_v37  ;;  %v1188_v36 = vunpack.c.l.bf16 (!%p1441_p13), %v1187_v29  ;;  %v1189_v37 = vunpack.c.h.bf16 (!%p1441_p13), %v1187_v29 }
  0x72   : > { %1126 = vmatprep.subr.bf16.mxu1 %v1560_v38 }
  0x74   : > { %1086 = vmatpush1.bf16.msra.mxu0 %v1562_v39 }
  0x75   : > { %1127 = vmatpush1.bf16.msra.mxu1 %v1563_v40  ;;  %1087 = vmatprep.subr.bf16.mxu0 %v1564_v41 }
  0x76   : > { %1128 = vmatprep.subr.bf16.mxu1 %v1566_v42 }
  0x78   : > { %1088 = vmatpush1.bf16.msra.mxu0 %v1568_v43 }
  0x79   : > { %1129 = vmatpush1.bf16.msra.mxu1 %v1569_v44  ;;  %1089 = vmatprep.subr.bf16.mxu0 %v1570_v45 }
  0x7a   : > { %1130 = vmatprep.subr.bf16.mxu1 %v1572_v46 }
  0x7c   : > { %1090 = vmatpush1.bf16.msra.mxu0 %v1574_v50 }
  0x7d   : > { %1131 = vmatpush1.bf16.msra.mxu1 %v1575_v51  ;;  %1091 = vmatprep.subr.bf16.mxu0 %v1576_v53 }
  0x7e   : > { %1132 = vmatprep.subr.bf16.mxu1 %v1578_v54 }
  0x80   : > { %1092 = vmatpush1.bf16.msra.mxu0 %v1580_v55 }
  0x81   : > { %1133 = vmatpush1.bf16.msra.mxu1 %v1581_v56  ;;  %1093 = vmatprep.subr.bf16.mxu0 %v1582_v57 }
  0x82   : > { %1134 = vmatprep.subr.bf16.mxu1 %v1584_v58 }
  0x84   : > { %1094 = vmatpush1.bf16.msra.mxu0 %v1586_v59 }
  0x85   : > { %1135 = vmatpush1.bf16.msra.mxu1 %v1587_v60  ;;  %1095 = vmatprep.subr.bf16.mxu0 %v1588_v61 }
  0x86   : > { %1136 = vmatprep.subr.bf16.mxu1 %v1590_v62 }
  0x88   : > { %1096 = vmatpush1.bf16.msra.mxu0 %v1592_v63 }
  0x89   : > { %1137 = vmatpush1.bf16.msra.mxu1 %v1593_v0  ;;  %1097 = vmatprep.subr.bf16.mxu0 %v1594_v1 }
  0x8a   : > { %1138 = vmatprep.subr.bf16.mxu1 %v1596_v2 }
  0x8c   : > { %1098 = vmatpush1.bf16.msra.mxu0 %v1598_v3 }
  0x8d   : > { %1139 = vmatpush1.bf16.msra.mxu1 %v1599_v4 }
  0x8f   : > { %1100 = vmatmul.mubr.bf16.vlgmr.msra.gmra.mrb[0].mxu0 %v1373_v5 }
  0x90   : > { %1141 = vmatmul.mubr.bf16.vlgmr.msra.gmra.mrb[0].mxu1 %v1375_v6 }
 0x162   : > { %v1101_v7 = vpop.f32.mrb[0].mxu0 }
 0x163   : > { %v1142_v9 = vpop.f32.mrb[0].mxu1  ;;  %v1103_v11 = vpop.f32.mrb[1].mxu0  ;;  %1156 = sbr.rel (%p1441_p13) target bundleno = 380 (0x17c), region = 86 }
 0x164   : > { %v1143_v10 = vadd.f32 %v1142_v9, %v1101_v7  ;;  %v1144_v13 = vpop.f32.mrb[1].mxu1  ;;  %v1105_v15 = vpop.f32.mrb[2].mxu0 }
 0x165   : > { %v1145_v14 = vadd.f32 %v1144_v13, %v1103_v11  ;;  %v1146_v16 = vpop.f32.mrb[2].mxu1  ;;  %v1106_v18 = vpop.f32.mrb[3].mxu0 }
 0x166   : > { %v1149_v17 = vadd.f32 %v1143_v10, %v665_v8  ;;  %v1147_v19 = vpop.f32.mrb[3].mxu1 }
 0x167   : > { %v1150_v20 = vadd.f32 %v1145_v14, %v666_v12 }
 0x168   : > { %1151 = vst [vmem:[#allocation2] sm:$0xff] %v1149_v17 }
 0x169   : > { %1152 = vst [vmem:[#allocation2 + $0x8] sm:$0xff] %v1150_v20 }
 0x16f   : > { %v1157_v27 = vld [vmem:[#allocation2] sm:$0xff] }
 0x170   : > { %v1158_v28 = vld [vmem:[#allocation2 + $0x8] sm:$0xff]  ;;  %v1171_v34 = vmul.f32 %v1164_v30, %v1157_v27 }
 0x171   : > { %v1172_v35 = vmul.f32 %v1168_v31, %v1158_v28 }
 0x172   : > { %v1185_v38 = vadd.f32 %v1178_v32, %v1171_v34 }
 0x173   : > { %v1186_v39 = vadd.f32 %v1182_v33, %v1172_v35 }
 0x174   : > { %v1190_v40 = vadd.f32 %v1188_v36, %v1185_v38 }
 0x175   : > { %v1191_v41 = vadd.f32 %v1189_v37, %v1186_v39 }
 0x176   : > { %v1192_v42 = vmax.f32 %v1190_v40, 0.0 }
 0x177   : > { %v1193_v43 = vmax.f32 %v1191_v41, 0.0 }
 0x179   : > { %v1446_v44 = vpack.c.bf16 %v1193_v43, %v1192_v42 }
 0x17b   : > { %1202 = vst [vmem:[%s1912_s7] sm:$0xff] %v1446_v44 }
 0x17c PF: > { %s15_s24 = sadd.s32 1, %s1658_s24   ;;  %s2023_s18 = smov %s1638_s19 }
 0x17d   : > { %p12_p0 = scmp.ge.s32.totalorder %s15_s24, 20   ;;  %s2024_s19 = smov %s1742_s6 }
 0x17e   : > { %s2025_s20 = smov %s1650_s22  ;;  %s2026_s21 = smov %s1654_s23 }
 0x17f   : > { %s2027_s22 = smov %s2030_s25  ;;  %s2028_s23 = smov %s2034_s26 }
 0x180   :  { %14 = sbr.rel (!%p12_p0) target bundleno = 4 (0x4), region = 133 }

// kernel: resnet18_forward.41
= control target key start
LH: loop header
LB: loop body
LE: loop exit
PB: predicated region body
PF: predicated region fallthrough
CT: control target
= control target key end

     0   :  { %s1598_s15 = smov 0   ;;  %s1600_s16 = smov 0   ;;  %s1918_s0 = inlined_call_operand.vmem [shape: bf16[8,4608], index: 0, kind: input, shape index: {}]   ;;  %s1919_s1 = inlined_call_operand.vmem [shape: bf16[4608,512], index: 1, kind: input, shape index: {}]   ;;  %s1920_s2 = inlined_call_operand.vmem [shape: f32[1,512], index: 2, kind: input, shape index: {}]   ;;  %s1921_s3 = inlined_call_operand.vmem [shape: f32[1,512], index: 3, kind: input, shape index: {}]   ;;  %s1922_s4 = inlined_call_operand.vmem [shape: bf16[8,512], index: 4, kind: output, shape index: {}]  }
   0x1   :  { %s1602_s17 = smov 0   ;;  %s1604_s18 = smov 0  }
   0x2   :  { %s1606_s19 = smov 0   ;;  %s1608_s20 = smov 0  }
   0x3   :  { %s1610_s21 = smov 0  }
   0x4 LB: > { %s26_s22 = sadd.s32 1, %s1562_s19  ;;  %s29_s23 = sadd.s32 1, %s1566_s20  ;;  %s1570_s21 = sphi %s1610_s21, %s14_s21   ;;  %s1566_s20 = sphi %s1608_s20, %s1928_s20   ;;  %s1562_s19 = sphi %s1606_s19, %s1927_s19   ;;  %s1558_s18 = sphi %s1604_s18, %s1926_s18   ;;  %s1554_s17 = sphi %s1602_s17, %s1925_s17   ;;  %s1550_s16 = sphi %s1600_s16, %s1924_s16   ;;  %s1546_s15 = sphi %s1598_s15, %s1923_s15  }
   0x5   : > { %p27_p0 = scmp.ge.s32.totalorder %s26_s22, 9  ;;  %p77_p1 = scmp.ne.s32.totalorder %s1550_s16, %s1546_s15 }
   0x6   : > { %p78_p2 = scmp.eq.s32.totalorder %s1570_s21, 0  ;;  %s70_s27 = sadd.s32 1, %s1550_s16 }
   0x7   : > { %s1930_s22 = smov (%p27_p0, %s26_s22), 0  ;;  %s1932_s23 = smov (!%p27_p0, %s29_s23), %s1566_s20 }
   0x8   : > { %p79_p3 = por %p78_p2, %p77_p1  ;;  %p31_p4 = scmp.ge.s32.totalorder %s1932_s23, 2 }
   0x9   : > { %s65_s24 = ssub.s32 %s1562_s19, %s1930_s22  ;;  %p1270_p6 = scmp.ge.s32.totalorder %s1570_s21, 18 }
   0xa   : > { %s1934_s23 = smov (%p31_p4, %s1932_s23), 0 }
   0xb   : > { %s66_s25 = ssub.s32 %s1566_s20, %s1934_s23  ;;  %183 = sbr.rel (%p1270_p6) target bundleno = 57 (0x39), region = 16 }
   0xc   : > { %s67_s26 = sor.u32 %s66_s25, %s65_s24 }
   0xd   : > { %p68_p5 = scmp.eq.s32.totalorder %s67_s26, 0 }
   0xf   : > { %s1649_s28 = scalar_select %p68_p5, %s1550_s16, %s70_s27  }
  0x12   : > { %199 = sbr.rel (!%p79_p3) target bundleno = 57 (0x39), region = 24  ;;  %s201_s29 = sand.u32 (%p79_p3), 1, %s1550_s16  }
  0x13   : > { %s1273_s30 = sshll.u32 (%p79_p3), %s1566_s20, 1  ;;  %s1271_s5 = sshll.u32 (%p79_p3), %s201_s29, 9 }
  0x14   : > { %s1357_s6 = sshll.u32 (%p79_p3), %s1562_s19, 8  ;;  %s1663_s12 = scalar_lea.vmem (%p79_p3), [#allocation3], %s1271_s5 }
  0x15   : > { %s207_s7 = sadd.s32 (%p79_p3), %s1357_s6, %s1273_s30 }
  0x16   : > { %s1275_s8 = sshll.u32 (%p79_p3), %s207_s7, 2 }
  0x17   : > { %s1658_s11 = scalar_lea.vmem (%p79_p3), %s1919_s1, %s1275_s8 }
  0x18   : > { %v363_v0 = vld [vmem:[%s1658_s11] sm:$0xff] (%p79_p3)  ;;  %v365_v1 = vld [vmem:[%s1658_s11 + $0x10] sm:$0xff] (%p79_p3) }
  0x19   : > { %v367_v2 = vld [vmem:[%s1658_s11 + $0x20] sm:$0xff]  ;;  %364 = vst [vmem:[%s1663_s12] sm:$0xff] %v363_v0  ;;  %366 = vst [vmem:[%s1663_s12 + $0x8] sm:$0xff] %v365_v1  ;;  %v369_v3 = vld [vmem:[%s1658_s11 + $0x30] sm:$0xff] }
  0x1a   : > { %368 = vst [vmem:[%s1663_s12 + $0x10] sm:$0xff] %v367_v2  ;;  %v371_v4 = vld [vmem:[%s1658_s11 + $0x40] sm:$0xff]  ;;  %v373_v5 = vld [vmem:[%s1658_s11 + $0x50] sm:$0xff]  ;;  %370 = vst [vmem:[%s1663_s12 + $0x18] sm:$0xff] %v369_v3 }
  0x1b   : > { %372 = vst [vmem:[%s1663_s12 + $0x20] sm:$0xff] %v371_v4  ;;  %374 = vst [vmem:[%s1663_s12 + $0x28] sm:$0xff] %v373_v5  ;;  %v375_v6 = vld [vmem:[%s1658_s11 + $0x60] sm:$0xff]  ;;  %v377_v7 = vld [vmem:[%s1658_s11 + $0x70] sm:$0xff] }
  0x1c   : > { %v379_v8 = vld [vmem:[%s1658_s11 + $0x80] sm:$0xff]  ;;  %376 = vst [vmem:[%s1663_s12 + $0x30] sm:$0xff] %v375_v6  ;;  %378 = vst [vmem:[%s1663_s12 + $0x38] sm:$0xff] %v377_v7  ;;  %v381_v9 = vld [vmem:[%s1658_s11 + $0x90] sm:$0xff] }
  0x1d   : > { %380 = vst [vmem:[%s1663_s12 + $0x40] sm:$0xff] %v379_v8  ;;  %v383_v10 = vld [vmem:[%s1658_s11 + $0xa0] sm:$0xff]  ;;  %v385_v11 = vld [vmem:[%s1658_s11 + $0xb0] sm:$0xff]  ;;  %382 = vst [vmem:[%s1663_s12 + $0x48] sm:$0xff] %v381_v9 }
  0x1e   : > { %384 = vst [vmem:[%s1663_s12 + $0x50] sm:$0xff] %v383_v10  ;;  %386 = vst [vmem:[%s1663_s12 + $0x58] sm:$0xff] %v385_v11  ;;  %v387_v12 = vld [vmem:[%s1658_s11 + $0xc0] sm:$0xff]  ;;  %v389_v13 = vld [vmem:[%s1658_s11 + $0xd0] sm:$0xff] }
  0x1f   : > { %v391_v14 = vld [vmem:[%s1658_s11 + $0xe0] sm:$0xff]  ;;  %388 = vst [vmem:[%s1663_s12 + $0x60] sm:$0xff] %v387_v12  ;;  %390 = vst [vmem:[%s1663_s12 + $0x68] sm:$0xff] %v389_v13  ;;  %v393_v15 = vld [vmem:[%s1658_s11 + $0xf0] sm:$0xff] }
  0x20   : > { %392 = vst [vmem:[%s1663_s12 + $0x70] sm:$0xff] %v391_v14  ;;  %v395_v16 = vld [vmem:[%s1658_s11 + $0x100] sm:$0xff]  ;;  %v397_v17 = vld [vmem:[%s1658_s11 + $0x110] sm:$0xff]  ;;  %394 = vst [vmem:[%s1663_s12 + $0x78] sm:$0xff] %v393_v15 }
  0x21   : > { %396 = vst [vmem:[%s1663_s12 + $0x80] sm:$0xff] %v395_v16  ;;  %398 = vst [vmem:[%s1663_s12 + $0x88] sm:$0xff] %v397_v17  ;;  %v399_v18 = vld [vmem:[%s1658_s11 + $0x120] sm:$0xff]  ;;  %v401_v19 = vld [vmem:[%s1658_s11 + $0x130] sm:$0xff] }
  0x22   : > { %v403_v20 = vld [vmem:[%s1658_s11 + $0x140] sm:$0xff]  ;;  %400 = vst [vmem:[%s1663_s12 + $0x90] sm:$0xff] %v399_v18  ;;  %402 = vst [vmem:[%s1663_s12 + $0x98] sm:$0xff] %v401_v19  ;;  %v405_v21 = vld [vmem:[%s1658_s11 + $0x150] sm:$0xff] }
  0x23   : > { %404 = vst [vmem:[%s1663_s12 + $0xa0] sm:$0xff] %v403_v20  ;;  %v407_v22 = vld [vmem:[%s1658_s11 + $0x160] sm:$0xff]  ;;  %v409_v23 = vld [vmem:[%s1658_s11 + $0x170] sm:$0xff]  ;;  %406 = vst [vmem:[%s1663_s12 + $0xa8] sm:$0xff] %v405_v21 }
  0x24   : > { %408 = vst [vmem:[%s1663_s12 + $0xb0] sm:$0xff] %v407_v22  ;;  %410 = vst [vmem:[%s1663_s12 + $0xb8] sm:$0xff] %v409_v23  ;;  %v411_v24 = vld [vmem:[%s1658_s11 + $0x180] sm:$0xff]  ;;  %v413_v25 = vld [vmem:[%s1658_s11 + $0x190] sm:$0xff] }
  0x25   : > { %v415_v26 = vld [vmem:[%s1658_s11 + $0x1a0] sm:$0xff]  ;;  %412 = vst [vmem:[%s1663_s12 + $0xc0] sm:$0xff] %v411_v24  ;;  %414 = vst [vmem:[%s1663_s12 + $0xc8] sm:$0xff] %v413_v25  ;;  %v417_v27 = vld [vmem:[%s1658_s11 + $0x1b0] sm:$0xff] }
  0x26   : > { %416 = vst [vmem:[%s1663_s12 + $0xd0] sm:$0xff] %v415_v26  ;;  %v419_v28 = vld [vmem:[%s1658_s11 + $0x1c0] sm:$0xff]  ;;  %v421_v29 = vld [vmem:[%s1658_s11 + $0x1d0] sm:$0xff]  ;;  %418 = vst [vmem:[%s1663_s12 + $0xd8] sm:$0xff] %v417_v27 }
  0x27   : > { %420 = vst [vmem:[%s1663_s12 + $0xe0] sm:$0xff] %v419_v28  ;;  %422 = vst [vmem:[%s1663_s12 + $0xe8] sm:$0xff] %v421_v29  ;;  %v423_v30 = vld [vmem:[%s1658_s11 + $0x1e0] sm:$0xff]  ;;  %v425_v31 = vld [vmem:[%s1658_s11 + $0x1f0] sm:$0xff] }
  0x28   : > { %v427_v32 = vld [vmem:[%s1658_s11 + $0x200] sm:$0xff]  ;;  %424 = vst [vmem:[%s1663_s12 + $0xf0] sm:$0xff] %v423_v30  ;;  %426 = vst [vmem:[%s1663_s12 + $0xf8] sm:$0xff] %v425_v31  ;;  %v429_v33 = vld [vmem:[%s1658_s11 + $0x210] sm:$0xff] }
  0x29   : > { %428 = vst [vmem:[%s1663_s12 + $0x100] sm:$0xff] %v427_v32  ;;  %v431_v34 = vld [vmem:[%s1658_s11 + $0x220] sm:$0xff]  ;;  %v433_v35 = vld [vmem:[%s1658_s11 + $0x230] sm:$0xff]  ;;  %430 = vst [vmem:[%s1663_s12 + $0x108] sm:$0xff] %v429_v33 }
  0x2a   : > { %432 = vst [vmem:[%s1663_s12 + $0x110] sm:$0xff] %v431_v34  ;;  %434 = vst [vmem:[%s1663_s12 + $0x118] sm:$0xff] %v433_v35  ;;  %v435_v36 = vld [vmem:[%s1658_s11 + $0x240] sm:$0xff]  ;;  %v437_v37 = vld [vmem:[%s1658_s11 + $0x250] sm:$0xff] }
  0x2b   : > { %v439_v38 = vld [vmem:[%s1658_s11 + $0x260] sm:$0xff]  ;;  %436 = vst [vmem:[%s1663_s12 + $0x120] sm:$0xff] %v435_v36  ;;  %438 = vst [vmem:[%s1663_s12 + $0x128] sm:$0xff] %v437_v37  ;;  %v441_v39 = vld [vmem:[%s1658_s11 + $0x270] sm:$0xff] }
  0x2c   : > { %440 = vst [vmem:[%s1663_s12 + $0x130] sm:$0xff] %v439_v38  ;;  %v443_v40 = vld [vmem:[%s1658_s11 + $0x280] sm:$0xff]  ;;  %v445_v41 = vld [vmem:[%s1658_s11 + $0x290] sm:$0xff]  ;;  %442 = vst [vmem:[%s1663_s12 + $0x138] sm:$0xff] %v441_v39 }
  0x2d   : > { %444 = vst [vmem:[%s1663_s12 + $0x140] sm:$0xff] %v443_v40  ;;  %446 = vst [vmem:[%s1663_s12 + $0x148] sm:$0xff] %v445_v41  ;;  %v447_v42 = vld [vmem:[%s1658_s11 + $0x2a0] sm:$0xff]  ;;  %v449_v43 = vld [vmem:[%s1658_s11 + $0x2b0] sm:$0xff] }
  0x2e   : > { %v451_v44 = vld [vmem:[%s1658_s11 + $0x2c0] sm:$0xff]  ;;  %448 = vst [vmem:[%s1663_s12 + $0x150] sm:$0xff] %v447_v42  ;;  %450 = vst [vmem:[%s1663_s12 + $0x158] sm:$0xff] %v449_v43  ;;  %v453_v45 = vld [vmem:[%s1658_s11 + $0x2d0] sm:$0xff] }
  0x2f   : > { %452 = vst [vmem:[%s1663_s12 + $0x160] sm:$0xff] %v451_v44  ;;  %v455_v46 = vld [vmem:[%s1658_s11 + $0x2e0] sm:$0xff]  ;;  %v457_v47 = vld [vmem:[%s1658_s11 + $0x2f0] sm:$0xff]  ;;  %454 = vst [vmem:[%s1663_s12 + $0x168] sm:$0xff] %v453_v45 }
  0x30   : > { %456 = vst [vmem:[%s1663_s12 + $0x170] sm:$0xff] %v455_v46  ;;  %458 = vst [vmem:[%s1663_s12 + $0x178] sm:$0xff] %v457_v47  ;;  %v459_v48 = vld [vmem:[%s1658_s11 + $0x300] sm:$0xff]  ;;  %v461_v49 = vld [vmem:[%s1658_s11 + $0x310] sm:$0xff] }
  0x31   : > { %v463_v50 = vld [vmem:[%s1658_s11 + $0x320] sm:$0xff]  ;;  %460 = vst [vmem:[%s1663_s12 + $0x180] sm:$0xff] %v459_v48  ;;  %462 = vst [vmem:[%s1663_s12 + $0x188] sm:$0xff] %v461_v49  ;;  %v465_v51 = vld [vmem:[%s1658_s11 + $0x330] sm:$0xff] }
  0x32   : > { %464 = vst [vmem:[%s1663_s12 + $0x190] sm:$0xff] %v463_v50  ;;  %v467_v52 = vld [vmem:[%s1658_s11 + $0x340] sm:$0xff]  ;;  %v469_v53 = vld [vmem:[%s1658_s11 + $0x350] sm:$0xff]  ;;  %466 = vst [vmem:[%s1663_s12 + $0x198] sm:$0xff] %v465_v51 }
  0x33   : > { %468 = vst [vmem:[%s1663_s12 + $0x1a0] sm:$0xff] %v467_v52  ;;  %470 = vst [vmem:[%s1663_s12 + $0x1a8] sm:$0xff] %v469_v53  ;;  %v471_v54 = vld [vmem:[%s1658_s11 + $0x360] sm:$0xff]  ;;  %v473_v55 = vld [vmem:[%s1658_s11 + $0x370] sm:$0xff] }
  0x34   : > { %v475_v56 = vld [vmem:[%s1658_s11 + $0x380] sm:$0xff]  ;;  %472 = vst [vmem:[%s1663_s12 + $0x1b0] sm:$0xff] %v471_v54  ;;  %474 = vst [vmem:[%s1663_s12 + $0x1b8] sm:$0xff] %v473_v55  ;;  %v477_v57 = vld [vmem:[%s1658_s11 + $0x390] sm:$0xff] }
  0x35   : > { %476 = vst [vmem:[%s1663_s12 + $0x1c0] sm:$0xff] %v475_v56  ;;  %v479_v58 = vld [vmem:[%s1658_s11 + $0x3a0] sm:$0xff]  ;;  %v481_v59 = vld [vmem:[%s1658_s11 + $0x3b0] sm:$0xff]  ;;  %478 = vst [vmem:[%s1663_s12 + $0x1c8] sm:$0xff] %v477_v57 }
  0x36   : > { %480 = vst [vmem:[%s1663_s12 + $0x1d0] sm:$0xff] %v479_v58  ;;  %482 = vst [vmem:[%s1663_s12 + $0x1d8] sm:$0xff] %v481_v59  ;;  %v483_v60 = vld [vmem:[%s1658_s11 + $0x3c0] sm:$0xff]  ;;  %v485_v61 = vld [vmem:[%s1658_s11 + $0x3d0] sm:$0xff] }
  0x37   : > { %v487_v62 = vld [vmem:[%s1658_s11 + $0x3e0] sm:$0xff]  ;;  %484 = vst [vmem:[%s1663_s12 + $0x1e0] sm:$0xff] %v483_v60  ;;  %486 = vst [vmem:[%s1663_s12 + $0x1e8] sm:$0xff] %v485_v61  ;;  %v489_v63 = vld [vmem:[%s1658_s11 + $0x3f0] sm:$0xff] }
  0x38   : > { %488 = vst [vmem:[%s1663_s12 + $0x1f0] sm:$0xff] %v487_v62  ;;  %490 = vst [vmem:[%s1663_s12 + $0x1f8] sm:$0xff] %v489_v63 }
  0x39 PF: > { %p1276_p7 = scmp.ge.s32.totalorder %s1570_s21, 1  ;;  %p511_p8 = scmp.lt.s32.totalorder %s1570_s21, 19 }
  0x3b   : > { %p512_p9 = pnand %p1276_p7, %p511_p8 }
  0x3c   : > { %s518_s13 = sand.u32 (!%p512_p9), 1, %s1546_s15   ;;  %s1278_s14 = sshll.u32 (!%p512_p9), %s1554_s17, 2 }
  0x3d   : > { %515 = sbr.rel (%p512_p9) target bundleno = 378 (0x17a), region = 70  ;;  %s1277_s24 = sshll.u32 (!%p512_p9), %s518_s13, 9 }
  0x3e   : > { %p567_p10 = scmp.lt.s32.totalorder (!%p512_p9), %s1278_s14, 35  ;;  %s1280_s25 = sshll.u32 (!%p512_p9), %s1558_s18, 1 }
  0x3f   : > { %p577_p11 = scmp.lt.s32.totalorder (!%p512_p9), %s1280_s25, 3  ;;  %s1816_s13 = scalar_lea.vmem (!%p512_p9), [#allocation3], %s1277_s24 }
  0x40   : > { %p1284_p12 = scmp.ne.s32.totalorder (!%p512_p9), %s1554_s17, 0 }
  0x44   : > { %s1936_s14 = smov (!%p567_p10, %s1278_s14), 35  ;;  %s1938_s25 = smov (!%p577_p11, %s1280_s25), 3 }
  0x45   : > { %s1279_s26 = sshll.u32 %s1936_s14, 2  ;;  %s579_s15 = scalar_lea.vmem %s1920_s2, %s1938_s25  ;;  %v1572_v0 = vmov (!%p1284_p12), 0.0  }
  0x46   : > { %s1798_s30 = scalar_lea.vmem %s1918_s0, %s1279_s26  ;;  %s584_s18 = scalar_lea.vmem %s1921_s3, %s1938_s25  ;;  %600 = vst [vmem:[#allocation2] sm:$0xff] (!%p1284_p12), %v1572_v0  ;;  %601 = vst [vmem:[#allocation2 + $0x8] sm:$0xff] (!%p1284_p12), %v1572_v0 }
  0x47   : > { %s1283_s9 = sshll.u32 %s1938_s25, 2  ;;  %599 = sbr.rel (%p1284_p12) target bundleno = 78 (0x4e), region = 78 }
  0x48   : > { %s1814_s12 = scalar_lea.vmem %s1922_s4, %s1283_s9 }
  0x4e PF: > { %v1416_v1 = vld [vmem:[%s1816_s13 + $0x4] ss:$8 sps:$4 sm:$0xff]   ;;  %v1420_v3 = vld [vmem:[%s1816_s13] ss:$8 sps:$4 sm:$0xff]   ;;  %v1422_v5 = vld [vmem:[%s1816_s13 + $0x14] ss:$8 sps:$4 sm:$0xff]  }
  0x4f   : > { %v1418_v2 = vld [vmem:[%s1816_s13 + $0x104] ss:$8 sps:$4 sm:$0xff]   ;;  %1004 = vmatprep.subr.bf16.mxu0 %v1416_v1  ;;  %v1421_v4 = vld [vmem:[%s1816_s13 + $0x100] ss:$8 sps:$4 sm:$0xff]   ;;  %v1424_v6 = vld [vmem:[%s1816_s13 + $0x114] ss:$8 sps:$4 sm:$0xff]  }
  0x50   : > { %1045 = vmatprep.subr.bf16.mxu1 %v1418_v2  ;;  %1005 = vmatpush1.bf16.msra.mxu0 %v1420_v3  ;;  %v1426_v7 = vld [vmem:[%s1816_s13 + $0x10] ss:$8 sps:$4 sm:$0xff]   ;;  %v1428_v9 = vld [vmem:[%s1816_s13 + $0x24] ss:$8 sps:$4 sm:$0xff]   ;;  %v1432_v11 = vld [vmem:[%s1816_s13 + $0x20] ss:$8 sps:$4 sm:$0xff]  }
  0x51   : > { %1046 = vmatpush1.bf16.msra.mxu1 %v1421_v4  ;;  %1006 = vmatprep.subr.bf16.mxu0 %v1422_v5  ;;  %v1427_v8 = vld [vmem:[%s1816_s13 + $0x110] ss:$8 sps:$4 sm:$0xff]   ;;  %v1430_v10 = vld [vmem:[%s1816_s13 + $0x124] ss:$8 sps:$4 sm:$0xff]   ;;  %v1433_v12 = vld [vmem:[%s1816_s13 + $0x120] ss:$8 sps:$4 sm:$0xff]  }
  0x52   : > { %1047 = vmatprep.subr.bf16.mxu1 %v1424_v6  ;;  %v1434_v13 = vld [vmem:[%s1816_s13 + $0x34] ss:$8 sps:$4 sm:$0xff]   ;;  %v1438_v15 = vld [vmem:[%s1816_s13 + $0x30] ss:$8 sps:$4 sm:$0xff]   ;;  %v1440_v17 = vld [vmem:[%s1816_s13 + $0x44] ss:$8 sps:$4 sm:$0xff]  }
  0x53   : > { %v1436_v14 = vld [vmem:[%s1816_s13 + $0x134] ss:$8 sps:$4 sm:$0xff]   ;;  %v1439_v16 = vld [vmem:[%s1816_s13 + $0x130] ss:$8 sps:$4 sm:$0xff]   ;;  %v1442_v18 = vld [vmem:[%s1816_s13 + $0x144] ss:$8 sps:$4 sm:$0xff]  }
  0x54   : > { %1007 = vmatpush1.bf16.msra.mxu0 %v1426_v7  ;;  %v1444_v19 = vld [vmem:[%s1816_s13 + $0x40] ss:$8 sps:$4 sm:$0xff]   ;;  %v1446_v21 = vld [vmem:[%s1816_s13 + $0x54] ss:$8 sps:$4 sm:$0xff]   ;;  %v1450_v23 = vld [vmem:[%s1816_s13 + $0x50] ss:$8 sps:$4 sm:$0xff]  }
  0x55   : > { %1048 = vmatpush1.bf16.msra.mxu1 %v1427_v8  ;;  %1008 = vmatprep.subr.bf16.mxu0 %v1428_v9  ;;  %v1445_v20 = vld [vmem:[%s1816_s13 + $0x140] ss:$8 sps:$4 sm:$0xff]   ;;  %v1448_v22 = vld [vmem:[%s1816_s13 + $0x154] ss:$8 sps:$4 sm:$0xff]   ;;  %v1451_v24 = vld [vmem:[%s1816_s13 + $0x150] ss:$8 sps:$4 sm:$0xff]  }
  0x56   : > { %1049 = vmatprep.subr.bf16.mxu1 %v1430_v10  ;;  %v1452_v25 = vld [vmem:[%s1816_s13 + $0x64] ss:$8 sps:$4 sm:$0xff]   ;;  %v1456_v27 = vld [vmem:[%s1816_s13 + $0x60] ss:$8 sps:$4 sm:$0xff]   ;;  %v1458_v29 = vld [vmem:[%s1816_s13 + $0x74] ss:$8 sps:$4 sm:$0xff]  }
  0x57   : > { %v1454_v26 = vld [vmem:[%s1816_s13 + $0x164] ss:$8 sps:$4 sm:$0xff]   ;;  %v1457_v28 = vld [vmem:[%s1816_s13 + $0x160] ss:$8 sps:$4 sm:$0xff]   ;;  %v1460_v30 = vld [vmem:[%s1816_s13 + $0x174] ss:$8 sps:$4 sm:$0xff]  }
  0x58   : > { %1009 = vmatpush1.bf16.msra.mxu0 %v1432_v11  ;;  %v1462_v31 = vld [vmem:[%s1816_s13 + $0x70] ss:$8 sps:$4 sm:$0xff]   ;;  %v1464_v33 = vld [vmem:[%s1816_s13 + $0x84] ss:$8 sps:$4 sm:$0xff]   ;;  %v1468_v35 = vld [vmem:[%s1816_s13 + $0x80] ss:$8 sps:$4 sm:$0xff]  }
  0x59   : > { %1050 = vmatpush1.bf16.msra.mxu1 %v1433_v12  ;;  %1010 = vmatprep.subr.bf16.mxu0 %v1434_v13  ;;  %v1463_v32 = vld [vmem:[%s1816_s13 + $0x170] ss:$8 sps:$4 sm:$0xff]   ;;  %v1466_v34 = vld [vmem:[%s1816_s13 + $0x184] ss:$8 sps:$4 sm:$0xff]   ;;  %v1469_v36 = vld [vmem:[%s1816_s13 + $0x180] ss:$8 sps:$4 sm:$0xff]  }
  0x5a   : > { %1051 = vmatprep.subr.bf16.mxu1 %v1436_v14  ;;  %v1470_v37 = vld [vmem:[%s1816_s13 + $0x94] ss:$8 sps:$4 sm:$0xff]   ;;  %v1474_v39 = vld [vmem:[%s1816_s13 + $0x90] ss:$8 sps:$4 sm:$0xff]   ;;  %v1476_v41 = vld [vmem:[%s1816_s13 + $0xa4] ss:$8 sps:$4 sm:$0xff]  }
  0x5b   : > { %v1472_v38 = vld [vmem:[%s1816_s13 + $0x194] ss:$8 sps:$4 sm:$0xff]   ;;  %v1475_v40 = vld [vmem:[%s1816_s13 + $0x190] ss:$8 sps:$4 sm:$0xff]   ;;  %v1478_v42 = vld [vmem:[%s1816_s13 + $0x1a4] ss:$8 sps:$4 sm:$0xff]  }
  0x5c   : > { %1011 = vmatpush1.bf16.msra.mxu0 %v1438_v15  ;;  %v1480_v43 = vld [vmem:[%s1816_s13 + $0xa0] ss:$8 sps:$4 sm:$0xff]   ;;  %v1482_v45 = vld [vmem:[%s1816_s13 + $0xb4] ss:$8 sps:$4 sm:$0xff]   ;;  %v1486_v50 = vld [vmem:[%s1816_s13 + $0xb0] ss:$8 sps:$4 sm:$0xff]  }
  0x5d   : > { %1052 = vmatpush1.bf16.msra.mxu1 %v1439_v16  ;;  %1012 = vmatprep.subr.bf16.mxu0 %v1440_v17  ;;  %v1481_v44 = vld [vmem:[%s1816_s13 + $0x1a0] ss:$8 sps:$4 sm:$0xff]   ;;  %v1484_v46 = vld [vmem:[%s1816_s13 + $0x1b4] ss:$8 sps:$4 sm:$0xff]   ;;  %v1487_v51 = vld [vmem:[%s1816_s13 + $0x1b0] ss:$8 sps:$4 sm:$0xff]  }
  0x5e   : > { %1053 = vmatprep.subr.bf16.mxu1 %v1442_v18  ;;  %v604_v47 = vld [vmem:[%s1798_s30] sm:$0xff]  ;;  %v605_v49 = vld [vmem:[%s1798_s30 + $0x8] sm:$0xff]  ;;  %v1488_v53 = vld [vmem:[%s1816_s13 + $0xc4] ss:$8 sps:$4 sm:$0xff]   ;;  %p1353_p13 = scmp.ne.s32.totalorder %s1554_s17, 8 }
  0x5f   : > { %v1286_v48 = vcombine.high %v604_v47, %v604_v47  ;;  %v1288_v52 = vcombine.high %v605_v49, %v605_v49  ;;  %v1490_v54 = vld [vmem:[%s1816_s13 + $0x1c4] ss:$8 sps:$4 sm:$0xff]   ;;  %v1492_v55 = vld [vmem:[%s1816_s13 + $0xc0] ss:$8 sps:$4 sm:$0xff]   ;;  %v1494_v57 = vld [vmem:[%s1816_s13 + $0xd4] ss:$8 sps:$4 sm:$0xff]   ;;  %v1285_v5 = vcombine.low %v604_v47, %v604_v47  ;;  %v1287_v6 = vcombine.low %v605_v49, %v605_v49 }
  0x60   : > { %1013 = vmatpush1.bf16.msra.mxu0 %v1444_v19  ;;  %v1493_v56 = vld [vmem:[%s1816_s13 + $0x1c0] ss:$8 sps:$4 sm:$0xff]   ;;  %v1496_v58 = vld [vmem:[%s1816_s13 + $0x1d4] ss:$8 sps:$4 sm:$0xff]   ;;  %v1498_v59 = vld [vmem:[%s1816_s13 + $0xd0] ss:$8 sps:$4 sm:$0xff]  }
  0x61   : > { %1054 = vmatpush1.bf16.msra.mxu1 %v1445_v20  ;;  %1014 = vmatprep.subr.bf16.mxu0 %v1446_v21  ;;  %v1499_v60 = vld [vmem:[%s1816_s13 + $0x1d0] ss:$8 sps:$4 sm:$0xff]   ;;  %v1500_v61 = vld [vmem:[%s1816_s13 + $0xe4] ss:$8 sps:$4 sm:$0xff]   ;;  %v1504_v63 = vld [vmem:[%s1816_s13 + $0xe0] ss:$8 sps:$4 sm:$0xff]   ;;  %v1098_v21 = vlaneseq (!%p1353_p13) }
  0x62   : > { %1055 = vmatprep.subr.bf16.mxu1 %v1448_v22  ;;  %1036 = vmatprep.mubr.bf16.mxu0 %v1286_v48  ;;  %v1502_v62 = vld [vmem:[%s1816_s13 + $0x1e4] ss:$8 sps:$4 sm:$0xff]   ;;  %v1505_v0 = vld [vmem:[%s1816_s13 + $0x1e0] ss:$8 sps:$4 sm:$0xff]   ;;  %v1506_v1 = vld [vmem:[%s1816_s13 + $0xf4] ss:$8 sps:$4 sm:$0xff]  }
  0x63   : > { %1077 = vmatprep.mubr.bf16.mxu1 %v1288_v52  ;;  %v1508_v2 = vld [vmem:[%s1816_s13 + $0x1f4] ss:$8 sps:$4 sm:$0xff]   ;;  %v1510_v3 = vld [vmem:[%s1816_s13 + $0xf0] ss:$8 sps:$4 sm:$0xff]   ;;  %v1099_v22 = vshrl.u32 (!%p1353_p13), %v1098_v21, 7 }
  0x64   : > { %1015 = vmatpush1.bf16.msra.mxu0 %v1450_v23  ;;  %v1511_v4 = vld [vmem:[%s1816_s13 + $0x1f0] ss:$8 sps:$4 sm:$0xff]  }
  0x65   : > { %1056 = vmatpush1.bf16.msra.mxu1 %v1451_v24  ;;  %1016 = vmatprep.subr.bf16.mxu0 %v1452_v25  ;;  %v602_v8 = vld [vmem:[#allocation2] sm:$0xff]  ;;  %v603_v12 = vld [vmem:[#allocation2 + $0x8] sm:$0xff]  ;;  %v1100_v25 = vsub.s32 (!%p1353_p13), 0, %v1099_v22 }
  0x66   : > { %1057 = vmatprep.subr.bf16.mxu1 %v1454_v26  ;;  %v1096_v23 = vld [vmem:[%s579_s15] sm:$0x3] (!%p1353_p13)  ;;  %v1104_v26 = vsub.s32 (!%p1353_p13), 1, %v1099_v22 }
  0x67   : > { %v1110_v24 = vld [vmem:[%s584_s18] sm:$0x3] (!%p1353_p13) }
  0x68   : > { %1017 = vmatpush1.bf16.msra.mxu0 %v1456_v27 }
  0x69   : > { %1058 = vmatpush1.bf16.msra.mxu1 %v1457_v28  ;;  %1018 = vmatprep.subr.bf16.mxu0 %v1458_v29  ;;  %v1101_v29 = vrot.slane (!%p1353_p13), %v1096_v23, %v1100_v25 }
  0x6a   : > { %1059 = vmatprep.subr.bf16.mxu1 %v1460_v30  ;;  %v1105_v30 = vrot.slane (!%p1353_p13), %v1096_v23, %v1104_v26 }
  0x6c   : > { %1019 = vmatpush1.bf16.msra.mxu0 %v1462_v31  ;;  %v1115_v31 = vrot.slane (!%p1353_p13), %v1110_v24, %v1100_v25 }
  0x6d   : > { %1060 = vmatpush1.bf16.msra.mxu1 %v1463_v32  ;;  %1020 = vmatprep.subr.bf16.mxu0 %v1464_v33  ;;  %v1119_v32 = vrot.slane (!%p1353_p13), %v1110_v24, %v1104_v26 }
  0x6e   : > { %1061 = vmatprep.subr.bf16.mxu1 %v1466_v34 }
  0x70   : > { %1021 = vmatpush1.bf16.msra.mxu0 %v1468_v35 }
  0x71   : > { %1062 = vmatpush1.bf16.msra.mxu1 %v1469_v36  ;;  %1022 = vmatprep.subr.bf16.mxu0 %v1470_v37 }
  0x72   : > { %1063 = vmatprep.subr.bf16.mxu1 %v1472_v38 }
  0x74   : > { %1023 = vmatpush1.bf16.msra.mxu0 %v1474_v39 }
  0x75   : > { %1064 = vmatpush1.bf16.msra.mxu1 %v1475_v40  ;;  %1024 = vmatprep.subr.bf16.mxu0 %v1476_v41 }
  0x76   : > { %1065 = vmatprep.subr.bf16.mxu1 %v1478_v42 }
  0x78   : > { %1025 = vmatpush1.bf16.msra.mxu0 %v1480_v43 }
  0x79   : > { %1066 = vmatpush1.bf16.msra.mxu1 %v1481_v44  ;;  %1026 = vmatprep.subr.bf16.mxu0 %v1482_v45 }
  0x7a   : > { %1067 = vmatprep.subr.bf16.mxu1 %v1484_v46 }
  0x7c   : > { %1027 = vmatpush1.bf16.msra.mxu0 %v1486_v50 }
  0x7d   : > { %1068 = vmatpush1.bf16.msra.mxu1 %v1487_v51  ;;  %1028 = vmatprep.subr.bf16.mxu0 %v1488_v53 }
  0x7e   : > { %1069 = vmatprep.subr.bf16.mxu1 %v1490_v54 }
  0x80   : > { %1029 = vmatpush1.bf16.msra.mxu0 %v1492_v55 }
  0x81   : > { %1070 = vmatpush1.bf16.msra.mxu1 %v1493_v56  ;;  %1030 = vmatprep.subr.bf16.mxu0 %v1494_v57 }
  0x82   : > { %1071 = vmatprep.subr.bf16.mxu1 %v1496_v58 }
  0x84   : > { %1031 = vmatpush1.bf16.msra.mxu0 %v1498_v59 }
  0x85   : > { %1072 = vmatpush1.bf16.msra.mxu1 %v1499_v60  ;;  %1032 = vmatprep.subr.bf16.mxu0 %v1500_v61 }
  0x86   : > { %1073 = vmatprep.subr.bf16.mxu1 %v1502_v62 }
  0x88   : > { %1033 = vmatpush1.bf16.msra.mxu0 %v1504_v63 }
  0x89   : > { %1074 = vmatpush1.bf16.msra.mxu1 %v1505_v0  ;;  %1034 = vmatprep.subr.bf16.mxu0 %v1506_v1 }
  0x8a   : > { %1075 = vmatprep.subr.bf16.mxu1 %v1508_v2 }
  0x8c   : > { %1035 = vmatpush1.bf16.msra.mxu0 %v1510_v3 }
  0x8d   : > { %1076 = vmatpush1.bf16.msra.mxu1 %v1511_v4 }
  0x8f   : > { %1037 = vmatmul.mubr.bf16.vlgmr.msra.gmra.mrb[0].mxu0 %v1285_v5 }
  0x90   : > { %1078 = vmatmul.mubr.bf16.vlgmr.msra.gmra.mrb[0].mxu1 %v1287_v6 }
 0x162   : > { %v1038_v7 = vpop.f32.mrb[0].mxu0 }
 0x163   : > { %v1079_v9 = vpop.f32.mrb[0].mxu1  ;;  %v1040_v11 = vpop.f32.mrb[1].mxu0  ;;  %1093 = sbr.rel (%p1353_p13) target bundleno = 378 (0x17a), region = 82 }
 0x164   : > { %v1080_v10 = vadd.f32 %v1079_v9, %v1038_v7  ;;  %v1081_v13 = vpop.f32.mrb[1].mxu1  ;;  %v1042_v15 = vpop.f32.mrb[2].mxu0 }
 0x165   : > { %v1082_v14 = vadd.f32 %v1081_v13, %v1040_v11  ;;  %v1083_v16 = vpop.f32.mrb[2].mxu1  ;;  %v1043_v18 = vpop.f32.mrb[3].mxu0 }
 0x166   : > { %v1086_v17 = vadd.f32 %v1080_v10, %v602_v8  ;;  %v1084_v19 = vpop.f32.mrb[3].mxu1 }
 0x167   : > { %v1087_v20 = vadd.f32 %v1082_v14, %v603_v12 }
 0x168   : > { %1088 = vst [vmem:[#allocation2] sm:$0xff] %v1086_v17 }
 0x169   : > { %1089 = vst [vmem:[#allocation2 + $0x8] sm:$0xff] %v1087_v20 }
 0x16f   : > { %v1094_v27 = vld [vmem:[#allocation2] sm:$0xff] }
 0x170   : > { %v1095_v28 = vld [vmem:[#allocation2 + $0x8] sm:$0xff]  ;;  %v1108_v33 = vmul.f32 %v1101_v29, %v1094_v27 }
 0x171   : > { %v1109_v34 = vmul.f32 %v1105_v30, %v1095_v28 }
 0x172   : > { %v1122_v35 = vadd.f32 %v1115_v31, %v1108_v33 }
 0x173   : > { %v1123_v36 = vadd.f32 %v1119_v32, %v1109_v34 }
 0x174   : > { %v1124_v37 = vmax.f32 %v1122_v35, 0.0 }
 0x175   : > { %v1125_v38 = vmax.f32 %v1123_v36, 0.0 }
 0x177   : > { %v1358_v39 = vpack.c.bf16 %v1125_v38, %v1124_v37 }
 0x179   : > { %1134 = vst [vmem:[%s1814_s12] sm:$0xff] %v1358_v39 }
 0x17a PF: > { %s14_s21 = sadd.s32 1, %s1570_s21   ;;  %s1923_s15 = smov %s1550_s16 }
 0x17b   : > { %p11_p0 = scmp.ge.s32.totalorder %s14_s21, 20   ;;  %s1924_s16 = smov %s1649_s28 }
 0x17c   : > { %s1925_s17 = smov %s1562_s19  ;;  %s1926_s18 = smov %s1566_s20 }
 0x17d   : > { %s1927_s19 = smov %s1930_s22  ;;  %s1928_s20 = smov %s1934_s23 }
 0x17e   :  { %13 = sbr.rel (!%p11_p0) target bundleno = 4 (0x4), region = 126 }

// kernel: resnet18_forward.43
= control target key start
LH: loop header
LB: loop body
LE: loop exit
PB: predicated region body
PF: predicated region fallthrough
CT: control target
= control target key end

     0   :  { %s622_s1 = inlined_call_operand.vmem [shape: bf16[512,128], index: 1, kind: input, shape index: {}]   ;;  %s623_s0 = inlined_call_operand.vmem [shape: bf16[1,8,512], index: 0, kind: input, shape index: {}]   ;;  %s624_s2 = inlined_call_operand.vmem [shape: f32[1,128], index: 2, kind: input, shape index: {}]   ;;  %s625_s3 = inlined_call_operand.vmem [shape: f32[8,128], index: 3, kind: output, shape index: {}]  }
   0x1   :  { %v458_v0 = vld [vmem:[%s622_s1 + $0x40] sm:$0xff]   ;;  %v462_v4 = vld [vmem:[%s622_s1 + $0x48] sm:$0xff]   ;;  %v466_v8 = vld [vmem:[%s622_s1 + $0x50] sm:$0xff]  }
   0x2   :  { %v459_v1 = vld [vmem:[%s622_s1 + $0xc0] sm:$0xff]   ;;  %414 = vmatprep.subr.bf16.mxu0 %v458_v0  ;;  %v463_v5 = vld [vmem:[%s622_s1 + $0xc8] sm:$0xff]   ;;  %v467_v9 = vld [vmem:[%s622_s1 + $0xd0] sm:$0xff]  }
   0x3   :  { %v460_v2 = vld [vmem:[%s622_s1] sm:$0xff]   ;;  %436 = vmatprep.subr.bf16.mxu1 %v459_v1  ;;  %v464_v6 = vld [vmem:[%s622_s1 + $0x8] sm:$0xff]   ;;  %v468_v10 = vld [vmem:[%s622_s1 + $0x10] sm:$0xff]  }
   0x4   :  { %v461_v3 = vld [vmem:[%s622_s1 + $0x80] sm:$0xff]   ;;  %415 = vmatpush3.bf16.msra.mxu0 %v460_v2  ;;  %v465_v7 = vld [vmem:[%s622_s1 + $0x88] sm:$0xff]   ;;  %v469_v11 = vld [vmem:[%s622_s1 + $0x90] sm:$0xff]  }
   0x5   :  { %437 = vmatpush3.bf16.msra.mxu1 %v461_v3  ;;  %416 = vmatprep.subr.bf16.mxu0 %v462_v4  ;;  %v470_v12 = vld [vmem:[%s622_s1 + $0x58] sm:$0xff]   ;;  %v474_v16 = vld [vmem:[%s622_s1 + $0x60] sm:$0xff]   ;;  %v478_v20 = vld [vmem:[%s622_s1 + $0x68] sm:$0xff]  }
   0x6   :  { %438 = vmatprep.subr.bf16.mxu1 %v463_v5  ;;  %v471_v13 = vld [vmem:[%s622_s1 + $0xd8] sm:$0xff]   ;;  %v475_v17 = vld [vmem:[%s622_s1 + $0xe0] sm:$0xff]   ;;  %v479_v21 = vld [vmem:[%s622_s1 + $0xe8] sm:$0xff]  }
   0x7   :  { %v472_v14 = vld [vmem:[%s622_s1 + $0x18] sm:$0xff]   ;;  %v476_v18 = vld [vmem:[%s622_s1 + $0x20] sm:$0xff]   ;;  %v480_v22 = vld [vmem:[%s622_s1 + $0x28] sm:$0xff]  }
   0x8   :  { %417 = vmatpush3.bf16.msra.mxu0 %v464_v6  ;;  %v473_v15 = vld [vmem:[%s622_s1 + $0x98] sm:$0xff]   ;;  %v477_v19 = vld [vmem:[%s622_s1 + $0xa0] sm:$0xff]   ;;  %v481_v23 = vld [vmem:[%s622_s1 + $0xa8] sm:$0xff]  }
   0x9   :  { %439 = vmatpush3.bf16.msra.mxu1 %v465_v7  ;;  %418 = vmatprep.subr.bf16.mxu0 %v466_v8  ;;  %v482_v24 = vld [vmem:[%s622_s1 + $0x70] sm:$0xff]   ;;  %v486_v28 = vld [vmem:[%s622_s1 + $0x78] sm:$0xff]   ;;  %v15_v32 = vld [vmem:[%s623_s0] sm:$0xff] }
   0xa   :  { %440 = vmatprep.subr.bf16.mxu1 %v467_v9  ;;  %v483_v25 = vld [vmem:[%s622_s1 + $0xf0] sm:$0xff]   ;;  %v487_v29 = vld [vmem:[%s622_s1 + $0xf8] sm:$0xff]   ;;  %v16_v33 = vld [vmem:[%s623_s0 + $0x8] sm:$0xff]  ;;  %v377_v34 = vcombine.low %v15_v32, %v15_v32  ;;  %v378_v35 = vcombine.high %v15_v32, %v15_v32 }
   0xb   :  { %v484_v26 = vld [vmem:[%s622_s1 + $0x30] sm:$0xff]   ;;  %v488_v30 = vld [vmem:[%s622_s1 + $0x38] sm:$0xff]   ;;  %v379_v36 = vcombine.low %v16_v33, %v16_v33  ;;  %v380_v37 = vcombine.high %v16_v33, %v16_v33  ;;  %v381_v40 = vld [vmem:[%s624_s2] ss:$0 sm:$0xff] }
   0xc   :  { %419 = vmatpush3.bf16.msra.mxu0 %v468_v10  ;;  %v485_v27 = vld [vmem:[%s622_s1 + $0xb0] sm:$0xff]   ;;  %v489_v31 = vld [vmem:[%s622_s1 + $0xb8] sm:$0xff]   ;;  %324 = vmatprep.mubr.bf16.mxu0 %v378_v35 }
   0xd   :  { %441 = vmatpush3.bf16.msra.mxu1 %v469_v11  ;;  %420 = vmatprep.subr.bf16.mxu0 %v470_v12 }
   0xe   :  { %442 = vmatprep.subr.bf16.mxu1 %v471_v13  ;;  %364 = vmatprep.mubr.bf16.mxu1 %v380_v37 }
  0x10   :  { %421 = vmatpush3.bf16.msra.mxu0 %v472_v14 }
  0x11   :  { %443 = vmatpush3.bf16.msra.mxu1 %v473_v15  ;;  %422 = vmatprep.subr.bf16.mxu0 %v474_v16 }
  0x12   :  { %444 = vmatprep.subr.bf16.mxu1 %v475_v17 }
  0x14   :  { %423 = vmatpush3.bf16.msra.mxu0 %v476_v18 }
  0x15   :  { %445 = vmatpush3.bf16.msra.mxu1 %v477_v19  ;;  %424 = vmatprep.subr.bf16.mxu0 %v478_v20 }
  0x16   :  { %446 = vmatprep.subr.bf16.mxu1 %v479_v21 }
  0x18   :  { %425 = vmatpush3.bf16.msra.mxu0 %v480_v22 }
  0x19   :  { %447 = vmatpush3.bf16.msra.mxu1 %v481_v23  ;;  %426 = vmatprep.subr.bf16.mxu0 %v482_v24 }
  0x1a   :  { %448 = vmatprep.subr.bf16.mxu1 %v483_v25 }
  0x1c   :  { %427 = vmatpush3.bf16.msra.mxu0 %v484_v26 }
  0x1d   :  { %449 = vmatpush3.bf16.msra.mxu1 %v485_v27  ;;  %428 = vmatprep.subr.bf16.mxu0 %v486_v28 }
  0x1e   :  { %450 = vmatprep.subr.bf16.mxu1 %v487_v29 }
  0x20   :  { %429 = vmatpush3.bf16.msra.mxu0 %v488_v30 }
  0x21   :  { %451 = vmatpush3.bf16.msra.mxu1 %v489_v31 }
  0x23   :  { %325 = vmatmul.mubr.bf16.vlgmr.msra.gmra.mrb[0].mxu0 %v377_v34 }
  0x24   :  { %365 = vmatmul.mubr.bf16.vlgmr.msra.gmra.mrb[0].mxu1 %v379_v36 }
  0xf6   :  { %v430_v38 = vpop.f32.mrb[0].mxu0 }
  0xf7   :  { %v452_v39 = vpop.f32.mrb[0].mxu1  ;;  %v431_v41 = vpop.f32.mrb[1].mxu0 }
  0xf8   :  { %v453_v42 = vpop.f32.mrb[1].mxu1  ;;  %v432_v43 = vadd.f32 %v431_v41, %v430_v38  ;;  %v433_v45 = vpop.f32.mrb[2].mxu0 }
  0xf9   :  { %v454_v44 = vadd.f32 %v453_v42, %v452_v39  ;;  %v455_v46 = vpop.f32.mrb[2].mxu1  ;;  %v434_v47 = vpop.f32.mrb[3].mxu0 }
  0xfa   :  { %v456_v48 = vpop.f32.mrb[3].mxu1  ;;  %v327_v49 = vadd.f32 %v432_v43, %v381_v40 }
  0xfc   :  { %v367_v50 = vadd.f32 %v454_v44, %v327_v49 }
  0xfe   :  { %372 = vst [vmem:[%s625_s3] sm:$0xff] %v367_v50 }

</bundles_post_ra>
